<compile_context>
chip_gen: v6e
topology: v6e:2x2x1
jax: 0.10.0
libtpu: 0.0.40
codegen_flags: <defaults>
</compile_context>

<pallas_src>
import functools
import math

import jax
import jax.numpy as jnp
from jax.experimental import pallas as pl
from jax.experimental.pallas import tpu as pltpu

PRELU_ALPHA = 0.25   # nn.PReLU() default (single shared scalar)
BN_EPS = 1e-5


def _round_up(x, m):
    return (x + m - 1) // m * m


def _apply_act(y, act):
    if act == "relu":
        return jnp.maximum(y, 0.0)
    if act == "prelu":
        return jnp.where(y > 0, y, PRELU_ALPHA * y)
    return y


# ---------------------------------------------------------------------------
# Pallas kernel: matmul (bf16 in, f32 acc) + fused BN scale/shift + activation
# and optionally a fused residual merge: act(act(acc*s+b) + res)
# ---------------------------------------------------------------------------
def _mm_kernel(a_ref, b_ref, scale_ref, shift_ref, o_ref, *, act):
    acc = jnp.dot(a_ref[...], b_ref[...], preferred_element_type=jnp.float32)
    y = acc * scale_ref[...] + shift_ref[...]
    o_ref[...] = _apply_act(y, act).astype(o_ref.dtype)


def _mm_res_kernel(a_ref, b_ref, scale_ref, shift_ref, res_ref, o_ref, *, act):
    acc = jnp.dot(a_ref[...], b_ref[...], preferred_element_type=jnp.float32)
    y = _apply_act(acc * scale_ref[...] + shift_ref[...], act)
    y = y + res_ref[...].astype(jnp.float32)
    o_ref[...] = _apply_act(y, act).astype(o_ref.dtype)


def _choose_tm(M):
    # Bigger row tiles for the bigger layers; >=2 blocks when M>=512 so both
    # v7x TensorCores get work.  Small layers use a single full-M block.
    if M >= 2048:
        return 512
    if M >= 512:
        return 256
    return _round_up(M, 16)


@functools.lru_cache(maxsize=None)
def _get_matmul_call(Mp, K, N, tm, act, has_res):
    in_specs = [
        pl.BlockSpec((tm, K), lambda i: (i, 0)),     # A tile (full K extent)
        pl.BlockSpec((K, N), lambda i: (0, 0)),      # full weight matrix
        pl.BlockSpec((1, N), lambda i: (0, 0)),      # BN scale
        pl.BlockSpec((1, N), lambda i: (0, 0)),      # BN shift
    ]
    if has_res:
        in_specs.append(pl.BlockSpec((tm, N), lambda i: (i, 0)))
        kernel = functools.partial(_mm_res_kernel, act=act)
    else:
        kernel = functools.partial(_mm_kernel, act=act)
    return pl.pallas_call(
        kernel,
        out_shape=jax.ShapeDtypeStruct((Mp, N), jnp.bfloat16),
        grid_spec=pltpu.PrefetchScalarGridSpec(
            num_scalar_prefetch=0,
            grid=(Mp // tm,),
            in_specs=in_specs,
            out_specs=pl.BlockSpec((tm, N), lambda i: (i, 0)),
        ),
        compiler_params=pltpu.CompilerParams(
            dimension_semantics=("parallel",)),
    )


def matmul_fused(a, b, scale, shift, act, residual=None):
    """act( [act(] (a @ b) * scale + shift [) + residual] )  -> bf16 (M, N)."""
    M, K = a.shape
    Kb, N = b.shape
    assert K == Kb
    tm = _choose_tm(M)
    Mp = _round_up(M, tm)
    Kp = _round_up(K, 16)          # keep K near its true size (no 128 padding)
    a = a.astype(jnp.bfloat16)
    b = b.astype(jnp.bfloat16)
    if (Mp, Kp) != (M, K):
        a = jnp.pad(a, ((0, Mp - M), (0, Kp - K)))
    if Kp != K:
        b = jnp.pad(b, ((0, Kp - K), (0, 0)))
    sc = scale.reshape(1, N).astype(jnp.float32)
    sh = shift.reshape(1, N).astype(jnp.float32)
    args = [a, b, sc, sh]
    if residual is not None:
        r = residual.astype(jnp.bfloat16)
        if Mp != M:
            r = jnp.pad(r, ((0, Mp - M), (0, 0)))
        args.append(r)
    out = _get_matmul_call(Mp, Kp, N, tm, act, residual is not None)(*args)
    if Mp != M:
        out = out[:M]
    return out


# ---------------------------------------------------------------------------
# Conv / pooling glue (im2col, zero-stuffing, pooling) in plain JAX, all
# inside the single outer jit so XLA fuses it.
# ---------------------------------------------------------------------------
def _im2col(x, kh, kw, stride, pad, dil):
    N, H, W, C = x.shape
    sh, sw = stride
    ph, pw = pad
    dh, dw = dil
    OH = (H + 2 * ph - dh * (kh - 1) - 1) // sh + 1
    OW = (W + 2 * pw - dw * (kw - 1) - 1) // sw + 1
    xp = jnp.pad(x, ((0, 0), (ph, ph), (pw, pw), (0, 0)))
    cols = []
    for i in range(kh):
        for j in range(kw):
            sl = xp[:, i * dh: i * dh + (OH - 1) * sh + 1: sh,
                       j * dw: j * dw + (OW - 1) * sw + 1: sw, :]
            cols.append(sl)
    return jnp.concatenate(cols, axis=-1), OH, OW


def conv_mm(x, cp, *, stride=(1, 1), pad=(0, 0), dil=(1, 1), act="none",
            residual=None):
    kh, kw, cin, cout = cp["kh"], cp["kw"], cp["cin"], cp["cout"]
    patches, OH, OW = _im2col(x, kh, kw, stride, pad, dil)
    Nb = x.shape[0]
    A = patches.reshape(Nb * OH * OW, kh * kw * cin)
    res2d = None
    if residual is not None:
        res2d = residual.reshape(Nb * OH * OW, cout)
    out = matmul_fused(A, cp["B"], cp["scale"], cp["shift"], act, res2d)
    return out.reshape(Nb, OH, OW, cout)


def _zero_stuff2(x):
    """Insert zeros between pixels (stride-2 transposed-conv input)."""
    Nb, H, W, C = x.shape
    xr = jnp.stack([x, jnp.zeros_like(x)], axis=2).reshape(Nb, 2 * H, W, C)
    xr = xr[:, :2 * H - 1]
    xc = jnp.stack([xr, jnp.zeros_like(xr)], axis=3).reshape(
        Nb, 2 * H - 1, 2 * W, C)
    return xc[:, :, :2 * W - 1]


def conv_transpose_mm(x, cp, *, padding=1, output_padding=1, act="none",
                      residual=None):
    kh, kw = cp["kh"], cp["kw"]
    xd = _zero_stuff2(x)
    plo_h, phi_h = kh - 1 - padding, kh - 1 - padding + output_padding
    plo_w, phi_w = kw - 1 - padding, kw - 1 - padding + output_padding
    xdp = jnp.pad(xd, ((0, 0), (plo_h, phi_h), (plo_w, phi_w), (0, 0)))
    return conv_mm(xdp, cp, act=act, residual=residual)


def maxpool2d(x, k, stride, pad, return_indices=False):
    N, H, W, C = x.shape
    OH = (H + 2 * pad - k) // stride + 1
    OW = (W + 2 * pad - k) // stride + 1
    xp = jnp.pad(x, ((0, 0), (pad, pad), (pad, pad), (0, 0)),
                 constant_values=-jnp.inf)
    vals, idxs = [], []
    for i in range(k):
        for j in range(k):
            sl = xp[:, i: i + (OH - 1) * stride + 1: stride,
                       j: j + (OW - 1) * stride + 1: stride, :]
            vals.append(sl)
            ih = jnp.arange(OH) * stride + i - pad
            iw = jnp.arange(OW) * stride + j - pad
            flat = ih[:, None] * W + iw[None, :]
            idxs.append(jnp.broadcast_to(flat[None, :, :, None], sl.shape))
    V = jnp.stack(vals, 0)
    out = jnp.max(V, 0)
    if not return_indices:
        return out
    I = jnp.stack(idxs, 0)
    best = jnp.argmax(V, 0)
    flat_idx = jnp.take_along_axis(I, best[None], axis=0)[0]
    return out, flat_idx.astype(jnp.int32)


def max_unpool2d(x, indices, out_hw):
    """Scatter-free MaxUnpool2d(kernel=2) for indices from a 3x3/s2/p1 pool."""
    N, H, W, C = x.shape
    OH, OW = out_hw                      # OH = 2H, OW = 2W
    ih = indices // OW
    iw = indices % OW
    dy = ih - 2 * jnp.arange(H).reshape(1, H, 1, 1)   # in {-1, 0, 1}
    dx = iw - 2 * jnp.arange(W).reshape(1, 1, W, 1)

    def tap(ddy, ddx):
        m = (dy == ddy) & (dx == ddx)
        return m, jnp.where(m, x, jnp.zeros_like(x))

    def sh_h(t):   # take contribution from row h+1
        m, v = t
        return (jnp.concatenate([m[:, 1:], jnp.zeros_like(m[:, :1])], 1),
                jnp.concatenate([v[:, 1:], jnp.zeros_like(v[:, :1])], 1))

    def sh_w(t):   # take contribution from col w+1
        m, v = t
        return (jnp.concatenate([m[:, :, 1:], jnp.zeros_like(m[:, :, :1])], 2),
                jnp.concatenate([v[:, :, 1:], jnp.zeros_like(v[:, :, :1])], 2))

    def pick(*taps):   # colliding writes carry the same value -> select, not sum
        out = jnp.zeros_like(x)
        for m, v in reversed(taps):
            out = jnp.where(m, v, out)
        return out

    ee = pick(tap(0, 0))
    eo = pick(tap(0, 1), sh_w(tap(0, -1)))
    oe = pick(tap(1, 0), sh_h(tap(-1, 0)))
    oo = pick(tap(1, 1), sh_w(tap(1, -1)), sh_h(tap(-1, 1)),
              sh_w(sh_h(tap(-1, -1))))

    row_e = jnp.stack([ee, eo], axis=3).reshape(N, H, 2 * W, C)
    row_o = jnp.stack([oe, oo], axis=3).reshape(N, H, 2 * W, C)
    return jnp.stack([row_e, row_o], axis=2).reshape(N, 2 * H, 2 * W, C)


# ---------------------------------------------------------------------------
# ENet blocks
# ---------------------------------------------------------------------------
def initial_block(x, p):
    act = p["act"]
    # Conv branch: BN (channels 0..12) + activation fused into the matmul.
    main = conv_mm(x, p["conv"], stride=(2, 2), pad=(1, 1), act=act)
    # Pool branch: 3 channels, BN+activation applied per-branch (elementwise
    # affine + act commute with channel concat).
    ext = maxpool2d(x, 3, 2, 1)
    ext = _apply_act(ext.astype(jnp.float32) * p["pool_scale"]
                     + p["pool_shift"], act).astype(jnp.bfloat16)
    return jnp.concatenate([main, ext], axis=-1)


def regular_block(x, p):
    act = p["act"]
    ext = conv_mm(x, p["c1"], act=act)
    if p["asym"]:
        pad = p["pad"]
        ext = conv_mm(ext, p["c2a"], pad=(pad, 0), act=act)
        ext = conv_mm(ext, p["c2b"], pad=(0, pad), act=act)
    else:
        ext = conv_mm(ext, p["c2"], pad=(p["pad"], p["pad"]),
                      dil=(p["dil"], p["dil"]), act=act)
    # conv3 with fused residual merge: act(act(bn(conv)) + main)
    return conv_mm(ext, p["c3"], act=act, residual=x)


def down_block(x, p):
    act = p["act"]
    main, idx = maxpool2d(x, 3, 2, 1, return_indices=True)
    ext = conv_mm(x, p["c1"], stride=(2, 2), act=act)
    ext = conv_mm(ext, p["c2"], pad=(1, 1), act=act)
    pad_c = p["c3"]["cout"] - main.shape[-1]
    main_p = jnp.pad(main, ((0, 0), (0, 0), (0, 0), (0, pad_c)))
    out = conv_mm(ext, p["c3"], act=act, residual=main_p)
    return out, idx


def up_block(x, idx, p):
    act = p["act"]
    main = conv_mm(x, p["cm"], act="none")          # conv + BN, no activation
    Nb, H, W, _ = x.shape
    main = max_unpool2d(main, idx, (2 * H, 2 * W))
    ext = conv_mm(x, p["c1"], act=act)
    ext = conv_transpose_mm(ext, p["c2"], padding=1, output_padding=1, act=act)
    return conv_mm(ext, p["c3"], act=act, residual=main)


# ---------------------------------------------------------------------------
# Deterministic parameter construction (shapes per ENet.__init__).
# Weights are pre-transposed / pre-folded (bf16 (K, N) matrices, f32 BN
# scale/shift) once, so the forward has no per-call weight reshaping.
# ---------------------------------------------------------------------------
def make_enet_params(classes, key):
    keys = iter(jax.random.split(key, 256))
    bn_scale_val = 1.0 / math.sqrt(1.0 + BN_EPS)

    def bn(c):
        return (jnp.full((1, c), bn_scale_val, jnp.float32),
                jnp.zeros((1, c), jnp.float32))

    def _pack(w_oihw, with_bn):
        cout, cin, kh, kw = w_oihw.shape
        B = jnp.transpose(w_oihw, (2, 3, 1, 0)).reshape(
            kh * kw * cin, cout).astype(jnp.bfloat16)
        if with_bn:
            s, b = bn(cout)
        else:
            s = jnp.ones((1, cout), jnp.float32)
            b = jnp.zeros((1, cout), jnp.float32)
        return dict(B=B, kh=kh, kw=kw, cin=cin, cout=cout, scale=s, shift=b)

    def conv(cout, cin, kh, kw, with_bn=True):
        fan = cin * kh * kw
        w = jax.random.normal(next(keys), (cout, cin, kh, kw),
                              jnp.float32) / math.sqrt(fan)
        return _pack(w, with_bn)

    def tconv(cin, cout, kh, kw, with_bn=True):
        fan = cin * kh * kw
        w = jax.random.normal(next(keys), (cin, cout, kh, kw),
                              jnp.float32) / math.sqrt(fan)
        # equivalent regular conv on the zero-stuffed input
        w_conv = jnp.transpose(jnp.flip(w, (2, 3)), (1, 0, 2, 3))
        return _pack(w_conv, with_bn)

    def regular(channels, k=3, pad=1, dil=1, asym=False, act="prelu"):
        internal = channels // 4
        d = dict(asym=asym, pad=pad, dil=dil, act=act)
        d["c1"] = conv(internal, channels, 1, 1)
        if asym:
            d["c2a"] = conv(internal, internal, k, 1)
            d["c2b"] = conv(internal, internal, 1, k)
        else:
            d["c2"] = conv(internal, internal, k, k)
        d["c3"] = conv(channels, internal, 1, 1)
        return d

    def down(cin, cout, act="prelu"):
        internal = cin // 4
        return dict(act=act,
                    c1=conv(internal, cin, 2, 2),
                    c2=conv(internal, internal, 3, 3),
                    c3=conv(cout, internal, 1, 1))

    def up(cin, cout, act="relu"):
        internal = cin // 4
        return dict(act=act,
                    cm=conv(cout, cin, 1, 1),
                    c1=conv(internal, cin, 1, 1),
                    c2=tconv(internal, internal, 3, 3),
                    c3=conv(cout, internal, 1, 1))

    P = {}
    s16, b16 = bn(16)
    init_conv = conv(13, 3, 3, 3, with_bn=False)
    init_conv["scale"] = s16[:, :13]      # BN of the 16-ch concat, first 13 ch
    init_conv["shift"] = b16[:, :13]
    P["init"] = dict(conv=init_conv, pool_scale=s16[0, 13:],
                     pool_shift=b16[0, 13:], act="prelu")
    P["down1"] = down(16, 64)
    for n in ("reg1_1", "reg1_2", "reg1_3", "reg1_4"):
        P[n] = regular(64, 3, 1, 1)
    P["down2"] = down(64, 128)
    P["reg2_1"] = regular(128, 3, 1, 1)
    P["dil2_2"] = regular(128, 3, 2, 2)
    P["asym2_3"] = regular(128, 5, 2, 1, asym=True)
    P["dil2_4"] = regular(128, 3, 4, 4)
    P["reg2_5"] = regular(128, 3, 1, 1)
    P["dil2_6"] = regular(128, 3, 8, 8)
    P["asym2_7"] = regular(128, 5, 2, 1, asym=True)
    P["dil2_8"] = regular(128, 3, 16, 16)
    P["reg3_0"] = regular(128, 3, 1, 1)
    P["dil3_1"] = regular(128, 3, 2, 2)
    P["asym3_2"] = regular(128, 5, 2, 1, asym=True)
    P["dil3_3"] = regular(128, 3, 4, 4)
    P["reg3_4"] = regular(128, 3, 1, 1)
    P["dil3_5"] = regular(128, 3, 8, 8)
    P["asym3_6"] = regular(128, 5, 2, 1, asym=True)
    P["dil3_7"] = regular(128, 3, 16, 16)
    P["up4"] = up(128, 64, act="relu")
    P["reg4_1"] = regular(64, 3, 1, 1, act="relu")
    P["reg4_2"] = regular(64, 3, 1, 1, act="relu")
    P["up5"] = up(64, 16, act="relu")
    P["reg5_1"] = regular(16, 3, 1, 1, act="relu")
    P["tconv"] = tconv(16, classes, 3, 3, with_bn=False)
    return P


# ---------------------------------------------------------------------------
# Full forward pass (mirrors ENet.forward)
# ---------------------------------------------------------------------------
def enet_forward(x_nchw, P):
    x = jnp.transpose(x_nchw, (0, 2, 3, 1)).astype(jnp.bfloat16)  # -> NHWC
    x = initial_block(x, P["init"])
    x, idx1 = down_block(x, P["down1"])
    for n in ("reg1_1", "reg1_2", "reg1_3", "reg1_4"):
        x = regular_block(x, P[n])
    x, idx2 = down_block(x, P["down2"])
    for n in ("reg2_1", "dil2_2", "asym2_3", "dil2_4", "reg2_5",
              "dil2_6", "asym2_7", "dil2_8",
              "reg3_0", "dil3_1", "asym3_2", "dil3_3", "reg3_4",
              "dil3_5", "asym3_6", "dil3_7"):
        x = regular_block(x, P[n])
    x = up_block(x, idx2, P["up4"])
    x = regular_block(x, P["reg4_1"])
    x = regular_block(x, P["reg4_2"])
    x = up_block(x, idx1, P["up5"])
    x = regular_block(x, P["reg5_1"])
    x = conv_transpose_mm(x, P["tconv"], padding=1, output_padding=1,
                          act="none")
    return jnp.transpose(x, (0, 3, 1, 2)).astype(jnp.float32)  # back to NCHW


if __name__ == "__main__":
    key = jax.random.PRNGKey(0)
    kx, kp = jax.random.split(key)
    classes = 4
    x = jax.random.normal(kx, (2, 3, 32, 32), jnp.float32)
    params = make_enet_params(classes, kp)
    fwd = jax.jit(lambda inp: enet_forward(inp, params))
    out = jax.block_until_ready(fwd(x))
    assert out.shape == (2, classes, 32, 32), out.shape
    assert bool(jnp.all(jnp.isfinite(out)))
    print("KERNEL_OK")
</pallas_src>

<mosaic_0001>
module attributes {stable_mosaic.version = 11 : i64} {
  func.func @_mm_kernel(%arg0: i32, %arg1: memref<256x32xbf16, #tpu.memory_space<vmem>>, %arg2: memref<32x13xbf16, #tpu.memory_space<vmem>>, %arg3: memref<1x13xf32, #tpu.memory_space<vmem>>, %arg4: memref<1x13xf32, #tpu.memory_space<vmem>>, %arg5: memref<256x13xbf16, #tpu.memory_space<vmem>>) attributes {dimension_semantics = [#tpu.dimension_semantics<parallel>], iteration_bounds = array<i64: 2>, scalar_prefetch = 0 : i64, scratch_operands = 0 : i64, tpu.core_type = #tpu.core_type<tc>, window_params = [{transform_indices = @transform_0, window_bounds = array<i64: 256, 32>}, {pipeline_mode = #tpu.pipeline_mode<synchronous>, transform_indices = @transform_1, window_bounds = array<i64: 32, 13>}, {pipeline_mode = #tpu.pipeline_mode<synchronous>, transform_indices = @transform_2, window_bounds = array<i64: 1, 13>}, {pipeline_mode = #tpu.pipeline_mode<synchronous>, transform_indices = @transform_3, window_bounds = array<i64: 1, 13>}, {transform_indices = @transform_4, window_bounds = array<i64: 256, 13>}]} {
    %c0 = arith.constant 0 : index
    %c0_0 = arith.constant 0 : index
    %0 = vector.load %arg1[%c0, %c0_0] : memref<256x32xbf16, #tpu.memory_space<vmem>>, vector<256x32xbf16>
    %c0_1 = arith.constant 0 : index
    %c0_2 = arith.constant 0 : index
    %1 = vector.load %arg2[%c0_1, %c0_2] : memref<32x13xbf16, #tpu.memory_space<vmem>>, vector<32x13xbf16>
    %cst = arith.constant dense<0.000000e+00> : vector<256x13xf32>
    %2 = tpu.matmul %0, %1, %cst {dimension_numbers = #tpu.dot_dimension_numbers<[1], [0], [0], [1], [0, 0, 1, 1], [], []>} : vector<256x32xbf16>, vector<32x13xbf16>, vector<256x13xf32> -> vector<256x13xf32>
    %c0_3 = arith.constant 0 : index
    %c0_4 = arith.constant 0 : index
    %3 = vector.load %arg3[%c0_3, %c0_4] : memref<1x13xf32, #tpu.memory_space<vmem>>, vector<1x13xf32>
    %4 = vector.broadcast %3 : vector<1x13xf32> to vector<256x13xf32>
    %5 = arith.mulf %2, %4 : vector<256x13xf32>
    %c0_5 = arith.constant 0 : index
    %c0_6 = arith.constant 0 : index
    %6 = vector.load %arg4[%c0_5, %c0_6] : memref<1x13xf32, #tpu.memory_space<vmem>>, vector<1x13xf32>
    %7 = vector.broadcast %6 : vector<1x13xf32> to vector<256x13xf32>
    %8 = arith.addf %5, %7 : vector<256x13xf32>
    %cst_7 = arith.constant 0.000000e+00 : f32
    %9 = vector.broadcast %cst_7 : f32 to vector<256x13xf32>
    %10 = arith.cmpf ogt, %8, %9 : vector<256x13xf32>
    %cst_8 = arith.constant 2.500000e-01 : f32
    %11 = vector.broadcast %cst_8 : f32 to vector<256x13xf32>
    %12 = arith.mulf %11, %8 : vector<256x13xf32>
    %13 = arith.select %10, %8, %12 : vector<256x13xi1>, vector<256x13xf32>
    %14 = arith.truncf %13 : vector<256x13xf32> to vector<256x13xbf16>
    %c0_9 = arith.constant 0 : index
    %c0_10 = arith.constant 0 : index
    %15 = vector.load %arg5[%c0_9, %c0_10] : memref<256x13xbf16, #tpu.memory_space<vmem>>, vector<256x13xbf16>
    tpu.vector_store %arg5[%c0_9, %c0_10], %14 {strides = array<i32>} : memref<256x13xbf16, #tpu.memory_space<vmem>>, vector<256x13xbf16>,
    return
  }
  func.func @transform_0(%arg0: i32) -> (i32, i32) {
    %c0_i32 = arith.constant 0 : i32
    %c0_i32_0 = arith.constant 0 : i32
    return %arg0, %c0_i32 : i32, i32
  }
  func.func @transform_1(%arg0: i32) -> (i32, i32) {
    %c0_i32 = arith.constant 0 : i32
    %c0_i32_0 = arith.constant 0 : i32
    %c0_i32_1 = arith.constant 0 : i32
    return %c0_i32, %c0_i32_0 : i32, i32
  }
  func.func @transform_2(%arg0: i32) -> (i32, i32) {
    %c0_i32 = arith.constant 0 : i32
    %c0_i32_0 = arith.constant 0 : i32
    %c0_i32_1 = arith.constant 0 : i32
    return %c0_i32, %c0_i32_0 : i32, i32
  }
  func.func @transform_3(%arg0: i32) -> (i32, i32) {
    %c0_i32 = arith.constant 0 : i32
    %c0_i32_0 = arith.constant 0 : i32
    %c0_i32_1 = arith.constant 0 : i32
    return %c0_i32, %c0_i32_0 : i32, i32
  }
  func.func @transform_4(%arg0: i32) -> (i32, i32) {
    %c0_i32 = arith.constant 0 : i32
    %c0_i32_0 = arith.constant 0 : i32
    return %arg0, %c0_i32 : i32, i32
  }
}

module attributes {stable_mosaic.version = 11 : i64} {
  func.func @_mm_kernel(%arg0: i32, %arg1: memref<128x64xbf16, #tpu.memory_space<vmem>>, %arg2: memref<64x4xbf16, #tpu.memory_space<vmem>>, %arg3: memref<1x4xf32, #tpu.memory_space<vmem>>, %arg4: memref<1x4xf32, #tpu.memory_space<vmem>>, %arg5: memref<128x4xbf16, #tpu.memory_space<vmem>>) attributes {dimension_semantics = [#tpu.dimension_semantics<parallel>], iteration_bounds = array<i64: 1>, scalar_prefetch = 0 : i64, scratch_operands = 0 : i64, tpu.core_type = #tpu.core_type<tc>, window_params = [{transform_indices = @transform_0, window_bounds = array<i64: 128, 64>}, {pipeline_mode = #tpu.pipeline_mode<synchronous>, transform_indices = @transform_1, window_bounds = array<i64: 64, 4>}, {pipeline_mode = #tpu.pipeline_mode<synchronous>, transform_indices = @transform_2, window_bounds = array<i64: 1, 4>}, {pipeline_mode = #tpu.pipeline_mode<synchronous>, transform_indices = @transform_3, window_bounds = array<i64: 1, 4>}, {transform_indices = @transform_4, window_bounds = array<i64: 128, 4>}]} {
    %c0 = arith.constant 0 : index
    %c0_0 = arith.constant 0 : index
    %0 = vector.load %arg1[%c0, %c0_0] : memref<128x64xbf16, #tpu.memory_space<vmem>>, vector<128x64xbf16>
    %c0_1 = arith.constant 0 : index
    %c0_2 = arith.constant 0 : index
    %1 = vector.load %arg2[%c0_1, %c0_2] : memref<64x4xbf16, #tpu.memory_space<vmem>>, vector<64x4xbf16>
    %cst = arith.constant dense<0.000000e+00> : vector<128x4xf32>
    %2 = tpu.matmul %0, %1, %cst {dimension_numbers = #tpu.dot_dimension_numbers<[1], [0], [0], [1], [0, 0, 1, 1], [], []>} : vector<128x64xbf16>, vector<64x4xbf16>, vector<128x4xf32> -> vector<128x4xf32>
    %c0_3 = arith.constant 0 : index
    %c0_4 = arith.constant 0 : index
    %3 = vector.load %arg3[%c0_3, %c0_4] : memref<1x4xf32, #tpu.memory_space<vmem>>, vector<1x4xf32>
    %4 = vector.broadcast %3 : vector<1x4xf32> to vector<128x4xf32>
    %5 = arith.mulf %2, %4 : vector<128x4xf32>
    %c0_5 = arith.constant 0 : index
    %c0_6 = arith.constant 0 : index
    %6 = vector.load %arg4[%c0_5, %c0_6] : memref<1x4xf32, #tpu.memory_space<vmem>>, vector<1x4xf32>
    %7 = vector.broadcast %6 : vector<1x4xf32> to vector<128x4xf32>
    %8 = arith.addf %5, %7 : vector<128x4xf32>
    %cst_7 = arith.constant 0.000000e+00 : f32
    %9 = vector.broadcast %cst_7 : f32 to vector<128x4xf32>
    %10 = arith.cmpf ogt, %8, %9 : vector<128x4xf32>
    %cst_8 = arith.constant 2.500000e-01 : f32
    %11 = vector.broadcast %cst_8 : f32 to vector<128x4xf32>
    %12 = arith.mulf %11, %8 : vector<128x4xf32>
    %13 = arith.select %10, %8, %12 : vector<128x4xi1>, vector<128x4xf32>
    %14 = arith.truncf %13 : vector<128x4xf32> to vector<128x4xbf16>
    %c0_9 = arith.constant 0 : index
    %c0_10 = arith.constant 0 : index
    %15 = vector.load %arg5[%c0_9, %c0_10] : memref<128x4xbf16, #tpu.memory_space<vmem>>, vector<128x4xbf16>
    tpu.vector_store %arg5[%c0_9, %c0_10], %14 {strides = array<i32>} : memref<128x4xbf16, #tpu.memory_space<vmem>>, vector<128x4xbf16>,
    return
  }
  func.func @transform_0(%arg0: i32) -> (i32, i32) {
    %c0_i32 = arith.constant 0 : i32
    %c0_i32_0 = arith.constant 0 : i32
    return %arg0, %c0_i32 : i32, i32
  }
  func.func @transform_1(%arg0: i32) -> (i32, i32) {
    %c0_i32 = arith.constant 0 : i32
    %c0_i32_0 = arith.constant 0 : i32
    %c0_i32_1 = arith.constant 0 : i32
    return %c0_i32, %c0_i32_0 : i32, i32
  }
  func.func @transform_2(%arg0: i32) -> (i32, i32) {
    %c0_i32 = arith.constant 0 : i32
    %c0_i32_0 = arith.constant 0 : i32
    %c0_i32_1 = arith.constant 0 : i32
    return %c0_i32, %c0_i32_0 : i32, i32
  }
  func.func @transform_3(%arg0: i32) -> (i32, i32) {
    %c0_i32 = arith.constant 0 : i32
    %c0_i32_0 = arith.constant 0 : i32
    %c0_i32_1 = arith.constant 0 : i32
    return %c0_i32, %c0_i32_0 : i32, i32
  }
  func.func @transform_4(%arg0: i32) -> (i32, i32) {
    %c0_i32 = arith.constant 0 : i32
    %c0_i32_0 = arith.constant 0 : i32
    return %arg0, %c0_i32 : i32, i32
  }
}

module attributes {stable_mosaic.version = 11 : i64} {
  func.func @_mm_kernel(%arg0: i32, %arg1: memref<128x48xbf16, #tpu.memory_space<vmem>>, %arg2: memref<48x4xbf16, #tpu.memory_space<vmem>>, %arg3: memref<1x4xf32, #tpu.memory_space<vmem>>, %arg4: memref<1x4xf32, #tpu.memory_space<vmem>>, %arg5: memref<128x4xbf16, #tpu.memory_space<vmem>>) attributes {dimension_semantics = [#tpu.dimension_semantics<parallel>], iteration_bounds = array<i64: 1>, scalar_prefetch = 0 : i64, scratch_operands = 0 : i64, tpu.core_type = #tpu.core_type<tc>, window_params = [{transform_indices = @transform_0, window_bounds = array<i64: 128, 48>}, {pipeline_mode = #tpu.pipeline_mode<synchronous>, transform_indices = @transform_1, window_bounds = array<i64: 48, 4>}, {pipeline_mode = #tpu.pipeline_mode<synchronous>, transform_indices = @transform_2, window_bounds = array<i64: 1, 4>}, {pipeline_mode = #tpu.pipeline_mode<synchronous>, transform_indices = @transform_3, window_bounds = array<i64: 1, 4>}, {transform_indices = @transform_4, window_bounds = array<i64: 128, 4>}]} {
    %c0 = arith.constant 0 : index
    %c0_0 = arith.constant 0 : index
    %0 = vector.load %arg1[%c0, %c0_0] : memref<128x48xbf16, #tpu.memory_space<vmem>>, vector<128x48xbf16>
    %c0_1 = arith.constant 0 : index
    %c0_2 = arith.constant 0 : index
    %1 = vector.load %arg2[%c0_1, %c0_2] : memref<48x4xbf16, #tpu.memory_space<vmem>>, vector<48x4xbf16>
    %cst = arith.constant dense<0.000000e+00> : vector<128x4xf32>
    %2 = tpu.matmul %0, %1, %cst {dimension_numbers = #tpu.dot_dimension_numbers<[1], [0], [0], [1], [0, 0, 1, 1], [], []>} : vector<128x48xbf16>, vector<48x4xbf16>, vector<128x4xf32> -> vector<128x4xf32>
    %c0_3 = arith.constant 0 : index
    %c0_4 = arith.constant 0 : index
    %3 = vector.load %arg3[%c0_3, %c0_4] : memref<1x4xf32, #tpu.memory_space<vmem>>, vector<1x4xf32>
    %4 = vector.broadcast %3 : vector<1x4xf32> to vector<128x4xf32>
    %5 = arith.mulf %2, %4 : vector<128x4xf32>
    %c0_5 = arith.constant 0 : index
    %c0_6 = arith.constant 0 : index
    %6 = vector.load %arg4[%c0_5, %c0_6] : memref<1x4xf32, #tpu.memory_space<vmem>>, vector<1x4xf32>
    %7 = vector.broadcast %6 : vector<1x4xf32> to vector<128x4xf32>
    %8 = arith.addf %5, %7 : vector<128x4xf32>
    %cst_7 = arith.constant 0.000000e+00 : f32
    %9 = vector.broadcast %cst_7 : f32 to vector<128x4xf32>
    %10 = arith.cmpf ogt, %8, %9 : vector<128x4xf32>
    %cst_8 = arith.constant 2.500000e-01 : f32
    %11 = vector.broadcast %cst_8 : f32 to vector<128x4xf32>
    %12 = arith.mulf %11, %8 : vector<128x4xf32>
    %13 = arith.select %10, %8, %12 : vector<128x4xi1>, vector<128x4xf32>
    %14 = arith.truncf %13 : vector<128x4xf32> to vector<128x4xbf16>
    %c0_9 = arith.constant 0 : index
    %c0_10 = arith.constant 0 : index
    %15 = vector.load %arg5[%c0_9, %c0_10] : memref<128x4xbf16, #tpu.memory_space<vmem>>, vector<128x4xbf16>
    tpu.vector_store %arg5[%c0_9, %c0_10], %14 {strides = array<i32>} : memref<128x4xbf16, #tpu.memory_space<vmem>>, vector<128x4xbf16>,
    return
  }
  func.func @transform_0(%arg0: i32) -> (i32, i32) {
    %c0_i32 = arith.constant 0 : i32
    %c0_i32_0 = arith.constant 0 : i32
    return %arg0, %c0_i32 : i32, i32
  }
  func.func @transform_1(%arg0: i32) -> (i32, i32) {
    %c0_i32 = arith.constant 0 : i32
    %c0_i32_0 = arith.constant 0 : i32
    %c0_i32_1 = arith.constant 0 : i32
    return %c0_i32, %c0_i32_0 : i32, i32
  }
  func.func @transform_2(%arg0: i32) -> (i32, i32) {
    %c0_i32 = arith.constant 0 : i32
    %c0_i32_0 = arith.constant 0 : i32
    %c0_i32_1 = arith.constant 0 : i32
    return %c0_i32, %c0_i32_0 : i32, i32
  }
  func.func @transform_3(%arg0: i32) -> (i32, i32) {
    %c0_i32 = arith.constant 0 : i32
    %c0_i32_0 = arith.constant 0 : i32
    %c0_i32_1 = arith.constant 0 : i32
    return %c0_i32, %c0_i32_0 : i32, i32
  }
  func.func @transform_4(%arg0: i32) -> (i32, i32) {
    %c0_i32 = arith.constant 0 : i32
    %c0_i32_0 = arith.constant 0 : i32
    return %arg0, %c0_i32 : i32, i32
  }
}

module attributes {stable_mosaic.version = 11 : i64} {
  func.func @_mm_res_kernel(%arg0: i32, %arg1: memref<128x16xbf16, #tpu.memory_space<vmem>>, %arg2: memref<16x64xbf16, #tpu.memory_space<vmem>>, %arg3: memref<1x64xf32, #tpu.memory_space<vmem>>, %arg4: memref<1x64xf32, #tpu.memory_space<vmem>>, %arg5: memref<128x64xbf16, #tpu.memory_space<vmem>>, %arg6: memref<128x64xbf16, #tpu.memory_space<vmem>>) attributes {dimension_semantics = [#tpu.dimension_semantics<parallel>], iteration_bounds = array<i64: 1>, scalar_prefetch = 0 : i64, scratch_operands = 0 : i64, tpu.core_type = #tpu.core_type<tc>, window_params = [{transform_indices = @transform_0, window_bounds = array<i64: 128, 16>}, {pipeline_mode = #tpu.pipeline_mode<synchronous>, transform_indices = @transform_1, window_bounds = array<i64: 16, 64>}, {pipeline_mode = #tpu.pipeline_mode<synchronous>, transform_indices = @transform_2, window_bounds = array<i64: 1, 64>}, {pipeline_mode = #tpu.pipeline_mode<synchronous>, transform_indices = @transform_3, window_bounds = array<i64: 1, 64>}, {transform_indices = @transform_4, window_bounds = array<i64: 128, 64>}, {transform_indices = @transform_5, window_bounds = array<i64: 128, 64>}]} {
    %c0 = arith.constant 0 : index
    %c0_0 = arith.constant 0 : index
    %0 = vector.load %arg1[%c0, %c0_0] : memref<128x16xbf16, #tpu.memory_space<vmem>>, vector<128x16xbf16>
    %c0_1 = arith.constant 0 : index
    %c0_2 = arith.constant 0 : index
    %1 = vector.load %arg2[%c0_1, %c0_2] : memref<16x64xbf16, #tpu.memory_space<vmem>>, vector<16x64xbf16>
    %cst = arith.constant dense<0.000000e+00> : vector<128x64xf32>
    %2 = tpu.matmul %0, %1, %cst {dimension_numbers = #tpu.dot_dimension_numbers<[1], [0], [0], [1], [0, 0, 1, 1], [], []>} : vector<128x16xbf16>, vector<16x64xbf16>, vector<128x64xf32> -> vector<128x64xf32>
    %c0_3 = arith.constant 0 : index
    %c0_4 = arith.constant 0 : index
    %3 = vector.load %arg3[%c0_3, %c0_4] : memref<1x64xf32, #tpu.memory_space<vmem>>, vector<1x64xf32>
    %4 = vector.broadcast %3 : vector<1x64xf32> to vector<128x64xf32>
    %5 = arith.mulf %2, %4 : vector<128x64xf32>
    %c0_5 = arith.constant 0 : index
    %c0_6 = arith.constant 0 : index
    %6 = vector.load %arg4[%c0_5, %c0_6] : memref<1x64xf32, #tpu.memory_space<vmem>>, vector<1x64xf32>
    %7 = vector.broadcast %6 : vector<1x64xf32> to vector<128x64xf32>
    %8 = arith.addf %5, %7 : vector<128x64xf32>
    %cst_7 = arith.constant 0.000000e+00 : f32
    %9 = vector.broadcast %cst_7 : f32 to vector<128x64xf32>
    %10 = arith.cmpf ogt, %8, %9 : vector<128x64xf32>
    %cst_8 = arith.constant 2.500000e-01 : f32
    %11 = vector.broadcast %cst_8 : f32 to vector<128x64xf32>
    %12 = arith.mulf %11, %8 : vector<128x64xf32>
    %13 = arith.select %10, %8, %12 : vector<128x64xi1>, vector<128x64xf32>
    %c0_9 = arith.constant 0 : index
    %c0_10 = arith.constant 0 : index
    %14 = vector.load %arg5[%c0_9, %c0_10] : memref<128x64xbf16, #tpu.memory_space<vmem>>, vector<128x64xbf16>
    %15 = arith.extf %14 : vector<128x64xbf16> to vector<128x64xf32>
    %16 = arith.addf %13, %15 : vector<128x64xf32>
    %cst_11 = arith.constant 0.000000e+00 : f32
    %17 = vector.broadcast %cst_11 : f32 to vector<128x64xf32>
    %18 = arith.cmpf ogt, %16, %17 : vector<128x64xf32>
    %cst_12 = arith.constant 2.500000e-01 : f32
    %19 = vector.broadcast %cst_12 : f32 to vector<128x64xf32>
    %20 = arith.mulf %19, %16 : vector<128x64xf32>
    %21 = arith.select %18, %16, %20 : vector<128x64xi1>, vector<128x64xf32>
    %22 = arith.truncf %21 : vector<128x64xf32> to vector<128x64xbf16>
    %c0_13 = arith.constant 0 : index
    %c0_14 = arith.constant 0 : index
    %23 = vector.load %arg6[%c0_13, %c0_14] : memref<128x64xbf16, #tpu.memory_space<vmem>>, vector<128x64xbf16>
    tpu.vector_store %arg6[%c0_13, %c0_14], %22 {strides = array<i32>} : memref<128x64xbf16, #tpu.memory_space<vmem>>, vector<128x64xbf16>,
    return
  }
  func.func @transform_0(%arg0: i32) -> (i32, i32) {
    %c0_i32 = arith.constant 0 : i32
    %c0_i32_0 = arith.constant 0 : i32
    return %arg0, %c0_i32 : i32, i32
  }
  func.func @transform_1(%arg0: i32) -> (i32, i32) {
    %c0_i32 = arith.constant 0 : i32
    %c0_i32_0 = arith.constant 0 : i32
    %c0_i32_1 = arith.constant 0 : i32
    return %c0_i32, %c0_i32_0 : i32, i32
  }
  func.func @transform_2(%arg0: i32) -> (i32, i32) {
    %c0_i32 = arith.constant 0 : i32
    %c0_i32_0 = arith.constant 0 : i32
    %c0_i32_1 = arith.constant 0 : i32
    return %c0_i32, %c0_i32_0 : i32, i32
  }
  func.func @transform_3(%arg0: i32) -> (i32, i32) {
    %c0_i32 = arith.constant 0 : i32
    %c0_i32_0 = arith.constant 0 : i32
    %c0_i32_1 = arith.constant 0 : i32
    return %c0_i32, %c0_i32_0 : i32, i32
  }
  func.func @transform_4(%arg0: i32) -> (i32, i32) {
    %c0_i32 = arith.constant 0 : i32
    %c0_i32_0 = arith.constant 0 : i32
    return %arg0, %c0_i32 : i32, i32
  }
  func.func @transform_5(%arg0: i32) -> (i32, i32) {
    %c0_i32 = arith.constant 0 : i32
    %c0_i32_0 = arith.constant 0 : i32
    return %arg0, %c0_i32 : i32, i32
  }
}

module attributes {stable_mosaic.version = 11 : i64} {
  func.func @_mm_kernel(%arg0: i32, %arg1: memref<128x64xbf16, #tpu.memory_space<vmem>>, %arg2: memref<64x16xbf16, #tpu.memory_space<vmem>>, %arg3: memref<1x16xf32, #tpu.memory_space<vmem>>, %arg4: memref<1x16xf32, #tpu.memory_space<vmem>>, %arg5: memref<128x16xbf16, #tpu.memory_space<vmem>>) attributes {dimension_semantics = [#tpu.dimension_semantics<parallel>], iteration_bounds = array<i64: 1>, scalar_prefetch = 0 : i64, scratch_operands = 0 : i64, tpu.core_type = #tpu.core_type<tc>, window_params = [{transform_indices = @transform_0, window_bounds = array<i64: 128, 64>}, {pipeline_mode = #tpu.pipeline_mode<synchronous>, transform_indices = @transform_1, window_bounds = array<i64: 64, 16>}, {pipeline_mode = #tpu.pipeline_mode<synchronous>, transform_indices = @transform_2, window_bounds = array<i64: 1, 16>}, {pipeline_mode = #tpu.pipeline_mode<synchronous>, transform_indices = @transform_3, window_bounds = array<i64: 1, 16>}, {transform_indices = @transform_4, window_bounds = array<i64: 128, 16>}]} {
    %c0 = arith.constant 0 : index
    %c0_0 = arith.constant 0 : index
    %0 = vector.load %arg1[%c0, %c0_0] : memref<128x64xbf16, #tpu.memory_space<vmem>>, vector<128x64xbf16>
    %c0_1 = arith.constant 0 : index
    %c0_2 = arith.constant 0 : index
    %1 = vector.load %arg2[%c0_1, %c0_2] : memref<64x16xbf16, #tpu.memory_space<vmem>>, vector<64x16xbf16>
    %cst = arith.constant dense<0.000000e+00> : vector<128x16xf32>
    %2 = tpu.matmul %0, %1, %cst {dimension_numbers = #tpu.dot_dimension_numbers<[1], [0], [0], [1], [0, 0, 1, 1], [], []>} : vector<128x64xbf16>, vector<64x16xbf16>, vector<128x16xf32> -> vector<128x16xf32>
    %c0_3 = arith.constant 0 : index
    %c0_4 = arith.constant 0 : index
    %3 = vector.load %arg3[%c0_3, %c0_4] : memref<1x16xf32, #tpu.memory_space<vmem>>, vector<1x16xf32>
    %4 = vector.broadcast %3 : vector<1x16xf32> to vector<128x16xf32>
    %5 = arith.mulf %2, %4 : vector<128x16xf32>
    %c0_5 = arith.constant 0 : index
    %c0_6 = arith.constant 0 : index
    %6 = vector.load %arg4[%c0_5, %c0_6] : memref<1x16xf32, #tpu.memory_space<vmem>>, vector<1x16xf32>
    %7 = vector.broadcast %6 : vector<1x16xf32> to vector<128x16xf32>
    %8 = arith.addf %5, %7 : vector<128x16xf32>
    %cst_7 = arith.constant 0.000000e+00 : f32
    %9 = vector.broadcast %cst_7 : f32 to vector<128x16xf32>
    %10 = arith.cmpf ogt, %8, %9 : vector<128x16xf32>
    %cst_8 = arith.constant 2.500000e-01 : f32
    %11 = vector.broadcast %cst_8 : f32 to vector<128x16xf32>
    %12 = arith.mulf %11, %8 : vector<128x16xf32>
    %13 = arith.select %10, %8, %12 : vector<128x16xi1>, vector<128x16xf32>
    %14 = arith.truncf %13 : vector<128x16xf32> to vector<128x16xbf16>
    %c0_9 = arith.constant 0 : index
    %c0_10 = arith.constant 0 : index
    %15 = vector.load %arg5[%c0_9, %c0_10] : memref<128x16xbf16, #tpu.memory_space<vmem>>, vector<128x16xbf16>
    tpu.vector_store %arg5[%c0_9, %c0_10], %14 {strides = array<i32>} : memref<128x16xbf16, #tpu.memory_space<vmem>>, vector<128x16xbf16>,
    return
  }
  func.func @transform_0(%arg0: i32) -> (i32, i32) {
    %c0_i32 = arith.constant 0 : i32
    %c0_i32_0 = arith.constant 0 : i32
    return %arg0, %c0_i32 : i32, i32
  }
  func.func @transform_1(%arg0: i32) -> (i32, i32) {
    %c0_i32 = arith.constant 0 : i32
    %c0_i32_0 = arith.constant 0 : i32
    %c0_i32_1 = arith.constant 0 : i32
    return %c0_i32, %c0_i32_0 : i32, i32
  }
  func.func @transform_2(%arg0: i32) -> (i32, i32) {
    %c0_i32 = arith.constant 0 : i32
    %c0_i32_0 = arith.constant 0 : i32
    %c0_i32_1 = arith.constant 0 : i32
    return %c0_i32, %c0_i32_0 : i32, i32
  }
  func.func @transform_3(%arg0: i32) -> (i32, i32) {
    %c0_i32 = arith.constant 0 : i32
    %c0_i32_0 = arith.constant 0 : i32
    %c0_i32_1 = arith.constant 0 : i32
    return %c0_i32, %c0_i32_0 : i32, i32
  }
  func.func @transform_4(%arg0: i32) -> (i32, i32) {
    %c0_i32 = arith.constant 0 : i32
    %c0_i32_0 = arith.constant 0 : i32
    return %arg0, %c0_i32 : i32, i32
  }
}

module attributes {stable_mosaic.version = 11 : i64} {
  func.func @_mm_kernel(%arg0: i32, %arg1: memref<128x144xbf16, #tpu.memory_space<vmem>>, %arg2: memref<144x16xbf16, #tpu.memory_space<vmem>>, %arg3: memref<1x16xf32, #tpu.memory_space<vmem>>, %arg4: memref<1x16xf32, #tpu.memory_space<vmem>>, %arg5: memref<128x16xbf16, #tpu.memory_space<vmem>>) attributes {dimension_semantics = [#tpu.dimension_semantics<parallel>], iteration_bounds = array<i64: 1>, scalar_prefetch = 0 : i64, scratch_operands = 0 : i64, tpu.core_type = #tpu.core_type<tc>, window_params = [{transform_indices = @transform_0, window_bounds = array<i64: 128, 144>}, {pipeline_mode = #tpu.pipeline_mode<synchronous>, transform_indices = @transform_1, window_bounds = array<i64: 144, 16>}, {pipeline_mode = #tpu.pipeline_mode<synchronous>, transform_indices = @transform_2, window_bounds = array<i64: 1, 16>}, {pipeline_mode = #tpu.pipeline_mode<synchronous>, transform_indices = @transform_3, window_bounds = array<i64: 1, 16>}, {transform_indices = @transform_4, window_bounds = array<i64: 128, 16>}]} {
    %c0 = arith.constant 0 : index
    %c0_0 = arith.constant 0 : index
    %0 = vector.load %arg1[%c0, %c0_0] : memref<128x144xbf16, #tpu.memory_space<vmem>>, vector<128x144xbf16>
    %c0_1 = arith.constant 0 : index
    %c0_2 = arith.constant 0 : index
    %1 = vector.load %arg2[%c0_1, %c0_2] : memref<144x16xbf16, #tpu.memory_space<vmem>>, vector<144x16xbf16>
    %cst = arith.constant dense<0.000000e+00> : vector<128x16xf32>
    %2 = tpu.matmul %0, %1, %cst {dimension_numbers = #tpu.dot_dimension_numbers<[1], [0], [0], [1], [0, 0, 1, 1], [], []>} : vector<128x144xbf16>, vector<144x16xbf16>, vector<128x16xf32> -> vector<128x16xf32>
    %c0_3 = arith.constant 0 : index
    %c0_4 = arith.constant 0 : index
    %3 = vector.load %arg3[%c0_3, %c0_4] : memref<1x16xf32, #tpu.memory_space<vmem>>, vector<1x16xf32>
    %4 = vector.broadcast %3 : vector<1x16xf32> to vector<128x16xf32>
    %5 = arith.mulf %2, %4 : vector<128x16xf32>
    %c0_5 = arith.constant 0 : index
    %c0_6 = arith.constant 0 : index
    %6 = vector.load %arg4[%c0_5, %c0_6] : memref<1x16xf32, #tpu.memory_space<vmem>>, vector<1x16xf32>
    %7 = vector.broadcast %6 : vector<1x16xf32> to vector<128x16xf32>
    %8 = arith.addf %5, %7 : vector<128x16xf32>
    %cst_7 = arith.constant 0.000000e+00 : f32
    %9 = vector.broadcast %cst_7 : f32 to vector<128x16xf32>
    %10 = arith.cmpf ogt, %8, %9 : vector<128x16xf32>
    %cst_8 = arith.constant 2.500000e-01 : f32
    %11 = vector.broadcast %cst_8 : f32 to vector<128x16xf32>
    %12 = arith.mulf %11, %8 : vector<128x16xf32>
    %13 = arith.select %10, %8, %12 : vector<128x16xi1>, vector<128x16xf32>
    %14 = arith.truncf %13 : vector<128x16xf32> to vector<128x16xbf16>
    %c0_9 = arith.constant 0 : index
    %c0_10 = arith.constant 0 : index
    %15 = vector.load %arg5[%c0_9, %c0_10] : memref<128x16xbf16, #tpu.memory_space<vmem>>, vector<128x16xbf16>
    tpu.vector_store %arg5[%c0_9, %c0_10], %14 {strides = array<i32>} : memref<128x16xbf16, #tpu.memory_space<vmem>>, vector<128x16xbf16>,
    return
  }
  func.func @transform_0(%arg0: i32) -> (i32, i32) {
    %c0_i32 = arith.constant 0 : i32
    %c0_i32_0 = arith.constant 0 : i32
    return %arg0, %c0_i32 : i32, i32
  }
  func.func @transform_1(%arg0: i32) -> (i32, i32) {
    %c0_i32 = arith.constant 0 : i32
    %c0_i32_0 = arith.constant 0 : i32
    %c0_i32_1 = arith.constant 0 : i32
    return %c0_i32, %c0_i32_0 : i32, i32
  }
  func.func @transform_2(%arg0: i32) -> (i32, i32) {
    %c0_i32 = arith.constant 0 : i32
    %c0_i32_0 = arith.constant 0 : i32
    %c0_i32_1 = arith.constant 0 : i32
    return %c0_i32, %c0_i32_0 : i32, i32
  }
  func.func @transform_3(%arg0: i32) -> (i32, i32) {
    %c0_i32 = arith.constant 0 : i32
    %c0_i32_0 = arith.constant 0 : i32
    %c0_i32_1 = arith.constant 0 : i32
    return %c0_i32, %c0_i32_0 : i32, i32
  }
  func.func @transform_4(%arg0: i32) -> (i32, i32) {
    %c0_i32 = arith.constant 0 : i32
    %c0_i32_0 = arith.constant 0 : i32
    return %arg0, %c0_i32 : i32, i32
  }
}

module attributes {stable_mosaic.version = 11 : i64} {
  func.func @_mm_kernel(%arg0: i32, %arg1: memref<32x256xbf16, #tpu.memory_space<vmem>>, %arg2: memref<256x16xbf16, #tpu.memory_space<vmem>>, %arg3: memref<1x16xf32, #tpu.memory_space<vmem>>, %arg4: memref<1x16xf32, #tpu.memory_space<vmem>>, %arg5: memref<32x16xbf16, #tpu.memory_space<vmem>>) attributes {dimension_semantics = [#tpu.dimension_semantics<parallel>], iteration_bounds = array<i64: 1>, scalar_prefetch = 0 : i64, scratch_operands = 0 : i64, tpu.core_type = #tpu.core_type<tc>, window_params = [{transform_indices = @transform_0, window_bounds = array<i64: 32, 256>}, {pipeline_mode = #tpu.pipeline_mode<synchronous>, transform_indices = @transform_1, window_bounds = array<i64: 256, 16>}, {pipeline_mode = #tpu.pipeline_mode<synchronous>, transform_indices = @transform_2, window_bounds = array<i64: 1, 16>}, {pipeline_mode = #tpu.pipeline_mode<synchronous>, transform_indices = @transform_3, window_bounds = array<i64: 1, 16>}, {transform_indices = @transform_4, window_bounds = array<i64: 32, 16>}]} {
    %c0 = arith.constant 0 : index
    %c0_0 = arith.constant 0 : index
    %0 = vector.load %arg1[%c0, %c0_0] : memref<32x256xbf16, #tpu.memory_space<vmem>>, vector<32x256xbf16>
    %c0_1 = arith.constant 0 : index
    %c0_2 = arith.constant 0 : index
    %1 = vector.load %arg2[%c0_1, %c0_2] : memref<256x16xbf16, #tpu.memory_space<vmem>>, vector<256x16xbf16>
    %cst = arith.constant dense<0.000000e+00> : vector<32x16xf32>
    %2 = tpu.matmul %0, %1, %cst {dimension_numbers = #tpu.dot_dimension_numbers<[1], [0], [0], [1], [0, 0, 1, 1], [], []>} : vector<32x256xbf16>, vector<256x16xbf16>, vector<32x16xf32> -> vector<32x16xf32>
    %c0_3 = arith.constant 0 : index
    %c0_4 = arith.constant 0 : index
    %3 = vector.load %arg3[%c0_3, %c0_4] : memref<1x16xf32, #tpu.memory_space<vmem>>, vector<1x16xf32>
    %4 = vector.broadcast %3 : vector<1x16xf32> to vector<32x16xf32>
    %5 = arith.mulf %2, %4 : vector<32x16xf32>
    %c0_5 = arith.constant 0 : index
    %c0_6 = arith.constant 0 : index
    %6 = vector.load %arg4[%c0_5, %c0_6] : memref<1x16xf32, #tpu.memory_space<vmem>>, vector<1x16xf32>
    %7 = vector.broadcast %6 : vector<1x16xf32> to vector<32x16xf32>
    %8 = arith.addf %5, %7 : vector<32x16xf32>
    %cst_7 = arith.constant 0.000000e+00 : f32
    %9 = vector.broadcast %cst_7 : f32 to vector<32x16xf32>
    %10 = arith.cmpf ogt, %8, %9 : vector<32x16xf32>
    %cst_8 = arith.constant 2.500000e-01 : f32
    %11 = vector.broadcast %cst_8 : f32 to vector<32x16xf32>
    %12 = arith.mulf %11, %8 : vector<32x16xf32>
    %13 = arith.select %10, %8, %12 : vector<32x16xi1>, vector<32x16xf32>
    %14 = arith.truncf %13 : vector<32x16xf32> to vector<32x16xbf16>
    %c0_9 = arith.constant 0 : index
    %c0_10 = arith.constant 0 : index
    %15 = vector.load %arg5[%c0_9, %c0_10] : memref<32x16xbf16, #tpu.memory_space<vmem>>, vector<32x16xbf16>
    tpu.vector_store %arg5[%c0_9, %c0_10], %14 {strides = array<i32>} : memref<32x16xbf16, #tpu.memory_space<vmem>>, vector<32x16xbf16>,
    return
  }
  func.func @transform_0(%arg0: i32) -> (i32, i32) {
    %c0_i32 = arith.constant 0 : i32
    %c0_i32_0 = arith.constant 0 : i32
    return %arg0, %c0_i32 : i32, i32
  }
  func.func @transform_1(%arg0: i32) -> (i32, i32) {
    %c0_i32 = arith.constant 0 : i32
    %c0_i32_0 = arith.constant 0 : i32
    %c0_i32_1 = arith.constant 0 : i32
    return %c0_i32, %c0_i32_0 : i32, i32
  }
  func.func @transform_2(%arg0: i32) -> (i32, i32) {
    %c0_i32 = arith.constant 0 : i32
    %c0_i32_0 = arith.constant 0 : i32
    %c0_i32_1 = arith.constant 0 : i32
    return %c0_i32, %c0_i32_0 : i32, i32
  }
  func.func @transform_3(%arg0: i32) -> (i32, i32) {
    %c0_i32 = arith.constant 0 : i32
    %c0_i32_0 = arith.constant 0 : i32
    %c0_i32_1 = arith.constant 0 : i32
    return %c0_i32, %c0_i32_0 : i32, i32
  }
  func.func @transform_4(%arg0: i32) -> (i32, i32) {
    %c0_i32 = arith.constant 0 : i32
    %c0_i32_0 = arith.constant 0 : i32
    return %arg0, %c0_i32 : i32, i32
  }
}

module attributes {stable_mosaic.version = 11 : i64} {
  func.func @_mm_res_kernel(%arg0: i32, %arg1: memref<32x16xbf16, #tpu.memory_space<vmem>>, %arg2: memref<16x128xbf16, #tpu.memory_space<vmem>>, %arg3: memref<1x128xf32, #tpu.memory_space<vmem>>, %arg4: memref<1x128xf32, #tpu.memory_space<vmem>>, %arg5: memref<32x128xbf16, #tpu.memory_space<vmem>>, %arg6: memref<32x128xbf16, #tpu.memory_space<vmem>>) attributes {dimension_semantics = [#tpu.dimension_semantics<parallel>], iteration_bounds = array<i64: 1>, scalar_prefetch = 0 : i64, scratch_operands = 0 : i64, tpu.core_type = #tpu.core_type<tc>, window_params = [{transform_indices = @transform_0, window_bounds = array<i64: 32, 16>}, {pipeline_mode = #tpu.pipeline_mode<synchronous>, transform_indices = @transform_1, window_bounds = array<i64: 16, 128>}, {pipeline_mode = #tpu.pipeline_mode<synchronous>, transform_indices = @transform_2, window_bounds = array<i64: 1, 128>}, {pipeline_mode = #tpu.pipeline_mode<synchronous>, transform_indices = @transform_3, window_bounds = array<i64: 1, 128>}, {transform_indices = @transform_4, window_bounds = array<i64: 32, 128>}, {transform_indices = @transform_5, window_bounds = array<i64: 32, 128>}]} {
    %c0 = arith.constant 0 : index
    %c0_0 = arith.constant 0 : index
    %0 = vector.load %arg1[%c0, %c0_0] : memref<32x16xbf16, #tpu.memory_space<vmem>>, vector<32x16xbf16>
    %c0_1 = arith.constant 0 : index
    %c0_2 = arith.constant 0 : index
    %1 = vector.load %arg2[%c0_1, %c0_2] : memref<16x128xbf16, #tpu.memory_space<vmem>>, vector<16x128xbf16>
    %cst = arith.constant dense<0.000000e+00> : vector<32x128xf32>
    %2 = tpu.matmul %0, %1, %cst {dimension_numbers = #tpu.dot_dimension_numbers<[1], [0], [0], [1], [0, 0, 1, 1], [], []>} : vector<32x16xbf16>, vector<16x128xbf16>, vector<32x128xf32> -> vector<32x128xf32>
    %c0_3 = arith.constant 0 : index
    %c0_4 = arith.constant 0 : index
    %3 = vector.load %arg3[%c0_3, %c0_4] : memref<1x128xf32, #tpu.memory_space<vmem>>, vector<1x128xf32>
    %4 = vector.broadcast %3 : vector<1x128xf32> to vector<32x128xf32>
    %5 = arith.mulf %2, %4 : vector<32x128xf32>
    %c0_5 = arith.constant 0 : index
    %c0_6 = arith.constant 0 : index
    %6 = vector.load %arg4[%c0_5, %c0_6] : memref<1x128xf32, #tpu.memory_space<vmem>>, vector<1x128xf32>
    %7 = vector.broadcast %6 : vector<1x128xf32> to vector<32x128xf32>
    %8 = arith.addf %5, %7 : vector<32x128xf32>
    %cst_7 = arith.constant 0.000000e+00 : f32
    %9 = vector.broadcast %cst_7 : f32 to vector<32x128xf32>
    %10 = arith.cmpf ogt, %8, %9 : vector<32x128xf32>
    %cst_8 = arith.constant 2.500000e-01 : f32
    %11 = vector.broadcast %cst_8 : f32 to vector<32x128xf32>
    %12 = arith.mulf %11, %8 : vector<32x128xf32>
    %13 = arith.select %10, %8, %12 : vector<32x128xi1>, vector<32x128xf32>
    %c0_9 = arith.constant 0 : index
    %c0_10 = arith.constant 0 : index
    %14 = vector.load %arg5[%c0_9, %c0_10] : memref<32x128xbf16, #tpu.memory_space<vmem>>, vector<32x128xbf16>
    %15 = arith.extf %14 : vector<32x128xbf16> to vector<32x128xf32>
    %16 = arith.addf %13, %15 : vector<32x128xf32>
    %cst_11 = arith.constant 0.000000e+00 : f32
    %17 = vector.broadcast %cst_11 : f32 to vector<32x128xf32>
    %18 = arith.cmpf ogt, %16, %17 : vector<32x128xf32>
    %cst_12 = arith.constant 2.500000e-01 : f32
    %19 = vector.broadcast %cst_12 : f32 to vector<32x128xf32>
    %20 = arith.mulf %19, %16 : vector<32x128xf32>
    %21 = arith.select %18, %16, %20 : vector<32x128xi1>, vector<32x128xf32>
    %22 = arith.truncf %21 : vector<32x128xf32> to vector<32x128xbf16>
    %c0_13 = arith.constant 0 : index
    %c0_14 = arith.constant 0 : index
    %23 = vector.load %arg6[%c0_13, %c0_14] : memref<32x128xbf16, #tpu.memory_space<vmem>>, vector<32x128xbf16>
    tpu.vector_store %arg6[%c0_13, %c0_14], %22 {strides = array<i32>} : memref<32x128xbf16, #tpu.memory_space<vmem>>, vector<32x128xbf16>,
    return
  }
  func.func @transform_0(%arg0: i32) -> (i32, i32) {
    %c0_i32 = arith.constant 0 : i32
    %c0_i32_0 = arith.constant 0 : i32
    return %arg0, %c0_i32 : i32, i32
  }
  func.func @transform_1(%arg0: i32) -> (i32, i32) {
    %c0_i32 = arith.constant 0 : i32
    %c0_i32_0 = arith.constant 0 : i32
    %c0_i32_1 = arith.constant 0 : i32
    return %c0_i32, %c0_i32_0 : i32, i32
  }
  func.func @transform_2(%arg0: i32) -> (i32, i32) {
    %c0_i32 = arith.constant 0 : i32
    %c0_i32_0 = arith.constant 0 : i32
    %c0_i32_1 = arith.constant 0 : i32
    return %c0_i32, %c0_i32_0 : i32, i32
  }
  func.func @transform_3(%arg0: i32) -> (i32, i32) {
    %c0_i32 = arith.constant 0 : i32
    %c0_i32_0 = arith.constant 0 : i32
    %c0_i32_1 = arith.constant 0 : i32
    return %c0_i32, %c0_i32_0 : i32, i32
  }
  func.func @transform_4(%arg0: i32) -> (i32, i32) {
    %c0_i32 = arith.constant 0 : i32
    %c0_i32_0 = arith.constant 0 : i32
    return %arg0, %c0_i32 : i32, i32
  }
  func.func @transform_5(%arg0: i32) -> (i32, i32) {
    %c0_i32 = arith.constant 0 : i32
    %c0_i32_0 = arith.constant 0 : i32
    return %arg0, %c0_i32 : i32, i32
  }
}

module attributes {stable_mosaic.version = 11 : i64} {
  func.func @_mm_kernel(%arg0: i32, %arg1: memref<32x144xbf16, #tpu.memory_space<vmem>>, %arg2: memref<144x16xbf16, #tpu.memory_space<vmem>>, %arg3: memref<1x16xf32, #tpu.memory_space<vmem>>, %arg4: memref<1x16xf32, #tpu.memory_space<vmem>>, %arg5: memref<32x16xbf16, #tpu.memory_space<vmem>>) attributes {dimension_semantics = [#tpu.dimension_semantics<parallel>], iteration_bounds = array<i64: 1>, scalar_prefetch = 0 : i64, scratch_operands = 0 : i64, tpu.core_type = #tpu.core_type<tc>, window_params = [{transform_indices = @transform_0, window_bounds = array<i64: 32, 144>}, {pipeline_mode = #tpu.pipeline_mode<synchronous>, transform_indices = @transform_1, window_bounds = array<i64: 144, 16>}, {pipeline_mode = #tpu.pipeline_mode<synchronous>, transform_indices = @transform_2, window_bounds = array<i64: 1, 16>}, {pipeline_mode = #tpu.pipeline_mode<synchronous>, transform_indices = @transform_3, window_bounds = array<i64: 1, 16>}, {transform_indices = @transform_4, window_bounds = array<i64: 32, 16>}]} {
    %c0 = arith.constant 0 : index
    %c0_0 = arith.constant 0 : index
    %0 = vector.load %arg1[%c0, %c0_0] : memref<32x144xbf16, #tpu.memory_space<vmem>>, vector<32x144xbf16>
    %c0_1 = arith.constant 0 : index
    %c0_2 = arith.constant 0 : index
    %1 = vector.load %arg2[%c0_1, %c0_2] : memref<144x16xbf16, #tpu.memory_space<vmem>>, vector<144x16xbf16>
    %cst = arith.constant dense<0.000000e+00> : vector<32x16xf32>
    %2 = tpu.matmul %0, %1, %cst {dimension_numbers = #tpu.dot_dimension_numbers<[1], [0], [0], [1], [0, 0, 1, 1], [], []>} : vector<32x144xbf16>, vector<144x16xbf16>, vector<32x16xf32> -> vector<32x16xf32>
    %c0_3 = arith.constant 0 : index
    %c0_4 = arith.constant 0 : index
    %3 = vector.load %arg3[%c0_3, %c0_4] : memref<1x16xf32, #tpu.memory_space<vmem>>, vector<1x16xf32>
    %4 = vector.broadcast %3 : vector<1x16xf32> to vector<32x16xf32>
    %5 = arith.mulf %2, %4 : vector<32x16xf32>
    %c0_5 = arith.constant 0 : index
    %c0_6 = arith.constant 0 : index
    %6 = vector.load %arg4[%c0_5, %c0_6] : memref<1x16xf32, #tpu.memory_space<vmem>>, vector<1x16xf32>
    %7 = vector.broadcast %6 : vector<1x16xf32> to vector<32x16xf32>
    %8 = arith.addf %5, %7 : vector<32x16xf32>
    %cst_7 = arith.constant 0.000000e+00 : f32
    %9 = vector.broadcast %cst_7 : f32 to vector<32x16xf32>
    %10 = arith.cmpf ogt, %8, %9 : vector<32x16xf32>
    %cst_8 = arith.constant 2.500000e-01 : f32
    %11 = vector.broadcast %cst_8 : f32 to vector<32x16xf32>
    %12 = arith.mulf %11, %8 : vector<32x16xf32>
    %13 = arith.select %10, %8, %12 : vector<32x16xi1>, vector<32x16xf32>
    %14 = arith.truncf %13 : vector<32x16xf32> to vector<32x16xbf16>
    %c0_9 = arith.constant 0 : index
    %c0_10 = arith.constant 0 : index
    %15 = vector.load %arg5[%c0_9, %c0_10] : memref<32x16xbf16, #tpu.memory_space<vmem>>, vector<32x16xbf16>
    tpu.vector_store %arg5[%c0_9, %c0_10], %14 {strides = array<i32>} : memref<32x16xbf16, #tpu.memory_space<vmem>>, vector<32x16xbf16>,
    return
  }
  func.func @transform_0(%arg0: i32) -> (i32, i32) {
    %c0_i32 = arith.constant 0 : i32
    %c0_i32_0 = arith.constant 0 : i32
    return %arg0, %c0_i32 : i32, i32
  }
  func.func @transform_1(%arg0: i32) -> (i32, i32) {
    %c0_i32 = arith.constant 0 : i32
    %c0_i32_0 = arith.constant 0 : i32
    %c0_i32_1 = arith.constant 0 : i32
    return %c0_i32, %c0_i32_0 : i32, i32
  }
  func.func @transform_2(%arg0: i32) -> (i32, i32) {
    %c0_i32 = arith.constant 0 : i32
    %c0_i32_0 = arith.constant 0 : i32
    %c0_i32_1 = arith.constant 0 : i32
    return %c0_i32, %c0_i32_0 : i32, i32
  }
  func.func @transform_3(%arg0: i32) -> (i32, i32) {
    %c0_i32 = arith.constant 0 : i32
    %c0_i32_0 = arith.constant 0 : i32
    %c0_i32_1 = arith.constant 0 : i32
    return %c0_i32, %c0_i32_0 : i32, i32
  }
  func.func @transform_4(%arg0: i32) -> (i32, i32) {
    %c0_i32 = arith.constant 0 : i32
    %c0_i32_0 = arith.constant 0 : i32
    return %arg0, %c0_i32 : i32, i32
  }
}

module attributes {stable_mosaic.version = 11 : i64} {
  func.func @_mm_kernel(%arg0: i32, %arg1: memref<32x128xbf16, #tpu.memory_space<vmem>>, %arg2: memref<128x32xbf16, #tpu.memory_space<vmem>>, %arg3: memref<1x32xf32, #tpu.memory_space<vmem>>, %arg4: memref<1x32xf32, #tpu.memory_space<vmem>>, %arg5: memref<32x32xbf16, #tpu.memory_space<vmem>>) attributes {dimension_semantics = [#tpu.dimension_semantics<parallel>], iteration_bounds = array<i64: 1>, scalar_prefetch = 0 : i64, scratch_operands = 0 : i64, tpu.core_type = #tpu.core_type<tc>, window_params = [{transform_indices = @transform_0, window_bounds = array<i64: 32, 128>}, {pipeline_mode = #tpu.pipeline_mode<synchronous>, transform_indices = @transform_1, window_bounds = array<i64: 128, 32>}, {pipeline_mode = #tpu.pipeline_mode<synchronous>, transform_indices = @transform_2, window_bounds = array<i64: 1, 32>}, {pipeline_mode = #tpu.pipeline_mode<synchronous>, transform_indices = @transform_3, window_bounds = array<i64: 1, 32>}, {transform_indices = @transform_4, window_bounds = array<i64: 32, 32>}]} {
    %c0 = arith.constant 0 : index
    %c0_0 = arith.constant 0 : index
    %0 = vector.load %arg1[%c0, %c0_0] : memref<32x128xbf16, #tpu.memory_space<vmem>>, vector<32x128xbf16>
    %c0_1 = arith.constant 0 : index
    %c0_2 = arith.constant 0 : index
    %1 = vector.load %arg2[%c0_1, %c0_2] : memref<128x32xbf16, #tpu.memory_space<vmem>>, vector<128x32xbf16>
    %cst = arith.constant dense<0.000000e+00> : vector<32x32xf32>
    %2 = tpu.matmul %0, %1, %cst {dimension_numbers = #tpu.dot_dimension_numbers<[1], [0], [0], [1], [0, 0, 1, 1], [], []>} : vector<32x128xbf16>, vector<128x32xbf16>, vector<32x32xf32> -> vector<32x32xf32>
    %c0_3 = arith.constant 0 : index
    %c0_4 = arith.constant 0 : index
    %3 = vector.load %arg3[%c0_3, %c0_4] : memref<1x32xf32, #tpu.memory_space<vmem>>, vector<1x32xf32>
    %4 = vector.broadcast %3 : vector<1x32xf32> to vector<32x32xf32>
    %5 = arith.mulf %2, %4 : vector<32x32xf32>
    %c0_5 = arith.constant 0 : index
    %c0_6 = arith.constant 0 : index
    %6 = vector.load %arg4[%c0_5, %c0_6] : memref<1x32xf32, #tpu.memory_space<vmem>>, vector<1x32xf32>
    %7 = vector.broadcast %6 : vector<1x32xf32> to vector<32x32xf32>
    %8 = arith.addf %5, %7 : vector<32x32xf32>
    %cst_7 = arith.constant 0.000000e+00 : f32
    %9 = vector.broadcast %cst_7 : f32 to vector<32x32xf32>
    %10 = arith.cmpf ogt, %8, %9 : vector<32x32xf32>
    %cst_8 = arith.constant 2.500000e-01 : f32
    %11 = vector.broadcast %cst_8 : f32 to vector<32x32xf32>
    %12 = arith.mulf %11, %8 : vector<32x32xf32>
    %13 = arith.select %10, %8, %12 : vector<32x32xi1>, vector<32x32xf32>
    %14 = arith.truncf %13 : vector<32x32xf32> to vector<32x32xbf16>
    %c0_9 = arith.constant 0 : index
    %c0_10 = arith.constant 0 : index
    %15 = vector.load %arg5[%c0_9, %c0_10] : memref<32x32xbf16, #tpu.memory_space<vmem>>, vector<32x32xbf16>
    tpu.vector_store %arg5[%c0_9, %c0_10], %14 {strides = array<i32>} : memref<32x32xbf16, #tpu.memory_space<vmem>>, vector<32x32xbf16>,
    return
  }
  func.func @transform_0(%arg0: i32) -> (i32, i32) {
    %c0_i32 = arith.constant 0 : i32
    %c0_i32_0 = arith.constant 0 : i32
    return %arg0, %c0_i32 : i32, i32
  }
  func.func @transform_1(%arg0: i32) -> (i32, i32) {
    %c0_i32 = arith.constant 0 : i32
    %c0_i32_0 = arith.constant 0 : i32
    %c0_i32_1 = arith.constant 0 : i32
    return %c0_i32, %c0_i32_0 : i32, i32
  }
  func.func @transform_2(%arg0: i32) -> (i32, i32) {
    %c0_i32 = arith.constant 0 : i32
    %c0_i32_0 = arith.constant 0 : i32
    %c0_i32_1 = arith.constant 0 : i32
    return %c0_i32, %c0_i32_0 : i32, i32
  }
  func.func @transform_3(%arg0: i32) -> (i32, i32) {
    %c0_i32 = arith.constant 0 : i32
    %c0_i32_0 = arith.constant 0 : i32
    %c0_i32_1 = arith.constant 0 : i32
    return %c0_i32, %c0_i32_0 : i32, i32
  }
  func.func @transform_4(%arg0: i32) -> (i32, i32) {
    %c0_i32 = arith.constant 0 : i32
    %c0_i32_0 = arith.constant 0 : i32
    return %arg0, %c0_i32 : i32, i32
  }
}

module attributes {stable_mosaic.version = 11 : i64} {
  func.func @_mm_kernel(%arg0: i32, %arg1: memref<32x288xbf16, #tpu.memory_space<vmem>>, %arg2: memref<288x32xbf16, #tpu.memory_space<vmem>>, %arg3: memref<1x32xf32, #tpu.memory_space<vmem>>, %arg4: memref<1x32xf32, #tpu.memory_space<vmem>>, %arg5: memref<32x32xbf16, #tpu.memory_space<vmem>>) attributes {dimension_semantics = [#tpu.dimension_semantics<parallel>], iteration_bounds = array<i64: 1>, scalar_prefetch = 0 : i64, scratch_operands = 0 : i64, tpu.core_type = #tpu.core_type<tc>, window_params = [{transform_indices = @transform_0, window_bounds = array<i64: 32, 288>}, {pipeline_mode = #tpu.pipeline_mode<synchronous>, transform_indices = @transform_1, window_bounds = array<i64: 288, 32>}, {pipeline_mode = #tpu.pipeline_mode<synchronous>, transform_indices = @transform_2, window_bounds = array<i64: 1, 32>}, {pipeline_mode = #tpu.pipeline_mode<synchronous>, transform_indices = @transform_3, window_bounds = array<i64: 1, 32>}, {transform_indices = @transform_4, window_bounds = array<i64: 32, 32>}]} {
    %c0 = arith.constant 0 : index
    %c0_0 = arith.constant 0 : index
    %0 = vector.load %arg1[%c0, %c0_0] : memref<32x288xbf16, #tpu.memory_space<vmem>>, vector<32x288xbf16>
    %c0_1 = arith.constant 0 : index
    %c0_2 = arith.constant 0 : index
    %1 = vector.load %arg2[%c0_1, %c0_2] : memref<288x32xbf16, #tpu.memory_space<vmem>>, vector<288x32xbf16>
    %cst = arith.constant dense<0.000000e+00> : vector<32x32xf32>
    %2 = tpu.matmul %0, %1, %cst {dimension_numbers = #tpu.dot_dimension_numbers<[1], [0], [0], [1], [0, 0, 1, 1], [], []>} : vector<32x288xbf16>, vector<288x32xbf16>, vector<32x32xf32> -> vector<32x32xf32>
    %c0_3 = arith.constant 0 : index
    %c0_4 = arith.constant 0 : index
    %3 = vector.load %arg3[%c0_3, %c0_4] : memref<1x32xf32, #tpu.memory_space<vmem>>, vector<1x32xf32>
    %4 = vector.broadcast %3 : vector<1x32xf32> to vector<32x32xf32>
    %5 = arith.mulf %2, %4 : vector<32x32xf32>
    %c0_5 = arith.constant 0 : index
    %c0_6 = arith.constant 0 : index
    %6 = vector.load %arg4[%c0_5, %c0_6] : memref<1x32xf32, #tpu.memory_space<vmem>>, vector<1x32xf32>
    %7 = vector.broadcast %6 : vector<1x32xf32> to vector<32x32xf32>
    %8 = arith.addf %5, %7 : vector<32x32xf32>
    %cst_7 = arith.constant 0.000000e+00 : f32
    %9 = vector.broadcast %cst_7 : f32 to vector<32x32xf32>
    %10 = arith.cmpf ogt, %8, %9 : vector<32x32xf32>
    %cst_8 = arith.constant 2.500000e-01 : f32
    %11 = vector.broadcast %cst_8 : f32 to vector<32x32xf32>
    %12 = arith.mulf %11, %8 : vector<32x32xf32>
    %13 = arith.select %10, %8, %12 : vector<32x32xi1>, vector<32x32xf32>
    %14 = arith.truncf %13 : vector<32x32xf32> to vector<32x32xbf16>
    %c0_9 = arith.constant 0 : index
    %c0_10 = arith.constant 0 : index
    %15 = vector.load %arg5[%c0_9, %c0_10] : memref<32x32xbf16, #tpu.memory_space<vmem>>, vector<32x32xbf16>
    tpu.vector_store %arg5[%c0_9, %c0_10], %14 {strides = array<i32>} : memref<32x32xbf16, #tpu.memory_space<vmem>>, vector<32x32xbf16>,
    return
  }
  func.func @transform_0(%arg0: i32) -> (i32, i32) {
    %c0_i32 = arith.constant 0 : i32
    %c0_i32_0 = arith.constant 0 : i32
    return %arg0, %c0_i32 : i32, i32
  }
  func.func @transform_1(%arg0: i32) -> (i32, i32) {
    %c0_i32 = arith.constant 0 : i32
    %c0_i32_0 = arith.constant 0 : i32
    %c0_i32_1 = arith.constant 0 : i32
    return %c0_i32, %c0_i32_0 : i32, i32
  }
  func.func @transform_2(%arg0: i32) -> (i32, i32) {
    %c0_i32 = arith.constant 0 : i32
    %c0_i32_0 = arith.constant 0 : i32
    %c0_i32_1 = arith.constant 0 : i32
    return %c0_i32, %c0_i32_0 : i32, i32
  }
  func.func @transform_3(%arg0: i32) -> (i32, i32) {
    %c0_i32 = arith.constant 0 : i32
    %c0_i32_0 = arith.constant 0 : i32
    %c0_i32_1 = arith.constant 0 : i32
    return %c0_i32, %c0_i32_0 : i32, i32
  }
  func.func @transform_4(%arg0: i32) -> (i32, i32) {
    %c0_i32 = arith.constant 0 : i32
    %c0_i32_0 = arith.constant 0 : i32
    return %arg0, %c0_i32 : i32, i32
  }
}

module attributes {stable_mosaic.version = 11 : i64} {
  func.func @_mm_res_kernel(%arg0: i32, %arg1: memref<32x32xbf16, #tpu.memory_space<vmem>>, %arg2: memref<32x128xbf16, #tpu.memory_space<vmem>>, %arg3: memref<1x128xf32, #tpu.memory_space<vmem>>, %arg4: memref<1x128xf32, #tpu.memory_space<vmem>>, %arg5: memref<32x128xbf16, #tpu.memory_space<vmem>>, %arg6: memref<32x128xbf16, #tpu.memory_space<vmem>>) attributes {dimension_semantics = [#tpu.dimension_semantics<parallel>], iteration_bounds = array<i64: 1>, scalar_prefetch = 0 : i64, scratch_operands = 0 : i64, tpu.core_type = #tpu.core_type<tc>, window_params = [{transform_indices = @transform_0, window_bounds = array<i64: 32, 32>}, {pipeline_mode = #tpu.pipeline_mode<synchronous>, transform_indices = @transform_1, window_bounds = array<i64: 32, 128>}, {pipeline_mode = #tpu.pipeline_mode<synchronous>, transform_indices = @transform_2, window_bounds = array<i64: 1, 128>}, {pipeline_mode = #tpu.pipeline_mode<synchronous>, transform_indices = @transform_3, window_bounds = array<i64: 1, 128>}, {transform_indices = @transform_4, window_bounds = array<i64: 32, 128>}, {transform_indices = @transform_5, window_bounds = array<i64: 32, 128>}]} {
    %c0 = arith.constant 0 : index
    %c0_0 = arith.constant 0 : index
    %0 = vector.load %arg1[%c0, %c0_0] : memref<32x32xbf16, #tpu.memory_space<vmem>>, vector<32x32xbf16>
    %c0_1 = arith.constant 0 : index
    %c0_2 = arith.constant 0 : index
    %1 = vector.load %arg2[%c0_1, %c0_2] : memref<32x128xbf16, #tpu.memory_space<vmem>>, vector<32x128xbf16>
    %cst = arith.constant dense<0.000000e+00> : vector<32x128xf32>
    %2 = tpu.matmul %0, %1, %cst {dimension_numbers = #tpu.dot_dimension_numbers<[1], [0], [0], [1], [0, 0, 1, 1], [], []>} : vector<32x32xbf16>, vector<32x128xbf16>, vector<32x128xf32> -> vector<32x128xf32>
    %c0_3 = arith.constant 0 : index
    %c0_4 = arith.constant 0 : index
    %3 = vector.load %arg3[%c0_3, %c0_4] : memref<1x128xf32, #tpu.memory_space<vmem>>, vector<1x128xf32>
    %4 = vector.broadcast %3 : vector<1x128xf32> to vector<32x128xf32>
    %5 = arith.mulf %2, %4 : vector<32x128xf32>
    %c0_5 = arith.constant 0 : index
    %c0_6 = arith.constant 0 : index
    %6 = vector.load %arg4[%c0_5, %c0_6] : memref<1x128xf32, #tpu.memory_space<vmem>>, vector<1x128xf32>
    %7 = vector.broadcast %6 : vector<1x128xf32> to vector<32x128xf32>
    %8 = arith.addf %5, %7 : vector<32x128xf32>
    %cst_7 = arith.constant 0.000000e+00 : f32
    %9 = vector.broadcast %cst_7 : f32 to vector<32x128xf32>
    %10 = arith.cmpf ogt, %8, %9 : vector<32x128xf32>
    %cst_8 = arith.constant 2.500000e-01 : f32
    %11 = vector.broadcast %cst_8 : f32 to vector<32x128xf32>
    %12 = arith.mulf %11, %8 : vector<32x128xf32>
    %13 = arith.select %10, %8, %12 : vector<32x128xi1>, vector<32x128xf32>
    %c0_9 = arith.constant 0 : index
    %c0_10 = arith.constant 0 : index
    %14 = vector.load %arg5[%c0_9, %c0_10] : memref<32x128xbf16, #tpu.memory_space<vmem>>, vector<32x128xbf16>
    %15 = arith.extf %14 : vector<32x128xbf16> to vector<32x128xf32>
    %16 = arith.addf %13, %15 : vector<32x128xf32>
    %cst_11 = arith.constant 0.000000e+00 : f32
    %17 = vector.broadcast %cst_11 : f32 to vector<32x128xf32>
    %18 = arith.cmpf ogt, %16, %17 : vector<32x128xf32>
    %cst_12 = arith.constant 2.500000e-01 : f32
    %19 = vector.broadcast %cst_12 : f32 to vector<32x128xf32>
    %20 = arith.mulf %19, %16 : vector<32x128xf32>
    %21 = arith.select %18, %16, %20 : vector<32x128xi1>, vector<32x128xf32>
    %22 = arith.truncf %21 : vector<32x128xf32> to vector<32x128xbf16>
    %c0_13 = arith.constant 0 : index
    %c0_14 = arith.constant 0 : index
    %23 = vector.load %arg6[%c0_13, %c0_14] : memref<32x128xbf16, #tpu.memory_space<vmem>>, vector<32x128xbf16>
    tpu.vector_store %arg6[%c0_13, %c0_14], %22 {strides = array<i32>} : memref<32x128xbf16, #tpu.memory_space<vmem>>, vector<32x128xbf16>,
    return
  }
  func.func @transform_0(%arg0: i32) -> (i32, i32) {
    %c0_i32 = arith.constant 0 : i32
    %c0_i32_0 = arith.constant 0 : i32
    return %arg0, %c0_i32 : i32, i32
  }
  func.func @transform_1(%arg0: i32) -> (i32, i32) {
    %c0_i32 = arith.constant 0 : i32
    %c0_i32_0 = arith.constant 0 : i32
    %c0_i32_1 = arith.constant 0 : i32
    return %c0_i32, %c0_i32_0 : i32, i32
  }
  func.func @transform_2(%arg0: i32) -> (i32, i32) {
    %c0_i32 = arith.constant 0 : i32
    %c0_i32_0 = arith.constant 0 : i32
    %c0_i32_1 = arith.constant 0 : i32
    return %c0_i32, %c0_i32_0 : i32, i32
  }
  func.func @transform_3(%arg0: i32) -> (i32, i32) {
    %c0_i32 = arith.constant 0 : i32
    %c0_i32_0 = arith.constant 0 : i32
    %c0_i32_1 = arith.constant 0 : i32
    return %c0_i32, %c0_i32_0 : i32, i32
  }
  func.func @transform_4(%arg0: i32) -> (i32, i32) {
    %c0_i32 = arith.constant 0 : i32
    %c0_i32_0 = arith.constant 0 : i32
    return %arg0, %c0_i32 : i32, i32
  }
  func.func @transform_5(%arg0: i32) -> (i32, i32) {
    %c0_i32 = arith.constant 0 : i32
    %c0_i32_0 = arith.constant 0 : i32
    return %arg0, %c0_i32 : i32, i32
  }
}

module attributes {stable_mosaic.version = 11 : i64} {
  func.func @_mm_kernel(%arg0: i32, %arg1: memref<32x160xbf16, #tpu.memory_space<vmem>>, %arg2: memref<160x32xbf16, #tpu.memory_space<vmem>>, %arg3: memref<1x32xf32, #tpu.memory_space<vmem>>, %arg4: memref<1x32xf32, #tpu.memory_space<vmem>>, %arg5: memref<32x32xbf16, #tpu.memory_space<vmem>>) attributes {dimension_semantics = [#tpu.dimension_semantics<parallel>], iteration_bounds = array<i64: 1>, scalar_prefetch = 0 : i64, scratch_operands = 0 : i64, tpu.core_type = #tpu.core_type<tc>, window_params = [{transform_indices = @transform_0, window_bounds = array<i64: 32, 160>}, {pipeline_mode = #tpu.pipeline_mode<synchronous>, transform_indices = @transform_1, window_bounds = array<i64: 160, 32>}, {pipeline_mode = #tpu.pipeline_mode<synchronous>, transform_indices = @transform_2, window_bounds = array<i64: 1, 32>}, {pipeline_mode = #tpu.pipeline_mode<synchronous>, transform_indices = @transform_3, window_bounds = array<i64: 1, 32>}, {transform_indices = @transform_4, window_bounds = array<i64: 32, 32>}]} {
    %c0 = arith.constant 0 : index
    %c0_0 = arith.constant 0 : index
    %0 = vector.load %arg1[%c0, %c0_0] : memref<32x160xbf16, #tpu.memory_space<vmem>>, vector<32x160xbf16>
    %c0_1 = arith.constant 0 : index
    %c0_2 = arith.constant 0 : index
    %1 = vector.load %arg2[%c0_1, %c0_2] : memref<160x32xbf16, #tpu.memory_space<vmem>>, vector<160x32xbf16>
    %cst = arith.constant dense<0.000000e+00> : vector<32x32xf32>
    %2 = tpu.matmul %0, %1, %cst {dimension_numbers = #tpu.dot_dimension_numbers<[1], [0], [0], [1], [0, 0, 1, 1], [], []>} : vector<32x160xbf16>, vector<160x32xbf16>, vector<32x32xf32> -> vector<32x32xf32>
    %c0_3 = arith.constant 0 : index
    %c0_4 = arith.constant 0 : index
    %3 = vector.load %arg3[%c0_3, %c0_4] : memref<1x32xf32, #tpu.memory_space<vmem>>, vector<1x32xf32>
    %4 = vector.broadcast %3 : vector<1x32xf32> to vector<32x32xf32>
    %5 = arith.mulf %2, %4 : vector<32x32xf32>
    %c0_5 = arith.constant 0 : index
    %c0_6 = arith.constant 0 : index
    %6 = vector.load %arg4[%c0_5, %c0_6] : memref<1x32xf32, #tpu.memory_space<vmem>>, vector<1x32xf32>
    %7 = vector.broadcast %6 : vector<1x32xf32> to vector<32x32xf32>
    %8 = arith.addf %5, %7 : vector<32x32xf32>
    %cst_7 = arith.constant 0.000000e+00 : f32
    %9 = vector.broadcast %cst_7 : f32 to vector<32x32xf32>
    %10 = arith.cmpf ogt, %8, %9 : vector<32x32xf32>
    %cst_8 = arith.constant 2.500000e-01 : f32
    %11 = vector.broadcast %cst_8 : f32 to vector<32x32xf32>
    %12 = arith.mulf %11, %8 : vector<32x32xf32>
    %13 = arith.select %10, %8, %12 : vector<32x32xi1>, vector<32x32xf32>
    %14 = arith.truncf %13 : vector<32x32xf32> to vector<32x32xbf16>
    %c0_9 = arith.constant 0 : index
    %c0_10 = arith.constant 0 : index
    %15 = vector.load %arg5[%c0_9, %c0_10] : memref<32x32xbf16, #tpu.memory_space<vmem>>, vector<32x32xbf16>
    tpu.vector_store %arg5[%c0_9, %c0_10], %14 {strides = array<i32>} : memref<32x32xbf16, #tpu.memory_space<vmem>>, vector<32x32xbf16>,
    return
  }
  func.func @transform_0(%arg0: i32) -> (i32, i32) {
    %c0_i32 = arith.constant 0 : i32
    %c0_i32_0 = arith.constant 0 : i32
    return %arg0, %c0_i32 : i32, i32
  }
  func.func @transform_1(%arg0: i32) -> (i32, i32) {
    %c0_i32 = arith.constant 0 : i32
    %c0_i32_0 = arith.constant 0 : i32
    %c0_i32_1 = arith.constant 0 : i32
    return %c0_i32, %c0_i32_0 : i32, i32
  }
  func.func @transform_2(%arg0: i32) -> (i32, i32) {
    %c0_i32 = arith.constant 0 : i32
    %c0_i32_0 = arith.constant 0 : i32
    %c0_i32_1 = arith.constant 0 : i32
    return %c0_i32, %c0_i32_0 : i32, i32
  }
  func.func @transform_3(%arg0: i32) -> (i32, i32) {
    %c0_i32 = arith.constant 0 : i32
    %c0_i32_0 = arith.constant 0 : i32
    %c0_i32_1 = arith.constant 0 : i32
    return %c0_i32, %c0_i32_0 : i32, i32
  }
  func.func @transform_4(%arg0: i32) -> (i32, i32) {
    %c0_i32 = arith.constant 0 : i32
    %c0_i32_0 = arith.constant 0 : i32
    return %arg0, %c0_i32 : i32, i32
  }
}

module attributes {stable_mosaic.version = 11 : i64} {
  func.func @_mm_kernel(%arg0: i32, %arg1: memref<32x128xbf16, #tpu.memory_space<vmem>>, %arg2: memref<128x64xbf16, #tpu.memory_space<vmem>>, %arg3: memref<1x64xf32, #tpu.memory_space<vmem>>, %arg4: memref<1x64xf32, #tpu.memory_space<vmem>>, %arg5: memref<32x64xbf16, #tpu.memory_space<vmem>>) attributes {dimension_semantics = [#tpu.dimension_semantics<parallel>], iteration_bounds = array<i64: 1>, scalar_prefetch = 0 : i64, scratch_operands = 0 : i64, tpu.core_type = #tpu.core_type<tc>, window_params = [{transform_indices = @transform_0, window_bounds = array<i64: 32, 128>}, {pipeline_mode = #tpu.pipeline_mode<synchronous>, transform_indices = @transform_1, window_bounds = array<i64: 128, 64>}, {pipeline_mode = #tpu.pipeline_mode<synchronous>, transform_indices = @transform_2, window_bounds = array<i64: 1, 64>}, {pipeline_mode = #tpu.pipeline_mode<synchronous>, transform_indices = @transform_3, window_bounds = array<i64: 1, 64>}, {transform_indices = @transform_4, window_bounds = array<i64: 32, 64>}]} {
    %c0 = arith.constant 0 : index
    %c0_0 = arith.constant 0 : index
    %0 = vector.load %arg1[%c0, %c0_0] : memref<32x128xbf16, #tpu.memory_space<vmem>>, vector<32x128xbf16>
    %c0_1 = arith.constant 0 : index
    %c0_2 = arith.constant 0 : index
    %1 = vector.load %arg2[%c0_1, %c0_2] : memref<128x64xbf16, #tpu.memory_space<vmem>>, vector<128x64xbf16>
    %cst = arith.constant dense<0.000000e+00> : vector<32x64xf32>
    %2 = tpu.matmul %0, %1, %cst {dimension_numbers = #tpu.dot_dimension_numbers<[1], [0], [0], [1], [0, 0, 1, 1], [], []>} : vector<32x128xbf16>, vector<128x64xbf16>, vector<32x64xf32> -> vector<32x64xf32>
    %c0_3 = arith.constant 0 : index
    %c0_4 = arith.constant 0 : index
    %3 = vector.load %arg3[%c0_3, %c0_4] : memref<1x64xf32, #tpu.memory_space<vmem>>, vector<1x64xf32>
    %4 = vector.broadcast %3 : vector<1x64xf32> to vector<32x64xf32>
    %5 = arith.mulf %2, %4 : vector<32x64xf32>
    %c0_5 = arith.constant 0 : index
    %c0_6 = arith.constant 0 : index
    %6 = vector.load %arg4[%c0_5, %c0_6] : memref<1x64xf32, #tpu.memory_space<vmem>>, vector<1x64xf32>
    %7 = vector.broadcast %6 : vector<1x64xf32> to vector<32x64xf32>
    %8 = arith.addf %5, %7 : vector<32x64xf32>
    %9 = arith.truncf %8 : vector<32x64xf32> to vector<32x64xbf16>
    %c0_7 = arith.constant 0 : index
    %c0_8 = arith.constant 0 : index
    %10 = vector.load %arg5[%c0_7, %c0_8] : memref<32x64xbf16, #tpu.memory_space<vmem>>, vector<32x64xbf16>
    tpu.vector_store %arg5[%c0_7, %c0_8], %9 {strides = array<i32>} : memref<32x64xbf16, #tpu.memory_space<vmem>>, vector<32x64xbf16>,
    return
  }
  func.func @transform_0(%arg0: i32) -> (i32, i32) {
    %c0_i32 = arith.constant 0 : i32
    %c0_i32_0 = arith.constant 0 : i32
    return %arg0, %c0_i32 : i32, i32
  }
  func.func @transform_1(%arg0: i32) -> (i32, i32) {
    %c0_i32 = arith.constant 0 : i32
    %c0_i32_0 = arith.constant 0 : i32
    %c0_i32_1 = arith.constant 0 : i32
    return %c0_i32, %c0_i32_0 : i32, i32
  }
  func.func @transform_2(%arg0: i32) -> (i32, i32) {
    %c0_i32 = arith.constant 0 : i32
    %c0_i32_0 = arith.constant 0 : i32
    %c0_i32_1 = arith.constant 0 : i32
    return %c0_i32, %c0_i32_0 : i32, i32
  }
  func.func @transform_3(%arg0: i32) -> (i32, i32) {
    %c0_i32 = arith.constant 0 : i32
    %c0_i32_0 = arith.constant 0 : i32
    %c0_i32_1 = arith.constant 0 : i32
    return %c0_i32, %c0_i32_0 : i32, i32
  }
  func.func @transform_4(%arg0: i32) -> (i32, i32) {
    %c0_i32 = arith.constant 0 : i32
    %c0_i32_0 = arith.constant 0 : i32
    return %arg0, %c0_i32 : i32, i32
  }
}

module attributes {stable_mosaic.version = 11 : i64} {
  func.func @_mm_kernel(%arg0: i32, %arg1: memref<32x128xbf16, #tpu.memory_space<vmem>>, %arg2: memref<128x32xbf16, #tpu.memory_space<vmem>>, %arg3: memref<1x32xf32, #tpu.memory_space<vmem>>, %arg4: memref<1x32xf32, #tpu.memory_space<vmem>>, %arg5: memref<32x32xbf16, #tpu.memory_space<vmem>>) attributes {dimension_semantics = [#tpu.dimension_semantics<parallel>], iteration_bounds = array<i64: 1>, scalar_prefetch = 0 : i64, scratch_operands = 0 : i64, tpu.core_type = #tpu.core_type<tc>, window_params = [{transform_indices = @transform_0, window_bounds = array<i64: 32, 128>}, {pipeline_mode = #tpu.pipeline_mode<synchronous>, transform_indices = @transform_1, window_bounds = array<i64: 128, 32>}, {pipeline_mode = #tpu.pipeline_mode<synchronous>, transform_indices = @transform_2, window_bounds = array<i64: 1, 32>}, {pipeline_mode = #tpu.pipeline_mode<synchronous>, transform_indices = @transform_3, window_bounds = array<i64: 1, 32>}, {transform_indices = @transform_4, window_bounds = array<i64: 32, 32>}]} {
    %c0 = arith.constant 0 : index
    %c0_0 = arith.constant 0 : index
    %0 = vector.load %arg1[%c0, %c0_0] : memref<32x128xbf16, #tpu.memory_space<vmem>>, vector<32x128xbf16>
    %c0_1 = arith.constant 0 : index
    %c0_2 = arith.constant 0 : index
    %1 = vector.load %arg2[%c0_1, %c0_2] : memref<128x32xbf16, #tpu.memory_space<vmem>>, vector<128x32xbf16>
    %cst = arith.constant dense<0.000000e+00> : vector<32x32xf32>
    %2 = tpu.matmul %0, %1, %cst {dimension_numbers = #tpu.dot_dimension_numbers<[1], [0], [0], [1], [0, 0, 1, 1], [], []>} : vector<32x128xbf16>, vector<128x32xbf16>, vector<32x32xf32> -> vector<32x32xf32>
    %c0_3 = arith.constant 0 : index
    %c0_4 = arith.constant 0 : index
    %3 = vector.load %arg3[%c0_3, %c0_4] : memref<1x32xf32, #tpu.memory_space<vmem>>, vector<1x32xf32>
    %4 = vector.broadcast %3 : vector<1x32xf32> to vector<32x32xf32>
    %5 = arith.mulf %2, %4 : vector<32x32xf32>
    %c0_5 = arith.constant 0 : index
    %c0_6 = arith.constant 0 : index
    %6 = vector.load %arg4[%c0_5, %c0_6] : memref<1x32xf32, #tpu.memory_space<vmem>>, vector<1x32xf32>
    %7 = vector.broadcast %6 : vector<1x32xf32> to vector<32x32xf32>
    %8 = arith.addf %5, %7 : vector<32x32xf32>
    %cst_7 = arith.constant 0.000000e+00 : f32
    %9 = vector.broadcast %cst_7 : f32 to vector<32x32xf32>
    %10 = arith.maximumf %8, %9 : vector<32x32xf32>
    %11 = arith.truncf %10 : vector<32x32xf32> to vector<32x32xbf16>
    %c0_8 = arith.constant 0 : index
    %c0_9 = arith.constant 0 : index
    %12 = vector.load %arg5[%c0_8, %c0_9] : memref<32x32xbf16, #tpu.memory_space<vmem>>, vector<32x32xbf16>
    tpu.vector_store %arg5[%c0_8, %c0_9], %11 {strides = array<i32>} : memref<32x32xbf16, #tpu.memory_space<vmem>>, vector<32x32xbf16>,
    return
  }
  func.func @transform_0(%arg0: i32) -> (i32, i32) {
    %c0_i32 = arith.constant 0 : i32
    %c0_i32_0 = arith.constant 0 : i32
    return %arg0, %c0_i32 : i32, i32
  }
  func.func @transform_1(%arg0: i32) -> (i32, i32) {
    %c0_i32 = arith.constant 0 : i32
    %c0_i32_0 = arith.constant 0 : i32
    %c0_i32_1 = arith.constant 0 : i32
    return %c0_i32, %c0_i32_0 : i32, i32
  }
  func.func @transform_2(%arg0: i32) -> (i32, i32) {
    %c0_i32 = arith.constant 0 : i32
    %c0_i32_0 = arith.constant 0 : i32
    %c0_i32_1 = arith.constant 0 : i32
    return %c0_i32, %c0_i32_0 : i32, i32
  }
  func.func @transform_3(%arg0: i32) -> (i32, i32) {
    %c0_i32 = arith.constant 0 : i32
    %c0_i32_0 = arith.constant 0 : i32
    %c0_i32_1 = arith.constant 0 : i32
    return %c0_i32, %c0_i32_0 : i32, i32
  }
  func.func @transform_4(%arg0: i32) -> (i32, i32) {
    %c0_i32 = arith.constant 0 : i32
    %c0_i32_0 = arith.constant 0 : i32
    return %arg0, %c0_i32 : i32, i32
  }
}

module attributes {stable_mosaic.version = 11 : i64} {
  func.func @_mm_kernel(%arg0: i32, %arg1: memref<128x288xbf16, #tpu.memory_space<vmem>>, %arg2: memref<288x32xbf16, #tpu.memory_space<vmem>>, %arg3: memref<1x32xf32, #tpu.memory_space<vmem>>, %arg4: memref<1x32xf32, #tpu.memory_space<vmem>>, %arg5: memref<128x32xbf16, #tpu.memory_space<vmem>>) attributes {dimension_semantics = [#tpu.dimension_semantics<parallel>], iteration_bounds = array<i64: 1>, scalar_prefetch = 0 : i64, scratch_operands = 0 : i64, tpu.core_type = #tpu.core_type<tc>, window_params = [{transform_indices = @transform_0, window_bounds = array<i64: 128, 288>}, {pipeline_mode = #tpu.pipeline_mode<synchronous>, transform_indices = @transform_1, window_bounds = array<i64: 288, 32>}, {pipeline_mode = #tpu.pipeline_mode<synchronous>, transform_indices = @transform_2, window_bounds = array<i64: 1, 32>}, {pipeline_mode = #tpu.pipeline_mode<synchronous>, transform_indices = @transform_3, window_bounds = array<i64: 1, 32>}, {transform_indices = @transform_4, window_bounds = array<i64: 128, 32>}]} {
    %c0 = arith.constant 0 : index
    %c0_0 = arith.constant 0 : index
    %0 = vector.load %arg1[%c0, %c0_0] : memref<128x288xbf16, #tpu.memory_space<vmem>>, vector<128x288xbf16>
    %c0_1 = arith.constant 0 : index
    %c0_2 = arith.constant 0 : index
    %1 = vector.load %arg2[%c0_1, %c0_2] : memref<288x32xbf16, #tpu.memory_space<vmem>>, vector<288x32xbf16>
    %cst = arith.constant dense<0.000000e+00> : vector<128x32xf32>
    %2 = tpu.matmul %0, %1, %cst {dimension_numbers = #tpu.dot_dimension_numbers<[1], [0], [0], [1], [0, 0, 1, 1], [], []>} : vector<128x288xbf16>, vector<288x32xbf16>, vector<128x32xf32> -> vector<128x32xf32>
    %c0_3 = arith.constant 0 : index
    %c0_4 = arith.constant 0 : index
    %3 = vector.load %arg3[%c0_3, %c0_4] : memref<1x32xf32, #tpu.memory_space<vmem>>, vector<1x32xf32>
    %4 = vector.broadcast %3 : vector<1x32xf32> to vector<128x32xf32>
    %5 = arith.mulf %2, %4 : vector<128x32xf32>
    %c0_5 = arith.constant 0 : index
    %c0_6 = arith.constant 0 : index
    %6 = vector.load %arg4[%c0_5, %c0_6] : memref<1x32xf32, #tpu.memory_space<vmem>>, vector<1x32xf32>
    %7 = vector.broadcast %6 : vector<1x32xf32> to vector<128x32xf32>
    %8 = arith.addf %5, %7 : vector<128x32xf32>
    %cst_7 = arith.constant 0.000000e+00 : f32
    %9 = vector.broadcast %cst_7 : f32 to vector<128x32xf32>
    %10 = arith.maximumf %8, %9 : vector<128x32xf32>
    %11 = arith.truncf %10 : vector<128x32xf32> to vector<128x32xbf16>
    %c0_8 = arith.constant 0 : index
    %c0_9 = arith.constant 0 : index
    %12 = vector.load %arg5[%c0_8, %c0_9] : memref<128x32xbf16, #tpu.memory_space<vmem>>, vector<128x32xbf16>
    tpu.vector_store %arg5[%c0_8, %c0_9], %11 {strides = array<i32>} : memref<128x32xbf16, #tpu.memory_space<vmem>>, vector<128x32xbf16>,
    return
  }
  func.func @transform_0(%arg0: i32) -> (i32, i32) {
    %c0_i32 = arith.constant 0 : i32
    %c0_i32_0 = arith.constant 0 : i32
    return %arg0, %c0_i32 : i32, i32
  }
  func.func @transform_1(%arg0: i32) -> (i32, i32) {
    %c0_i32 = arith.constant 0 : i32
    %c0_i32_0 = arith.constant 0 : i32
    %c0_i32_1 = arith.constant 0 : i32
    return %c0_i32, %c0_i32_0 : i32, i32
  }
  func.func @transform_2(%arg0: i32) -> (i32, i32) {
    %c0_i32 = arith.constant 0 : i32
    %c0_i32_0 = arith.constant 0 : i32
    %c0_i32_1 = arith.constant 0 : i32
    return %c0_i32, %c0_i32_0 : i32, i32
  }
  func.func @transform_3(%arg0: i32) -> (i32, i32) {
    %c0_i32 = arith.constant 0 : i32
    %c0_i32_0 = arith.constant 0 : i32
    %c0_i32_1 = arith.constant 0 : i32
    return %c0_i32, %c0_i32_0 : i32, i32
  }
  func.func @transform_4(%arg0: i32) -> (i32, i32) {
    %c0_i32 = arith.constant 0 : i32
    %c0_i32_0 = arith.constant 0 : i32
    return %arg0, %c0_i32 : i32, i32
  }
}

module attributes {stable_mosaic.version = 11 : i64} {
  func.func @_mm_res_kernel(%arg0: i32, %arg1: memref<128x32xbf16, #tpu.memory_space<vmem>>, %arg2: memref<32x64xbf16, #tpu.memory_space<vmem>>, %arg3: memref<1x64xf32, #tpu.memory_space<vmem>>, %arg4: memref<1x64xf32, #tpu.memory_space<vmem>>, %arg5: memref<128x64xbf16, #tpu.memory_space<vmem>>, %arg6: memref<128x64xbf16, #tpu.memory_space<vmem>>) attributes {dimension_semantics = [#tpu.dimension_semantics<parallel>], iteration_bounds = array<i64: 1>, scalar_prefetch = 0 : i64, scratch_operands = 0 : i64, tpu.core_type = #tpu.core_type<tc>, window_params = [{transform_indices = @transform_0, window_bounds = array<i64: 128, 32>}, {pipeline_mode = #tpu.pipeline_mode<synchronous>, transform_indices = @transform_1, window_bounds = array<i64: 32, 64>}, {pipeline_mode = #tpu.pipeline_mode<synchronous>, transform_indices = @transform_2, window_bounds = array<i64: 1, 64>}, {pipeline_mode = #tpu.pipeline_mode<synchronous>, transform_indices = @transform_3, window_bounds = array<i64: 1, 64>}, {transform_indices = @transform_4, window_bounds = array<i64: 128, 64>}, {transform_indices = @transform_5, window_bounds = array<i64: 128, 64>}]} {
    %c0 = arith.constant 0 : index
    %c0_0 = arith.constant 0 : index
    %0 = vector.load %arg1[%c0, %c0_0] : memref<128x32xbf16, #tpu.memory_space<vmem>>, vector<128x32xbf16>
    %c0_1 = arith.constant 0 : index
    %c0_2 = arith.constant 0 : index
    %1 = vector.load %arg2[%c0_1, %c0_2] : memref<32x64xbf16, #tpu.memory_space<vmem>>, vector<32x64xbf16>
    %cst = arith.constant dense<0.000000e+00> : vector<128x64xf32>
    %2 = tpu.matmul %0, %1, %cst {dimension_numbers = #tpu.dot_dimension_numbers<[1], [0], [0], [1], [0, 0, 1, 1], [], []>} : vector<128x32xbf16>, vector<32x64xbf16>, vector<128x64xf32> -> vector<128x64xf32>
    %c0_3 = arith.constant 0 : index
    %c0_4 = arith.constant 0 : index
    %3 = vector.load %arg3[%c0_3, %c0_4] : memref<1x64xf32, #tpu.memory_space<vmem>>, vector<1x64xf32>
    %4 = vector.broadcast %3 : vector<1x64xf32> to vector<128x64xf32>
    %5 = arith.mulf %2, %4 : vector<128x64xf32>
    %c0_5 = arith.constant 0 : index
    %c0_6 = arith.constant 0 : index
    %6 = vector.load %arg4[%c0_5, %c0_6] : memref<1x64xf32, #tpu.memory_space<vmem>>, vector<1x64xf32>
    %7 = vector.broadcast %6 : vector<1x64xf32> to vector<128x64xf32>
    %8 = arith.addf %5, %7 : vector<128x64xf32>
    %cst_7 = arith.constant 0.000000e+00 : f32
    %9 = vector.broadcast %cst_7 : f32 to vector<128x64xf32>
    %10 = arith.maximumf %8, %9 : vector<128x64xf32>
    %c0_8 = arith.constant 0 : index
    %c0_9 = arith.constant 0 : index
    %11 = vector.load %arg5[%c0_8, %c0_9] : memref<128x64xbf16, #tpu.memory_space<vmem>>, vector<128x64xbf16>
    %12 = arith.extf %11 : vector<128x64xbf16> to vector<128x64xf32>
    %13 = arith.addf %10, %12 : vector<128x64xf32>
    %cst_10 = arith.constant 0.000000e+00 : f32
    %14 = vector.broadcast %cst_10 : f32 to vector<128x64xf32>
    %15 = arith.maximumf %13, %14 : vector<128x64xf32>
    %16 = arith.truncf %15 : vector<128x64xf32> to vector<128x64xbf16>
    %c0_11 = arith.constant 0 : index
    %c0_12 = arith.constant 0 : index
    %17 = vector.load %arg6[%c0_11, %c0_12] : memref<128x64xbf16, #tpu.memory_space<vmem>>, vector<128x64xbf16>
    tpu.vector_store %arg6[%c0_11, %c0_12], %16 {strides = array<i32>} : memref<128x64xbf16, #tpu.memory_space<vmem>>, vector<128x64xbf16>,
    return
  }
  func.func @transform_0(%arg0: i32) -> (i32, i32) {
    %c0_i32 = arith.constant 0 : i32
    %c0_i32_0 = arith.constant 0 : i32
    return %arg0, %c0_i32 : i32, i32
  }
  func.func @transform_1(%arg0: i32) -> (i32, i32) {
    %c0_i32 = arith.constant 0 : i32
    %c0_i32_0 = arith.constant 0 : i32
    %c0_i32_1 = arith.constant 0 : i32
    return %c0_i32, %c0_i32_0 : i32, i32
  }
  func.func @transform_2(%arg0: i32) -> (i32, i32) {
    %c0_i32 = arith.constant 0 : i32
    %c0_i32_0 = arith.constant 0 : i32
    %c0_i32_1 = arith.constant 0 : i32
    return %c0_i32, %c0_i32_0 : i32, i32
  }
  func.func @transform_3(%arg0: i32) -> (i32, i32) {
    %c0_i32 = arith.constant 0 : i32
    %c0_i32_0 = arith.constant 0 : i32
    %c0_i32_1 = arith.constant 0 : i32
    return %c0_i32, %c0_i32_0 : i32, i32
  }
  func.func @transform_4(%arg0: i32) -> (i32, i32) {
    %c0_i32 = arith.constant 0 : i32
    %c0_i32_0 = arith.constant 0 : i32
    return %arg0, %c0_i32 : i32, i32
  }
  func.func @transform_5(%arg0: i32) -> (i32, i32) {
    %c0_i32 = arith.constant 0 : i32
    %c0_i32_0 = arith.constant 0 : i32
    return %arg0, %c0_i32 : i32, i32
  }
}

module attributes {stable_mosaic.version = 11 : i64} {
  func.func @_mm_kernel(%arg0: i32, %arg1: memref<128x64xbf16, #tpu.memory_space<vmem>>, %arg2: memref<64x16xbf16, #tpu.memory_space<vmem>>, %arg3: memref<1x16xf32, #tpu.memory_space<vmem>>, %arg4: memref<1x16xf32, #tpu.memory_space<vmem>>, %arg5: memref<128x16xbf16, #tpu.memory_space<vmem>>) attributes {dimension_semantics = [#tpu.dimension_semantics<parallel>], iteration_bounds = array<i64: 1>, scalar_prefetch = 0 : i64, scratch_operands = 0 : i64, tpu.core_type = #tpu.core_type<tc>, window_params = [{transform_indices = @transform_0, window_bounds = array<i64: 128, 64>}, {pipeline_mode = #tpu.pipeline_mode<synchronous>, transform_indices = @transform_1, window_bounds = array<i64: 64, 16>}, {pipeline_mode = #tpu.pipeline_mode<synchronous>, transform_indices = @transform_2, window_bounds = array<i64: 1, 16>}, {pipeline_mode = #tpu.pipeline_mode<synchronous>, transform_indices = @transform_3, window_bounds = array<i64: 1, 16>}, {transform_indices = @transform_4, window_bounds = array<i64: 128, 16>}]} {
    %c0 = arith.constant 0 : index
    %c0_0 = arith.constant 0 : index
    %0 = vector.load %arg1[%c0, %c0_0] : memref<128x64xbf16, #tpu.memory_space<vmem>>, vector<128x64xbf16>
    %c0_1 = arith.constant 0 : index
    %c0_2 = arith.constant 0 : index
    %1 = vector.load %arg2[%c0_1, %c0_2] : memref<64x16xbf16, #tpu.memory_space<vmem>>, vector<64x16xbf16>
    %cst = arith.constant dense<0.000000e+00> : vector<128x16xf32>
    %2 = tpu.matmul %0, %1, %cst {dimension_numbers = #tpu.dot_dimension_numbers<[1], [0], [0], [1], [0, 0, 1, 1], [], []>} : vector<128x64xbf16>, vector<64x16xbf16>, vector<128x16xf32> -> vector<128x16xf32>
    %c0_3 = arith.constant 0 : index
    %c0_4 = arith.constant 0 : index
    %3 = vector.load %arg3[%c0_3, %c0_4] : memref<1x16xf32, #tpu.memory_space<vmem>>, vector<1x16xf32>
    %4 = vector.broadcast %3 : vector<1x16xf32> to vector<128x16xf32>
    %5 = arith.mulf %2, %4 : vector<128x16xf32>
    %c0_5 = arith.constant 0 : index
    %c0_6 = arith.constant 0 : index
    %6 = vector.load %arg4[%c0_5, %c0_6] : memref<1x16xf32, #tpu.memory_space<vmem>>, vector<1x16xf32>
    %7 = vector.broadcast %6 : vector<1x16xf32> to vector<128x16xf32>
    %8 = arith.addf %5, %7 : vector<128x16xf32>
    %cst_7 = arith.constant 0.000000e+00 : f32
    %9 = vector.broadcast %cst_7 : f32 to vector<128x16xf32>
    %10 = arith.maximumf %8, %9 : vector<128x16xf32>
    %11 = arith.truncf %10 : vector<128x16xf32> to vector<128x16xbf16>
    %c0_8 = arith.constant 0 : index
    %c0_9 = arith.constant 0 : index
    %12 = vector.load %arg5[%c0_8, %c0_9] : memref<128x16xbf16, #tpu.memory_space<vmem>>, vector<128x16xbf16>
    tpu.vector_store %arg5[%c0_8, %c0_9], %11 {strides = array<i32>} : memref<128x16xbf16, #tpu.memory_space<vmem>>, vector<128x16xbf16>,
    return
  }
  func.func @transform_0(%arg0: i32) -> (i32, i32) {
    %c0_i32 = arith.constant 0 : i32
    %c0_i32_0 = arith.constant 0 : i32
    return %arg0, %c0_i32 : i32, i32
  }
  func.func @transform_1(%arg0: i32) -> (i32, i32) {
    %c0_i32 = arith.constant 0 : i32
    %c0_i32_0 = arith.constant 0 : i32
    %c0_i32_1 = arith.constant 0 : i32
    return %c0_i32, %c0_i32_0 : i32, i32
  }
  func.func @transform_2(%arg0: i32) -> (i32, i32) {
    %c0_i32 = arith.constant 0 : i32
    %c0_i32_0 = arith.constant 0 : i32
    %c0_i32_1 = arith.constant 0 : i32
    return %c0_i32, %c0_i32_0 : i32, i32
  }
  func.func @transform_3(%arg0: i32) -> (i32, i32) {
    %c0_i32 = arith.constant 0 : i32
    %c0_i32_0 = arith.constant 0 : i32
    %c0_i32_1 = arith.constant 0 : i32
    return %c0_i32, %c0_i32_0 : i32, i32
  }
  func.func @transform_4(%arg0: i32) -> (i32, i32) {
    %c0_i32 = arith.constant 0 : i32
    %c0_i32_0 = arith.constant 0 : i32
    return %arg0, %c0_i32 : i32, i32
  }
}

module attributes {stable_mosaic.version = 11 : i64} {
  func.func @_mm_kernel(%arg0: i32, %arg1: memref<128x144xbf16, #tpu.memory_space<vmem>>, %arg2: memref<144x16xbf16, #tpu.memory_space<vmem>>, %arg3: memref<1x16xf32, #tpu.memory_space<vmem>>, %arg4: memref<1x16xf32, #tpu.memory_space<vmem>>, %arg5: memref<128x16xbf16, #tpu.memory_space<vmem>>) attributes {dimension_semantics = [#tpu.dimension_semantics<parallel>], iteration_bounds = array<i64: 1>, scalar_prefetch = 0 : i64, scratch_operands = 0 : i64, tpu.core_type = #tpu.core_type<tc>, window_params = [{transform_indices = @transform_0, window_bounds = array<i64: 128, 144>}, {pipeline_mode = #tpu.pipeline_mode<synchronous>, transform_indices = @transform_1, window_bounds = array<i64: 144, 16>}, {pipeline_mode = #tpu.pipeline_mode<synchronous>, transform_indices = @transform_2, window_bounds = array<i64: 1, 16>}, {pipeline_mode = #tpu.pipeline_mode<synchronous>, transform_indices = @transform_3, window_bounds = array<i64: 1, 16>}, {transform_indices = @transform_4, window_bounds = array<i64: 128, 16>}]} {
    %c0 = arith.constant 0 : index
    %c0_0 = arith.constant 0 : index
    %0 = vector.load %arg1[%c0, %c0_0] : memref<128x144xbf16, #tpu.memory_space<vmem>>, vector<128x144xbf16>
    %c0_1 = arith.constant 0 : index
    %c0_2 = arith.constant 0 : index
    %1 = vector.load %arg2[%c0_1, %c0_2] : memref<144x16xbf16, #tpu.memory_space<vmem>>, vector<144x16xbf16>
    %cst = arith.constant dense<0.000000e+00> : vector<128x16xf32>
    %2 = tpu.matmul %0, %1, %cst {dimension_numbers = #tpu.dot_dimension_numbers<[1], [0], [0], [1], [0, 0, 1, 1], [], []>} : vector<128x144xbf16>, vector<144x16xbf16>, vector<128x16xf32> -> vector<128x16xf32>
    %c0_3 = arith.constant 0 : index
    %c0_4 = arith.constant 0 : index
    %3 = vector.load %arg3[%c0_3, %c0_4] : memref<1x16xf32, #tpu.memory_space<vmem>>, vector<1x16xf32>
    %4 = vector.broadcast %3 : vector<1x16xf32> to vector<128x16xf32>
    %5 = arith.mulf %2, %4 : vector<128x16xf32>
    %c0_5 = arith.constant 0 : index
    %c0_6 = arith.constant 0 : index
    %6 = vector.load %arg4[%c0_5, %c0_6] : memref<1x16xf32, #tpu.memory_space<vmem>>, vector<1x16xf32>
    %7 = vector.broadcast %6 : vector<1x16xf32> to vector<128x16xf32>
    %8 = arith.addf %5, %7 : vector<128x16xf32>
    %cst_7 = arith.constant 0.000000e+00 : f32
    %9 = vector.broadcast %cst_7 : f32 to vector<128x16xf32>
    %10 = arith.maximumf %8, %9 : vector<128x16xf32>
    %11 = arith.truncf %10 : vector<128x16xf32> to vector<128x16xbf16>
    %c0_8 = arith.constant 0 : index
    %c0_9 = arith.constant 0 : index
    %12 = vector.load %arg5[%c0_8, %c0_9] : memref<128x16xbf16, #tpu.memory_space<vmem>>, vector<128x16xbf16>
    tpu.vector_store %arg5[%c0_8, %c0_9], %11 {strides = array<i32>} : memref<128x16xbf16, #tpu.memory_space<vmem>>, vector<128x16xbf16>,
    return
  }
  func.func @transform_0(%arg0: i32) -> (i32, i32) {
    %c0_i32 = arith.constant 0 : i32
    %c0_i32_0 = arith.constant 0 : i32
    return %arg0, %c0_i32 : i32, i32
  }
  func.func @transform_1(%arg0: i32) -> (i32, i32) {
    %c0_i32 = arith.constant 0 : i32
    %c0_i32_0 = arith.constant 0 : i32
    %c0_i32_1 = arith.constant 0 : i32
    return %c0_i32, %c0_i32_0 : i32, i32
  }
  func.func @transform_2(%arg0: i32) -> (i32, i32) {
    %c0_i32 = arith.constant 0 : i32
    %c0_i32_0 = arith.constant 0 : i32
    %c0_i32_1 = arith.constant 0 : i32
    return %c0_i32, %c0_i32_0 : i32, i32
  }
  func.func @transform_3(%arg0: i32) -> (i32, i32) {
    %c0_i32 = arith.constant 0 : i32
    %c0_i32_0 = arith.constant 0 : i32
    %c0_i32_1 = arith.constant 0 : i32
    return %c0_i32, %c0_i32_0 : i32, i32
  }
  func.func @transform_4(%arg0: i32) -> (i32, i32) {
    %c0_i32 = arith.constant 0 : i32
    %c0_i32_0 = arith.constant 0 : i32
    return %arg0, %c0_i32 : i32, i32
  }
}

module attributes {stable_mosaic.version = 11 : i64} {
  func.func @_mm_res_kernel(%arg0: i32, %arg1: memref<128x16xbf16, #tpu.memory_space<vmem>>, %arg2: memref<16x64xbf16, #tpu.memory_space<vmem>>, %arg3: memref<1x64xf32, #tpu.memory_space<vmem>>, %arg4: memref<1x64xf32, #tpu.memory_space<vmem>>, %arg5: memref<128x64xbf16, #tpu.memory_space<vmem>>, %arg6: memref<128x64xbf16, #tpu.memory_space<vmem>>) attributes {dimension_semantics = [#tpu.dimension_semantics<parallel>], iteration_bounds = array<i64: 1>, scalar_prefetch = 0 : i64, scratch_operands = 0 : i64, tpu.core_type = #tpu.core_type<tc>, window_params = [{transform_indices = @transform_0, window_bounds = array<i64: 128, 16>}, {pipeline_mode = #tpu.pipeline_mode<synchronous>, transform_indices = @transform_1, window_bounds = array<i64: 16, 64>}, {pipeline_mode = #tpu.pipeline_mode<synchronous>, transform_indices = @transform_2, window_bounds = array<i64: 1, 64>}, {pipeline_mode = #tpu.pipeline_mode<synchronous>, transform_indices = @transform_3, window_bounds = array<i64: 1, 64>}, {transform_indices = @transform_4, window_bounds = array<i64: 128, 64>}, {transform_indices = @transform_5, window_bounds = array<i64: 128, 64>}]} {
    %c0 = arith.constant 0 : index
    %c0_0 = arith.constant 0 : index
    %0 = vector.load %arg1[%c0, %c0_0] : memref<128x16xbf16, #tpu.memory_space<vmem>>, vector<128x16xbf16>
    %c0_1 = arith.constant 0 : index
    %c0_2 = arith.constant 0 : index
    %1 = vector.load %arg2[%c0_1, %c0_2] : memref<16x64xbf16, #tpu.memory_space<vmem>>, vector<16x64xbf16>
    %cst = arith.constant dense<0.000000e+00> : vector<128x64xf32>
    %2 = tpu.matmul %0, %1, %cst {dimension_numbers = #tpu.dot_dimension_numbers<[1], [0], [0], [1], [0, 0, 1, 1], [], []>} : vector<128x16xbf16>, vector<16x64xbf16>, vector<128x64xf32> -> vector<128x64xf32>
    %c0_3 = arith.constant 0 : index
    %c0_4 = arith.constant 0 : index
    %3 = vector.load %arg3[%c0_3, %c0_4] : memref<1x64xf32, #tpu.memory_space<vmem>>, vector<1x64xf32>
    %4 = vector.broadcast %3 : vector<1x64xf32> to vector<128x64xf32>
    %5 = arith.mulf %2, %4 : vector<128x64xf32>
    %c0_5 = arith.constant 0 : index
    %c0_6 = arith.constant 0 : index
    %6 = vector.load %arg4[%c0_5, %c0_6] : memref<1x64xf32, #tpu.memory_space<vmem>>, vector<1x64xf32>
    %7 = vector.broadcast %6 : vector<1x64xf32> to vector<128x64xf32>
    %8 = arith.addf %5, %7 : vector<128x64xf32>
    %cst_7 = arith.constant 0.000000e+00 : f32
    %9 = vector.broadcast %cst_7 : f32 to vector<128x64xf32>
    %10 = arith.maximumf %8, %9 : vector<128x64xf32>
    %c0_8 = arith.constant 0 : index
    %c0_9 = arith.constant 0 : index
    %11 = vector.load %arg5[%c0_8, %c0_9] : memref<128x64xbf16, #tpu.memory_space<vmem>>, vector<128x64xbf16>
    %12 = arith.extf %11 : vector<128x64xbf16> to vector<128x64xf32>
    %13 = arith.addf %10, %12 : vector<128x64xf32>
    %cst_10 = arith.constant 0.000000e+00 : f32
    %14 = vector.broadcast %cst_10 : f32 to vector<128x64xf32>
    %15 = arith.maximumf %13, %14 : vector<128x64xf32>
    %16 = arith.truncf %15 : vector<128x64xf32> to vector<128x64xbf16>
    %c0_11 = arith.constant 0 : index
    %c0_12 = arith.constant 0 : index
    %17 = vector.load %arg6[%c0_11, %c0_12] : memref<128x64xbf16, #tpu.memory_space<vmem>>, vector<128x64xbf16>
    tpu.vector_store %arg6[%c0_11, %c0_12], %16 {strides = array<i32>} : memref<128x64xbf16, #tpu.memory_space<vmem>>, vector<128x64xbf16>,
    return
  }
  func.func @transform_0(%arg0: i32) -> (i32, i32) {
    %c0_i32 = arith.constant 0 : i32
    %c0_i32_0 = arith.constant 0 : i32
    return %arg0, %c0_i32 : i32, i32
  }
  func.func @transform_1(%arg0: i32) -> (i32, i32) {
    %c0_i32 = arith.constant 0 : i32
    %c0_i32_0 = arith.constant 0 : i32
    %c0_i32_1 = arith.constant 0 : i32
    return %c0_i32, %c0_i32_0 : i32, i32
  }
  func.func @transform_2(%arg0: i32) -> (i32, i32) {
    %c0_i32 = arith.constant 0 : i32
    %c0_i32_0 = arith.constant 0 : i32
    %c0_i32_1 = arith.constant 0 : i32
    return %c0_i32, %c0_i32_0 : i32, i32
  }
  func.func @transform_3(%arg0: i32) -> (i32, i32) {
    %c0_i32 = arith.constant 0 : i32
    %c0_i32_0 = arith.constant 0 : i32
    %c0_i32_1 = arith.constant 0 : i32
    return %c0_i32, %c0_i32_0 : i32, i32
  }
  func.func @transform_4(%arg0: i32) -> (i32, i32) {
    %c0_i32 = arith.constant 0 : i32
    %c0_i32_0 = arith.constant 0 : i32
    return %arg0, %c0_i32 : i32, i32
  }
  func.func @transform_5(%arg0: i32) -> (i32, i32) {
    %c0_i32 = arith.constant 0 : i32
    %c0_i32_0 = arith.constant 0 : i32
    return %arg0, %c0_i32 : i32, i32
  }
}

module attributes {stable_mosaic.version = 11 : i64} {
  func.func @_mm_kernel(%arg0: i32, %arg1: memref<128x64xbf16, #tpu.memory_space<vmem>>, %arg2: memref<64x16xbf16, #tpu.memory_space<vmem>>, %arg3: memref<1x16xf32, #tpu.memory_space<vmem>>, %arg4: memref<1x16xf32, #tpu.memory_space<vmem>>, %arg5: memref<128x16xbf16, #tpu.memory_space<vmem>>) attributes {dimension_semantics = [#tpu.dimension_semantics<parallel>], iteration_bounds = array<i64: 1>, scalar_prefetch = 0 : i64, scratch_operands = 0 : i64, tpu.core_type = #tpu.core_type<tc>, window_params = [{transform_indices = @transform_0, window_bounds = array<i64: 128, 64>}, {pipeline_mode = #tpu.pipeline_mode<synchronous>, transform_indices = @transform_1, window_bounds = array<i64: 64, 16>}, {pipeline_mode = #tpu.pipeline_mode<synchronous>, transform_indices = @transform_2, window_bounds = array<i64: 1, 16>}, {pipeline_mode = #tpu.pipeline_mode<synchronous>, transform_indices = @transform_3, window_bounds = array<i64: 1, 16>}, {transform_indices = @transform_4, window_bounds = array<i64: 128, 16>}]} {
    %c0 = arith.constant 0 : index
    %c0_0 = arith.constant 0 : index
    %0 = vector.load %arg1[%c0, %c0_0] : memref<128x64xbf16, #tpu.memory_space<vmem>>, vector<128x64xbf16>
    %c0_1 = arith.constant 0 : index
    %c0_2 = arith.constant 0 : index
    %1 = vector.load %arg2[%c0_1, %c0_2] : memref<64x16xbf16, #tpu.memory_space<vmem>>, vector<64x16xbf16>
    %cst = arith.constant dense<0.000000e+00> : vector<128x16xf32>
    %2 = tpu.matmul %0, %1, %cst {dimension_numbers = #tpu.dot_dimension_numbers<[1], [0], [0], [1], [0, 0, 1, 1], [], []>} : vector<128x64xbf16>, vector<64x16xbf16>, vector<128x16xf32> -> vector<128x16xf32>
    %c0_3 = arith.constant 0 : index
    %c0_4 = arith.constant 0 : index
    %3 = vector.load %arg3[%c0_3, %c0_4] : memref<1x16xf32, #tpu.memory_space<vmem>>, vector<1x16xf32>
    %4 = vector.broadcast %3 : vector<1x16xf32> to vector<128x16xf32>
    %5 = arith.mulf %2, %4 : vector<128x16xf32>
    %c0_5 = arith.constant 0 : index
    %c0_6 = arith.constant 0 : index
    %6 = vector.load %arg4[%c0_5, %c0_6] : memref<1x16xf32, #tpu.memory_space<vmem>>, vector<1x16xf32>
    %7 = vector.broadcast %6 : vector<1x16xf32> to vector<128x16xf32>
    %8 = arith.addf %5, %7 : vector<128x16xf32>
    %9 = arith.truncf %8 : vector<128x16xf32> to vector<128x16xbf16>
    %c0_7 = arith.constant 0 : index
    %c0_8 = arith.constant 0 : index
    %10 = vector.load %arg5[%c0_7, %c0_8] : memref<128x16xbf16, #tpu.memory_space<vmem>>, vector<128x16xbf16>
    tpu.vector_store %arg5[%c0_7, %c0_8], %9 {strides = array<i32>} : memref<128x16xbf16, #tpu.memory_space<vmem>>, vector<128x16xbf16>,
    return
  }
  func.func @transform_0(%arg0: i32) -> (i32, i32) {
    %c0_i32 = arith.constant 0 : i32
    %c0_i32_0 = arith.constant 0 : i32
    return %arg0, %c0_i32 : i32, i32
  }
  func.func @transform_1(%arg0: i32) -> (i32, i32) {
    %c0_i32 = arith.constant 0 : i32
    %c0_i32_0 = arith.constant 0 : i32
    %c0_i32_1 = arith.constant 0 : i32
    return %c0_i32, %c0_i32_0 : i32, i32
  }
  func.func @transform_2(%arg0: i32) -> (i32, i32) {
    %c0_i32 = arith.constant 0 : i32
    %c0_i32_0 = arith.constant 0 : i32
    %c0_i32_1 = arith.constant 0 : i32
    return %c0_i32, %c0_i32_0 : i32, i32
  }
  func.func @transform_3(%arg0: i32) -> (i32, i32) {
    %c0_i32 = arith.constant 0 : i32
    %c0_i32_0 = arith.constant 0 : i32
    %c0_i32_1 = arith.constant 0 : i32
    return %c0_i32, %c0_i32_0 : i32, i32
  }
  func.func @transform_4(%arg0: i32) -> (i32, i32) {
    %c0_i32 = arith.constant 0 : i32
    %c0_i32_0 = arith.constant 0 : i32
    return %arg0, %c0_i32 : i32, i32
  }
}

module attributes {stable_mosaic.version = 11 : i64} {
  func.func @_mm_kernel(%arg0: i32, %arg1: memref<256x144xbf16, #tpu.memory_space<vmem>>, %arg2: memref<144x16xbf16, #tpu.memory_space<vmem>>, %arg3: memref<1x16xf32, #tpu.memory_space<vmem>>, %arg4: memref<1x16xf32, #tpu.memory_space<vmem>>, %arg5: memref<256x16xbf16, #tpu.memory_space<vmem>>) attributes {dimension_semantics = [#tpu.dimension_semantics<parallel>], iteration_bounds = array<i64: 2>, scalar_prefetch = 0 : i64, scratch_operands = 0 : i64, tpu.core_type = #tpu.core_type<tc>, window_params = [{transform_indices = @transform_0, window_bounds = array<i64: 256, 144>}, {pipeline_mode = #tpu.pipeline_mode<synchronous>, transform_indices = @transform_1, window_bounds = array<i64: 144, 16>}, {pipeline_mode = #tpu.pipeline_mode<synchronous>, transform_indices = @transform_2, window_bounds = array<i64: 1, 16>}, {pipeline_mode = #tpu.pipeline_mode<synchronous>, transform_indices = @transform_3, window_bounds = array<i64: 1, 16>}, {transform_indices = @transform_4, window_bounds = array<i64: 256, 16>}]} {
    %c0 = arith.constant 0 : index
    %c0_0 = arith.constant 0 : index
    %0 = vector.load %arg1[%c0, %c0_0] : memref<256x144xbf16, #tpu.memory_space<vmem>>, vector<256x144xbf16>
    %c0_1 = arith.constant 0 : index
    %c0_2 = arith.constant 0 : index
    %1 = vector.load %arg2[%c0_1, %c0_2] : memref<144x16xbf16, #tpu.memory_space<vmem>>, vector<144x16xbf16>
    %cst = arith.constant dense<0.000000e+00> : vector<256x16xf32>
    %2 = tpu.matmul %0, %1, %cst {dimension_numbers = #tpu.dot_dimension_numbers<[1], [0], [0], [1], [0, 0, 1, 1], [], []>} : vector<256x144xbf16>, vector<144x16xbf16>, vector<256x16xf32> -> vector<256x16xf32>
    %c0_3 = arith.constant 0 : index
    %c0_4 = arith.constant 0 : index
    %3 = vector.load %arg3[%c0_3, %c0_4] : memref<1x16xf32, #tpu.memory_space<vmem>>, vector<1x16xf32>
    %4 = vector.broadcast %3 : vector<1x16xf32> to vector<256x16xf32>
    %5 = arith.mulf %2, %4 : vector<256x16xf32>
    %c0_5 = arith.constant 0 : index
    %c0_6 = arith.constant 0 : index
    %6 = vector.load %arg4[%c0_5, %c0_6] : memref<1x16xf32, #tpu.memory_space<vmem>>, vector<1x16xf32>
    %7 = vector.broadcast %6 : vector<1x16xf32> to vector<256x16xf32>
    %8 = arith.addf %5, %7 : vector<256x16xf32>
    %cst_7 = arith.constant 0.000000e+00 : f32
    %9 = vector.broadcast %cst_7 : f32 to vector<256x16xf32>
    %10 = arith.maximumf %8, %9 : vector<256x16xf32>
    %11 = arith.truncf %10 : vector<256x16xf32> to vector<256x16xbf16>
    %c0_8 = arith.constant 0 : index
    %c0_9 = arith.constant 0 : index
    %12 = vector.load %arg5[%c0_8, %c0_9] : memref<256x16xbf16, #tpu.memory_space<vmem>>, vector<256x16xbf16>
    tpu.vector_store %arg5[%c0_8, %c0_9], %11 {strides = array<i32>} : memref<256x16xbf16, #tpu.memory_space<vmem>>, vector<256x16xbf16>,
    return
  }
  func.func @transform_0(%arg0: i32) -> (i32, i32) {
    %c0_i32 = arith.constant 0 : i32
    %c0_i32_0 = arith.constant 0 : i32
    return %arg0, %c0_i32 : i32, i32
  }
  func.func @transform_1(%arg0: i32) -> (i32, i32) {
    %c0_i32 = arith.constant 0 : i32
    %c0_i32_0 = arith.constant 0 : i32
    %c0_i32_1 = arith.constant 0 : i32
    return %c0_i32, %c0_i32_0 : i32, i32
  }
  func.func @transform_2(%arg0: i32) -> (i32, i32) {
    %c0_i32 = arith.constant 0 : i32
    %c0_i32_0 = arith.constant 0 : i32
    %c0_i32_1 = arith.constant 0 : i32
    return %c0_i32, %c0_i32_0 : i32, i32
  }
  func.func @transform_3(%arg0: i32) -> (i32, i32) {
    %c0_i32 = arith.constant 0 : i32
    %c0_i32_0 = arith.constant 0 : i32
    %c0_i32_1 = arith.constant 0 : i32
    return %c0_i32, %c0_i32_0 : i32, i32
  }
  func.func @transform_4(%arg0: i32) -> (i32, i32) {
    %c0_i32 = arith.constant 0 : i32
    %c0_i32_0 = arith.constant 0 : i32
    return %arg0, %c0_i32 : i32, i32
  }
}

module attributes {stable_mosaic.version = 11 : i64} {
  func.func @_mm_res_kernel(%arg0: i32, %arg1: memref<256x16xbf16, #tpu.memory_space<vmem>>, %arg2: memref<16x16xbf16, #tpu.memory_space<vmem>>, %arg3: memref<1x16xf32, #tpu.memory_space<vmem>>, %arg4: memref<1x16xf32, #tpu.memory_space<vmem>>, %arg5: memref<256x16xbf16, #tpu.memory_space<vmem>>, %arg6: memref<256x16xbf16, #tpu.memory_space<vmem>>) attributes {dimension_semantics = [#tpu.dimension_semantics<parallel>], iteration_bounds = array<i64: 2>, scalar_prefetch = 0 : i64, scratch_operands = 0 : i64, tpu.core_type = #tpu.core_type<tc>, window_params = [{transform_indices = @transform_0, window_bounds = array<i64: 256, 16>}, {pipeline_mode = #tpu.pipeline_mode<synchronous>, transform_indices = @transform_1, window_bounds = array<i64: 16, 16>}, {pipeline_mode = #tpu.pipeline_mode<synchronous>, transform_indices = @transform_2, window_bounds = array<i64: 1, 16>}, {pipeline_mode = #tpu.pipeline_mode<synchronous>, transform_indices = @transform_3, window_bounds = array<i64: 1, 16>}, {transform_indices = @transform_4, window_bounds = array<i64: 256, 16>}, {transform_indices = @transform_5, window_bounds = array<i64: 256, 16>}]} {
    %c0 = arith.constant 0 : index
    %c0_0 = arith.constant 0 : index
    %0 = vector.load %arg1[%c0, %c0_0] : memref<256x16xbf16, #tpu.memory_space<vmem>>, vector<256x16xbf16>
    %c0_1 = arith.constant 0 : index
    %c0_2 = arith.constant 0 : index
    %1 = vector.load %arg2[%c0_1, %c0_2] : memref<16x16xbf16, #tpu.memory_space<vmem>>, vector<16x16xbf16>
    %cst = arith.constant dense<0.000000e+00> : vector<256x16xf32>
    %2 = tpu.matmul %0, %1, %cst {dimension_numbers = #tpu.dot_dimension_numbers<[1], [0], [0], [1], [0, 0, 1, 1], [], []>} : vector<256x16xbf16>, vector<16x16xbf16>, vector<256x16xf32> -> vector<256x16xf32>
    %c0_3 = arith.constant 0 : index
    %c0_4 = arith.constant 0 : index
    %3 = vector.load %arg3[%c0_3, %c0_4] : memref<1x16xf32, #tpu.memory_space<vmem>>, vector<1x16xf32>
    %4 = vector.broadcast %3 : vector<1x16xf32> to vector<256x16xf32>
    %5 = arith.mulf %2, %4 : vector<256x16xf32>
    %c0_5 = arith.constant 0 : index
    %c0_6 = arith.constant 0 : index
    %6 = vector.load %arg4[%c0_5, %c0_6] : memref<1x16xf32, #tpu.memory_space<vmem>>, vector<1x16xf32>
    %7 = vector.broadcast %6 : vector<1x16xf32> to vector<256x16xf32>
    %8 = arith.addf %5, %7 : vector<256x16xf32>
    %cst_7 = arith.constant 0.000000e+00 : f32
    %9 = vector.broadcast %cst_7 : f32 to vector<256x16xf32>
    %10 = arith.maximumf %8, %9 : vector<256x16xf32>
    %c0_8 = arith.constant 0 : index
    %c0_9 = arith.constant 0 : index
    %11 = vector.load %arg5[%c0_8, %c0_9] : memref<256x16xbf16, #tpu.memory_space<vmem>>, vector<256x16xbf16>
    %12 = arith.extf %11 : vector<256x16xbf16> to vector<256x16xf32>
    %13 = arith.addf %10, %12 : vector<256x16xf32>
    %cst_10 = arith.constant 0.000000e+00 : f32
    %14 = vector.broadcast %cst_10 : f32 to vector<256x16xf32>
    %15 = arith.maximumf %13, %14 : vector<256x16xf32>
    %16 = arith.truncf %15 : vector<256x16xf32> to vector<256x16xbf16>
    %c0_11 = arith.constant 0 : index
    %c0_12 = arith.constant 0 : index
    %17 = vector.load %arg6[%c0_11, %c0_12] : memref<256x16xbf16, #tpu.memory_space<vmem>>, vector<256x16xbf16>
    tpu.vector_store %arg6[%c0_11, %c0_12], %16 {strides = array<i32>} : memref<256x16xbf16, #tpu.memory_space<vmem>>, vector<256x16xbf16>,
    return
  }
  func.func @transform_0(%arg0: i32) -> (i32, i32) {
    %c0_i32 = arith.constant 0 : i32
    %c0_i32_0 = arith.constant 0 : i32
    return %arg0, %c0_i32 : i32, i32
  }
  func.func @transform_1(%arg0: i32) -> (i32, i32) {
    %c0_i32 = arith.constant 0 : i32
    %c0_i32_0 = arith.constant 0 : i32
    %c0_i32_1 = arith.constant 0 : i32
    return %c0_i32, %c0_i32_0 : i32, i32
  }
  func.func @transform_2(%arg0: i32) -> (i32, i32) {
    %c0_i32 = arith.constant 0 : i32
    %c0_i32_0 = arith.constant 0 : i32
    %c0_i32_1 = arith.constant 0 : i32
    return %c0_i32, %c0_i32_0 : i32, i32
  }
  func.func @transform_3(%arg0: i32) -> (i32, i32) {
    %c0_i32 = arith.constant 0 : i32
    %c0_i32_0 = arith.constant 0 : i32
    %c0_i32_1 = arith.constant 0 : i32
    return %c0_i32, %c0_i32_0 : i32, i32
  }
  func.func @transform_4(%arg0: i32) -> (i32, i32) {
    %c0_i32 = arith.constant 0 : i32
    %c0_i32_0 = arith.constant 0 : i32
    return %arg0, %c0_i32 : i32, i32
  }
  func.func @transform_5(%arg0: i32) -> (i32, i32) {
    %c0_i32 = arith.constant 0 : i32
    %c0_i32_0 = arith.constant 0 : i32
    return %arg0, %c0_i32 : i32, i32
  }
}

module attributes {stable_mosaic.version = 11 : i64} {
  func.func @_mm_kernel(%arg0: i32, %arg1: memref<256x16xbf16, #tpu.memory_space<vmem>>, %arg2: memref<16x4xbf16, #tpu.memory_space<vmem>>, %arg3: memref<1x4xf32, #tpu.memory_space<vmem>>, %arg4: memref<1x4xf32, #tpu.memory_space<vmem>>, %arg5: memref<256x4xbf16, #tpu.memory_space<vmem>>) attributes {dimension_semantics = [#tpu.dimension_semantics<parallel>], iteration_bounds = array<i64: 2>, scalar_prefetch = 0 : i64, scratch_operands = 0 : i64, tpu.core_type = #tpu.core_type<tc>, window_params = [{transform_indices = @transform_0, window_bounds = array<i64: 256, 16>}, {pipeline_mode = #tpu.pipeline_mode<synchronous>, transform_indices = @transform_1, window_bounds = array<i64: 16, 4>}, {pipeline_mode = #tpu.pipeline_mode<synchronous>, transform_indices = @transform_2, window_bounds = array<i64: 1, 4>}, {pipeline_mode = #tpu.pipeline_mode<synchronous>, transform_indices = @transform_3, window_bounds = array<i64: 1, 4>}, {transform_indices = @transform_4, window_bounds = array<i64: 256, 4>}]} {
    %c0 = arith.constant 0 : index
    %c0_0 = arith.constant 0 : index
    %0 = vector.load %arg1[%c0, %c0_0] : memref<256x16xbf16, #tpu.memory_space<vmem>>, vector<256x16xbf16>
    %c0_1 = arith.constant 0 : index
    %c0_2 = arith.constant 0 : index
    %1 = vector.load %arg2[%c0_1, %c0_2] : memref<16x4xbf16, #tpu.memory_space<vmem>>, vector<16x4xbf16>
    %cst = arith.constant dense<0.000000e+00> : vector<256x4xf32>
    %2 = tpu.matmul %0, %1, %cst {dimension_numbers = #tpu.dot_dimension_numbers<[1], [0], [0], [1], [0, 0, 1, 1], [], []>} : vector<256x16xbf16>, vector<16x4xbf16>, vector<256x4xf32> -> vector<256x4xf32>
    %c0_3 = arith.constant 0 : index
    %c0_4 = arith.constant 0 : index
    %3 = vector.load %arg3[%c0_3, %c0_4] : memref<1x4xf32, #tpu.memory_space<vmem>>, vector<1x4xf32>
    %4 = vector.broadcast %3 : vector<1x4xf32> to vector<256x4xf32>
    %5 = arith.mulf %2, %4 : vector<256x4xf32>
    %c0_5 = arith.constant 0 : index
    %c0_6 = arith.constant 0 : index
    %6 = vector.load %arg4[%c0_5, %c0_6] : memref<1x4xf32, #tpu.memory_space<vmem>>, vector<1x4xf32>
    %7 = vector.broadcast %6 : vector<1x4xf32> to vector<256x4xf32>
    %8 = arith.addf %5, %7 : vector<256x4xf32>
    %cst_7 = arith.constant 0.000000e+00 : f32
    %9 = vector.broadcast %cst_7 : f32 to vector<256x4xf32>
    %10 = arith.maximumf %8, %9 : vector<256x4xf32>
    %11 = arith.truncf %10 : vector<256x4xf32> to vector<256x4xbf16>
    %c0_8 = arith.constant 0 : index
    %c0_9 = arith.constant 0 : index
    %12 = vector.load %arg5[%c0_8, %c0_9] : memref<256x4xbf16, #tpu.memory_space<vmem>>, vector<256x4xbf16>
    tpu.vector_store %arg5[%c0_8, %c0_9], %11 {strides = array<i32>} : memref<256x4xbf16, #tpu.memory_space<vmem>>, vector<256x4xbf16>,
    return
  }
  func.func @transform_0(%arg0: i32) -> (i32, i32) {
    %c0_i32 = arith.constant 0 : i32
    %c0_i32_0 = arith.constant 0 : i32
    return %arg0, %c0_i32 : i32, i32
  }
  func.func @transform_1(%arg0: i32) -> (i32, i32) {
    %c0_i32 = arith.constant 0 : i32
    %c0_i32_0 = arith.constant 0 : i32
    %c0_i32_1 = arith.constant 0 : i32
    return %c0_i32, %c0_i32_0 : i32, i32
  }
  func.func @transform_2(%arg0: i32) -> (i32, i32) {
    %c0_i32 = arith.constant 0 : i32
    %c0_i32_0 = arith.constant 0 : i32
    %c0_i32_1 = arith.constant 0 : i32
    return %c0_i32, %c0_i32_0 : i32, i32
  }
  func.func @transform_3(%arg0: i32) -> (i32, i32) {
    %c0_i32 = arith.constant 0 : i32
    %c0_i32_0 = arith.constant 0 : i32
    %c0_i32_1 = arith.constant 0 : i32
    return %c0_i32, %c0_i32_0 : i32, i32
  }
  func.func @transform_4(%arg0: i32) -> (i32, i32) {
    %c0_i32 = arith.constant 0 : i32
    %c0_i32_0 = arith.constant 0 : i32
    return %arg0, %c0_i32 : i32, i32
  }
}

module attributes {stable_mosaic.version = 11 : i64} {
  func.func @_mm_kernel(%arg0: i32, %arg1: memref<256x48xbf16, #tpu.memory_space<vmem>>, %arg2: memref<48x4xbf16, #tpu.memory_space<vmem>>, %arg3: memref<1x4xf32, #tpu.memory_space<vmem>>, %arg4: memref<1x4xf32, #tpu.memory_space<vmem>>, %arg5: memref<256x4xbf16, #tpu.memory_space<vmem>>) attributes {dimension_semantics = [#tpu.dimension_semantics<parallel>], iteration_bounds = array<i64: 2>, scalar_prefetch = 0 : i64, scratch_operands = 0 : i64, tpu.core_type = #tpu.core_type<tc>, window_params = [{transform_indices = @transform_0, window_bounds = array<i64: 256, 48>}, {pipeline_mode = #tpu.pipeline_mode<synchronous>, transform_indices = @transform_1, window_bounds = array<i64: 48, 4>}, {pipeline_mode = #tpu.pipeline_mode<synchronous>, transform_indices = @transform_2, window_bounds = array<i64: 1, 4>}, {pipeline_mode = #tpu.pipeline_mode<synchronous>, transform_indices = @transform_3, window_bounds = array<i64: 1, 4>}, {transform_indices = @transform_4, window_bounds = array<i64: 256, 4>}]} {
    %c0 = arith.constant 0 : index
    %c0_0 = arith.constant 0 : index
    %0 = vector.load %arg1[%c0, %c0_0] : memref<256x48xbf16, #tpu.memory_space<vmem>>, vector<256x48xbf16>
    %c0_1 = arith.constant 0 : index
    %c0_2 = arith.constant 0 : index
    %1 = vector.load %arg2[%c0_1, %c0_2] : memref<48x4xbf16, #tpu.memory_space<vmem>>, vector<48x4xbf16>
    %cst = arith.constant dense<0.000000e+00> : vector<256x4xf32>
    %2 = tpu.matmul %0, %1, %cst {dimension_numbers = #tpu.dot_dimension_numbers<[1], [0], [0], [1], [0, 0, 1, 1], [], []>} : vector<256x48xbf16>, vector<48x4xbf16>, vector<256x4xf32> -> vector<256x4xf32>
    %c0_3 = arith.constant 0 : index
    %c0_4 = arith.constant 0 : index
    %3 = vector.load %arg3[%c0_3, %c0_4] : memref<1x4xf32, #tpu.memory_space<vmem>>, vector<1x4xf32>
    %4 = vector.broadcast %3 : vector<1x4xf32> to vector<256x4xf32>
    %5 = arith.mulf %2, %4 : vector<256x4xf32>
    %c0_5 = arith.constant 0 : index
    %c0_6 = arith.constant 0 : index
    %6 = vector.load %arg4[%c0_5, %c0_6] : memref<1x4xf32, #tpu.memory_space<vmem>>, vector<1x4xf32>
    %7 = vector.broadcast %6 : vector<1x4xf32> to vector<256x4xf32>
    %8 = arith.addf %5, %7 : vector<256x4xf32>
    %cst_7 = arith.constant 0.000000e+00 : f32
    %9 = vector.broadcast %cst_7 : f32 to vector<256x4xf32>
    %10 = arith.maximumf %8, %9 : vector<256x4xf32>
    %11 = arith.truncf %10 : vector<256x4xf32> to vector<256x4xbf16>
    %c0_8 = arith.constant 0 : index
    %c0_9 = arith.constant 0 : index
    %12 = vector.load %arg5[%c0_8, %c0_9] : memref<256x4xbf16, #tpu.memory_space<vmem>>, vector<256x4xbf16>
    tpu.vector_store %arg5[%c0_8, %c0_9], %11 {strides = array<i32>} : memref<256x4xbf16, #tpu.memory_space<vmem>>, vector<256x4xbf16>,
    return
  }
  func.func @transform_0(%arg0: i32) -> (i32, i32) {
    %c0_i32 = arith.constant 0 : i32
    %c0_i32_0 = arith.constant 0 : i32
    return %arg0, %c0_i32 : i32, i32
  }
  func.func @transform_1(%arg0: i32) -> (i32, i32) {
    %c0_i32 = arith.constant 0 : i32
    %c0_i32_0 = arith.constant 0 : i32
    %c0_i32_1 = arith.constant 0 : i32
    return %c0_i32, %c0_i32_0 : i32, i32
  }
  func.func @transform_2(%arg0: i32) -> (i32, i32) {
    %c0_i32 = arith.constant 0 : i32
    %c0_i32_0 = arith.constant 0 : i32
    %c0_i32_1 = arith.constant 0 : i32
    return %c0_i32, %c0_i32_0 : i32, i32
  }
  func.func @transform_3(%arg0: i32) -> (i32, i32) {
    %c0_i32 = arith.constant 0 : i32
    %c0_i32_0 = arith.constant 0 : i32
    %c0_i32_1 = arith.constant 0 : i32
    return %c0_i32, %c0_i32_0 : i32, i32
  }
  func.func @transform_4(%arg0: i32) -> (i32, i32) {
    %c0_i32 = arith.constant 0 : i32
    %c0_i32_0 = arith.constant 0 : i32
    return %arg0, %c0_i32 : i32, i32
  }
}

module attributes {stable_mosaic.version = 11 : i64} {
  func.func @_mm_kernel(%arg0: i32, %arg1: memref<512x144xbf16, #tpu.memory_space<vmem>>, %arg2: memref<144x4xbf16, #tpu.memory_space<vmem>>, %arg3: memref<1x4xf32, #tpu.memory_space<vmem>>, %arg4: memref<1x4xf32, #tpu.memory_space<vmem>>, %arg5: memref<512x4xbf16, #tpu.memory_space<vmem>>) attributes {dimension_semantics = [#tpu.dimension_semantics<parallel>], iteration_bounds = array<i64: 4>, scalar_prefetch = 0 : i64, scratch_operands = 0 : i64, tpu.core_type = #tpu.core_type<tc>, window_params = [{transform_indices = @transform_0, window_bounds = array<i64: 512, 144>}, {pipeline_mode = #tpu.pipeline_mode<synchronous>, transform_indices = @transform_1, window_bounds = array<i64: 144, 4>}, {pipeline_mode = #tpu.pipeline_mode<synchronous>, transform_indices = @transform_2, window_bounds = array<i64: 1, 4>}, {pipeline_mode = #tpu.pipeline_mode<synchronous>, transform_indices = @transform_3, window_bounds = array<i64: 1, 4>}, {transform_indices = @transform_4, window_bounds = array<i64: 512, 4>}]} {
    %c0 = arith.constant 0 : index
    %c0_0 = arith.constant 0 : index
    %0 = vector.load %arg1[%c0, %c0_0] : memref<512x144xbf16, #tpu.memory_space<vmem>>, vector<512x144xbf16>
    %c0_1 = arith.constant 0 : index
    %c0_2 = arith.constant 0 : index
    %1 = vector.load %arg2[%c0_1, %c0_2] : memref<144x4xbf16, #tpu.memory_space<vmem>>, vector<144x4xbf16>
    %cst = arith.constant dense<0.000000e+00> : vector<512x4xf32>
    %2 = tpu.matmul %0, %1, %cst {dimension_numbers = #tpu.dot_dimension_numbers<[1], [0], [0], [1], [0, 0, 1, 1], [], []>} : vector<512x144xbf16>, vector<144x4xbf16>, vector<512x4xf32> -> vector<512x4xf32>
    %c0_3 = arith.constant 0 : index
    %c0_4 = arith.constant 0 : index
    %3 = vector.load %arg3[%c0_3, %c0_4] : memref<1x4xf32, #tpu.memory_space<vmem>>, vector<1x4xf32>
    %4 = vector.broadcast %3 : vector<1x4xf32> to vector<512x4xf32>
    %5 = arith.mulf %2, %4 : vector<512x4xf32>
    %c0_5 = arith.constant 0 : index
    %c0_6 = arith.constant 0 : index
    %6 = vector.load %arg4[%c0_5, %c0_6] : memref<1x4xf32, #tpu.memory_space<vmem>>, vector<1x4xf32>
    %7 = vector.broadcast %6 : vector<1x4xf32> to vector<512x4xf32>
    %8 = arith.addf %5, %7 : vector<512x4xf32>
    %9 = arith.truncf %8 : vector<512x4xf32> to vector<512x4xbf16>
    %c0_7 = arith.constant 0 : index
    %c0_8 = arith.constant 0 : index
    %10 = vector.load %arg5[%c0_7, %c0_8] : memref<512x4xbf16, #tpu.memory_space<vmem>>, vector<512x4xbf16>
    tpu.vector_store %arg5[%c0_7, %c0_8], %9 {strides = array<i32>} : memref<512x4xbf16, #tpu.memory_space<vmem>>, vector<512x4xbf16>,
    return
  }
  func.func @transform_0(%arg0: i32) -> (i32, i32) {
    %c0_i32 = arith.constant 0 : i32
    %c0_i32_0 = arith.constant 0 : i32
    return %arg0, %c0_i32 : i32, i32
  }
  func.func @transform_1(%arg0: i32) -> (i32, i32) {
    %c0_i32 = arith.constant 0 : i32
    %c0_i32_0 = arith.constant 0 : i32
    %c0_i32_1 = arith.constant 0 : i32
    return %c0_i32, %c0_i32_0 : i32, i32
  }
  func.func @transform_2(%arg0: i32) -> (i32, i32) {
    %c0_i32 = arith.constant 0 : i32
    %c0_i32_0 = arith.constant 0 : i32
    %c0_i32_1 = arith.constant 0 : i32
    return %c0_i32, %c0_i32_0 : i32, i32
  }
  func.func @transform_3(%arg0: i32) -> (i32, i32) {
    %c0_i32 = arith.constant 0 : i32
    %c0_i32_0 = arith.constant 0 : i32
    %c0_i32_1 = arith.constant 0 : i32
    return %c0_i32, %c0_i32_0 : i32, i32
  }
  func.func @transform_4(%arg0: i32) -> (i32, i32) {
    %c0_i32 = arith.constant 0 : i32
    %c0_i32_0 = arith.constant 0 : i32
    return %arg0, %c0_i32 : i32, i32
  }
}

</mosaic_0001>

<bundles_post_ra>
// kernel: _lambda_.89
= control target key start
LH: loop header
LB: loop body
LE: loop exit
PB: predicated region body
PF: predicated region fallthrough
CT: control target
= control target key end

     0   :  { %s1159_s15 = smov 0   ;;  %s1363_s0 = inlined_call_operand.vmem [shape: bf16[512,32], index: 0, kind: input, shape index: {}]   ;;  %s1364_s1 = inlined_call_operand.vmem [shape: bf16[32,13], index: 1, kind: input, shape index: {}]   ;;  %s1365_s2 = inlined_call_operand.vmem [shape: f32[1,13], index: 2, kind: input, shape index: {}]   ;;  %s1366_s3 = inlined_call_operand.vmem [shape: f32[1,13], index: 3, kind: input, shape index: {}]   ;;  %s1367_s4 = inlined_call_operand.vmem [shape: bf16[512,13], index: 4, kind: output, shape index: {}]  }
   0x1 LB: > { %s931_s16 = sadd.s32 4294967295, %s1132_s15   ;;  %p935_p0 = scmp.ge.s32.totalorder %s1132_s15, 1  ;;  %s1132_s15 = sphi %s1159_s15, %s14_s15  }
   0x2   : > { %p163_p1 = scmp.lt.s32.totalorder %s1132_s15, 3 }
   0x4   : > { %p164_p2 = pnand %p935_p0, %p163_p1 }
   0x5   : > { %s936_s19 = sshll.u32 (!%p164_p2), %s931_s16, 5 }
   0x6   : > { %167 = sbr.rel (%p164_p2) target bundleno = 270 (0x10e), region = 36  ;;  %p190_p3 = scmp.lt.s32.totalorder (!%p164_p2), %s936_s19, 63 }
   0xb   : > { %v1108_v0 = vld [vmem:[%s1364_s1 + $0x8] sm:$0xff]   ;;  %v1109_v1 = vld [vmem:[%s1364_s1] sm:$0xff]   ;;  %s1369_s19 = smov (!%p190_p3, %s936_s19), 63  ;;  %vm330_vm0 = vcmask 261120   ;;  %vm842_vm1 = vcmask 101376  }
   0xc   : > { %1060 = vmatprep.subr.bf16.mxu0 %v1108_v0  ;;  %1096 = vmatprep.subr.bf16.mxu1 %v1108_v0  ;;  %s937_s22 = sshll.u32 %s1369_s19, 2  ;;  %v1218_v18 = vld [vmem:[%s1365_s2] ss:$0 sm:$0xff] }
   0xd   : > { %1061 = vmatpush3.bf16.msra.mxu0 %v1108_v0  ;;  %1098 = vmatpush3.bf16.msra.mxu1 %v1108_v0  ;;  %s1181_s25 = scalar_lea.vmem %s1363_s0, %s937_s22  ;;  %v1223_v20 = vld [vmem:[%s1366_s3] ss:$0 sm:$0xff]  ;;  %s1240_s6 = scalar_lea.vmem %s1367_s4, %s937_s22 }
   0xe   : > { %1062 = vmatprep.subr.bf16.mxu0 %v1109_v1  ;;  %1097 = vmatprep.subr.bf16.mxu1 %v1109_v1  ;;  %v1110_v2 = vld [vmem:[%s1181_s25] sm:$0xff]   ;;  %v1112_v4 = vld [vmem:[%s1181_s25 + $0x8] sm:$0xff]   ;;  %v1114_v6 = vld [vmem:[%s1181_s25 + $0x10] sm:$0xff]  }
   0xf   : > { %v1111_v3 = vld [vmem:[%s1181_s25 + $0x40] sm:$0xff]   ;;  %1064 = vmatprep.mubr.msk.bf16.mxu0 %vm330_vm0, %v1110_v2  ;;  %v1113_v5 = vld [vmem:[%s1181_s25 + $0x48] sm:$0xff]   ;;  %v1115_v7 = vld [vmem:[%s1181_s25 + $0x50] sm:$0xff]  }
  0x10   : > { %1080 = vmatprep.mubr.msk.bf16.mxu1 %vm330_vm0, %v1111_v3  ;;  %v1116_v8 = vld [vmem:[%s1181_s25 + $0x18] sm:$0xff]   ;;  %v1118_v10 = vld [vmem:[%s1181_s25 + $0x20] sm:$0xff]   ;;  %v1120_v12 = vld [vmem:[%s1181_s25 + $0x28] sm:$0xff]  }
  0x11   : > { %1063 = vmatpush3.bf16.msra.mxu0 %v1109_v1  ;;  %1099 = vmatpush3.bf16.msra.mxu1 %v1109_v1  ;;  %v1117_v9 = vld [vmem:[%s1181_s25 + $0x58] sm:$0xff]   ;;  %v1119_v11 = vld [vmem:[%s1181_s25 + $0x60] sm:$0xff]   ;;  %v1121_v13 = vld [vmem:[%s1181_s25 + $0x68] sm:$0xff]  }
  0x12   : > { %v1122_v14 = vld [vmem:[%s1181_s25 + $0x30] sm:$0xff]   ;;  %v1124_v16 = vld [vmem:[%s1181_s25 + $0x38] sm:$0xff]  }
  0x13   : > { %v1123_v15 = vld [vmem:[%s1181_s25 + $0x70] sm:$0xff]   ;;  %v1125_v17 = vld [vmem:[%s1181_s25 + $0x78] sm:$0xff]  }
  0x14   : > { %1065 = vmatmul.mubr.msk.bf16.vlgmr.msra.gmra.mxu0 %vm330_vm0, %v1112_v4  ;;  %1081 = vmatmul.mubr.msk.bf16.vlgmr.msra.gmra.mxu1 %vm330_vm0, %v1113_v5 }
  0x15   : > { %1068 = vmatprep.mubr.msk.bf16.mxu0 %vm330_vm0, %v1114_v6  ;;  %1084 = vmatprep.mubr.msk.bf16.mxu1 %vm330_vm0, %v1115_v7 }
  0x1c   : > { %1069 = vmatmul.mubr.msk.bf16.gmra.mxu0 %vm330_vm0, %v1116_v8  ;;  %1085 = vmatmul.mubr.msk.bf16.gmra.mxu1 %vm330_vm0, %v1117_v9 }
  0x1d   : > { %1072 = vmatprep.mubr.msk.bf16.mxu0 %vm330_vm0, %v1118_v10  ;;  %1088 = vmatprep.mubr.msk.bf16.mxu1 %vm330_vm0, %v1119_v11 }
  0x24   : > { %1073 = vmatmul.mubr.msk.bf16.gmra.mxu0 %vm330_vm0, %v1120_v12  ;;  %1089 = vmatmul.mubr.msk.bf16.gmra.mxu1 %vm330_vm0, %v1121_v13 }
  0x25   : > { %1076 = vmatprep.mubr.msk.bf16.mxu0 %vm330_vm0, %v1122_v14  ;;  %1092 = vmatprep.mubr.msk.bf16.mxu1 %vm330_vm0, %v1123_v15 }
  0x2c   : > { %1077 = vmatmul.mubr.msk.bf16.gmra.mxu0 %vm330_vm0, %v1124_v16  ;;  %1093 = vmatmul.mubr.msk.bf16.gmra.mxu1 %vm330_vm0, %v1125_v17 }
  0xd4   : > { %v1066_v19 = vpop.f32.mrf.mxu0  ;;  %v1082_v22 = vpop.f32.mrf.mxu1 }
  0xd5   : > { %v549_v21 = vmul.f32 %v1066_v19, %v1218_v18  ;;  %v565_v23 = vmul.f32 %v1082_v22, %v1218_v18 }
  0xd6   : > { %v413_v24 = vpop.f32.mrf.mxu0  ;;  %v477_v27 = vpop.f32.mrf.mxu1 }
  0xd7   : > { %v588_v25 = vadd.f32 %v1223_v20, %v549_v21  ;;  %v547_v26 = vmul.f32 %v1218_v18, %v413_v24  ;;  %v604_v28 = vadd.f32 %v1223_v20, %v565_v23  ;;  %v563_v29 = vmul.f32 %v1218_v18, %v477_v27 }
  0xd8   : > { %v1067_v30 = vpop.f32.mrf.mxu0  ;;  %v1083_v34 = vpop.f32.mrf.mxu1 }
  0xd9   : > { %vm620_vm2 = vcmp.gt.f32.partialorder %v588_v25, 0.0  ;;  %v652_v31 = vmul.f32 0.25, %v588_v25  ;;  %v586_v32 = vadd.f32 %v1223_v20, %v547_v26  ;;  %v550_v33 = vmul.f32 %v1067_v30, %v1218_v18 }
  0xda   : > { %vm636_vm3 = vcmp.gt.f32.partialorder %v604_v28, 0.0  ;;  %v668_v35 = vmul.f32 0.25, %v604_v28  ;;  %v602_v36 = vadd.f32 %v1223_v20, %v563_v29  ;;  %v566_v37 = vmul.f32 %v1083_v34, %v1218_v18  ;;  %v416_v38 = vpop.f32.mrf.mxu0  ;;  %v480_v42 = vpop.f32.mrf.mxu1 }
  0xdb   : > { %v684_v39 = vsel %vm620_vm2, %v588_v25, %v652_v31  ;;  %vm618_vm4 = vcmp.gt.f32.partialorder %v586_v32, 0.0  ;;  %v650_v40 = vmul.f32 0.25, %v586_v32  ;;  %v589_v41 = vadd.f32 %v1223_v20, %v550_v33 }
  0xdc   : > { %v1012_v43 = vpack.c.bf16 %v684_v39, %v684_v39  ;;  %v700_v44 = vsel %vm636_vm3, %v604_v28, %v668_v35  ;;  %vm634_vm5 = vcmp.gt.f32.partialorder %v602_v36, 0.0  ;;  %v666_v45 = vmul.f32 0.25, %v602_v36  ;;  %v1070_v46 = vpop.f32.mrf.mxu0  ;;  %v1086_v50 = vpop.f32.mrf.mxu1 }
  0xdd   : > { %v1028_v47 = vpack.c.bf16 %v700_v44, %v700_v44  ;;  %v682_v48 = vsel %vm618_vm4, %v586_v32, %v650_v40  ;;  %vm621_vm6 = vcmp.gt.f32.partialorder %v589_v41, 0.0  ;;  %v653_v49 = vmul.f32 0.25, %v589_v41 }
  0xde   : > { %845 = vst.msk [vmem:[%s1240_s6 + $0x8] sm:$0xf] %vm842_vm1, %v1012_v43  ;;  %v1010_v51 = vpack.c.bf16 %v682_v48, %v682_v48  ;;  %v698_v52 = vsel %vm634_vm5, %v602_v36, %v666_v45  ;;  %v605_v53 = vadd.f32 %v1223_v20, %v566_v37  ;;  %v548_v54 = vmul.f32 %v1218_v18, %v416_v38  ;;  %v429_v55 = vpop.f32.mrf.mxu0  ;;  %v493_v60 = vpop.f32.mrf.mxu1 }
  0xdf   : > { %861 = vst.msk [vmem:[%s1240_s6 + $0x48] sm:$0xf] %vm842_vm1, %v1028_v47  ;;  %v1026_v56 = vpack.c.bf16 %v698_v52, %v698_v52  ;;  %v685_v57 = vsel %vm621_vm6, %v589_v41, %v653_v49  ;;  %v564_v58 = vmul.f32 %v1218_v18, %v480_v42  ;;  %v553_v59 = vmul.f32 %v1070_v46, %v1218_v18 }
  0xe0   : > { %843 = vst.msk [vmem:[%s1240_s6] sm:$0xf] %vm842_vm1, %v1010_v51  ;;  %v1013_v61 = vpack.c.bf16 %v685_v57, %v685_v57  ;;  %vm637_vm7 = vcmp.gt.f32.partialorder %v605_v53, 0.0  ;;  %v669_v62 = vmul.f32 0.25, %v605_v53  ;;  %v587_v63 = vadd.f32 %v1223_v20, %v548_v54  ;;  %v1071_v0 = vpop.f32.mrf.mxu0  ;;  %v1087_v5 = vpop.f32.mrf.mxu1 }
  0xe1   : > { %859 = vst.msk [vmem:[%s1240_s6 + $0x40] sm:$0xf] %vm842_vm1, %v1026_v56  ;;  %v603_v1 = vadd.f32 %v1223_v20, %v564_v58  ;;  %v592_v2 = vadd.f32 %v1223_v20, %v553_v59  ;;  %v569_v3 = vmul.f32 %v1086_v50, %v1218_v18  ;;  %v551_v4 = vmul.f32 %v1218_v18, %v429_v55 }
  0xe2   : > { %846 = vst.msk [vmem:[%s1240_s6 + $0xc] sm:$0xf] %vm842_vm1, %v1013_v61  ;;  %v701_v6 = vsel %vm637_vm7, %v605_v53, %v669_v62  ;;  %vm619_vm8 = vcmp.gt.f32.partialorder %v587_v63, 0.0  ;;  %v651_v7 = vmul.f32 0.25, %v587_v63  ;;  %v567_v8 = vmul.f32 %v1218_v18, %v493_v60  ;;  %v432_v9 = vpop.f32.mrf.mxu0  ;;  %v496_v12 = vpop.f32.mrf.mxu1 }
  0xe3   : > { %v1029_v10 = vpack.c.bf16 %v701_v6, %v701_v6  ;;  %vm635_vm9 = vcmp.gt.f32.partialorder %v603_v1, 0.0  ;;  %v667_v11 = vmul.f32 0.25, %v603_v1  ;;  %vm624_vm10 = vcmp.gt.f32.partialorder %v592_v2, 0.0 }
  0xe4   : > { %v683_v13 = vsel %vm619_vm8, %v587_v63, %v651_v7  ;;  %v656_v14 = vmul.f32 0.25, %v592_v2  ;;  %v608_v15 = vadd.f32 %v1223_v20, %v569_v3  ;;  %v590_v16 = vadd.f32 %v1223_v20, %v551_v4  ;;  %v1074_v17 = vpop.f32.mrf.mxu0  ;;  %v1090_v24 = vpop.f32.mrf.mxu1 }
  0xe5   : > { %862 = vst.msk [vmem:[%s1240_s6 + $0x4c] sm:$0xf] %vm842_vm1, %v1029_v10  ;;  %v1011_v19 = vpack.c.bf16 %v683_v13, %v683_v13  ;;  %v699_v21 = vsel %vm635_vm9, %v603_v1, %v667_v11  ;;  %v606_v22 = vadd.f32 %v1223_v20, %v567_v8  ;;  %v554_v23 = vmul.f32 %v1071_v0, %v1218_v18 }
  0xe6   : > { %v1027_v25 = vpack.c.bf16 %v699_v21, %v699_v21  ;;  %v688_v26 = vsel %vm624_vm10, %v592_v2, %v656_v14  ;;  %vm640_vm11 = vcmp.gt.f32.partialorder %v608_v15, 0.0  ;;  %v672_v27 = vmul.f32 0.25, %v608_v15  ;;  %v445_v28 = vpop.f32.mrf.mxu0  ;;  %v509_v31 = vpop.f32.mrf.mxu1 }
  0xe7   : > { %844 = vst.msk [vmem:[%s1240_s6 + $0x4] sm:$0xf] %vm842_vm1, %v1011_v19  ;;  %v1016_v29 = vpack.c.bf16 %v688_v26, %v688_v26  ;;  %vm622_vm12 = vcmp.gt.f32.partialorder %v590_v16, 0.0  ;;  %v654_v30 = vmul.f32 0.25, %v590_v16  ;;  %vm638_vm13 = vcmp.gt.f32.partialorder %v606_v22, 0.0 }
  0xe8   : > { %860 = vst.msk [vmem:[%s1240_s6 + $0x44] sm:$0xf] %vm842_vm1, %v1027_v25  ;;  %v704_v32 = vsel %vm640_vm11, %v608_v15, %v672_v27  ;;  %v670_v33 = vmul.f32 0.25, %v606_v22  ;;  %v593_v34 = vadd.f32 %v1223_v20, %v554_v23  ;;  %v570_v35 = vmul.f32 %v1087_v5, %v1218_v18  ;;  %v1075_v43 = vpop.f32.mrf.mxu0  ;;  %v1091_v44 = vpop.f32.mrf.mxu1 }
  0xe9   : > { %849 = vst.msk [vmem:[%s1240_s6 + $0x18] sm:$0xf] %vm842_vm1, %v1016_v29  ;;  %v1032_v36 = vpack.c.bf16 %v704_v32, %v704_v32  ;;  %v686_v37 = vsel %vm622_vm12, %v590_v16, %v654_v30  ;;  %v552_v38 = vmul.f32 %v1218_v18, %v432_v9  ;;  %v568_v39 = vmul.f32 %v1218_v18, %v496_v12 }
  0xea   : > { %v1014_v40 = vpack.c.bf16 %v686_v37, %v686_v37  ;;  %v702_v41 = vsel %vm638_vm13, %v606_v22, %v670_v33  ;;  %vm625_vm14 = vcmp.gt.f32.partialorder %v593_v34, 0.0  ;;  %v657_v42 = vmul.f32 0.25, %v593_v34  ;;  %v448_v58 = vpop.f32.mrf.mxu0  ;;  %v512_v59 = vpop.f32.mrf.mxu1 }
  0xeb   : > { %865 = vst.msk [vmem:[%s1240_s6 + $0x58] sm:$0xf] %vm842_vm1, %v1032_v36  ;;  %v1030_v45 = vpack.c.bf16 %v702_v41, %v702_v41  ;;  %v609_v46 = vadd.f32 %v1223_v20, %v570_v35  ;;  %v591_v47 = vadd.f32 %v1223_v20, %v552_v38  ;;  %v607_v48 = vadd.f32 %v1223_v20, %v568_v39 }
  0xec   : > { %847 = vst.msk [vmem:[%s1240_s6 + $0x10] sm:$0xf] %vm842_vm1, %v1014_v40  ;;  %v689_v49 = vsel %vm625_vm14, %v593_v34, %v657_v42  ;;  %v557_v50 = vmul.f32 %v1074_v17, %v1218_v18  ;;  %v573_v51 = vmul.f32 %v1090_v24, %v1218_v18  ;;  %v555_v52 = vmul.f32 %v1218_v18, %v445_v28  ;;  %v1078_v9 = vpop.f32.mrf.mxu0  ;;  %v1094_v10 = vpop.f32.mrf.mxu1 }
  0xed   : > { %863 = vst.msk [vmem:[%s1240_s6 + $0x50] sm:$0xf] %vm842_vm1, %v1030_v45  ;;  %v1017_v53 = vpack.c.bf16 %v689_v49, %v689_v49  ;;  %vm641_vm15 = vcmp.gt.f32.partialorder %v609_v46, 0.0  ;;  %v673_v54 = vmul.f32 0.25, %v609_v46  ;;  %vm623_vm0 = vcmp.gt.f32.partialorder %v591_v47, 0.0 }
  0xee   : > { %v655_v55 = vmul.f32 0.25, %v591_v47  ;;  %vm639_vm2 = vcmp.gt.f32.partialorder %v607_v48, 0.0  ;;  %v671_v56 = vmul.f32 0.25, %v607_v48  ;;  %v596_v57 = vadd.f32 %v1223_v20, %v557_v50  ;;  %v461_v28 = vpop.f32.mrf.mxu0  ;;  %v525_v29 = vpop.f32.mrf.mxu1 }
  0xef   : > { %850 = vst.msk [vmem:[%s1240_s6 + $0x1c] sm:$0xf] %vm842_vm1, %v1017_v53  ;;  %v705_v60 = vsel %vm641_vm15, %v609_v46, %v673_v54  ;;  %v612_v61 = vadd.f32 %v1223_v20, %v573_v51  ;;  %v594_v62 = vadd.f32 %v1223_v20, %v555_v52  ;;  %v571_v63 = vmul.f32 %v1218_v18, %v509_v31 }
  0xf0   : > { %v1033_v0 = vpack.c.bf16 %v705_v60, %v705_v60  ;;  %v687_v1 = vsel %vm623_vm0, %v591_v47, %v655_v55  ;;  %v703_v2 = vsel %vm639_vm2, %v607_v48, %v671_v56  ;;  %vm628_vm3 = vcmp.gt.f32.partialorder %v596_v57, 0.0 }
  0xf1   : > { %v1015_v3 = vpack.c.bf16 %v687_v1, %v687_v1  ;;  %v1031_v4 = vpack.c.bf16 %v703_v2, %v703_v2  ;;  %v660_v5 = vmul.f32 0.25, %v596_v57  ;;  %vm644_vm4 = vcmp.gt.f32.partialorder %v612_v61, 0.0 }
  0xf2   : > { %866 = vst.msk [vmem:[%s1240_s6 + $0x5c] sm:$0xf] %vm842_vm1, %v1033_v0  ;;  %v676_v6 = vmul.f32 0.25, %v612_v61  ;;  %vm626_vm5 = vcmp.gt.f32.partialorder %v594_v62, 0.0  ;;  %v658_v7 = vmul.f32 0.25, %v594_v62  ;;  %v610_v8 = vadd.f32 %v1223_v20, %v571_v63 }
  0xf3   : > { %848 = vst.msk [vmem:[%s1240_s6 + $0x14] sm:$0xf] %vm842_vm1, %v1015_v3  ;;  %864 = vst.msk [vmem:[%s1240_s6 + $0x54] sm:$0xf] %vm842_vm1, %v1031_v4  ;;  %v692_v11 = vsel %vm628_vm3, %v596_v57, %v660_v5  ;;  %v558_v12 = vmul.f32 %v1075_v43, %v1218_v18  ;;  %v574_v13 = vmul.f32 %v1091_v44, %v1218_v18  ;;  %v1079_v43 = vpop.f32.mrf.mxu0  ;;  %v1095_v44 = vpop.f32.mrf.mxu1 }
  0xf4   : > { %v556_v14 = vmul.f32 %v1218_v18, %v448_v58  ;;  %v1020_v15 = vpack.c.bf16 %v692_v11, %v692_v11  ;;  %v708_v16 = vsel %vm644_vm4, %v612_v61, %v676_v6  ;;  %v690_v17 = vsel %vm626_vm5, %v594_v62, %v658_v7 }
  0xf5   : > { %vm642_vm6 = vcmp.gt.f32.partialorder %v610_v8, 0.0  ;;  %v1036_v19 = vpack.c.bf16 %v708_v16, %v708_v16  ;;  %v1018_v21 = vpack.c.bf16 %v690_v17, %v690_v17  ;;  %v674_v22 = vmul.f32 0.25, %v610_v8  ;;  %v464_v58 = vpop.f32.mrf.mxu0 }
  0xf6   : > { %v597_v23 = vadd.f32 %v1223_v20, %v558_v12  ;;  %853 = vst.msk [vmem:[%s1240_s6 + $0x28] sm:$0xf] %vm842_vm1, %v1020_v15  ;;  %v613_v24 = vadd.f32 %v1223_v20, %v574_v13  ;;  %v595_v25 = vadd.f32 %v1223_v20, %v556_v14  ;;  %v572_v26 = vmul.f32 %v1218_v18, %v512_v59  ;;  %v528_v59 = vpop.f32.mrf.mxu1 }
  0xf7   : > { %v561_v27 = vmul.f32 %v1078_v9, %v1218_v18  ;;  %869 = vst.msk [vmem:[%s1240_s6 + $0x68] sm:$0xf] %vm842_vm1, %v1036_v19  ;;  %851 = vst.msk [vmem:[%s1240_s6 + $0x20] sm:$0xf] %vm842_vm1, %v1018_v21  ;;  %v706_v30 = vsel %vm642_vm6, %v610_v8, %v674_v22  ;;  %v577_v32 = vmul.f32 %v1094_v10, %v1218_v18 }
  0xf8   : > { %vm629_vm7 = vcmp.gt.f32.partialorder %v597_v23, 0.0  ;;  %v661_v31 = vmul.f32 0.25, %v597_v23  ;;  %v1034_v33 = vpack.c.bf16 %v706_v30, %v706_v30  ;;  %vm645_vm8 = vcmp.gt.f32.partialorder %v613_v24, 0.0 }
  0xf9   : > { %v677_v34 = vmul.f32 0.25, %v613_v24  ;;  %vm627_vm9 = vcmp.gt.f32.partialorder %v595_v25, 0.0  ;;  %v659_v36 = vmul.f32 0.25, %v595_v25  ;;  %v611_v37 = vadd.f32 %v1223_v20, %v572_v26 }
  0xfa   : > { %v693_v35 = vsel %vm629_vm7, %v597_v23, %v661_v31  ;;  %v600_v38 = vadd.f32 %v1223_v20, %v561_v27  ;;  %867 = vst.msk [vmem:[%s1240_s6 + $0x60] sm:$0xf] %vm842_vm1, %v1034_v33  ;;  %v616_v41 = vadd.f32 %v1223_v20, %v577_v32  ;;  %v559_v42 = vmul.f32 %v1218_v18, %v461_v28 }
  0xfb   : > { %v1021_v39 = vpack.c.bf16 %v693_v35, %v693_v35  ;;  %v709_v40 = vsel %vm645_vm8, %v613_v24, %v677_v34  ;;  %v691_v46 = vsel %vm627_vm9, %v595_v25, %v659_v36  ;;  %vm643_vm10 = vcmp.gt.f32.partialorder %v611_v37, 0.0 }
  0xfc   : > { %v1037_v45 = vpack.c.bf16 %v709_v40, %v709_v40  ;;  %v675_v47 = vmul.f32 0.25, %v611_v37  ;;  %v1019_v48 = vpack.c.bf16 %v691_v46, %v691_v46  ;;  %vm632_vm11 = vcmp.gt.f32.partialorder %v600_v38, 0.0 }
  0xfd   : > { %854 = vst.msk [vmem:[%s1240_s6 + $0x2c] sm:$0xf] %vm842_vm1, %v1021_v39  ;;  %v664_v49 = vmul.f32 0.25, %v600_v38  ;;  %vm648_vm12 = vcmp.gt.f32.partialorder %v616_v41, 0.0  ;;  %v680_v51 = vmul.f32 0.25, %v616_v41  ;;  %v598_v52 = vadd.f32 %v1223_v20, %v559_v42 }
  0xfe   : > { %870 = vst.msk [vmem:[%s1240_s6 + $0x6c] sm:$0xf] %vm842_vm1, %v1037_v45  ;;  %v707_v50 = vsel %vm643_vm10, %v611_v37, %v675_v47  ;;  %v575_v53 = vmul.f32 %v1218_v18, %v525_v29  ;;  %852 = vst.msk [vmem:[%s1240_s6 + $0x24] sm:$0xf] %vm842_vm1, %v1019_v48  ;;  %v562_v56 = vmul.f32 %v1079_v43, %v1218_v18 }
  0xff   : > { %v1035_v54 = vpack.c.bf16 %v707_v50, %v707_v50  ;;  %v696_v55 = vsel %vm632_vm11, %v600_v38, %v664_v49  ;;  %v578_v57 = vmul.f32 %v1095_v44, %v1218_v18  ;;  %v712_v61 = vsel %vm648_vm12, %v616_v41, %v680_v51 }
 0x100   : > { %v1024_v60 = vpack.c.bf16 %v696_v55, %v696_v55  ;;  %vm630_vm13 = vcmp.gt.f32.partialorder %v598_v52, 0.0  ;;  %v662_v62 = vmul.f32 0.25, %v598_v52  ;;  %v1040_v63 = vpack.c.bf16 %v712_v61, %v712_v61 }
 0x101   : > { %868 = vst.msk [vmem:[%s1240_s6 + $0x64] sm:$0xf] %vm842_vm1, %v1035_v54  ;;  %v614_v0 = vadd.f32 %v1223_v20, %v575_v53  ;;  %v601_v1 = vadd.f32 %v1223_v20, %v562_v56  ;;  %v617_v2 = vadd.f32 %v1223_v20, %v578_v57  ;;  %v560_v4 = vmul.f32 %v1218_v18, %v464_v58 }
 0x102   : > { %857 = vst.msk [vmem:[%s1240_s6 + $0x38] sm:$0xf] %vm842_vm1, %v1024_v60  ;;  %v694_v3 = vsel %vm630_vm13, %v598_v52, %v662_v62  ;;  %v576_v5 = vmul.f32 %v1218_v18, %v528_v59  ;;  %873 = vst.msk [vmem:[%s1240_s6 + $0x78] sm:$0xf] %vm842_vm1, %v1040_v63 }
 0x103   : > { %v1022_v6 = vpack.c.bf16 %v694_v3, %v694_v3  ;;  %vm646_vm14 = vcmp.gt.f32.partialorder %v614_v0, 0.0  ;;  %v678_v7 = vmul.f32 0.25, %v614_v0  ;;  %vm633_vm15 = vcmp.gt.f32.partialorder %v601_v1, 0.0 }
 0x104   : > { %v665_v8 = vmul.f32 0.25, %v601_v1  ;;  %vm649_vm0 = vcmp.gt.f32.partialorder %v617_v2, 0.0  ;;  %v681_v9 = vmul.f32 0.25, %v617_v2  ;;  %v599_v10 = vadd.f32 %v1223_v20, %v560_v4 }
 0x105   : > { %855 = vst.msk [vmem:[%s1240_s6 + $0x30] sm:$0xf] %vm842_vm1, %v1022_v6  ;;  %v710_v11 = vsel %vm646_vm14, %v614_v0, %v678_v7  ;;  %v615_v12 = vadd.f32 %v1223_v20, %v576_v5 }
 0x106   : > { %v1038_v18 = vpack.c.bf16 %v710_v11, %v710_v11  ;;  %v697_v13 = vsel %vm633_vm15, %v601_v1, %v665_v8  ;;  %v713_v14 = vsel %vm649_vm0, %v617_v2, %v681_v9  ;;  %vm631_vm2 = vcmp.gt.f32.partialorder %v599_v10, 0.0 }
 0x107   : > { %v1025_v15 = vpack.c.bf16 %v697_v13, %v697_v13  ;;  %v1041_v16 = vpack.c.bf16 %v713_v14, %v713_v14  ;;  %v663_v17 = vmul.f32 0.25, %v599_v10  ;;  %vm647_vm3 = vcmp.gt.f32.partialorder %v615_v12, 0.0 }
 0x108   : > { %871 = vst.msk [vmem:[%s1240_s6 + $0x70] sm:$0xf] %vm842_vm1, %v1038_v18  ;;  %v679_v19 = vmul.f32 0.25, %v615_v12 }
 0x109   : > { %858 = vst.msk [vmem:[%s1240_s6 + $0x3c] sm:$0xf] %vm842_vm1, %v1025_v15  ;;  %874 = vst.msk [vmem:[%s1240_s6 + $0x7c] sm:$0xf] %vm842_vm1, %v1041_v16  ;;  %v695_v21 = vsel %vm631_vm2, %v599_v10, %v663_v17 }
 0x10a   : > { %v1023_v22 = vpack.c.bf16 %v695_v21, %v695_v21  ;;  %v711_v20 = vsel %vm647_vm3, %v615_v12, %v679_v19 }
 0x10b   : > { %v1039_v23 = vpack.c.bf16 %v711_v20, %v711_v20 }
 0x10c   : > { %856 = vst.msk [vmem:[%s1240_s6 + $0x34] sm:$0xf] %vm842_vm1, %v1023_v22 }
 0x10d   : > { %872 = vst.msk [vmem:[%s1240_s6 + $0x74] sm:$0xf] %vm842_vm1, %v1039_v23 }
 0x10e PF: > { %s14_s15 = sadd.s32 1, %s1132_s15  }
 0x10f   : > { %p11_p4 = scmp.ge.s32.totalorder %s14_s15, 4  }
 0x111   :  { %13 = sbr.rel (!%p11_p4) target bundleno = 1 (0x1), region = 66 }

// kernel: _lambda_.90
= control target key start
LH: loop header
LB: loop body
LE: loop exit
PB: predicated region body
PF: predicated region fallthrough
CT: control target
= control target key end

     0   :  { %vm106_vm0 = vcmask 523264   ;;  %vm386_vm1 = vcmask 27648   ;;  %s692_s1 = inlined_call_operand.vmem [shape: bf16[64,4], index: 1, kind: input, shape index: {}]   ;;  %s693_s0 = inlined_call_operand.vmem [shape: bf16[128,64], index: 0, kind: input, shape index: {}]   ;;  %s694_s2 = inlined_call_operand.vmem [shape: f32[1,4], index: 2, kind: input, shape index: {}]   ;;  %s695_s3 = inlined_call_operand.vmem [shape: f32[1,4], index: 3, kind: input, shape index: {}]   ;;  %s696_s4 = inlined_call_operand.vmem [shape: bf16[128,4], index: 4, kind: output, shape index: {}]  }
   0x1   :  { %v505_v0 = vld [vmem:[%s692_s1 + $0x18] sm:$0xff]   ;;  %v506_v1 = vld [vmem:[%s692_s1 + $0x10] sm:$0xff]   ;;  %v507_v2 = vld [vmem:[%s692_s1 + $0x8] sm:$0xff]  }
   0x2   :  { %473 = vmatprep.subr.bf16.mxu0 %v505_v0  ;;  %497 = vmatprep.subr.bf16.mxu1 %v505_v0  ;;  %v509_v3 = vld [vmem:[%s693_s0] sm:$0xff]   ;;  %v511_v6 = vld [vmem:[%s693_s0 + $0x8] sm:$0xff]   ;;  %v513_v8 = vld [vmem:[%s693_s0 + $0x10] sm:$0xff]  }
   0x3   :  { %474 = vmatpush3.bf16.msra.mxu0 %v505_v0  ;;  %501 = vmatpush3.bf16.msra.mxu1 %v505_v0  ;;  %v510_v4 = vld [vmem:[%s693_s0 + $0x20] sm:$0xff]   ;;  %v512_v7 = vld [vmem:[%s693_s0 + $0x28] sm:$0xff]   ;;  %v514_v9 = vld [vmem:[%s693_s0 + $0x30] sm:$0xff]  }
   0x4   :  { %475 = vmatprep.subr.bf16.mxu0 %v506_v1  ;;  %498 = vmatprep.subr.bf16.mxu1 %v506_v1  ;;  %v508_v5 = vld [vmem:[%s692_s1] sm:$0xff]   ;;  %v515_v10 = vld [vmem:[%s693_s0 + $0x18] sm:$0xff]  }
   0x5   :  { %481 = vmatprep.mubr.msk.bf16.mxu0 %vm106_vm0, %v509_v3  ;;  %489 = vmatprep.mubr.msk.bf16.mxu1 %vm106_vm0, %v510_v4  ;;  %v516_v11 = vld [vmem:[%s693_s0 + $0x38] sm:$0xff]   ;;  %v589_v12 = vld [vmem:[%s694_s2] ss:$0 sm:$0xff] }
   0x6   :  { %v594_v14 = vld [vmem:[%s695_s3] ss:$0 sm:$0xff] }
   0x7   :  { %476 = vmatpush3.bf16.msra.mxu0 %v506_v1  ;;  %502 = vmatpush3.bf16.msra.mxu1 %v506_v1 }
   0x8   :  { %477 = vmatprep.subr.bf16.mxu0 %v507_v2  ;;  %499 = vmatprep.subr.bf16.mxu1 %v507_v2 }
   0xb   :  { %478 = vmatpush3.bf16.msra.mxu0 %v507_v2  ;;  %503 = vmatpush3.bf16.msra.mxu1 %v507_v2 }
   0xc   :  { %479 = vmatprep.subr.bf16.mxu0 %v508_v5  ;;  %500 = vmatprep.subr.bf16.mxu1 %v508_v5 }
   0xf   :  { %480 = vmatpush3.bf16.msra.mxu0 %v508_v5  ;;  %504 = vmatpush3.bf16.msra.mxu1 %v508_v5 }
  0x12   :  { %482 = vmatmul.mubr.msk.bf16.vlgmr.msra.gmra.mxu0 %vm106_vm0, %v511_v6  ;;  %490 = vmatmul.mubr.msk.bf16.vlgmr.msra.gmra.mxu1 %vm106_vm0, %v512_v7 }
  0x13   :  { %485 = vmatprep.mubr.msk.bf16.mxu0 %vm106_vm0, %v513_v8  ;;  %493 = vmatprep.mubr.msk.bf16.mxu1 %vm106_vm0, %v514_v9 }
  0x1a   :  { %486 = vmatmul.mubr.msk.bf16.gmra.mxu0 %vm106_vm0, %v515_v10  ;;  %494 = vmatmul.mubr.msk.bf16.gmra.mxu1 %vm106_vm0, %v516_v11 }
  0xd2   :  { %v483_v13 = vpop.f32.mrf.mxu0  ;;  %v491_v15 = vpop.f32.mrf.mxu1 }
  0xd3   :  { %v237_v16 = vmul.f32 %v483_v13, %v589_v12  ;;  %v245_v17 = vmul.f32 %v491_v15, %v589_v12 }
  0xd4   :  { %v165_v18 = vpop.f32.mrf.mxu0  ;;  %v197_v19 = vpop.f32.mrf.mxu1 }
  0xd5   :  { %v260_v20 = vadd.f32 %v594_v14, %v237_v16  ;;  %v268_v21 = vadd.f32 %v594_v14, %v245_v17  ;;  %v235_v22 = vmul.f32 %v589_v12, %v165_v18  ;;  %v243_v23 = vmul.f32 %v589_v12, %v197_v19 }
  0xd6   :  { %v484_v24 = vpop.f32.mrf.mxu0  ;;  %v492_v25 = vpop.f32.mrf.mxu1 }
  0xd7   :  { %vm276_vm2 = vcmp.gt.f32.partialorder %v260_v20, 0.0  ;;  %v292_v26 = vmul.f32 0.25, %v260_v20  ;;  %vm284_vm3 = vcmp.gt.f32.partialorder %v268_v21, 0.0  ;;  %v300_v27 = vmul.f32 0.25, %v268_v21 }
  0xd8   :  { %v258_v28 = vadd.f32 %v594_v14, %v235_v22  ;;  %v266_v29 = vadd.f32 %v594_v14, %v243_v23  ;;  %v238_v30 = vmul.f32 %v484_v24, %v589_v12  ;;  %v246_v31 = vmul.f32 %v492_v25, %v589_v12  ;;  %v168_v32 = vpop.f32.mrf.mxu0  ;;  %v200_v33 = vpop.f32.mrf.mxu1 }
  0xd9   :  { %v308_v34 = vsel %vm276_vm2, %v260_v20, %v292_v26  ;;  %v316_v35 = vsel %vm284_vm3, %v268_v21, %v300_v27  ;;  %v236_v36 = vmul.f32 %v589_v12, %v168_v32  ;;  %v244_v37 = vmul.f32 %v589_v12, %v200_v33 }
  0xda   :  { %v447_v38 = vpack.c.bf16 %v308_v34, %v308_v34  ;;  %v455_v39 = vpack.c.bf16 %v316_v35, %v316_v35  ;;  %vm274_vm4 = vcmp.gt.f32.partialorder %v258_v28, 0.0  ;;  %v290_v40 = vmul.f32 0.25, %v258_v28  ;;  %v487_v41 = vpop.f32.mrf.mxu0  ;;  %v495_v42 = vpop.f32.mrf.mxu1 }
  0xdb   :  { %vm282_vm5 = vcmp.gt.f32.partialorder %v266_v29, 0.0  ;;  %v298_v43 = vmul.f32 0.25, %v266_v29  ;;  %v261_v44 = vadd.f32 %v594_v14, %v238_v30  ;;  %v269_v45 = vadd.f32 %v594_v14, %v246_v31 }
  0xdc   :  { %389 = vst.msk [vmem:[%s696_s4 + $0x8] sm:$0xf] %vm386_vm1, %v447_v38  ;;  %397 = vst.msk [vmem:[%s696_s4 + $0x28] sm:$0xf] %vm386_vm1, %v455_v39  ;;  %v306_v46 = vsel %vm274_vm4, %v258_v28, %v290_v40  ;;  %v259_v47 = vadd.f32 %v594_v14, %v236_v36  ;;  %v267_v48 = vadd.f32 %v594_v14, %v244_v37  ;;  %v181_v50 = vpop.f32.mrf.mxu0  ;;  %v213_v51 = vpop.f32.mrf.mxu1 }
  0xdd   :  { %v241_v49 = vmul.f32 %v487_v41, %v589_v12  ;;  %v445_v52 = vpack.c.bf16 %v306_v46, %v306_v46  ;;  %v314_v53 = vsel %vm282_vm5, %v266_v29, %v298_v43  ;;  %vm277_vm6 = vcmp.gt.f32.partialorder %v261_v44, 0.0 }
  0xde   :  { %v293_v54 = vmul.f32 0.25, %v261_v44  ;;  %v453_v55 = vpack.c.bf16 %v314_v53, %v314_v53  ;;  %vm285_vm7 = vcmp.gt.f32.partialorder %v269_v45, 0.0  ;;  %v301_v56 = vmul.f32 0.25, %v269_v45  ;;  %v488_v57 = vpop.f32.mrf.mxu0  ;;  %v496_v58 = vpop.f32.mrf.mxu1 }
  0xdf   :  { %vm275_vm8 = vcmp.gt.f32.partialorder %v259_v47, 0.0  ;;  %387 = vst.msk [vmem:[%s696_s4] sm:$0xf] %vm386_vm1, %v445_v52  ;;  %v291_v60 = vmul.f32 0.25, %v259_v47  ;;  %vm283_vm9 = vcmp.gt.f32.partialorder %v267_v48, 0.0  ;;  %v299_v61 = vmul.f32 0.25, %v267_v48 }
  0xe0   :  { %v309_v59 = vsel %vm277_vm6, %v261_v44, %v293_v54  ;;  %395 = vst.msk [vmem:[%s696_s4 + $0x20] sm:$0xf] %vm386_vm1, %v453_v55  ;;  %v317_v63 = vsel %vm285_vm7, %v269_v45, %v301_v56  ;;  %v264_v0 = vadd.f32 %v594_v14, %v241_v49  ;;  %v249_v1 = vmul.f32 %v495_v42, %v589_v12  ;;  %v184_v6 = vpop.f32.mrf.mxu0  ;;  %v216_v7 = vpop.f32.mrf.mxu1 }
  0xe1   :  { %v448_v62 = vpack.c.bf16 %v309_v59, %v309_v59  ;;  %v456_v2 = vpack.c.bf16 %v317_v63, %v317_v63  ;;  %v307_v3 = vsel %vm275_vm8, %v259_v47, %v291_v60  ;;  %v315_v4 = vsel %vm283_vm9, %v267_v48, %v299_v61 }
  0xe2   :  { %v239_v5 = vmul.f32 %v589_v12, %v181_v50  ;;  %v446_v8 = vpack.c.bf16 %v307_v3, %v307_v3  ;;  %v454_v9 = vpack.c.bf16 %v315_v4, %v315_v4  ;;  %vm280_vm10 = vcmp.gt.f32.partialorder %v264_v0, 0.0 }
  0xe3   :  { %390 = vst.msk [vmem:[%s696_s4 + $0xc] sm:$0xf] %vm386_vm1, %v448_v62  ;;  %v296_v10 = vmul.f32 0.25, %v264_v0  ;;  %398 = vst.msk [vmem:[%s696_s4 + $0x2c] sm:$0xf] %vm386_vm1, %v456_v2  ;;  %v272_v11 = vadd.f32 %v594_v14, %v249_v1  ;;  %v247_v15 = vmul.f32 %v589_v12, %v213_v51  ;;  %v242_v16 = vmul.f32 %v488_v57, %v589_v12 }
  0xe4   :  { %v262_v13 = vadd.f32 %v594_v14, %v239_v5  ;;  %388 = vst.msk [vmem:[%s696_s4 + $0x4] sm:$0xf] %vm386_vm1, %v446_v8  ;;  %396 = vst.msk [vmem:[%s696_s4 + $0x24] sm:$0xf] %vm386_vm1, %v454_v9  ;;  %v250_v18 = vmul.f32 %v496_v58, %v589_v12  ;;  %v240_v19 = vmul.f32 %v589_v12, %v184_v6 }
  0xe5   :  { %v312_v17 = vsel %vm280_vm10, %v264_v0, %v296_v10  ;;  %v248_v20 = vmul.f32 %v589_v12, %v216_v7  ;;  %vm288_vm11 = vcmp.gt.f32.partialorder %v272_v11, 0.0  ;;  %v304_v22 = vmul.f32 0.25, %v272_v11 }
  0xe6   :  { %v451_v21 = vpack.c.bf16 %v312_v17, %v312_v17  ;;  %vm278_vm12 = vcmp.gt.f32.partialorder %v262_v13, 0.0  ;;  %v294_v23 = vmul.f32 0.25, %v262_v13  ;;  %v270_v24 = vadd.f32 %v594_v14, %v247_v15 }
  0xe7   :  { %v265_v25 = vadd.f32 %v594_v14, %v242_v16  ;;  %v273_v26 = vadd.f32 %v594_v14, %v250_v18  ;;  %v320_v27 = vsel %vm288_vm11, %v272_v11, %v304_v22  ;;  %v263_v28 = vadd.f32 %v594_v14, %v240_v19 }
  0xe8   :  { %393 = vst.msk [vmem:[%s696_s4 + $0x18] sm:$0xf] %vm386_vm1, %v451_v21  ;;  %v271_v12 = vadd.f32 %v594_v14, %v248_v20  ;;  %v459_v29 = vpack.c.bf16 %v320_v27, %v320_v27  ;;  %v310_v30 = vsel %vm278_vm12, %v262_v13, %v294_v23  ;;  %vm286_vm13 = vcmp.gt.f32.partialorder %v270_v24, 0.0 }
  0xe9   :  { %v302_v31 = vmul.f32 0.25, %v270_v24  ;;  %v449_v32 = vpack.c.bf16 %v310_v30, %v310_v30  ;;  %vm281_vm14 = vcmp.gt.f32.partialorder %v265_v25, 0.0  ;;  %v297_v33 = vmul.f32 0.25, %v265_v25 }
  0xea   :  { %vm289_vm15 = vcmp.gt.f32.partialorder %v273_v26, 0.0  ;;  %401 = vst.msk [vmem:[%s696_s4 + $0x38] sm:$0xf] %vm386_vm1, %v459_v29  ;;  %v305_v35 = vmul.f32 0.25, %v273_v26  ;;  %vm279_vm0 = vcmp.gt.f32.partialorder %v263_v28, 0.0  ;;  %v295_v36 = vmul.f32 0.25, %v263_v28 }
  0xeb   :  { %v318_v34 = vsel %vm286_vm13, %v270_v24, %v302_v31  ;;  %391 = vst.msk [vmem:[%s696_s4 + $0x10] sm:$0xf] %vm386_vm1, %v449_v32  ;;  %v313_v37 = vsel %vm281_vm14, %v265_v25, %v297_v33  ;;  %vm287_vm2 = vcmp.gt.f32.partialorder %v271_v12, 0.0  ;;  %v303_v38 = vmul.f32 0.25, %v271_v12 }
  0xec   :  { %v457_v14 = vpack.c.bf16 %v318_v34, %v318_v34  ;;  %v452_v39 = vpack.c.bf16 %v313_v37, %v313_v37  ;;  %v321_v40 = vsel %vm289_vm15, %v273_v26, %v305_v35  ;;  %v311_v41 = vsel %vm279_vm0, %v263_v28, %v295_v36 }
  0xed   :  { %v460_v42 = vpack.c.bf16 %v321_v40, %v321_v40  ;;  %v450_v43 = vpack.c.bf16 %v311_v41, %v311_v41  ;;  %v319_v44 = vsel %vm287_vm2, %v271_v12, %v303_v38 }
  0xee   :  { %399 = vst.msk [vmem:[%s696_s4 + $0x30] sm:$0xf] %vm386_vm1, %v457_v14  ;;  %394 = vst.msk [vmem:[%s696_s4 + $0x1c] sm:$0xf] %vm386_vm1, %v452_v39  ;;  %v458_v45 = vpack.c.bf16 %v319_v44, %v319_v44 }
  0xef   :  { %402 = vst.msk [vmem:[%s696_s4 + $0x3c] sm:$0xf] %vm386_vm1, %v460_v42  ;;  %392 = vst.msk [vmem:[%s696_s4 + $0x14] sm:$0xf] %vm386_vm1, %v450_v43 }
  0xf0   :  { %400 = vst.msk [vmem:[%s696_s4 + $0x34] sm:$0xf] %vm386_vm1, %v458_v45 }

// kernel: _lambda_.91
= control target key start
LH: loop header
LB: loop body
LE: loop exit
PB: predicated region body
PF: predicated region fallthrough
CT: control target
= control target key end

     0   :  { %vm98_vm0 = vcmask 392192   ;;  %vm378_vm1 = vcmask 27648   ;;  %s674_s1 = inlined_call_operand.vmem [shape: bf16[48,4], index: 1, kind: input, shape index: {}]   ;;  %s675_s0 = inlined_call_operand.vmem [shape: bf16[128,48], index: 0, kind: input, shape index: {}]   ;;  %s676_s2 = inlined_call_operand.vmem [shape: f32[1,4], index: 2, kind: input, shape index: {}]   ;;  %s677_s3 = inlined_call_operand.vmem [shape: f32[1,4], index: 3, kind: input, shape index: {}]   ;;  %s678_s4 = inlined_call_operand.vmem [shape: bf16[128,4], index: 4, kind: output, shape index: {}]  }
   0x1   :  { %v491_v0 = vld [vmem:[%s674_s1 + $0x10] sm:$0xff]   ;;  %v492_v1 = vld [vmem:[%s674_s1 + $0x8] sm:$0xff]   ;;  %v493_v2 = vld [vmem:[%s674_s1] sm:$0xff]  }
   0x2   :  { %463 = vmatprep.subr.bf16.mxu0 %v491_v0  ;;  %485 = vmatprep.subr.bf16.mxu1 %v491_v0  ;;  %v494_v3 = vld [vmem:[%s675_s0] sm:$0xff]   ;;  %v496_v5 = vld [vmem:[%s675_s0 + $0x8] sm:$0xff]   ;;  %v498_v7 = vld [vmem:[%s675_s0 + $0x10] sm:$0xff]  }
   0x3   :  { %464 = vmatpush3.bf16.msra.mxu0 %v491_v0  ;;  %488 = vmatpush3.bf16.msra.mxu1 %v491_v0  ;;  %v495_v4 = vld [vmem:[%s675_s0 + $0x20] sm:$0xff]   ;;  %v497_v6 = vld [vmem:[%s675_s0 + $0x28] sm:$0xff]   ;;  %v499_v8 = vld [vmem:[%s675_s0 + $0x30] sm:$0xff]  }
   0x4   :  { %465 = vmatprep.subr.bf16.mxu0 %v492_v1  ;;  %486 = vmatprep.subr.bf16.mxu1 %v492_v1  ;;  %v500_v9 = vld [vmem:[%s675_s0 + $0x18] sm:$0xff]   ;;  %v571_v11 = vld [vmem:[%s676_s2] ss:$0 sm:$0xff] }
   0x5   :  { %469 = vmatprep.mubr.msk.bf16.mxu0 %vm98_vm0, %v494_v3  ;;  %477 = vmatprep.mubr.msk.bf16.mxu1 %vm98_vm0, %v495_v4  ;;  %v501_v10 = vld [vmem:[%s675_s0 + $0x38] sm:$0xff]   ;;  %v576_v13 = vld [vmem:[%s677_s3] ss:$0 sm:$0xff] }
   0x7   :  { %466 = vmatpush3.bf16.msra.mxu0 %v492_v1  ;;  %489 = vmatpush3.bf16.msra.mxu1 %v492_v1 }
   0x8   :  { %467 = vmatprep.subr.bf16.mxu0 %v493_v2  ;;  %487 = vmatprep.subr.bf16.mxu1 %v493_v2 }
   0xb   :  { %468 = vmatpush3.bf16.msra.mxu0 %v493_v2  ;;  %490 = vmatpush3.bf16.msra.mxu1 %v493_v2 }
   0xe   :  { %470 = vmatmul.mubr.msk.bf16.vlgmr.msra.gmra.mxu0 %vm98_vm0, %v496_v5  ;;  %478 = vmatmul.mubr.msk.bf16.vlgmr.msra.gmra.mxu1 %vm98_vm0, %v497_v6 }
   0xf   :  { %473 = vmatprep.mubr.msk.bf16.mxu0 %vm98_vm0, %v498_v7  ;;  %481 = vmatprep.mubr.msk.bf16.mxu1 %vm98_vm0, %v499_v8 }
  0x16   :  { %474 = vmatmul.mubr.msk.bf16.gmra.mxu0 %vm98_vm0, %v500_v9  ;;  %482 = vmatmul.mubr.msk.bf16.gmra.mxu1 %vm98_vm0, %v501_v10 }
  0xce   :  { %v471_v12 = vpop.f32.mrf.mxu0  ;;  %v479_v14 = vpop.f32.mrf.mxu1 }
  0xcf   :  { %v229_v15 = vmul.f32 %v471_v12, %v571_v11  ;;  %v237_v16 = vmul.f32 %v479_v14, %v571_v11 }
  0xd0   :  { %v157_v17 = vpop.f32.mrf.mxu0  ;;  %v189_v18 = vpop.f32.mrf.mxu1 }
  0xd1   :  { %v252_v19 = vadd.f32 %v576_v13, %v229_v15  ;;  %v260_v20 = vadd.f32 %v576_v13, %v237_v16  ;;  %v227_v21 = vmul.f32 %v571_v11, %v157_v17  ;;  %v235_v22 = vmul.f32 %v571_v11, %v189_v18 }
  0xd2   :  { %v472_v23 = vpop.f32.mrf.mxu0  ;;  %v480_v24 = vpop.f32.mrf.mxu1 }
  0xd3   :  { %vm268_vm2 = vcmp.gt.f32.partialorder %v252_v19, 0.0  ;;  %v284_v25 = vmul.f32 0.25, %v252_v19  ;;  %vm276_vm3 = vcmp.gt.f32.partialorder %v260_v20, 0.0  ;;  %v292_v26 = vmul.f32 0.25, %v260_v20 }
  0xd4   :  { %v250_v27 = vadd.f32 %v576_v13, %v227_v21  ;;  %v258_v28 = vadd.f32 %v576_v13, %v235_v22  ;;  %v230_v29 = vmul.f32 %v472_v23, %v571_v11  ;;  %v238_v30 = vmul.f32 %v480_v24, %v571_v11  ;;  %v160_v31 = vpop.f32.mrf.mxu0  ;;  %v192_v32 = vpop.f32.mrf.mxu1 }
  0xd5   :  { %v300_v33 = vsel %vm268_vm2, %v252_v19, %v284_v25  ;;  %v308_v34 = vsel %vm276_vm3, %v260_v20, %v292_v26  ;;  %v228_v35 = vmul.f32 %v571_v11, %v160_v31  ;;  %v236_v36 = vmul.f32 %v571_v11, %v192_v32 }
  0xd6   :  { %v438_v37 = vpack.c.bf16 %v300_v33, %v300_v33  ;;  %v446_v38 = vpack.c.bf16 %v308_v34, %v308_v34  ;;  %vm266_vm4 = vcmp.gt.f32.partialorder %v250_v27, 0.0  ;;  %v282_v39 = vmul.f32 0.25, %v250_v27  ;;  %v475_v40 = vpop.f32.mrf.mxu0  ;;  %v483_v41 = vpop.f32.mrf.mxu1 }
  0xd7   :  { %vm274_vm5 = vcmp.gt.f32.partialorder %v258_v28, 0.0  ;;  %v290_v42 = vmul.f32 0.25, %v258_v28  ;;  %v253_v43 = vadd.f32 %v576_v13, %v230_v29  ;;  %v261_v44 = vadd.f32 %v576_v13, %v238_v30 }
  0xd8   :  { %381 = vst.msk [vmem:[%s678_s4 + $0x8] sm:$0xf] %vm378_vm1, %v438_v37  ;;  %389 = vst.msk [vmem:[%s678_s4 + $0x28] sm:$0xf] %vm378_vm1, %v446_v38  ;;  %v298_v45 = vsel %vm266_vm4, %v250_v27, %v282_v39  ;;  %v251_v46 = vadd.f32 %v576_v13, %v228_v35  ;;  %v259_v47 = vadd.f32 %v576_v13, %v236_v36  ;;  %v173_v49 = vpop.f32.mrf.mxu0  ;;  %v205_v50 = vpop.f32.mrf.mxu1 }
  0xd9   :  { %v233_v48 = vmul.f32 %v475_v40, %v571_v11  ;;  %v436_v51 = vpack.c.bf16 %v298_v45, %v298_v45  ;;  %v306_v52 = vsel %vm274_vm5, %v258_v28, %v290_v42  ;;  %vm269_vm6 = vcmp.gt.f32.partialorder %v253_v43, 0.0 }
  0xda   :  { %v285_v53 = vmul.f32 0.25, %v253_v43  ;;  %v444_v54 = vpack.c.bf16 %v306_v52, %v306_v52  ;;  %vm277_vm7 = vcmp.gt.f32.partialorder %v261_v44, 0.0  ;;  %v293_v55 = vmul.f32 0.25, %v261_v44  ;;  %v476_v56 = vpop.f32.mrf.mxu0  ;;  %v484_v57 = vpop.f32.mrf.mxu1 }
  0xdb   :  { %vm267_vm8 = vcmp.gt.f32.partialorder %v251_v46, 0.0  ;;  %379 = vst.msk [vmem:[%s678_s4] sm:$0xf] %vm378_vm1, %v436_v51  ;;  %v283_v59 = vmul.f32 0.25, %v251_v46  ;;  %vm275_vm9 = vcmp.gt.f32.partialorder %v259_v47, 0.0  ;;  %v291_v60 = vmul.f32 0.25, %v259_v47 }
  0xdc   :  { %v301_v58 = vsel %vm269_vm6, %v253_v43, %v285_v53  ;;  %387 = vst.msk [vmem:[%s678_s4 + $0x20] sm:$0xf] %vm378_vm1, %v444_v54  ;;  %v309_v62 = vsel %vm277_vm7, %v261_v44, %v293_v55  ;;  %v256_v63 = vadd.f32 %v576_v13, %v233_v48  ;;  %v241_v0 = vmul.f32 %v483_v41, %v571_v11  ;;  %v176_v5 = vpop.f32.mrf.mxu0  ;;  %v208_v6 = vpop.f32.mrf.mxu1 }
  0xdd   :  { %v439_v61 = vpack.c.bf16 %v301_v58, %v301_v58  ;;  %v447_v1 = vpack.c.bf16 %v309_v62, %v309_v62  ;;  %v299_v2 = vsel %vm267_vm8, %v251_v46, %v283_v59  ;;  %v307_v3 = vsel %vm275_vm9, %v259_v47, %v291_v60 }
  0xde   :  { %v231_v4 = vmul.f32 %v571_v11, %v173_v49  ;;  %v437_v7 = vpack.c.bf16 %v299_v2, %v299_v2  ;;  %v445_v8 = vpack.c.bf16 %v307_v3, %v307_v3  ;;  %vm272_vm10 = vcmp.gt.f32.partialorder %v256_v63, 0.0 }
  0xdf   :  { %382 = vst.msk [vmem:[%s678_s4 + $0xc] sm:$0xf] %vm378_vm1, %v439_v61  ;;  %v288_v9 = vmul.f32 0.25, %v256_v63  ;;  %390 = vst.msk [vmem:[%s678_s4 + $0x2c] sm:$0xf] %vm378_vm1, %v447_v1  ;;  %v264_v10 = vadd.f32 %v576_v13, %v241_v0  ;;  %v239_v14 = vmul.f32 %v571_v11, %v205_v50  ;;  %v234_v15 = vmul.f32 %v476_v56, %v571_v11 }
  0xe0   :  { %v254_v12 = vadd.f32 %v576_v13, %v231_v4  ;;  %380 = vst.msk [vmem:[%s678_s4 + $0x4] sm:$0xf] %vm378_vm1, %v437_v7  ;;  %388 = vst.msk [vmem:[%s678_s4 + $0x24] sm:$0xf] %vm378_vm1, %v445_v8  ;;  %v242_v17 = vmul.f32 %v484_v57, %v571_v11  ;;  %v232_v18 = vmul.f32 %v571_v11, %v176_v5 }
  0xe1   :  { %v304_v16 = vsel %vm272_vm10, %v256_v63, %v288_v9  ;;  %v240_v19 = vmul.f32 %v571_v11, %v208_v6  ;;  %vm280_vm11 = vcmp.gt.f32.partialorder %v264_v10, 0.0  ;;  %v296_v21 = vmul.f32 0.25, %v264_v10 }
  0xe2   :  { %v442_v20 = vpack.c.bf16 %v304_v16, %v304_v16  ;;  %vm270_vm12 = vcmp.gt.f32.partialorder %v254_v12, 0.0  ;;  %v286_v22 = vmul.f32 0.25, %v254_v12  ;;  %v262_v23 = vadd.f32 %v576_v13, %v239_v14 }
  0xe3   :  { %v257_v24 = vadd.f32 %v576_v13, %v234_v15  ;;  %v265_v25 = vadd.f32 %v576_v13, %v242_v17  ;;  %v312_v26 = vsel %vm280_vm11, %v264_v10, %v296_v21  ;;  %v255_v27 = vadd.f32 %v576_v13, %v232_v18 }
  0xe4   :  { %385 = vst.msk [vmem:[%s678_s4 + $0x18] sm:$0xf] %vm378_vm1, %v442_v20  ;;  %v263_v11 = vadd.f32 %v576_v13, %v240_v19  ;;  %v450_v28 = vpack.c.bf16 %v312_v26, %v312_v26  ;;  %v302_v29 = vsel %vm270_vm12, %v254_v12, %v286_v22  ;;  %vm278_vm13 = vcmp.gt.f32.partialorder %v262_v23, 0.0 }
  0xe5   :  { %v294_v30 = vmul.f32 0.25, %v262_v23  ;;  %v440_v31 = vpack.c.bf16 %v302_v29, %v302_v29  ;;  %vm273_vm14 = vcmp.gt.f32.partialorder %v257_v24, 0.0  ;;  %v289_v32 = vmul.f32 0.25, %v257_v24 }
  0xe6   :  { %vm281_vm15 = vcmp.gt.f32.partialorder %v265_v25, 0.0  ;;  %393 = vst.msk [vmem:[%s678_s4 + $0x38] sm:$0xf] %vm378_vm1, %v450_v28  ;;  %v297_v34 = vmul.f32 0.25, %v265_v25  ;;  %vm271_vm0 = vcmp.gt.f32.partialorder %v255_v27, 0.0  ;;  %v287_v35 = vmul.f32 0.25, %v255_v27 }
  0xe7   :  { %v310_v33 = vsel %vm278_vm13, %v262_v23, %v294_v30  ;;  %383 = vst.msk [vmem:[%s678_s4 + $0x10] sm:$0xf] %vm378_vm1, %v440_v31  ;;  %v305_v36 = vsel %vm273_vm14, %v257_v24, %v289_v32  ;;  %vm279_vm2 = vcmp.gt.f32.partialorder %v263_v11, 0.0  ;;  %v295_v37 = vmul.f32 0.25, %v263_v11 }
  0xe8   :  { %v448_v13 = vpack.c.bf16 %v310_v33, %v310_v33  ;;  %v443_v38 = vpack.c.bf16 %v305_v36, %v305_v36  ;;  %v313_v39 = vsel %vm281_vm15, %v265_v25, %v297_v34  ;;  %v303_v40 = vsel %vm271_vm0, %v255_v27, %v287_v35 }
  0xe9   :  { %v451_v41 = vpack.c.bf16 %v313_v39, %v313_v39  ;;  %v441_v42 = vpack.c.bf16 %v303_v40, %v303_v40  ;;  %v311_v43 = vsel %vm279_vm2, %v263_v11, %v295_v37 }
  0xea   :  { %391 = vst.msk [vmem:[%s678_s4 + $0x30] sm:$0xf] %vm378_vm1, %v448_v13  ;;  %386 = vst.msk [vmem:[%s678_s4 + $0x1c] sm:$0xf] %vm378_vm1, %v443_v38  ;;  %v449_v44 = vpack.c.bf16 %v311_v43, %v311_v43 }
  0xeb   :  { %394 = vst.msk [vmem:[%s678_s4 + $0x3c] sm:$0xf] %vm378_vm1, %v451_v41  ;;  %384 = vst.msk [vmem:[%s678_s4 + $0x14] sm:$0xf] %vm378_vm1, %v441_v42 }
  0xec   :  { %392 = vst.msk [vmem:[%s678_s4 + $0x34] sm:$0xf] %vm378_vm1, %v449_v44 }

// kernel: _lambda_.92
= control target key start
LH: loop header
LB: loop body
LE: loop exit
PB: predicated region body
PF: predicated region fallthrough
CT: control target
= control target key end

     0   :  { %vm85_vm0 = vcmask 130048   ;;  %vm461_vm1 = vcmask 519168   ;;  %s860_s1 = inlined_call_operand.vmem [shape: bf16[16,64], index: 1, kind: input, shape index: {}]   ;;  %s861_s0 = inlined_call_operand.vmem [shape: bf16[128,16], index: 0, kind: input, shape index: {}]   ;;  %s862_s4 = inlined_call_operand.vmem [shape: bf16[128,64], index: 4, kind: input, shape index: {}]   ;;  %s863_s2 = inlined_call_operand.vmem [shape: f32[1,64], index: 2, kind: input, shape index: {}]   ;;  %s864_s3 = inlined_call_operand.vmem [shape: f32[1,64], index: 3, kind: input, shape index: {}]   ;;  %s865_s5 = inlined_call_operand.vmem [shape: bf16[128,64], index: 5, kind: output, shape index: {}]  }
   0x1   :  { %v601_v0 = vld [vmem:[%s860_s1] sm:$0xff]   ;;  %v604_v3 = vld [vmem:[%s861_s0 + $0x8] sm:$0xff]   ;;  %v606_v5 = vld [vmem:[%s861_s0 + $0x10] sm:$0xff]  }
   0x2   :  { %v602_v1 = vld [vmem:[%s861_s0] sm:$0xff]   ;;  %581 = vmatprep.subr.bf16.mxu0 %v601_v0  ;;  %599 = vmatprep.subr.bf16.mxu1 %v601_v0  ;;  %v605_v4 = vld [vmem:[%s861_s0 + $0x28] sm:$0xff]   ;;  %v607_v6 = vld [vmem:[%s861_s0 + $0x30] sm:$0xff]  }
   0x3   :  { %v603_v2 = vld [vmem:[%s861_s0 + $0x20] sm:$0xff]   ;;  %582 = vmatpush3.bf16.msra.mxu0 %v601_v0  ;;  %600 = vmatpush3.bf16.msra.mxu1 %v601_v0  ;;  %v608_v7 = vld [vmem:[%s861_s0 + $0x18] sm:$0xff]   ;;  %v678_v9 = vld [vmem:[%s862_s4 + $0x8] sm:$0xff]  }
   0x4   :  { %583 = vmatprep.mubr.msk.bf16.mxu0 %vm85_vm0, %v602_v1  ;;  %591 = vmatprep.mubr.msk.bf16.mxu1 %vm85_vm0, %v603_v2  ;;  %v609_v8 = vld [vmem:[%s861_s0 + $0x38] sm:$0xff]   ;;  %v683_v10 = vld [vmem:[%s862_s4 + $0x28] sm:$0xff]   ;;  %v688_v11 = vld [vmem:[%s862_s4] sm:$0xff]   ;;  %v539_v14 = vunpack.c.l.bf16 %v678_v9  ;;  %v540_v24 = vunpack.c.h.bf16 %v678_v9 }
   0x5   :  { %v693_v12 = vld [vmem:[%s862_s4 + $0x20] sm:$0xff]   ;;  %v704_v15 = vld [vmem:[%s862_s4 + $0x18] sm:$0xff]   ;;  %v714_v17 = vld [vmem:[%s862_s4 + $0x10] sm:$0xff]   ;;  %v555_v21 = vunpack.c.l.bf16 %v683_v10  ;;  %v535_v22 = vunpack.c.l.bf16 %v688_v11  ;;  %v556_v27 = vunpack.c.h.bf16 %v683_v10  ;;  %v536_v28 = vunpack.c.h.bf16 %v688_v11 }
   0x6   :  { %584 = vmatmul.mubr.msk.bf16.vlgmr.msra.gmra.mxu0 %vm85_vm0, %v604_v3  ;;  %592 = vmatmul.mubr.msk.bf16.vlgmr.msra.gmra.mxu1 %vm85_vm0, %v605_v4  ;;  %v698_v13 = vld [vmem:[%s863_s2] ss:$0 sm:$0xff]  ;;  %v709_v16 = vld [vmem:[%s862_s4 + $0x38] sm:$0xff]   ;;  %v551_v23 = vunpack.c.l.bf16 %v693_v12  ;;  %v732_v29 = vld [vmem:[%s862_s4 + $0x30] sm:$0xff]   ;;  %v552_v32 = vunpack.c.h.bf16 %v693_v12  ;;  %v547_v33 = vunpack.c.l.bf16 %v704_v15  ;;  %v543_v35 = vunpack.c.l.bf16 %v714_v17 }
   0x7   :  { %587 = vmatprep.mubr.msk.bf16.mxu0 %vm85_vm0, %v606_v5  ;;  %595 = vmatprep.mubr.msk.bf16.mxu1 %vm85_vm0, %v607_v6  ;;  %v719_v19 = vld [vmem:[%s864_s3] ss:$0 sm:$0xff]  ;;  %v563_v34 = vunpack.c.l.bf16 %v709_v16  ;;  %v559_v42 = vunpack.c.l.bf16 %v732_v29  ;;  %v548_v43 = vunpack.c.h.bf16 %v704_v15  ;;  %v564_v44 = vunpack.c.h.bf16 %v709_v16 }
   0x8   :  { %v544_v45 = vunpack.c.h.bf16 %v714_v17 }
   0xe   :  { %588 = vmatmul.mubr.msk.bf16.gmra.mxu0 %vm85_vm0, %v608_v7  ;;  %596 = vmatmul.mubr.msk.bf16.gmra.mxu1 %vm85_vm0, %v609_v8 }
  0xc6   :  { %v585_v18 = vpop.f32.mrf.mxu0  ;;  %v593_v20 = vpop.f32.mrf.mxu1 }
  0xc7   :  { %v216_v25 = vmul.f32 %v585_v18, %v698_v13  ;;  %v224_v26 = vmul.f32 %v593_v20, %v698_v13 }
  0xc8   :  { %v144_v30 = vpop.f32.mrf.mxu0  ;;  %v176_v31 = vpop.f32.mrf.mxu1 }
  0xc9   :  { %v239_v36 = vadd.f32 %v719_v19, %v216_v25  ;;  %v247_v37 = vadd.f32 %v719_v19, %v224_v26  ;;  %v214_v38 = vmul.f32 %v698_v13, %v144_v30  ;;  %v222_v39 = vmul.f32 %v698_v13, %v176_v31 }
  0xca   :  { %v586_v40 = vpop.f32.mrf.mxu0  ;;  %v594_v41 = vpop.f32.mrf.mxu1 }
  0xcb   :  { %vm255_vm2 = vcmp.gt.f32.partialorder %v239_v36, 0.0  ;;  %v271_v46 = vmul.f32 0.25, %v239_v36  ;;  %vm263_vm3 = vcmp.gt.f32.partialorder %v247_v37, 0.0  ;;  %v279_v47 = vmul.f32 0.25, %v247_v37 }
  0xcc   :  { %v237_v48 = vadd.f32 %v719_v19, %v214_v38  ;;  %v245_v49 = vadd.f32 %v719_v19, %v222_v39  ;;  %v217_v50 = vmul.f32 %v586_v40, %v698_v13  ;;  %v225_v51 = vmul.f32 %v594_v41, %v698_v13  ;;  %v147_v52 = vpop.f32.mrf.mxu0  ;;  %v179_v53 = vpop.f32.mrf.mxu1 }
  0xcd   :  { %v287_v54 = vsel %vm255_vm2, %v239_v36, %v271_v46  ;;  %v295_v55 = vsel %vm263_vm3, %v247_v37, %v279_v47  ;;  %v215_v56 = vmul.f32 %v698_v13, %v147_v52  ;;  %v223_v57 = vmul.f32 %v698_v13, %v179_v53 }
  0xce   :  { %v335_v58 = vadd.f32 %v539_v14, %v287_v54  ;;  %v343_v59 = vadd.f32 %v555_v21, %v295_v55  ;;  %vm253_vm4 = vcmp.gt.f32.partialorder %v237_v48, 0.0  ;;  %v269_v60 = vmul.f32 0.25, %v237_v48  ;;  %v589_v21 = vpop.f32.mrf.mxu0  ;;  %v597_v25 = vpop.f32.mrf.mxu1 }
  0xcf   :  { %vm261_vm5 = vcmp.gt.f32.partialorder %v245_v49, 0.0  ;;  %v277_v61 = vmul.f32 0.25, %v245_v49  ;;  %v240_v62 = vadd.f32 %v719_v19, %v217_v50  ;;  %v248_v63 = vadd.f32 %v719_v19, %v225_v51 }
  0xd0   :  { %vm351_vm6 = vcmp.gt.f32.partialorder %v335_v58, 0.0  ;;  %v367_v0 = vmul.f32 0.25, %v335_v58  ;;  %vm359_vm7 = vcmp.gt.f32.partialorder %v343_v59, 0.0  ;;  %v375_v1 = vmul.f32 0.25, %v343_v59 }
  0xd1   :  { %v285_v2 = vsel %vm253_vm4, %v237_v48, %v269_v60  ;;  %v293_v3 = vsel %vm261_vm5, %v245_v49, %v277_v61  ;;  %vm256_vm8 = vcmp.gt.f32.partialorder %v240_v62, 0.0  ;;  %v272_v4 = vmul.f32 0.25, %v240_v62  ;;  %v160_v48 = vpop.f32.mrf.mxu0  ;;  %v192_v60 = vpop.f32.mrf.mxu1 }
  0xd2   :  { %v383_v5 = vsel %vm351_vm6, %v335_v58, %v367_v0  ;;  %v391_v6 = vsel %vm359_vm7, %v343_v59, %v375_v1  ;;  %v333_v7 = vadd.f32 %v535_v22, %v285_v2  ;;  %v341_v8 = vadd.f32 %v551_v23, %v293_v3 }
  0xd3   :  { %v519_v14 = vpack.c.bf16 %v383_v5, %v383_v5  ;;  %v527_v18 = vpack.c.bf16 %v391_v6, %v391_v6  ;;  %v288_v20 = vsel %vm256_vm8, %v240_v62, %v272_v4  ;;  %vm264_vm9 = vcmp.gt.f32.partialorder %v248_v63, 0.0  ;;  %v590_v61 = vpop.f32.mrf.mxu0 }
  0xd4   :  { %vm349_vm10 = vcmp.gt.f32.partialorder %v333_v7, 0.0  ;;  %v365_v26 = vmul.f32 0.25, %v333_v7  ;;  %vm357_vm11 = vcmp.gt.f32.partialorder %v341_v8, 0.0  ;;  %v373_v30 = vmul.f32 0.25, %v341_v8 }
  0xd5   :  { %464 = vst.msk [vmem:[%s865_s5 + $0x8] sm:$0xf] %vm461_vm1, %v519_v14  ;;  %472 = vst.msk [vmem:[%s865_s5 + $0x28] sm:$0xf] %vm461_vm1, %v527_v18  ;;  %v336_v22 = vadd.f32 %v540_v24, %v288_v20  ;;  %v280_v23 = vmul.f32 0.25, %v248_v63  ;;  %v238_v31 = vadd.f32 %v719_v19, %v215_v56  ;;  %v246_v36 = vadd.f32 %v719_v19, %v223_v57  ;;  %v163_v14 = vpop.f32.mrf.mxu0 }
  0xd6   :  { %v381_v37 = vsel %vm349_vm10, %v333_v7, %v365_v26  ;;  %v389_v38 = vsel %vm357_vm11, %v341_v8, %v373_v30  ;;  %v220_v39 = vmul.f32 %v589_v21, %v698_v13  ;;  %v228_v40 = vmul.f32 %v597_v25, %v698_v13 }
  0xd7   :  { %v517_v41 = vpack.c.bf16 %v381_v37, %v381_v37  ;;  %v525_v46 = vpack.c.bf16 %v389_v38, %v389_v38  ;;  %vm352_vm12 = vcmp.gt.f32.partialorder %v336_v22, 0.0  ;;  %v368_v47 = vmul.f32 0.25, %v336_v22 }
  0xd8   :  { %v296_v49 = vsel %vm264_vm9, %v248_v63, %v280_v23  ;;  %vm254_vm13 = vcmp.gt.f32.partialorder %v238_v31, 0.0  ;;  %v270_v9 = vmul.f32 0.25, %v238_v31  ;;  %vm262_vm14 = vcmp.gt.f32.partialorder %v246_v36, 0.0 }
  0xd9   :  { %462 = vst.msk [vmem:[%s865_s5] sm:$0xf] %vm461_vm1, %v517_v41  ;;  %470 = vst.msk [vmem:[%s865_s5 + $0x20] sm:$0xf] %vm461_vm1, %v525_v46  ;;  %v384_v24 = vsel %vm352_vm12, %v336_v22, %v368_v47  ;;  %v344_v50 = vadd.f32 %v556_v27, %v296_v49  ;;  %v278_v51 = vmul.f32 0.25, %v246_v36  ;;  %v243_v52 = vadd.f32 %v719_v19, %v220_v39 }
  0xda   :  { %v520_v53 = vpack.c.bf16 %v384_v24, %v384_v24  ;;  %v286_v54 = vsel %vm254_vm13, %v238_v31, %v270_v9  ;;  %v251_v55 = vadd.f32 %v719_v19, %v228_v40  ;;  %v218_v56 = vmul.f32 %v698_v13, %v160_v48 }
  0xdb   :  { %vm360_vm15 = vcmp.gt.f32.partialorder %v344_v50, 0.0  ;;  %v376_v57 = vmul.f32 0.25, %v344_v50  ;;  %v334_v58 = vadd.f32 %v536_v28, %v286_v54  ;;  %v294_v59 = vsel %vm262_vm14, %v246_v36, %v278_v51 }
  0xdc   :  { %465 = vst.msk [vmem:[%s865_s5 + $0xc] sm:$0xf] %vm461_vm1, %v520_v53  ;;  %v342_v10 = vadd.f32 %v552_v32, %v294_v59  ;;  %vm259_vm0 = vcmp.gt.f32.partialorder %v243_v52, 0.0  ;;  %v275_v27 = vmul.f32 0.25, %v243_v52  ;;  %vm267_vm2 = vcmp.gt.f32.partialorder %v251_v55, 0.0  ;;  %v598_v32 = vpop.f32.mrf.mxu1 }
  0xdd   :  { %v392_v62 = vsel %vm360_vm15, %v344_v50, %v376_v57  ;;  %vm350_vm3 = vcmp.gt.f32.partialorder %v334_v58, 0.0  ;;  %v366_v63 = vmul.f32 0.25, %v334_v58  ;;  %v283_v0 = vmul.f32 0.25, %v251_v55 }
  0xde   :  { %v528_v11 = vpack.c.bf16 %v392_v62, %v392_v62  ;;  %vm358_vm4 = vcmp.gt.f32.partialorder %v342_v10, 0.0  ;;  %v374_v28 = vmul.f32 0.25, %v342_v10  ;;  %v291_v1 = vsel %vm259_vm0, %v243_v52, %v275_v27  ;;  %v195_v23 = vpop.f32.mrf.mxu1 }
  0xdf   :  { %v382_v2 = vsel %vm350_vm3, %v334_v58, %v366_v63  ;;  %v339_v3 = vadd.f32 %v547_v33, %v291_v1  ;;  %v299_v4 = vsel %vm267_vm2, %v251_v55, %v283_v0  ;;  %v241_v12 = vadd.f32 %v719_v19, %v218_v56 }
  0xe0   :  { %473 = vst.msk [vmem:[%s865_s5 + $0x2c] sm:$0xf] %vm461_vm1, %v528_v11  ;;  %v518_v5 = vpack.c.bf16 %v382_v2, %v382_v2  ;;  %v390_v6 = vsel %vm358_vm4, %v342_v10, %v374_v28  ;;  %v347_v7 = vadd.f32 %v563_v34, %v299_v4  ;;  %v226_v8 = vmul.f32 %v698_v13, %v192_v60 }
  0xe1   :  { %v526_v18 = vpack.c.bf16 %v390_v6, %v390_v6  ;;  %vm355_vm5 = vcmp.gt.f32.partialorder %v339_v3, 0.0  ;;  %v371_v33 = vmul.f32 0.25, %v339_v3  ;;  %vm257_vm6 = vcmp.gt.f32.partialorder %v241_v12, 0.0 }
  0xe2   :  { %463 = vst.msk [vmem:[%s865_s5 + $0x4] sm:$0xf] %vm461_vm1, %v518_v5  ;;  %vm363_vm7 = vcmp.gt.f32.partialorder %v347_v7, 0.0  ;;  %v379_v20 = vmul.f32 0.25, %v347_v7  ;;  %v273_v21 = vmul.f32 0.25, %v241_v12  ;;  %v249_v25 = vadd.f32 %v719_v19, %v226_v8 }
  0xe3   :  { %471 = vst.msk [vmem:[%s865_s5 + $0x24] sm:$0xf] %vm461_vm1, %v526_v18  ;;  %v387_v34 = vsel %vm355_vm5, %v339_v3, %v371_v33  ;;  %v221_v26 = vmul.f32 %v590_v61, %v698_v13  ;;  %v229_v30 = vmul.f32 %v598_v32, %v698_v13  ;;  %v219_v22 = vmul.f32 %v698_v13, %v163_v14 }
  0xe4   :  { %v523_v31 = vpack.c.bf16 %v387_v34, %v387_v34  ;;  %v395_v36 = vsel %vm363_vm7, %v347_v7, %v379_v20  ;;  %v289_v37 = vsel %vm257_vm6, %v241_v12, %v273_v21  ;;  %vm265_vm8 = vcmp.gt.f32.partialorder %v249_v25, 0.0 }
  0xe5   :  { %v531_v38 = vpack.c.bf16 %v395_v36, %v395_v36  ;;  %v337_v39 = vadd.f32 %v543_v35, %v289_v37  ;;  %v281_v40 = vmul.f32 0.25, %v249_v25  ;;  %v244_v41 = vadd.f32 %v719_v19, %v221_v26 }
  0xe6   :  { %468 = vst.msk [vmem:[%s865_s5 + $0x18] sm:$0xf] %vm461_vm1, %v523_v31  ;;  %v252_v46 = vadd.f32 %v719_v19, %v229_v30  ;;  %v242_v47 = vadd.f32 %v719_v19, %v219_v22  ;;  %v227_v48 = vmul.f32 %v698_v13, %v195_v23  ;;  %v560_v49 = vunpack.c.h.bf16 %v732_v29 }
  0xe7   :  { %476 = vst.msk [vmem:[%s865_s5 + $0x38] sm:$0xf] %vm461_vm1, %v531_v38  ;;  %vm353_vm9 = vcmp.gt.f32.partialorder %v337_v39, 0.0  ;;  %v369_v35 = vmul.f32 0.25, %v337_v39  ;;  %v297_v9 = vsel %vm265_vm8, %v249_v25, %v281_v40  ;;  %vm260_vm10 = vcmp.gt.f32.partialorder %v244_v41, 0.0 }
  0xe8   :  { %v345_v24 = vadd.f32 %v559_v42, %v297_v9  ;;  %v276_v50 = vmul.f32 0.25, %v244_v41  ;;  %vm268_vm11 = vcmp.gt.f32.partialorder %v252_v46, 0.0  ;;  %v284_v51 = vmul.f32 0.25, %v252_v46 }
  0xe9   :  { %v385_v52 = vsel %vm353_vm9, %v337_v39, %v369_v35  ;;  %vm258_vm12 = vcmp.gt.f32.partialorder %v242_v47, 0.0  ;;  %v274_v13 = vmul.f32 0.25, %v242_v47  ;;  %v250_v53 = vadd.f32 %v719_v19, %v227_v48 }
  0xea   :  { %v521_v54 = vpack.c.bf16 %v385_v52, %v385_v52  ;;  %vm361_vm13 = vcmp.gt.f32.partialorder %v345_v24, 0.0  ;;  %v377_v55 = vmul.f32 0.25, %v345_v24  ;;  %v292_v56 = vsel %vm260_vm10, %v244_v41, %v276_v50 }
  0xeb   :  { %v340_v57 = vadd.f32 %v548_v43, %v292_v56  ;;  %v300_v58 = vsel %vm268_vm11, %v252_v46, %v284_v51  ;;  %v290_v59 = vsel %vm258_vm12, %v242_v47, %v274_v13  ;;  %vm266_vm14 = vcmp.gt.f32.partialorder %v250_v53, 0.0 }
  0xec   :  { %466 = vst.msk [vmem:[%s865_s5 + $0x10] sm:$0xf] %vm461_vm1, %v521_v54  ;;  %v393_v29 = vsel %vm361_vm13, %v345_v24, %v377_v55  ;;  %v348_v42 = vadd.f32 %v564_v44, %v300_v58  ;;  %v338_v19 = vadd.f32 %v544_v45, %v290_v59  ;;  %v282_v60 = vmul.f32 0.25, %v250_v53 }
  0xed   :  { %v529_v10 = vpack.c.bf16 %v393_v29, %v393_v29  ;;  %vm356_vm15 = vcmp.gt.f32.partialorder %v340_v57, 0.0  ;;  %v372_v15 = vmul.f32 0.25, %v340_v57 }
  0xee   :  { %vm364_vm0 = vcmp.gt.f32.partialorder %v348_v42, 0.0  ;;  %v380_v43 = vmul.f32 0.25, %v348_v42  ;;  %vm354_vm2 = vcmp.gt.f32.partialorder %v338_v19, 0.0  ;;  %v370_v27 = vmul.f32 0.25, %v338_v19 }
  0xef   :  { %474 = vst.msk [vmem:[%s865_s5 + $0x30] sm:$0xf] %vm461_vm1, %v529_v10  ;;  %v388_v61 = vsel %vm356_vm15, %v340_v57, %v372_v15  ;;  %v298_v62 = vsel %vm266_vm14, %v250_v53, %v282_v60 }
  0xf0   :  { %v524_v16 = vpack.c.bf16 %v388_v61, %v388_v61  ;;  %v396_v44 = vsel %vm364_vm0, %v348_v42, %v380_v43  ;;  %v386_v63 = vsel %vm354_vm2, %v338_v19, %v370_v27  ;;  %v346_v17 = vadd.f32 %v560_v49, %v298_v62 }
  0xf1   :  { %v532_v45 = vpack.c.bf16 %v396_v44, %v396_v44  ;;  %v522_v0 = vpack.c.bf16 %v386_v63, %v386_v63 }
  0xf2   :  { %469 = vst.msk [vmem:[%s865_s5 + $0x1c] sm:$0xf] %vm461_vm1, %v524_v16  ;;  %vm362_vm3 = vcmp.gt.f32.partialorder %v346_v17, 0.0  ;;  %v378_v11 = vmul.f32 0.25, %v346_v17 }
  0xf3   :  { %477 = vst.msk [vmem:[%s865_s5 + $0x3c] sm:$0xf] %vm461_vm1, %v532_v45  ;;  %467 = vst.msk [vmem:[%s865_s5 + $0x14] sm:$0xf] %vm461_vm1, %v522_v0 }
  0xf4   :  { %v394_v28 = vsel %vm362_vm3, %v346_v17, %v378_v11 }
  0xf5   :  { %v530_v1 = vpack.c.bf16 %v394_v28, %v394_v28 }
  0xf7   :  { %475 = vst.msk [vmem:[%s865_s5 + $0x34] sm:$0xf] %vm461_vm1, %v530_v1 }

// kernel: _lambda_.93
= control target key start
LH: loop header
LB: loop body
LE: loop exit
PB: predicated region body
PF: predicated region fallthrough
CT: control target
= control target key end

     0   :  { %vm106_vm0 = vcmask 523264   ;;  %vm386_vm1 = vcmask 125952   ;;  %s692_s1 = inlined_call_operand.vmem [shape: bf16[64,16], index: 1, kind: input, shape index: {}]   ;;  %s693_s0 = inlined_call_operand.vmem [shape: bf16[128,64], index: 0, kind: input, shape index: {}]   ;;  %s694_s2 = inlined_call_operand.vmem [shape: f32[1,16], index: 2, kind: input, shape index: {}]   ;;  %s695_s3 = inlined_call_operand.vmem [shape: f32[1,16], index: 3, kind: input, shape index: {}]   ;;  %s696_s4 = inlined_call_operand.vmem [shape: bf16[128,16], index: 4, kind: output, shape index: {}]  }
   0x1   :  { %v505_v0 = vld [vmem:[%s692_s1 + $0x18] sm:$0xff]   ;;  %v506_v1 = vld [vmem:[%s692_s1 + $0x10] sm:$0xff]   ;;  %v507_v2 = vld [vmem:[%s692_s1 + $0x8] sm:$0xff]  }
   0x2   :  { %473 = vmatprep.subr.bf16.mxu0 %v505_v0  ;;  %497 = vmatprep.subr.bf16.mxu1 %v505_v0  ;;  %v509_v3 = vld [vmem:[%s693_s0] sm:$0xff]   ;;  %v511_v6 = vld [vmem:[%s693_s0 + $0x8] sm:$0xff]   ;;  %v513_v8 = vld [vmem:[%s693_s0 + $0x10] sm:$0xff]  }
   0x3   :  { %474 = vmatpush3.bf16.msra.mxu0 %v505_v0  ;;  %501 = vmatpush3.bf16.msra.mxu1 %v505_v0  ;;  %v510_v4 = vld [vmem:[%s693_s0 + $0x20] sm:$0xff]   ;;  %v512_v7 = vld [vmem:[%s693_s0 + $0x28] sm:$0xff]   ;;  %v514_v9 = vld [vmem:[%s693_s0 + $0x30] sm:$0xff]  }
   0x4   :  { %475 = vmatprep.subr.bf16.mxu0 %v506_v1  ;;  %498 = vmatprep.subr.bf16.mxu1 %v506_v1  ;;  %v508_v5 = vld [vmem:[%s692_s1] sm:$0xff]   ;;  %v515_v10 = vld [vmem:[%s693_s0 + $0x18] sm:$0xff]  }
   0x5   :  { %481 = vmatprep.mubr.msk.bf16.mxu0 %vm106_vm0, %v509_v3  ;;  %489 = vmatprep.mubr.msk.bf16.mxu1 %vm106_vm0, %v510_v4  ;;  %v516_v11 = vld [vmem:[%s693_s0 + $0x38] sm:$0xff]   ;;  %v589_v12 = vld [vmem:[%s694_s2] ss:$0 sm:$0xff] }
   0x6   :  { %v594_v14 = vld [vmem:[%s695_s3] ss:$0 sm:$0xff] }
   0x7   :  { %476 = vmatpush3.bf16.msra.mxu0 %v506_v1  ;;  %502 = vmatpush3.bf16.msra.mxu1 %v506_v1 }
   0x8   :  { %477 = vmatprep.subr.bf16.mxu0 %v507_v2  ;;  %499 = vmatprep.subr.bf16.mxu1 %v507_v2 }
   0xb   :  { %478 = vmatpush3.bf16.msra.mxu0 %v507_v2  ;;  %503 = vmatpush3.bf16.msra.mxu1 %v507_v2 }
   0xc   :  { %479 = vmatprep.subr.bf16.mxu0 %v508_v5  ;;  %500 = vmatprep.subr.bf16.mxu1 %v508_v5 }
   0xf   :  { %480 = vmatpush3.bf16.msra.mxu0 %v508_v5  ;;  %504 = vmatpush3.bf16.msra.mxu1 %v508_v5 }
  0x12   :  { %482 = vmatmul.mubr.msk.bf16.vlgmr.msra.gmra.mxu0 %vm106_vm0, %v511_v6  ;;  %490 = vmatmul.mubr.msk.bf16.vlgmr.msra.gmra.mxu1 %vm106_vm0, %v512_v7 }
  0x13   :  { %485 = vmatprep.mubr.msk.bf16.mxu0 %vm106_vm0, %v513_v8  ;;  %493 = vmatprep.mubr.msk.bf16.mxu1 %vm106_vm0, %v514_v9 }
  0x1a   :  { %486 = vmatmul.mubr.msk.bf16.gmra.mxu0 %vm106_vm0, %v515_v10  ;;  %494 = vmatmul.mubr.msk.bf16.gmra.mxu1 %vm106_vm0, %v516_v11 }
  0xd2   :  { %v483_v13 = vpop.f32.mrf.mxu0  ;;  %v491_v15 = vpop.f32.mrf.mxu1 }
  0xd3   :  { %v237_v16 = vmul.f32 %v483_v13, %v589_v12  ;;  %v245_v17 = vmul.f32 %v491_v15, %v589_v12 }
  0xd4   :  { %v165_v18 = vpop.f32.mrf.mxu0  ;;  %v197_v19 = vpop.f32.mrf.mxu1 }
  0xd5   :  { %v260_v20 = vadd.f32 %v594_v14, %v237_v16  ;;  %v268_v21 = vadd.f32 %v594_v14, %v245_v17  ;;  %v235_v22 = vmul.f32 %v589_v12, %v165_v18  ;;  %v243_v23 = vmul.f32 %v589_v12, %v197_v19 }
  0xd6   :  { %v484_v24 = vpop.f32.mrf.mxu0  ;;  %v492_v25 = vpop.f32.mrf.mxu1 }
  0xd7   :  { %vm276_vm2 = vcmp.gt.f32.partialorder %v260_v20, 0.0  ;;  %v292_v26 = vmul.f32 0.25, %v260_v20  ;;  %vm284_vm3 = vcmp.gt.f32.partialorder %v268_v21, 0.0  ;;  %v300_v27 = vmul.f32 0.25, %v268_v21 }
  0xd8   :  { %v258_v28 = vadd.f32 %v594_v14, %v235_v22  ;;  %v266_v29 = vadd.f32 %v594_v14, %v243_v23  ;;  %v238_v30 = vmul.f32 %v484_v24, %v589_v12  ;;  %v246_v31 = vmul.f32 %v492_v25, %v589_v12  ;;  %v168_v32 = vpop.f32.mrf.mxu0  ;;  %v200_v33 = vpop.f32.mrf.mxu1 }
  0xd9   :  { %v308_v34 = vsel %vm276_vm2, %v260_v20, %v292_v26  ;;  %v316_v35 = vsel %vm284_vm3, %v268_v21, %v300_v27  ;;  %v236_v36 = vmul.f32 %v589_v12, %v168_v32  ;;  %v244_v37 = vmul.f32 %v589_v12, %v200_v33 }
  0xda   :  { %v447_v38 = vpack.c.bf16 %v308_v34, %v308_v34  ;;  %v455_v39 = vpack.c.bf16 %v316_v35, %v316_v35  ;;  %vm274_vm4 = vcmp.gt.f32.partialorder %v258_v28, 0.0  ;;  %v290_v40 = vmul.f32 0.25, %v258_v28  ;;  %v487_v41 = vpop.f32.mrf.mxu0  ;;  %v495_v42 = vpop.f32.mrf.mxu1 }
  0xdb   :  { %vm282_vm5 = vcmp.gt.f32.partialorder %v266_v29, 0.0  ;;  %v298_v43 = vmul.f32 0.25, %v266_v29  ;;  %v261_v44 = vadd.f32 %v594_v14, %v238_v30  ;;  %v269_v45 = vadd.f32 %v594_v14, %v246_v31 }
  0xdc   :  { %389 = vst.msk [vmem:[%s696_s4 + $0x8] sm:$0xf] %vm386_vm1, %v447_v38  ;;  %397 = vst.msk [vmem:[%s696_s4 + $0x28] sm:$0xf] %vm386_vm1, %v455_v39  ;;  %v306_v46 = vsel %vm274_vm4, %v258_v28, %v290_v40  ;;  %v259_v47 = vadd.f32 %v594_v14, %v236_v36  ;;  %v267_v48 = vadd.f32 %v594_v14, %v244_v37  ;;  %v181_v50 = vpop.f32.mrf.mxu0  ;;  %v213_v51 = vpop.f32.mrf.mxu1 }
  0xdd   :  { %v241_v49 = vmul.f32 %v487_v41, %v589_v12  ;;  %v445_v52 = vpack.c.bf16 %v306_v46, %v306_v46  ;;  %v314_v53 = vsel %vm282_vm5, %v266_v29, %v298_v43  ;;  %vm277_vm6 = vcmp.gt.f32.partialorder %v261_v44, 0.0 }
  0xde   :  { %v293_v54 = vmul.f32 0.25, %v261_v44  ;;  %v453_v55 = vpack.c.bf16 %v314_v53, %v314_v53  ;;  %vm285_vm7 = vcmp.gt.f32.partialorder %v269_v45, 0.0  ;;  %v301_v56 = vmul.f32 0.25, %v269_v45  ;;  %v488_v57 = vpop.f32.mrf.mxu0  ;;  %v496_v58 = vpop.f32.mrf.mxu1 }
  0xdf   :  { %vm275_vm8 = vcmp.gt.f32.partialorder %v259_v47, 0.0  ;;  %387 = vst.msk [vmem:[%s696_s4] sm:$0xf] %vm386_vm1, %v445_v52  ;;  %v291_v60 = vmul.f32 0.25, %v259_v47  ;;  %vm283_vm9 = vcmp.gt.f32.partialorder %v267_v48, 0.0  ;;  %v299_v61 = vmul.f32 0.25, %v267_v48 }
  0xe0   :  { %v309_v59 = vsel %vm277_vm6, %v261_v44, %v293_v54  ;;  %395 = vst.msk [vmem:[%s696_s4 + $0x20] sm:$0xf] %vm386_vm1, %v453_v55  ;;  %v317_v63 = vsel %vm285_vm7, %v269_v45, %v301_v56  ;;  %v264_v0 = vadd.f32 %v594_v14, %v241_v49  ;;  %v249_v1 = vmul.f32 %v495_v42, %v589_v12  ;;  %v184_v6 = vpop.f32.mrf.mxu0  ;;  %v216_v7 = vpop.f32.mrf.mxu1 }
  0xe1   :  { %v448_v62 = vpack.c.bf16 %v309_v59, %v309_v59  ;;  %v456_v2 = vpack.c.bf16 %v317_v63, %v317_v63  ;;  %v307_v3 = vsel %vm275_vm8, %v259_v47, %v291_v60  ;;  %v315_v4 = vsel %vm283_vm9, %v267_v48, %v299_v61 }
  0xe2   :  { %v239_v5 = vmul.f32 %v589_v12, %v181_v50  ;;  %v446_v8 = vpack.c.bf16 %v307_v3, %v307_v3  ;;  %v454_v9 = vpack.c.bf16 %v315_v4, %v315_v4  ;;  %vm280_vm10 = vcmp.gt.f32.partialorder %v264_v0, 0.0 }
  0xe3   :  { %390 = vst.msk [vmem:[%s696_s4 + $0xc] sm:$0xf] %vm386_vm1, %v448_v62  ;;  %v296_v10 = vmul.f32 0.25, %v264_v0  ;;  %398 = vst.msk [vmem:[%s696_s4 + $0x2c] sm:$0xf] %vm386_vm1, %v456_v2  ;;  %v272_v11 = vadd.f32 %v594_v14, %v249_v1  ;;  %v247_v15 = vmul.f32 %v589_v12, %v213_v51  ;;  %v242_v16 = vmul.f32 %v488_v57, %v589_v12 }
  0xe4   :  { %v262_v13 = vadd.f32 %v594_v14, %v239_v5  ;;  %388 = vst.msk [vmem:[%s696_s4 + $0x4] sm:$0xf] %vm386_vm1, %v446_v8  ;;  %396 = vst.msk [vmem:[%s696_s4 + $0x24] sm:$0xf] %vm386_vm1, %v454_v9  ;;  %v250_v18 = vmul.f32 %v496_v58, %v589_v12  ;;  %v240_v19 = vmul.f32 %v589_v12, %v184_v6 }
  0xe5   :  { %v312_v17 = vsel %vm280_vm10, %v264_v0, %v296_v10  ;;  %v248_v20 = vmul.f32 %v589_v12, %v216_v7  ;;  %vm288_vm11 = vcmp.gt.f32.partialorder %v272_v11, 0.0  ;;  %v304_v22 = vmul.f32 0.25, %v272_v11 }
  0xe6   :  { %v451_v21 = vpack.c.bf16 %v312_v17, %v312_v17  ;;  %vm278_vm12 = vcmp.gt.f32.partialorder %v262_v13, 0.0  ;;  %v294_v23 = vmul.f32 0.25, %v262_v13  ;;  %v270_v24 = vadd.f32 %v594_v14, %v247_v15 }
  0xe7   :  { %v265_v25 = vadd.f32 %v594_v14, %v242_v16  ;;  %v273_v26 = vadd.f32 %v594_v14, %v250_v18  ;;  %v320_v27 = vsel %vm288_vm11, %v272_v11, %v304_v22  ;;  %v263_v28 = vadd.f32 %v594_v14, %v240_v19 }
  0xe8   :  { %393 = vst.msk [vmem:[%s696_s4 + $0x18] sm:$0xf] %vm386_vm1, %v451_v21  ;;  %v271_v12 = vadd.f32 %v594_v14, %v248_v20  ;;  %v459_v29 = vpack.c.bf16 %v320_v27, %v320_v27  ;;  %v310_v30 = vsel %vm278_vm12, %v262_v13, %v294_v23  ;;  %vm286_vm13 = vcmp.gt.f32.partialorder %v270_v24, 0.0 }
  0xe9   :  { %v302_v31 = vmul.f32 0.25, %v270_v24  ;;  %v449_v32 = vpack.c.bf16 %v310_v30, %v310_v30  ;;  %vm281_vm14 = vcmp.gt.f32.partialorder %v265_v25, 0.0  ;;  %v297_v33 = vmul.f32 0.25, %v265_v25 }
  0xea   :  { %vm289_vm15 = vcmp.gt.f32.partialorder %v273_v26, 0.0  ;;  %401 = vst.msk [vmem:[%s696_s4 + $0x38] sm:$0xf] %vm386_vm1, %v459_v29  ;;  %v305_v35 = vmul.f32 0.25, %v273_v26  ;;  %vm279_vm0 = vcmp.gt.f32.partialorder %v263_v28, 0.0  ;;  %v295_v36 = vmul.f32 0.25, %v263_v28 }
  0xeb   :  { %v318_v34 = vsel %vm286_vm13, %v270_v24, %v302_v31  ;;  %391 = vst.msk [vmem:[%s696_s4 + $0x10] sm:$0xf] %vm386_vm1, %v449_v32  ;;  %v313_v37 = vsel %vm281_vm14, %v265_v25, %v297_v33  ;;  %vm287_vm2 = vcmp.gt.f32.partialorder %v271_v12, 0.0  ;;  %v303_v38 = vmul.f32 0.25, %v271_v12 }
  0xec   :  { %v457_v14 = vpack.c.bf16 %v318_v34, %v318_v34  ;;  %v452_v39 = vpack.c.bf16 %v313_v37, %v313_v37  ;;  %v321_v40 = vsel %vm289_vm15, %v273_v26, %v305_v35  ;;  %v311_v41 = vsel %vm279_vm0, %v263_v28, %v295_v36 }
  0xed   :  { %v460_v42 = vpack.c.bf16 %v321_v40, %v321_v40  ;;  %v450_v43 = vpack.c.bf16 %v311_v41, %v311_v41  ;;  %v319_v44 = vsel %vm287_vm2, %v271_v12, %v303_v38 }
  0xee   :  { %399 = vst.msk [vmem:[%s696_s4 + $0x30] sm:$0xf] %vm386_vm1, %v457_v14  ;;  %394 = vst.msk [vmem:[%s696_s4 + $0x1c] sm:$0xf] %vm386_vm1, %v452_v39  ;;  %v458_v45 = vpack.c.bf16 %v319_v44, %v319_v44 }
  0xef   :  { %402 = vst.msk [vmem:[%s696_s4 + $0x3c] sm:$0xf] %vm386_vm1, %v460_v42  ;;  %392 = vst.msk [vmem:[%s696_s4 + $0x14] sm:$0xf] %vm386_vm1, %v450_v43 }
  0xf0   :  { %400 = vst.msk [vmem:[%s696_s4 + $0x34] sm:$0xf] %vm386_vm1, %v458_v45 }

// kernel: _lambda_.94
= control target key start
LH: loop header
LB: loop body
LE: loop exit
PB: predicated region body
PF: predicated region fallthrough
CT: control target
= control target key end

     0   :  { %v598_v0 = vmov 0   ;;  %vm178_vm0 = vcmask 130048   ;;  %vm458_vm3 = vcmask 125952   ;;  %s813_s1 = inlined_call_operand.vmem [shape: bf16[144,16], index: 1, kind: input, shape index: {}]   ;;  %s814_s0 = inlined_call_operand.vmem [shape: bf16[128,144], index: 0, kind: input, shape index: {}]   ;;  %s815_s2 = inlined_call_operand.vmem [shape: f32[1,16], index: 2, kind: input, shape index: {}]   ;;  %s816_s3 = inlined_call_operand.vmem [shape: f32[1,16], index: 3, kind: input, shape index: {}]   ;;  %s817_s4 = inlined_call_operand.vmem [shape: bf16[128,16], index: 4, kind: output, shape index: {}]  }
   0x1   :  { %203 = vmatprep.subr.bf16.mxu0 %v598_v0  ;;  %546 = vmatprep.subr.bf16.mxu1 %v598_v0  ;;  %v565_v1 = vld [vmem:[%s813_s1 + $0x38] sm:$0xff]   ;;  %v566_v2 = vld [vmem:[%s813_s1 + $0x30] sm:$0xff]   ;;  %v567_v3 = vld [vmem:[%s813_s1 + $0x28] sm:$0xff]  }
   0x2   :  { %204 = vmatpush1.bf16.msra.mxu0 %v565_v1  ;;  %555 = vmatpush1.bf16.msra.mxu1 %v565_v1  ;;  %v568_v4 = vld [vmem:[%s813_s1 + $0x20] sm:$0xff]   ;;  %v569_v7 = vld [vmem:[%s813_s1 + $0x18] sm:$0xff]   ;;  %v570_v8 = vld [vmem:[%s813_s1 + $0x10] sm:$0xff]  }
   0x3   :  { %205 = vmatprep.subr.bf16.mxu0 %v598_v0  ;;  %547 = vmatprep.subr.bf16.mxu1 %v598_v0  ;;  %v576_v5 = vld [vmem:[%s814_s0 + $0x4] ss:$8 sps:$4 sm:$0xff]   ;;  %v574_v12 = vld [vmem:[%s814_s0] ss:$8 sps:$4 sm:$0xff]   ;;  %v580_v14 = vld [vmem:[%s814_s0 + $0x14] ss:$8 sps:$4 sm:$0xff]  }
   0x4   :  { %v579_v6 = vld [vmem:[%s814_s0 + $0x44] ss:$8 sps:$4 sm:$0xff]   ;;  %504 = vmatprep.mubr.msk.bf16.mxu0 %vm178_vm0, %v576_v5  ;;  %v577_v13 = vld [vmem:[%s814_s0 + $0x40] ss:$8 sps:$4 sm:$0xff]   ;;  %v582_v15 = vld [vmem:[%s814_s0 + $0x54] ss:$8 sps:$4 sm:$0xff]  }
   0x5   :  { %508 = vmatprep.mubr.msk.bf16.mxu1 %vm178_vm0, %v579_v6  ;;  %v571_v9 = vld [vmem:[%s813_s1 + $0x8] sm:$0xff]   ;;  %v572_v10 = vld [vmem:[%s813_s1] sm:$0xff]   ;;  %v584_v16 = vld [vmem:[%s814_s0 + $0x10] ss:$8 sps:$4 sm:$0xff]  }
   0x6   :  { %206 = vmatpush1.bf16.msra.mxu0 %v566_v2  ;;  %556 = vmatpush1.bf16.msra.mxu1 %v566_v2  ;;  %v573_v11 = vld [vmem:[%s813_s1 + $0x40] sm:$0xff]   ;;  %v585_v17 = vld [vmem:[%s814_s0 + $0x50] ss:$8 sps:$4 sm:$0xff]   ;;  %v592_v22 = vld [vmem:[%s814_s0 + $0x34] ss:$8 sps:$4 sm:$0xff]  }
   0x7   :  { %207 = vmatprep.subr.bf16.mxu0 %v598_v0  ;;  %548 = vmatprep.subr.bf16.mxu1 %v598_v0  ;;  %v586_v18 = vld [vmem:[%s814_s0 + $0x24] ss:$8 sps:$4 sm:$0xff]   ;;  %v590_v20 = vld [vmem:[%s814_s0 + $0x20] ss:$8 sps:$4 sm:$0xff]   ;;  %v594_v23 = vld [vmem:[%s814_s0 + $0x74] ss:$8 sps:$4 sm:$0xff]  }
   0x8   :  { %v588_v19 = vld [vmem:[%s814_s0 + $0x64] ss:$8 sps:$4 sm:$0xff]   ;;  %v591_v21 = vld [vmem:[%s814_s0 + $0x60] ss:$8 sps:$4 sm:$0xff]   ;;  %v596_v24 = vld [vmem:[%s814_s0 + $0x30] ss:$8 sps:$4 sm:$0xff]  }
   0x9   :  { %v597_v25 = vld [vmem:[%s814_s0 + $0x70] ss:$8 sps:$4 sm:$0xff]   ;;  %v710_v26 = vld [vmem:[%s815_s2] ss:$0 sm:$0xff] }
   0xa   :  { %208 = vmatpush1.bf16.msra.mxu0 %v567_v3  ;;  %557 = vmatpush1.bf16.msra.mxu1 %v567_v3  ;;  %v715_v28 = vld [vmem:[%s816_s3] ss:$0 sm:$0xff] }
   0xb   :  { %209 = vmatprep.subr.bf16.mxu0 %v598_v0  ;;  %549 = vmatprep.subr.bf16.mxu1 %v598_v0 }
   0xe   :  { %210 = vmatpush1.bf16.msra.mxu0 %v568_v4  ;;  %558 = vmatpush1.bf16.msra.mxu1 %v568_v4 }
   0xf   :  { %211 = vmatprep.subr.bf16.mxu0 %v598_v0  ;;  %550 = vmatprep.subr.bf16.mxu1 %v598_v0 }
  0x12   :  { %212 = vmatpush1.bf16.msra.mxu0 %v569_v7  ;;  %559 = vmatpush1.bf16.msra.mxu1 %v569_v7 }
  0x13   :  { %213 = vmatprep.subr.bf16.mxu0 %v598_v0  ;;  %551 = vmatprep.subr.bf16.mxu1 %v598_v0 }
  0x16   :  { %214 = vmatpush1.bf16.msra.mxu0 %v570_v8  ;;  %560 = vmatpush1.bf16.msra.mxu1 %v570_v8 }
  0x17   :  { %215 = vmatprep.subr.bf16.mxu0 %v598_v0  ;;  %552 = vmatprep.subr.bf16.mxu1 %v598_v0 }
  0x1a   :  { %216 = vmatpush1.bf16.msra.mxu0 %v571_v9  ;;  %561 = vmatpush1.bf16.msra.mxu1 %v571_v9 }
  0x1b   :  { %217 = vmatprep.subr.bf16.mxu0 %v598_v0  ;;  %553 = vmatprep.subr.bf16.mxu1 %v598_v0 }
  0x1e   :  { %218 = vmatpush1.bf16.msra.mxu0 %v572_v10  ;;  %562 = vmatpush1.bf16.msra.mxu1 %v572_v10 }
  0x1f   :  { %233 = vmatprep.subr.bf16.mxu0 %v598_v0  ;;  %554 = vmatprep.subr.bf16.mxu1 %v598_v0 }
  0x22   :  { %234 = vmatpush2.bf16.msra.mxu0 %v573_v11  ;;  %563 = vmatpush2.bf16.msra.mxu1 %v573_v11 }
  0x25   :  { %236 = vmatmul.mubr.bf16.vlgmr.msra.gmra.mxu0 %v574_v12  ;;  %268 = vmatmul.mubr.bf16.vlgmr.msra.gmra.mxu1 %v577_v13 }
  0x26   :  { %505 = vmatprep.mubr.msk.bf16.mxu0 %vm178_vm0, %v580_v14  ;;  %509 = vmatprep.mubr.msk.bf16.mxu1 %vm178_vm0, %v582_v15 }
  0x2d   :  { %244 = vmatmul.mubr.bf16.gmra.mxu0 %v584_v16  ;;  %276 = vmatmul.mubr.bf16.gmra.mxu1 %v585_v17 }
  0x2e   :  { %506 = vmatprep.mubr.msk.bf16.mxu0 %vm178_vm0, %v586_v18  ;;  %510 = vmatprep.mubr.msk.bf16.mxu1 %vm178_vm0, %v588_v19 }
  0x35   :  { %252 = vmatmul.mubr.bf16.gmra.mxu0 %v590_v20  ;;  %284 = vmatmul.mubr.bf16.gmra.mxu1 %v591_v21 }
  0x36   :  { %507 = vmatprep.mubr.msk.bf16.mxu0 %vm178_vm0, %v592_v22  ;;  %511 = vmatprep.mubr.msk.bf16.mxu1 %vm178_vm0, %v594_v23 }
  0x3d   :  { %260 = vmatmul.mubr.bf16.gmra.mxu0 %v596_v24  ;;  %292 = vmatmul.mubr.bf16.gmra.mxu1 %v597_v25 }
  0xe5   :  { %v237_v27 = vpop.f32.mrf.mxu0  ;;  %v269_v29 = vpop.f32.mrf.mxu1 }
  0xe6   :  { %v307_v30 = vmul.f32 %v710_v26, %v237_v27  ;;  %v315_v31 = vmul.f32 %v710_v26, %v269_v29 }
  0xe7   :  { %v239_v32 = vpop.f32.mrf.mxu0  ;;  %v271_v33 = vpop.f32.mrf.mxu1 }
  0xe8   :  { %v330_v34 = vadd.f32 %v715_v28, %v307_v30  ;;  %v338_v35 = vadd.f32 %v715_v28, %v315_v31 }
  0xe9   :  { %v240_v36 = vpop.f32.mrf.mxu0  ;;  %v272_v37 = vpop.f32.mrf.mxu1 }
  0xea   :  { %vm346_vm1 = vcmp.gt.f32.partialorder %v330_v34, 0.0  ;;  %v362_v38 = vmul.f32 0.25, %v330_v34  ;;  %vm354_vm2 = vcmp.gt.f32.partialorder %v338_v35, 0.0  ;;  %v370_v39 = vmul.f32 0.25, %v338_v35 }
  0xeb   :  { %v308_v40 = vmul.f32 %v710_v26, %v240_v36  ;;  %v316_v41 = vmul.f32 %v710_v26, %v272_v37  ;;  %v242_v42 = vpop.f32.mrf.mxu0  ;;  %v274_v43 = vpop.f32.mrf.mxu1 }
  0xec   :  { %v378_v44 = vsel %vm346_vm1, %v330_v34, %v362_v38  ;;  %v386_v45 = vsel %vm354_vm2, %v338_v35, %v370_v39 }
  0xed   :  { %v530_v46 = vpack.c.bf16 %v378_v44, %v378_v44  ;;  %v538_v47 = vpack.c.bf16 %v386_v45, %v386_v45  ;;  %v331_v48 = vadd.f32 %v715_v28, %v308_v40  ;;  %v339_v49 = vadd.f32 %v715_v28, %v316_v41  ;;  %v245_v50 = vpop.f32.mrf.mxu0  ;;  %v277_v51 = vpop.f32.mrf.mxu1 }
  0xee   :  { %v309_v52 = vmul.f32 %v710_v26, %v245_v50  ;;  %v317_v53 = vmul.f32 %v710_v26, %v277_v51 }
  0xef   :  { %459 = vst.msk [vmem:[%s817_s4] sm:$0xf] %vm458_vm3, %v530_v46  ;;  %467 = vst.msk [vmem:[%s817_s4 + $0x20] sm:$0xf] %vm458_vm3, %v538_v47  ;;  %vm347_vm4 = vcmp.gt.f32.partialorder %v331_v48, 0.0  ;;  %v363_v54 = vmul.f32 0.25, %v331_v48  ;;  %v247_v56 = vpop.f32.mrf.mxu0  ;;  %v279_v57 = vpop.f32.mrf.mxu1 }
  0xf0   :  { %vm355_vm5 = vcmp.gt.f32.partialorder %v339_v49, 0.0  ;;  %v371_v55 = vmul.f32 0.25, %v339_v49  ;;  %v332_v58 = vadd.f32 %v715_v28, %v309_v52  ;;  %v340_v59 = vadd.f32 %v715_v28, %v317_v53 }
  0xf1   :  { %v379_v60 = vsel %vm347_vm4, %v331_v48, %v363_v54  ;;  %v248_v62 = vpop.f32.mrf.mxu0  ;;  %v280_v63 = vpop.f32.mrf.mxu1 }
  0xf2   :  { %v387_v61 = vsel %vm355_vm5, %v339_v49, %v371_v55  ;;  %v531_v0 = vpack.c.bf16 %v379_v60, %v379_v60  ;;  %vm348_vm6 = vcmp.gt.f32.partialorder %v332_v58, 0.0  ;;  %v364_v2 = vmul.f32 0.25, %v332_v58 }
  0xf3   :  { %v539_v1 = vpack.c.bf16 %v387_v61, %v387_v61  ;;  %vm356_vm7 = vcmp.gt.f32.partialorder %v340_v59, 0.0  ;;  %v372_v3 = vmul.f32 0.25, %v340_v59  ;;  %v310_v4 = vmul.f32 %v710_v26, %v248_v62  ;;  %v250_v6 = vpop.f32.mrf.mxu0  ;;  %v282_v7 = vpop.f32.mrf.mxu1 }
  0xf4   :  { %v318_v5 = vmul.f32 %v710_v26, %v280_v63  ;;  %460 = vst.msk [vmem:[%s817_s4 + $0x4] sm:$0xf] %vm458_vm3, %v531_v0  ;;  %v380_v8 = vsel %vm348_vm6, %v332_v58, %v364_v2 }
  0xf5   :  { %468 = vst.msk [vmem:[%s817_s4 + $0x24] sm:$0xf] %vm458_vm3, %v539_v1  ;;  %v532_v9 = vpack.c.bf16 %v380_v8, %v380_v8  ;;  %v388_v10 = vsel %vm356_vm7, %v340_v59, %v372_v3  ;;  %v333_v11 = vadd.f32 %v715_v28, %v310_v4  ;;  %v253_v13 = vpop.f32.mrf.mxu0  ;;  %v285_v14 = vpop.f32.mrf.mxu1 }
  0xf6   :  { %v341_v12 = vadd.f32 %v715_v28, %v318_v5  ;;  %v540_v15 = vpack.c.bf16 %v388_v10, %v388_v10  ;;  %v311_v16 = vmul.f32 %v710_v26, %v253_v13  ;;  %v319_v17 = vmul.f32 %v710_v26, %v285_v14 }
  0xf7   :  { %461 = vst.msk [vmem:[%s817_s4 + $0x8] sm:$0xf] %vm458_vm3, %v532_v9  ;;  %vm349_vm8 = vcmp.gt.f32.partialorder %v333_v11, 0.0  ;;  %v365_v18 = vmul.f32 0.25, %v333_v11  ;;  %v255_v20 = vpop.f32.mrf.mxu0  ;;  %v287_v21 = vpop.f32.mrf.mxu1 }
  0xf8   :  { %vm357_vm9 = vcmp.gt.f32.partialorder %v341_v12, 0.0  ;;  %v373_v19 = vmul.f32 0.25, %v341_v12  ;;  %469 = vst.msk [vmem:[%s817_s4 + $0x28] sm:$0xf] %vm458_vm3, %v540_v15  ;;  %v334_v22 = vadd.f32 %v715_v28, %v311_v16  ;;  %v342_v23 = vadd.f32 %v715_v28, %v319_v17 }
  0xf9   :  { %v381_v24 = vsel %vm349_vm8, %v333_v11, %v365_v18  ;;  %v256_v27 = vpop.f32.mrf.mxu0  ;;  %v288_v29 = vpop.f32.mrf.mxu1 }
  0xfa   :  { %v389_v25 = vsel %vm357_vm9, %v341_v12, %v373_v19  ;;  %v533_v30 = vpack.c.bf16 %v381_v24, %v381_v24  ;;  %vm350_vm10 = vcmp.gt.f32.partialorder %v334_v22, 0.0  ;;  %v366_v32 = vmul.f32 0.25, %v334_v22 }
  0xfb   :  { %v541_v31 = vpack.c.bf16 %v389_v25, %v389_v25  ;;  %vm358_vm11 = vcmp.gt.f32.partialorder %v342_v23, 0.0  ;;  %v374_v33 = vmul.f32 0.25, %v342_v23  ;;  %v312_v34 = vmul.f32 %v710_v26, %v256_v27  ;;  %v258_v36 = vpop.f32.mrf.mxu0  ;;  %v290_v37 = vpop.f32.mrf.mxu1 }
  0xfc   :  { %v320_v35 = vmul.f32 %v710_v26, %v288_v29  ;;  %462 = vst.msk [vmem:[%s817_s4 + $0xc] sm:$0xf] %vm458_vm3, %v533_v30  ;;  %v382_v38 = vsel %vm350_vm10, %v334_v22, %v366_v32 }
  0xfd   :  { %470 = vst.msk [vmem:[%s817_s4 + $0x2c] sm:$0xf] %vm458_vm3, %v541_v31  ;;  %v534_v39 = vpack.c.bf16 %v382_v38, %v382_v38  ;;  %v390_v40 = vsel %vm358_vm11, %v342_v23, %v374_v33  ;;  %v335_v41 = vadd.f32 %v715_v28, %v312_v34  ;;  %v261_v43 = vpop.f32.mrf.mxu0  ;;  %v293_v44 = vpop.f32.mrf.mxu1 }
  0xfe   :  { %v343_v42 = vadd.f32 %v715_v28, %v320_v35  ;;  %v542_v45 = vpack.c.bf16 %v390_v40, %v390_v40  ;;  %v313_v46 = vmul.f32 %v710_v26, %v261_v43  ;;  %v321_v47 = vmul.f32 %v710_v26, %v293_v44 }
  0xff   :  { %463 = vst.msk [vmem:[%s817_s4 + $0x10] sm:$0xf] %vm458_vm3, %v534_v39  ;;  %vm351_vm12 = vcmp.gt.f32.partialorder %v335_v41, 0.0  ;;  %v367_v48 = vmul.f32 0.25, %v335_v41  ;;  %v263_v50 = vpop.f32.mrf.mxu0  ;;  %v295_v51 = vpop.f32.mrf.mxu1 }
 0x100   :  { %vm359_vm13 = vcmp.gt.f32.partialorder %v343_v42, 0.0  ;;  %v375_v49 = vmul.f32 0.25, %v343_v42  ;;  %471 = vst.msk [vmem:[%s817_s4 + $0x30] sm:$0xf] %vm458_vm3, %v542_v45  ;;  %v336_v52 = vadd.f32 %v715_v28, %v313_v46  ;;  %v344_v53 = vadd.f32 %v715_v28, %v321_v47 }
 0x101   :  { %v383_v54 = vsel %vm351_vm12, %v335_v41, %v367_v48  ;;  %v264_v56 = vpop.f32.mrf.mxu0  ;;  %v296_v57 = vpop.f32.mrf.mxu1 }
 0x102   :  { %v391_v55 = vsel %vm359_vm13, %v343_v42, %v375_v49  ;;  %v535_v58 = vpack.c.bf16 %v383_v54, %v383_v54  ;;  %vm352_vm14 = vcmp.gt.f32.partialorder %v336_v52, 0.0  ;;  %v368_v60 = vmul.f32 0.25, %v336_v52 }
 0x103   :  { %v543_v59 = vpack.c.bf16 %v391_v55, %v391_v55  ;;  %vm360_vm15 = vcmp.gt.f32.partialorder %v344_v53, 0.0  ;;  %v376_v61 = vmul.f32 0.25, %v344_v53  ;;  %v314_v62 = vmul.f32 %v710_v26, %v264_v56  ;;  %v266_v0 = vpop.f32.mrf.mxu0  ;;  %v298_v1 = vpop.f32.mrf.mxu1 }
 0x104   :  { %v322_v63 = vmul.f32 %v710_v26, %v296_v57  ;;  %464 = vst.msk [vmem:[%s817_s4 + $0x14] sm:$0xf] %vm458_vm3, %v535_v58  ;;  %v384_v2 = vsel %vm352_vm14, %v336_v52, %v368_v60 }
 0x105   :  { %472 = vst.msk [vmem:[%s817_s4 + $0x34] sm:$0xf] %vm458_vm3, %v543_v59  ;;  %v536_v3 = vpack.c.bf16 %v384_v2, %v384_v2  ;;  %v392_v4 = vsel %vm360_vm15, %v344_v53, %v376_v61  ;;  %v337_v5 = vadd.f32 %v715_v28, %v314_v62 }
 0x106   :  { %v345_v6 = vadd.f32 %v715_v28, %v322_v63  ;;  %v544_v26 = vpack.c.bf16 %v392_v4, %v392_v4 }
 0x107   :  { %465 = vst.msk [vmem:[%s817_s4 + $0x18] sm:$0xf] %vm458_vm3, %v536_v3  ;;  %vm353_vm0 = vcmp.gt.f32.partialorder %v337_v5, 0.0  ;;  %v369_v7 = vmul.f32 0.25, %v337_v5 }
 0x108   :  { %vm361_vm1 = vcmp.gt.f32.partialorder %v345_v6, 0.0  ;;  %v377_v8 = vmul.f32 0.25, %v345_v6  ;;  %473 = vst.msk [vmem:[%s817_s4 + $0x38] sm:$0xf] %vm458_vm3, %v544_v26 }
 0x109   :  { %v385_v9 = vsel %vm353_vm0, %v337_v5, %v369_v7 }
 0x10a   :  { %v393_v10 = vsel %vm361_vm1, %v345_v6, %v377_v8  ;;  %v537_v11 = vpack.c.bf16 %v385_v9, %v385_v9 }
 0x10b   :  { %v545_v12 = vpack.c.bf16 %v393_v10, %v393_v10 }
 0x10c   :  { %466 = vst.msk [vmem:[%s817_s4 + $0x1c] sm:$0xf] %vm458_vm3, %v537_v11 }
 0x10d   :  { %474 = vst.msk [vmem:[%s817_s4 + $0x3c] sm:$0xf] %vm458_vm3, %v545_v12 }

// kernel: _lambda_.105
= control target key start
LH: loop header
LB: loop body
LE: loop exit
PB: predicated region body
PF: predicated region fallthrough
CT: control target
= control target key end

     0   :  { %vm269_vm2 = vcmask 125952   ;;  %s481_s1 = inlined_call_operand.vmem [shape: bf16[256,16], index: 1, kind: input, shape index: {}]   ;;  %s482_s0 = inlined_call_operand.vmem [shape: bf16[32,256], index: 0, kind: input, shape index: {}]   ;;  %s483_s2 = inlined_call_operand.vmem [shape: f32[1,16], index: 2, kind: input, shape index: {}]   ;;  %s484_s3 = inlined_call_operand.vmem [shape: f32[1,16], index: 3, kind: input, shape index: {}]   ;;  %s485_s4 = inlined_call_operand.vmem [shape: bf16[32,16], index: 4, kind: output, shape index: {}]  }
   0x1   :  { %v352_v0 = vld [vmem:[%s481_s1 + $0x78] sm:$0xff]   ;;  %v354_v2 = vld [vmem:[%s481_s1 + $0x70] sm:$0xff]   ;;  %v356_v4 = vld [vmem:[%s481_s1 + $0x68] sm:$0xff]  }
   0x2   :  { %v353_v1 = vld [vmem:[%s481_s1 + $0x38] sm:$0xff]   ;;  %308 = vmatprep.subr.bf16.mxu0 %v352_v0  ;;  %336 = vmatprep.subr.bf16.mxu1 %v352_v0  ;;  %v355_v3 = vld [vmem:[%s481_s1 + $0x30] sm:$0xff]   ;;  %v357_v5 = vld [vmem:[%s481_s1 + $0x28] sm:$0xff]  }
   0x3   :  { %309 = vmatpush3.bf16.msra.mxu0 %v353_v1  ;;  %344 = vmatpush3.bf16.msra.mxu1 %v353_v1  ;;  %v358_v6 = vld [vmem:[%s481_s1 + $0x60] sm:$0xff]   ;;  %v360_v8 = vld [vmem:[%s481_s1 + $0x58] sm:$0xff]   ;;  %v362_v10 = vld [vmem:[%s481_s1 + $0x50] sm:$0xff]  }
   0x4   :  { %310 = vmatprep.subr.bf16.mxu0 %v354_v2  ;;  %337 = vmatprep.subr.bf16.mxu1 %v354_v2  ;;  %v359_v7 = vld [vmem:[%s481_s1 + $0x20] sm:$0xff]   ;;  %v361_v9 = vld [vmem:[%s481_s1 + $0x18] sm:$0xff]   ;;  %v363_v13 = vld [vmem:[%s481_s1 + $0x10] sm:$0xff]  }
   0x5   :  { %v370_v11 = vld [vmem:[%s482_s0 + $0x4] ss:$8 sps:$4 sm:$0xff]   ;;  %v373_v12 = vld [vmem:[%s482_s0 + $0x14] ss:$8 sps:$4 sm:$0xff]   ;;  %v368_v18 = vld [vmem:[%s482_s0] ss:$8 sps:$4 sm:$0xff]  }
   0x6   :  { %v364_v14 = vld [vmem:[%s481_s1 + $0x48] sm:$0xff]   ;;  %202 = vmatprep.mubr.bf16.mxu0 %v370_v11  ;;  %210 = vmatprep.mubr.bf16.mxu1 %v373_v12  ;;  %v366_v16 = vld [vmem:[%s481_s1 + $0x40] sm:$0xff]   ;;  %v371_v19 = vld [vmem:[%s482_s0 + $0x10] ss:$8 sps:$4 sm:$0xff]  }
   0x7   :  { %311 = vmatpush3.bf16.msra.mxu0 %v355_v3  ;;  %345 = vmatpush3.bf16.msra.mxu1 %v355_v3  ;;  %v365_v15 = vld [vmem:[%s481_s1 + $0x8] sm:$0xff]   ;;  %v367_v17 = vld [vmem:[%s481_s1] sm:$0xff]  }
   0x8   :  { %312 = vmatprep.subr.bf16.mxu0 %v356_v4  ;;  %338 = vmatprep.subr.bf16.mxu1 %v356_v4  ;;  %v298_v23 = vld [vmem:[%s483_s2] ss:$0 sm:$0xff] }
   0x9   :  { %v299_v27 = vld [vmem:[%s484_s3] ss:$0 sm:$0xff] }
   0xb   :  { %313 = vmatpush3.bf16.msra.mxu0 %v357_v5  ;;  %346 = vmatpush3.bf16.msra.mxu1 %v357_v5 }
   0xc   :  { %314 = vmatprep.subr.bf16.mxu0 %v358_v6  ;;  %339 = vmatprep.subr.bf16.mxu1 %v358_v6 }
   0xf   :  { %315 = vmatpush3.bf16.msra.mxu0 %v359_v7  ;;  %347 = vmatpush3.bf16.msra.mxu1 %v359_v7 }
  0x10   :  { %316 = vmatprep.subr.bf16.mxu0 %v360_v8  ;;  %340 = vmatprep.subr.bf16.mxu1 %v360_v8 }
  0x13   :  { %317 = vmatpush3.bf16.msra.mxu0 %v361_v9  ;;  %348 = vmatpush3.bf16.msra.mxu1 %v361_v9 }
  0x14   :  { %318 = vmatprep.subr.bf16.mxu0 %v362_v10  ;;  %341 = vmatprep.subr.bf16.mxu1 %v362_v10 }
  0x17   :  { %319 = vmatpush3.bf16.msra.mxu0 %v363_v13  ;;  %349 = vmatpush3.bf16.msra.mxu1 %v363_v13 }
  0x18   :  { %320 = vmatprep.subr.bf16.mxu0 %v364_v14  ;;  %342 = vmatprep.subr.bf16.mxu1 %v364_v14 }
  0x1b   :  { %321 = vmatpush3.bf16.msra.mxu0 %v365_v15  ;;  %350 = vmatpush3.bf16.msra.mxu1 %v365_v15 }
  0x1c   :  { %322 = vmatprep.subr.bf16.mxu0 %v366_v16  ;;  %343 = vmatprep.subr.bf16.mxu1 %v366_v16 }
  0x1f   :  { %323 = vmatpush3.bf16.msra.mxu0 %v367_v17  ;;  %351 = vmatpush3.bf16.msra.mxu1 %v367_v17 }
  0x22   :  { %203 = vmatmul.mubr.bf16.vlgmr.msra.gmra.mxu0 %v368_v18  ;;  %211 = vmatmul.mubr.bf16.vlgmr.msra.gmra.mxu1 %v371_v19 }
  0xe2   :  { %v324_v20 = vpop.f32.mrf.mxu0  ;;  %v330_v21 = vpop.f32.mrf.mxu1 }
  0xe4   :  { %v325_v22 = vpop.f32.mrf.mxu0  ;;  %v331_v24 = vpop.f32.mrf.mxu1 }
  0xe5   :  { %v326_v25 = vadd.f32 %v325_v22, %v324_v20  ;;  %v332_v26 = vadd.f32 %v331_v24, %v330_v21 }
  0xe6   :  { %v327_v28 = vpop.f32.mrf.mxu0  ;;  %v333_v29 = vpop.f32.mrf.mxu1 }
  0xe7   :  { %v226_v30 = vmul.f32 %v326_v25, %v298_v23  ;;  %v228_v31 = vmul.f32 %v332_v26, %v298_v23 }
  0xe8   :  { %v328_v32 = vpop.f32.mrf.mxu0  ;;  %v334_v33 = vpop.f32.mrf.mxu1 }
  0xe9   :  { %v237_v34 = vadd.f32 %v299_v27, %v226_v30  ;;  %v239_v35 = vadd.f32 %v299_v27, %v228_v31  ;;  %v329_v36 = vadd.f32 %v328_v32, %v327_v28  ;;  %v335_v37 = vadd.f32 %v334_v33, %v333_v29 }
  0xeb   :  { %vm241_vm0 = vcmp.gt.f32.partialorder %v237_v34, 0.0  ;;  %v245_v38 = vmul.f32 0.25, %v237_v34  ;;  %vm243_vm1 = vcmp.gt.f32.partialorder %v239_v35, 0.0  ;;  %v247_v39 = vmul.f32 0.25, %v239_v35 }
  0xec   :  { %v227_v40 = vmul.f32 %v329_v36, %v298_v23  ;;  %v229_v41 = vmul.f32 %v335_v37, %v298_v23 }
  0xed   :  { %v249_v42 = vsel %vm241_vm0, %v237_v34, %v245_v38  ;;  %v251_v43 = vsel %vm243_vm1, %v239_v35, %v247_v39 }
  0xee   :  { %v304_v44 = vpack.c.bf16 %v249_v42, %v249_v42  ;;  %v306_v45 = vpack.c.bf16 %v251_v43, %v251_v43  ;;  %v238_v46 = vadd.f32 %v299_v27, %v227_v40  ;;  %v240_v47 = vadd.f32 %v299_v27, %v229_v41 }
  0xf0   :  { %270 = vst.msk [vmem:[%s485_s4] sm:$0xf] %vm269_vm2, %v304_v44  ;;  %272 = vst.msk [vmem:[%s485_s4 + $0x8] sm:$0xf] %vm269_vm2, %v306_v45  ;;  %vm242_vm3 = vcmp.gt.f32.partialorder %v238_v46, 0.0  ;;  %v246_v48 = vmul.f32 0.25, %v238_v46 }
  0xf1   :  { %vm244_vm4 = vcmp.gt.f32.partialorder %v240_v47, 0.0  ;;  %v248_v49 = vmul.f32 0.25, %v240_v47 }
  0xf2   :  { %v250_v50 = vsel %vm242_vm3, %v238_v46, %v246_v48 }
  0xf3   :  { %v252_v51 = vsel %vm244_vm4, %v240_v47, %v248_v49  ;;  %v305_v52 = vpack.c.bf16 %v250_v50, %v250_v50 }
  0xf4   :  { %v307_v53 = vpack.c.bf16 %v252_v51, %v252_v51 }
  0xf5   :  { %271 = vst.msk [vmem:[%s485_s4 + $0x4] sm:$0xf] %vm269_vm2, %v305_v52 }
  0xf6   :  { %273 = vst.msk [vmem:[%s485_s4 + $0xc] sm:$0xf] %vm269_vm2, %v307_v53 }

// kernel: _lambda_.107
= control target key start
LH: loop header
LB: loop body
LE: loop exit
PB: predicated region body
PF: predicated region fallthrough
CT: control target
= control target key end

     0   :  { %vm43_vm0 = vcmask 130048   ;;  %s285_s1 = inlined_call_operand.vmem [shape: bf16[16,128], index: 1, kind: input, shape index: {}]   ;;  %s286_s0 = inlined_call_operand.vmem [shape: bf16[32,16], index: 0, kind: input, shape index: {}]   ;;  %s287_s2 = inlined_call_operand.vmem [shape: f32[1,128], index: 2, kind: input, shape index: {}]   ;;  %s288_s3 = inlined_call_operand.vmem [shape: f32[1,128], index: 3, kind: input, shape index: {}]   ;;  %s289_s4 = inlined_call_operand.vmem [shape: bf16[32,128], index: 4, kind: input, shape index: {}]   ;;  %s290_s5 = inlined_call_operand.vmem [shape: bf16[32,128], index: 5, kind: output, shape index: {}]  }
   0x1   :  { %v225_v0 = vld [vmem:[%s285_s1] sm:$0xff]   ;;  %v227_v2 = vld [vmem:[%s286_s0 + $0x8] sm:$0xff]  }
   0x2   :  { %v226_v1 = vld [vmem:[%s286_s0] sm:$0xff]   ;;  %219 = vmatprep.subr.bf16.mxu0 %v225_v0  ;;  %v214_v7 = vld [vmem:[%s289_s4 + $0x8] sm:$0xff]  }
   0x3   :  { %220 = vmatpush3.bf16.msra.mxu0 %v225_v0  ;;  %221 = vmatprep.mubr.msk.bf16.mxu0 %vm43_vm0, %v226_v1  ;;  %v186_v3 = vld [vmem:[%s287_s2] ss:$0 sm:$0xff]  ;;  %v202_v11 = vunpack.c.l.bf16 %v214_v7  ;;  %v203_v23 = vunpack.c.h.bf16 %v214_v7 }
   0x4   :  { %v187_v5 = vld [vmem:[%s288_s3] ss:$0 sm:$0xff] }
   0x5   :  { %v197_v15 = vld [vmem:[%s289_s4] sm:$0xff]  }
   0x6   :  { %222 = vmatmul.mubr.msk.bf16.vlgmr.msra.gmra.mxu0 %vm43_vm0, %v227_v2  ;;  %v198_v22 = vunpack.c.l.bf16 %v197_v15  ;;  %v199_v32 = vunpack.c.h.bf16 %v197_v15 }
  0xc6   :  { %v223_v4 = vpop.f32.mrf.mxu0 }
  0xc7   :  { %v108_v6 = vmul.f32 %v223_v4, %v186_v3 }
  0xc8   :  { %v84_v8 = vpop.f32.mrf.mxu0 }
  0xc9   :  { %v119_v9 = vadd.f32 %v187_v5, %v108_v6  ;;  %v106_v10 = vmul.f32 %v186_v3, %v84_v8 }
  0xca   :  { %v224_v12 = vpop.f32.mrf.mxu0 }
  0xcb   :  { %vm123_vm1 = vcmp.gt.f32.partialorder %v119_v9, 0.0  ;;  %v127_v13 = vmul.f32 0.25, %v119_v9  ;;  %v117_v14 = vadd.f32 %v187_v5, %v106_v10  ;;  %v109_v16 = vmul.f32 %v224_v12, %v186_v3 }
  0xcc   :  { %v87_v17 = vpop.f32.mrf.mxu0 }
  0xcd   :  { %v131_v18 = vsel %vm123_vm1, %v119_v9, %v127_v13  ;;  %vm121_vm2 = vcmp.gt.f32.partialorder %v117_v14, 0.0  ;;  %v125_v19 = vmul.f32 0.25, %v117_v14  ;;  %v120_v20 = vadd.f32 %v187_v5, %v109_v16 }
  0xce   :  { %v143_v21 = vadd.f32 %v202_v11, %v131_v18  ;;  %v107_v24 = vmul.f32 %v186_v3, %v87_v17 }
  0xcf   :  { %v129_v25 = vsel %vm121_vm2, %v117_v14, %v125_v19  ;;  %vm124_vm3 = vcmp.gt.f32.partialorder %v120_v20, 0.0  ;;  %v128_v26 = vmul.f32 0.25, %v120_v20 }
  0xd0   :  { %v118_v27 = vadd.f32 %v187_v5, %v107_v24  ;;  %v151_v29 = vmul.f32 0.25, %v143_v21  ;;  %v141_v30 = vadd.f32 %v198_v22, %v129_v25  ;;  %vm147_vm4 = vcmp.gt.f32.partialorder %v143_v21, 0.0 }
  0xd1   :  { %v132_v28 = vsel %vm124_vm3, %v120_v20, %v128_v26 }
  0xd2   :  { %v144_v31 = vadd.f32 %v203_v23, %v132_v28  ;;  %vm122_vm5 = vcmp.gt.f32.partialorder %v118_v27, 0.0  ;;  %v126_v33 = vmul.f32 0.25, %v118_v27  ;;  %v155_v36 = vsel %vm147_vm4, %v143_v21, %v151_v29 }
  0xd3   :  { %v149_v37 = vmul.f32 0.25, %v141_v30  ;;  %vm145_vm7 = vcmp.gt.f32.partialorder %v141_v30, 0.0 }
  0xd4   :  { %vm148_vm6 = vcmp.gt.f32.partialorder %v144_v31, 0.0  ;;  %v152_v34 = vmul.f32 0.25, %v144_v31  ;;  %v130_v35 = vsel %vm122_vm5, %v118_v27, %v126_v33 }
  0xd5   :  { %v142_v39 = vadd.f32 %v199_v32, %v130_v35  ;;  %v153_v42 = vsel %vm145_vm7, %v141_v30, %v149_v37 }
  0xd6   :  { %v156_v38 = vsel %vm148_vm6, %v144_v31, %v152_v34 }
  0xd7   :  { %v212_v40 = vpack.c.bf16 %v156_v38, %v155_v36  ;;  %vm146_vm8 = vcmp.gt.f32.partialorder %v142_v39, 0.0  ;;  %v150_v41 = vmul.f32 0.25, %v142_v39 }
  0xd9   :  { %215 = vst [vmem:[%s290_s5 + $0x8] sm:$0xff] %v212_v40   ;;  %v154_v43 = vsel %vm146_vm8, %v142_v39, %v150_v41 }
  0xda   :  { %v207_v44 = vpack.c.bf16 %v154_v43, %v153_v42 }
  0xdc   :  { %208 = vst [vmem:[%s290_s5] sm:$0xff] %v207_v44  }

// kernel: _lambda_.106
= control target key start
LH: loop header
LB: loop body
LE: loop exit
PB: predicated region body
PF: predicated region fallthrough
CT: control target
= control target key end

     0   :  { %v286_v0 = vmov 0   ;;  %vm112_vm0 = vcmask 130048   ;;  %vm218_vm3 = vcmask 125952   ;;  %s373_s1 = inlined_call_operand.vmem [shape: bf16[144,16], index: 1, kind: input, shape index: {}]   ;;  %s374_s0 = inlined_call_operand.vmem [shape: bf16[32,144], index: 0, kind: input, shape index: {}]   ;;  %s375_s2 = inlined_call_operand.vmem [shape: f32[1,16], index: 2, kind: input, shape index: {}]   ;;  %s376_s3 = inlined_call_operand.vmem [shape: f32[1,16], index: 3, kind: input, shape index: {}]   ;;  %s377_s4 = inlined_call_operand.vmem [shape: bf16[32,16], index: 4, kind: output, shape index: {}]  }
   0x1   :  { %119 = vmatprep.subr.bf16.mxu0 %v286_v0  ;;  %252 = vmatprep.subr.bf16.mxu1 %v286_v0  ;;  %v271_v1 = vld [vmem:[%s373_s1 + $0x38] sm:$0xff]   ;;  %v272_v2 = vld [vmem:[%s373_s1 + $0x30] sm:$0xff]   ;;  %v273_v3 = vld [vmem:[%s373_s1 + $0x28] sm:$0xff]  }
   0x2   :  { %120 = vmatpush1.bf16.msra.mxu0 %v271_v1  ;;  %261 = vmatpush1.bf16.msra.mxu1 %v271_v1  ;;  %v274_v4 = vld [vmem:[%s373_s1 + $0x20] sm:$0xff]   ;;  %v285_v6 = vld [vmem:[%s374_s0 + $0x14] ss:$8 sps:$4 sm:$0xff]   ;;  %v277_v9 = vld [vmem:[%s373_s1 + $0x8] sm:$0xff]  }
   0x3   :  { %121 = vmatprep.subr.bf16.mxu0 %v286_v0  ;;  %253 = vmatprep.subr.bf16.mxu1 %v286_v0  ;;  %v282_v5 = vld [vmem:[%s374_s0 + $0x4] ss:$8 sps:$4 sm:$0xff]   ;;  %v275_v7 = vld [vmem:[%s373_s1 + $0x18] sm:$0xff]   ;;  %v276_v8 = vld [vmem:[%s373_s1 + $0x10] sm:$0xff]  }
   0x4   :  { %240 = vmatprep.mubr.msk.bf16.mxu0 %vm112_vm0, %v282_v5  ;;  %241 = vmatprep.mubr.msk.bf16.mxu1 %vm112_vm0, %v285_v6  ;;  %v278_v10 = vld [vmem:[%s373_s1] sm:$0xff]   ;;  %v283_v13 = vld [vmem:[%s374_s0 + $0x10] ss:$8 sps:$4 sm:$0xff]  }
   0x5   :  { %v279_v11 = vld [vmem:[%s373_s1 + $0x40] sm:$0xff]  }
   0x6   :  { %122 = vmatpush1.bf16.msra.mxu0 %v272_v2  ;;  %262 = vmatpush1.bf16.msra.mxu1 %v272_v2  ;;  %v280_v12 = vld [vmem:[%s374_s0] ss:$8 sps:$4 sm:$0xff]  }
   0x7   :  { %123 = vmatprep.subr.bf16.mxu0 %v286_v0  ;;  %254 = vmatprep.subr.bf16.mxu1 %v286_v0  ;;  %v242_v14 = vld [vmem:[%s375_s2] ss:$0 sm:$0xff] }
   0x8   :  { %v243_v16 = vld [vmem:[%s376_s3] ss:$0 sm:$0xff] }
   0xa   :  { %124 = vmatpush1.bf16.msra.mxu0 %v273_v3  ;;  %263 = vmatpush1.bf16.msra.mxu1 %v273_v3 }
   0xb   :  { %125 = vmatprep.subr.bf16.mxu0 %v286_v0  ;;  %255 = vmatprep.subr.bf16.mxu1 %v286_v0 }
   0xe   :  { %126 = vmatpush1.bf16.msra.mxu0 %v274_v4  ;;  %264 = vmatpush1.bf16.msra.mxu1 %v274_v4 }
   0xf   :  { %127 = vmatprep.subr.bf16.mxu0 %v286_v0  ;;  %256 = vmatprep.subr.bf16.mxu1 %v286_v0 }
  0x12   :  { %128 = vmatpush1.bf16.msra.mxu0 %v275_v7  ;;  %265 = vmatpush1.bf16.msra.mxu1 %v275_v7 }
  0x13   :  { %129 = vmatprep.subr.bf16.mxu0 %v286_v0  ;;  %257 = vmatprep.subr.bf16.mxu1 %v286_v0 }
  0x16   :  { %130 = vmatpush1.bf16.msra.mxu0 %v276_v8  ;;  %266 = vmatpush1.bf16.msra.mxu1 %v276_v8 }
  0x17   :  { %131 = vmatprep.subr.bf16.mxu0 %v286_v0  ;;  %258 = vmatprep.subr.bf16.mxu1 %v286_v0 }
  0x1a   :  { %132 = vmatpush1.bf16.msra.mxu0 %v277_v9  ;;  %267 = vmatpush1.bf16.msra.mxu1 %v277_v9 }
  0x1b   :  { %133 = vmatprep.subr.bf16.mxu0 %v286_v0  ;;  %259 = vmatprep.subr.bf16.mxu1 %v286_v0 }
  0x1e   :  { %134 = vmatpush1.bf16.msra.mxu0 %v278_v10  ;;  %268 = vmatpush1.bf16.msra.mxu1 %v278_v10 }
  0x1f   :  { %149 = vmatprep.subr.bf16.mxu0 %v286_v0  ;;  %260 = vmatprep.subr.bf16.mxu1 %v286_v0 }
  0x22   :  { %150 = vmatpush2.bf16.msra.mxu0 %v279_v11  ;;  %269 = vmatpush2.bf16.msra.mxu1 %v279_v11 }
  0x25   :  { %152 = vmatmul.mubr.bf16.vlgmr.msra.gmra.mxu0 %v280_v12  ;;  %160 = vmatmul.mubr.bf16.vlgmr.msra.gmra.mxu1 %v283_v13 }
  0xe5   :  { %v153_v15 = vpop.f32.mrf.mxu0  ;;  %v161_v17 = vpop.f32.mrf.mxu1 }
  0xe6   :  { %v175_v18 = vmul.f32 %v242_v14, %v153_v15  ;;  %v177_v19 = vmul.f32 %v242_v14, %v161_v17 }
  0xe7   :  { %v155_v20 = vpop.f32.mrf.mxu0  ;;  %v163_v21 = vpop.f32.mrf.mxu1 }
  0xe8   :  { %v186_v22 = vadd.f32 %v243_v16, %v175_v18  ;;  %v188_v23 = vadd.f32 %v243_v16, %v177_v19 }
  0xe9   :  { %v156_v24 = vpop.f32.mrf.mxu0  ;;  %v164_v25 = vpop.f32.mrf.mxu1 }
  0xea   :  { %vm190_vm1 = vcmp.gt.f32.partialorder %v186_v22, 0.0  ;;  %v194_v26 = vmul.f32 0.25, %v186_v22  ;;  %vm192_vm2 = vcmp.gt.f32.partialorder %v188_v23, 0.0  ;;  %v196_v27 = vmul.f32 0.25, %v188_v23 }
  0xeb   :  { %v176_v28 = vmul.f32 %v242_v14, %v156_v24  ;;  %v178_v29 = vmul.f32 %v242_v14, %v164_v25  ;;  %v158_v30 = vpop.f32.mrf.mxu0  ;;  %v166_v31 = vpop.f32.mrf.mxu1 }
  0xec   :  { %v198_v32 = vsel %vm190_vm1, %v186_v22, %v194_v26  ;;  %v200_v33 = vsel %vm192_vm2, %v188_v23, %v196_v27 }
  0xed   :  { %v248_v34 = vpack.c.bf16 %v198_v32, %v198_v32  ;;  %v250_v35 = vpack.c.bf16 %v200_v33, %v200_v33  ;;  %v187_v36 = vadd.f32 %v243_v16, %v176_v28  ;;  %v189_v37 = vadd.f32 %v243_v16, %v178_v29 }
  0xef   :  { %219 = vst.msk [vmem:[%s377_s4] sm:$0xf] %vm218_vm3, %v248_v34  ;;  %221 = vst.msk [vmem:[%s377_s4 + $0x8] sm:$0xf] %vm218_vm3, %v250_v35  ;;  %vm191_vm4 = vcmp.gt.f32.partialorder %v187_v36, 0.0  ;;  %v195_v38 = vmul.f32 0.25, %v187_v36 }
  0xf0   :  { %vm193_vm5 = vcmp.gt.f32.partialorder %v189_v37, 0.0  ;;  %v197_v39 = vmul.f32 0.25, %v189_v37 }
  0xf1   :  { %v199_v40 = vsel %vm191_vm4, %v187_v36, %v195_v38 }
  0xf2   :  { %v201_v41 = vsel %vm193_vm5, %v189_v37, %v197_v39  ;;  %v249_v42 = vpack.c.bf16 %v199_v40, %v199_v40 }
  0xf3   :  { %v251_v43 = vpack.c.bf16 %v201_v41, %v201_v41 }
  0xf4   :  { %220 = vst.msk [vmem:[%s377_s4 + $0x4] sm:$0xf] %vm218_vm3, %v249_v42 }
  0xf5   :  { %222 = vst.msk [vmem:[%s377_s4 + $0xc] sm:$0xf] %vm218_vm3, %v251_v43 }

// kernel: _lambda_.108
= control target key start
LH: loop header
LB: loop body
LE: loop exit
PB: predicated region body
PF: predicated region fallthrough
CT: control target
= control target key end

     0   :  { %vm197_vm1 = vcmask 257024   ;;  %s343_s1 = inlined_call_operand.vmem [shape: bf16[128,32], index: 1, kind: input, shape index: {}]   ;;  %s344_s0 = inlined_call_operand.vmem [shape: bf16[32,128], index: 0, kind: input, shape index: {}]   ;;  %s345_s2 = inlined_call_operand.vmem [shape: f32[1,32], index: 2, kind: input, shape index: {}]   ;;  %s346_s3 = inlined_call_operand.vmem [shape: f32[1,32], index: 3, kind: input, shape index: {}]   ;;  %s347_s4 = inlined_call_operand.vmem [shape: bf16[32,32], index: 4, kind: output, shape index: {}]  }
   0x1   :  { %v256_v0 = vld [vmem:[%s343_s1 + $0x38] sm:$0xff]   ;;  %v257_v1 = vld [vmem:[%s343_s1 + $0x30] sm:$0xff]   ;;  %v258_v2 = vld [vmem:[%s343_s1 + $0x28] sm:$0xff]  }
   0x2   :  { %236 = vmatprep.subr.bf16.mxu0 %v256_v0  ;;  %v259_v3 = vld [vmem:[%s343_s1 + $0x20] sm:$0xff]   ;;  %v260_v5 = vld [vmem:[%s343_s1 + $0x18] sm:$0xff]   ;;  %v261_v6 = vld [vmem:[%s343_s1 + $0x10] sm:$0xff]  }
   0x3   :  { %237 = vmatpush3.bf16.msra.mxu0 %v256_v0  ;;  %v264_v4 = vld [vmem:[%s344_s0] sm:$0xff]   ;;  %v262_v7 = vld [vmem:[%s343_s1 + $0x8] sm:$0xff]  }
   0x4   :  { %238 = vmatprep.subr.bf16.mxu0 %v257_v1  ;;  %252 = vmatprep.mubr.bf16.mxu0 %v264_v4  ;;  %v263_v8 = vld [vmem:[%s343_s1] sm:$0xff]   ;;  %v265_v9 = vld [vmem:[%s344_s0 + $0x8] sm:$0xff]  }
   0x5   :  { %v216_v10 = vld [vmem:[%s345_s2] ss:$0 sm:$0xff] }
   0x6   :  { %v217_v12 = vld [vmem:[%s346_s3] ss:$0 sm:$0xff] }
   0x7   :  { %239 = vmatpush3.bf16.msra.mxu0 %v257_v1 }
   0x8   :  { %240 = vmatprep.subr.bf16.mxu0 %v258_v2 }
   0xb   :  { %241 = vmatpush3.bf16.msra.mxu0 %v258_v2 }
   0xc   :  { %242 = vmatprep.subr.bf16.mxu0 %v259_v3 }
   0xf   :  { %243 = vmatpush3.bf16.msra.mxu0 %v259_v3 }
  0x10   :  { %244 = vmatprep.subr.bf16.mxu0 %v260_v5 }
  0x13   :  { %245 = vmatpush3.bf16.msra.mxu0 %v260_v5 }
  0x14   :  { %246 = vmatprep.subr.bf16.mxu0 %v261_v6 }
  0x17   :  { %247 = vmatpush3.bf16.msra.mxu0 %v261_v6 }
  0x18   :  { %248 = vmatprep.subr.bf16.mxu0 %v262_v7 }
  0x1b   :  { %249 = vmatpush3.bf16.msra.mxu0 %v262_v7 }
  0x1c   :  { %250 = vmatprep.subr.bf16.mxu0 %v263_v8 }
  0x1f   :  { %251 = vmatpush3.bf16.msra.mxu0 %v263_v8 }
  0x22   :  { %253 = vmatmul.mubr.bf16.vlgmr.msra.gmra.mxu0 %v265_v9 }
  0xe2   :  { %v254_v11 = vpop.f32.mrf.mxu0 }
  0xe3   :  { %v156_v13 = vmul.f32 %v254_v11, %v216_v10 }
  0xe4   :  { %v132_v14 = vpop.f32.mrf.mxu0 }
  0xe5   :  { %v167_v15 = vadd.f32 %v217_v12, %v156_v13  ;;  %v154_v16 = vmul.f32 %v216_v10, %v132_v14 }
  0xe6   :  { %v255_v17 = vpop.f32.mrf.mxu0 }
  0xe7   :  { %vm171_vm0 = vcmp.gt.f32.partialorder %v167_v15, 0.0  ;;  %v175_v18 = vmul.f32 0.25, %v167_v15  ;;  %v165_v19 = vadd.f32 %v217_v12, %v154_v16  ;;  %v157_v20 = vmul.f32 %v255_v17, %v216_v10 }
  0xe8   :  { %v135_v21 = vpop.f32.mrf.mxu0 }
  0xe9   :  { %v179_v22 = vsel %vm171_vm0, %v167_v15, %v175_v18  ;;  %vm169_vm2 = vcmp.gt.f32.partialorder %v165_v19, 0.0  ;;  %v173_v23 = vmul.f32 0.25, %v165_v19  ;;  %v168_v24 = vadd.f32 %v217_v12, %v157_v20 }
  0xea   :  { %v224_v25 = vpack.c.bf16 %v179_v22, %v179_v22  ;;  %v155_v26 = vmul.f32 %v216_v10, %v135_v21 }
  0xeb   :  { %v177_v27 = vsel %vm169_vm2, %v165_v19, %v173_v23  ;;  %vm172_vm3 = vcmp.gt.f32.partialorder %v168_v24, 0.0  ;;  %v176_v28 = vmul.f32 0.25, %v168_v24 }
  0xec   :  { %200 = vst.msk [vmem:[%s347_s4 + $0x8] sm:$0xf] %vm197_vm1, %v224_v25  ;;  %v222_v29 = vpack.c.bf16 %v177_v27, %v177_v27  ;;  %v166_v30 = vadd.f32 %v217_v12, %v155_v26 }
  0xed   :  { %v180_v31 = vsel %vm172_vm3, %v168_v24, %v176_v28 }
  0xee   :  { %198 = vst.msk [vmem:[%s347_s4] sm:$0xf] %vm197_vm1, %v222_v29  ;;  %v225_v32 = vpack.c.bf16 %v180_v31, %v180_v31  ;;  %vm170_vm4 = vcmp.gt.f32.partialorder %v166_v30, 0.0  ;;  %v174_v33 = vmul.f32 0.25, %v166_v30 }
  0xf0   :  { %201 = vst.msk [vmem:[%s347_s4 + $0xc] sm:$0xf] %vm197_vm1, %v225_v32  ;;  %v178_v34 = vsel %vm170_vm4, %v166_v30, %v174_v33 }
  0xf1   :  { %v223_v35 = vpack.c.bf16 %v178_v34, %v178_v34 }
  0xf3   :  { %199 = vst.msk [vmem:[%s347_s4 + $0x4] sm:$0xf] %vm197_vm1, %v223_v35 }

// kernel: _lambda_.110
= control target key start
LH: loop header
LB: loop body
LE: loop exit
PB: predicated region body
PF: predicated region fallthrough
CT: control target
= control target key end

     0   :  { %vm51_vm0 = vcmask 261120   ;;  %s301_s1 = inlined_call_operand.vmem [shape: bf16[32,128], index: 1, kind: input, shape index: {}]   ;;  %s302_s0 = inlined_call_operand.vmem [shape: bf16[32,32], index: 0, kind: input, shape index: {}]   ;;  %s303_s2 = inlined_call_operand.vmem [shape: f32[1,128], index: 2, kind: input, shape index: {}]   ;;  %s304_s3 = inlined_call_operand.vmem [shape: f32[1,128], index: 3, kind: input, shape index: {}]   ;;  %s305_s4 = inlined_call_operand.vmem [shape: bf16[32,128], index: 4, kind: input, shape index: {}]   ;;  %s306_s5 = inlined_call_operand.vmem [shape: bf16[32,128], index: 5, kind: output, shape index: {}]  }
   0x1   :  { %v237_v0 = vld [vmem:[%s301_s1 + $0x8] sm:$0xff]   ;;  %v238_v1 = vld [vmem:[%s301_s1] sm:$0xff]  }
   0x2   :  { %229 = vmatprep.subr.bf16.mxu0 %v237_v0  ;;  %v239_v2 = vld [vmem:[%s302_s0] sm:$0xff]   ;;  %v240_v3 = vld [vmem:[%s302_s0 + $0x8] sm:$0xff]  }
   0x3   :  { %230 = vmatpush3.bf16.msra.mxu0 %v237_v0  ;;  %233 = vmatprep.mubr.msk.bf16.mxu0 %vm51_vm0, %v239_v2  ;;  %v195_v4 = vld [vmem:[%s303_s2] ss:$0 sm:$0xff]  ;;  %v223_v8 = vld [vmem:[%s305_s4 + $0x8] sm:$0xff]  }
   0x4   :  { %231 = vmatprep.subr.bf16.mxu0 %v238_v1  ;;  %v196_v6 = vld [vmem:[%s304_s3] ss:$0 sm:$0xff]  ;;  %v211_v12 = vunpack.c.l.bf16 %v223_v8  ;;  %v212_v24 = vunpack.c.h.bf16 %v223_v8 }
   0x5   :  { %v206_v16 = vld [vmem:[%s305_s4] sm:$0xff]  }
   0x6   :  { %v207_v23 = vunpack.c.l.bf16 %v206_v16  ;;  %v208_v33 = vunpack.c.h.bf16 %v206_v16 }
   0x7   :  { %232 = vmatpush3.bf16.msra.mxu0 %v238_v1 }
   0xa   :  { %234 = vmatmul.mubr.msk.bf16.vlgmr.msra.gmra.mxu0 %vm51_vm0, %v240_v3 }
  0xca   :  { %v235_v5 = vpop.f32.mrf.mxu0 }
  0xcb   :  { %v116_v7 = vmul.f32 %v235_v5, %v195_v4 }
  0xcc   :  { %v92_v9 = vpop.f32.mrf.mxu0 }
  0xcd   :  { %v127_v10 = vadd.f32 %v196_v6, %v116_v7  ;;  %v114_v11 = vmul.f32 %v195_v4, %v92_v9 }
  0xce   :  { %v236_v13 = vpop.f32.mrf.mxu0 }
  0xcf   :  { %vm131_vm1 = vcmp.gt.f32.partialorder %v127_v10, 0.0  ;;  %v135_v14 = vmul.f32 0.25, %v127_v10  ;;  %v125_v15 = vadd.f32 %v196_v6, %v114_v11  ;;  %v117_v17 = vmul.f32 %v236_v13, %v195_v4 }
  0xd0   :  { %v95_v18 = vpop.f32.mrf.mxu0 }
  0xd1   :  { %v139_v19 = vsel %vm131_vm1, %v127_v10, %v135_v14  ;;  %vm129_vm2 = vcmp.gt.f32.partialorder %v125_v15, 0.0  ;;  %v133_v20 = vmul.f32 0.25, %v125_v15  ;;  %v128_v21 = vadd.f32 %v196_v6, %v117_v17 }
  0xd2   :  { %v151_v22 = vadd.f32 %v211_v12, %v139_v19  ;;  %v115_v25 = vmul.f32 %v195_v4, %v95_v18 }
  0xd3   :  { %v137_v26 = vsel %vm129_vm2, %v125_v15, %v133_v20  ;;  %vm132_vm3 = vcmp.gt.f32.partialorder %v128_v21, 0.0  ;;  %v136_v27 = vmul.f32 0.25, %v128_v21 }
  0xd4   :  { %v126_v28 = vadd.f32 %v196_v6, %v115_v25  ;;  %v159_v30 = vmul.f32 0.25, %v151_v22  ;;  %v149_v31 = vadd.f32 %v207_v23, %v137_v26  ;;  %vm155_vm4 = vcmp.gt.f32.partialorder %v151_v22, 0.0 }
  0xd5   :  { %v140_v29 = vsel %vm132_vm3, %v128_v21, %v136_v27 }
  0xd6   :  { %v152_v32 = vadd.f32 %v212_v24, %v140_v29  ;;  %vm130_vm5 = vcmp.gt.f32.partialorder %v126_v28, 0.0  ;;  %v134_v34 = vmul.f32 0.25, %v126_v28  ;;  %v163_v37 = vsel %vm155_vm4, %v151_v22, %v159_v30 }
  0xd7   :  { %v157_v38 = vmul.f32 0.25, %v149_v31  ;;  %vm153_vm7 = vcmp.gt.f32.partialorder %v149_v31, 0.0 }
  0xd8   :  { %vm156_vm6 = vcmp.gt.f32.partialorder %v152_v32, 0.0  ;;  %v160_v35 = vmul.f32 0.25, %v152_v32  ;;  %v138_v36 = vsel %vm130_vm5, %v126_v28, %v134_v34 }
  0xd9   :  { %v150_v40 = vadd.f32 %v208_v33, %v138_v36  ;;  %v161_v43 = vsel %vm153_vm7, %v149_v31, %v157_v38 }
  0xda   :  { %v164_v39 = vsel %vm156_vm6, %v152_v32, %v160_v35 }
  0xdb   :  { %v221_v41 = vpack.c.bf16 %v164_v39, %v163_v37  ;;  %vm154_vm8 = vcmp.gt.f32.partialorder %v150_v40, 0.0  ;;  %v158_v42 = vmul.f32 0.25, %v150_v40 }
  0xdd   :  { %224 = vst [vmem:[%s306_s5 + $0x8] sm:$0xff] %v221_v41   ;;  %v162_v44 = vsel %vm154_vm8, %v150_v40, %v158_v42 }
  0xde   :  { %v216_v45 = vpack.c.bf16 %v162_v44, %v161_v43 }
  0xe0   :  { %217 = vst [vmem:[%s306_s5] sm:$0xff] %v216_v45  }

// kernel: _lambda_.109
= control target key start
LH: loop header
LB: loop body
LE: loop exit
PB: predicated region body
PF: predicated region fallthrough
CT: control target
= control target key end

     0   :  { %vm200_vm0 = vcmask 261120   ;;  %vm355_vm2 = vcmask 257024   ;;  %s585_s1 = inlined_call_operand.vmem [shape: bf16[288,32], index: 1, kind: input, shape index: {}]   ;;  %s586_s0 = inlined_call_operand.vmem [shape: bf16[32,288], index: 0, kind: input, shape index: {}]   ;;  %s587_s2 = inlined_call_operand.vmem [shape: f32[1,32], index: 2, kind: input, shape index: {}]   ;;  %s588_s3 = inlined_call_operand.vmem [shape: f32[1,32], index: 3, kind: input, shape index: {}]   ;;  %s589_s4 = inlined_call_operand.vmem [shape: bf16[32,32], index: 4, kind: output, shape index: {}]  }
   0x1   :  { %v440_v0 = vld [vmem:[%s585_s1 + $0x78] sm:$0xff]   ;;  %v442_v2 = vld [vmem:[%s585_s1 + $0x70] sm:$0xff]   ;;  %v444_v4 = vld [vmem:[%s585_s1 + $0x68] sm:$0xff]  }
   0x2   :  { %v441_v1 = vld [vmem:[%s585_s1 + $0x38] sm:$0xff]   ;;  %400 = vmatprep.subr.bf16.mxu0 %v440_v0  ;;  %v443_v3 = vld [vmem:[%s585_s1 + $0x30] sm:$0xff]   ;;  %v445_v5 = vld [vmem:[%s585_s1 + $0x28] sm:$0xff]  }
   0x3   :  { %401 = vmatpush3.bf16.msra.mxu0 %v441_v1  ;;  %v446_v6 = vld [vmem:[%s585_s1 + $0x60] sm:$0xff]   ;;  %v448_v8 = vld [vmem:[%s585_s1 + $0x58] sm:$0xff]   ;;  %v454_v9 = vld [vmem:[%s585_s1 + $0x88] sm:$0xff]  }
   0x4   :  { %402 = vmatprep.subr.bf16.mxu0 %v442_v2  ;;  %v447_v7 = vld [vmem:[%s585_s1 + $0x20] sm:$0xff]   ;;  %v449_v10 = vld [vmem:[%s585_s1 + $0x18] sm:$0xff]   ;;  %v450_v11 = vld [vmem:[%s585_s1 + $0x50] sm:$0xff]   ;;  %432 = vmatprep.subr.bf16.mxu1 %v454_v9 }
   0x5   :  { %v451_v12 = vld [vmem:[%s585_s1 + $0x10] sm:$0xff]   ;;  %433 = vmatpush3.bf16.msra.mxu1 %v454_v9  ;;  %v457_v13 = vld [vmem:[%s585_s1 + $0x80] sm:$0xff]   ;;  %v452_v14 = vld [vmem:[%s585_s1 + $0x48] sm:$0xff]  }
   0x6   :  { %434 = vmatprep.subr.bf16.mxu1 %v457_v13  ;;  %v460_v15 = vld [vmem:[%s586_s0 + $0x4] ss:$12 sps:$4 sm:$0xff]   ;;  %v461_v16 = vld [vmem:[%s586_s0 + $0x8] ss:$12 sps:$4 sm:$0xff]   ;;  %v462_v17 = vld [vmem:[%s586_s0 + $0x20] ss:$12 sps:$4 sm:$0xff]  }
   0x7   :  { %403 = vmatpush3.bf16.msra.mxu0 %v443_v3  ;;  %239 = vmatprep.mubr.bf16.mxu0 %v460_v15  ;;  %v453_v18 = vld [vmem:[%s585_s1 + $0x8] sm:$0xff]   ;;  %v455_v19 = vld [vmem:[%s585_s1 + $0x40] sm:$0xff]  }
   0x8   :  { %404 = vmatprep.subr.bf16.mxu0 %v444_v4  ;;  %436 = vmatprep.mubr.msk.bf16.mxu1 %vm200_vm0, %v461_v16  ;;  %v456_v20 = vld [vmem:[%s585_s1] sm:$0xff]   ;;  %v463_v22 = vld [vmem:[%s586_s0 + $0x1c] ss:$12 sps:$4 sm:$0xff]  }
   0x9   :  { %435 = vmatpush3.bf16.msra.mxu1 %v457_v13  ;;  %v458_v21 = vld [vmem:[%s586_s0] ss:$12 sps:$4 sm:$0xff]   ;;  %v465_v23 = vld [vmem:[%s586_s0 + $0x18] ss:$12 sps:$4 sm:$0xff]  }
   0xa   :  { %v390_v31 = vld [vmem:[%s587_s2] ss:$0 sm:$0xff] }
   0xb   :  { %405 = vmatpush3.bf16.msra.mxu0 %v445_v5  ;;  %v391_v33 = vld [vmem:[%s588_s3] ss:$0 sm:$0xff] }
   0xc   :  { %406 = vmatprep.subr.bf16.mxu0 %v446_v6  ;;  %437 = vmatmul.mubr.msk.bf16.vlgmr.msra.gmra.mxu1 %vm200_vm0, %v462_v17 }
   0xf   :  { %407 = vmatpush3.bf16.msra.mxu0 %v447_v7 }
  0x10   :  { %408 = vmatprep.subr.bf16.mxu0 %v448_v8 }
  0x13   :  { %409 = vmatpush3.bf16.msra.mxu0 %v449_v10 }
  0x14   :  { %410 = vmatprep.subr.bf16.mxu0 %v450_v11 }
  0x17   :  { %411 = vmatpush3.bf16.msra.mxu0 %v451_v12 }
  0x18   :  { %412 = vmatprep.subr.bf16.mxu0 %v452_v14 }
  0x1b   :  { %413 = vmatpush3.bf16.msra.mxu0 %v453_v18 }
  0x1c   :  { %414 = vmatprep.subr.bf16.mxu0 %v455_v19 }
  0x1f   :  { %415 = vmatpush3.bf16.msra.mxu0 %v456_v20 }
  0x22   :  { %240 = vmatmul.mubr.bf16.vlgmr.msra.gmra.mxu0 %v458_v21 }
  0x23   :  { %247 = vmatprep.mubr.bf16.mxu0 %v463_v22 }
  0x2a   :  { %248 = vmatmul.mubr.bf16.gmra.mxu0 %v465_v23 }
  0xcc   :  { %v438_v24 = vpop.f32.mrf.mxu1 }
  0xce   :  { %v290_v25 = vpop.f32.mrf.mxu1 }
  0xd0   :  { %v439_v28 = vpop.f32.mrf.mxu1 }
  0xd2   :  { %v293_v35 = vpop.f32.mrf.mxu1 }
  0xe2   :  { %v416_v26 = vpop.f32.mrf.mxu0 }
  0xe4   :  { %v417_v27 = vpop.f32.mrf.mxu0 }
  0xe5   :  { %v418_v29 = vadd.f32 %v417_v27, %v416_v26 }
  0xe6   :  { %v419_v30 = vpop.f32.mrf.mxu0 }
  0xe7   :  { %v291_v32 = vadd.f32 %v418_v29, %v290_v25 }
  0xe8   :  { %v420_v34 = vpop.f32.mrf.mxu0 }
  0xe9   :  { %v312_v36 = vmul.f32 %v390_v31, %v291_v32  ;;  %v421_v37 = vadd.f32 %v420_v34, %v419_v30 }
  0xea   :  { %v422_v38 = vpop.f32.mrf.mxu0 }
  0xeb   :  { %v323_v39 = vadd.f32 %v391_v33, %v312_v36  ;;  %v294_v40 = vadd.f32 %v421_v37, %v293_v35 }
  0xec   :  { %v423_v41 = vpop.f32.mrf.mxu0 }
  0xed   :  { %vm327_vm1 = vcmp.gt.f32.partialorder %v323_v39, 0.0  ;;  %v331_v42 = vmul.f32 0.25, %v323_v39  ;;  %v313_v43 = vmul.f32 %v390_v31, %v294_v40  ;;  %v424_v44 = vadd.f32 %v423_v41, %v422_v38 }
  0xee   :  { %v425_v45 = vpop.f32.mrf.mxu0 }
  0xef   :  { %v335_v46 = vsel %vm327_vm1, %v323_v39, %v331_v42  ;;  %v324_v47 = vadd.f32 %v391_v33, %v313_v43  ;;  %v299_v48 = vadd.f32 %v438_v24, %v424_v44 }
  0xf0   :  { %v396_v49 = vpack.c.bf16 %v335_v46, %v335_v46  ;;  %v426_v50 = vpop.f32.mrf.mxu0 }
  0xf1   :  { %vm328_vm3 = vcmp.gt.f32.partialorder %v324_v47, 0.0  ;;  %v332_v51 = vmul.f32 0.25, %v324_v47  ;;  %v314_v52 = vmul.f32 %v390_v31, %v299_v48  ;;  %v427_v53 = vadd.f32 %v426_v50, %v425_v45 }
  0xf2   :  { %356 = vst.msk [vmem:[%s589_s4] sm:$0xf] %vm355_vm2, %v396_v49 }
  0xf3   :  { %v336_v54 = vsel %vm328_vm3, %v324_v47, %v332_v51  ;;  %v325_v55 = vadd.f32 %v391_v33, %v314_v52  ;;  %v302_v56 = vadd.f32 %v439_v28, %v427_v53 }
  0xf4   :  { %v397_v57 = vpack.c.bf16 %v336_v54, %v336_v54 }
  0xf5   :  { %vm329_vm4 = vcmp.gt.f32.partialorder %v325_v55, 0.0  ;;  %v333_v58 = vmul.f32 0.25, %v325_v55  ;;  %v315_v59 = vmul.f32 %v390_v31, %v302_v56 }
  0xf6   :  { %357 = vst.msk [vmem:[%s589_s4 + $0x4] sm:$0xf] %vm355_vm2, %v397_v57 }
  0xf7   :  { %v337_v60 = vsel %vm329_vm4, %v325_v55, %v333_v58  ;;  %v326_v61 = vadd.f32 %v391_v33, %v315_v59 }
  0xf8   :  { %v398_v62 = vpack.c.bf16 %v337_v60, %v337_v60 }
  0xf9   :  { %vm330_vm5 = vcmp.gt.f32.partialorder %v326_v61, 0.0  ;;  %v334_v63 = vmul.f32 0.25, %v326_v61 }
  0xfa   :  { %358 = vst.msk [vmem:[%s589_s4 + $0x8] sm:$0xf] %vm355_vm2, %v398_v62 }
  0xfb   :  { %v338_v0 = vsel %vm330_vm5, %v326_v61, %v334_v63 }
  0xfc   :  { %v399_v1 = vpack.c.bf16 %v338_v0, %v338_v0 }
  0xfe   :  { %359 = vst.msk [vmem:[%s589_s4 + $0xc] sm:$0xf] %vm355_vm2, %v399_v1 }

// kernel: _lambda_.115
= control target key start
LH: loop header
LB: loop body
LE: loop exit
PB: predicated region body
PF: predicated region fallthrough
CT: control target
= control target key end

     0   :  { %v298_v0 = vmov 0   ;;  %vm120_vm0 = vcmask 261120   ;;  %vm226_vm3 = vcmask 257024   ;;  %s388_s1 = inlined_call_operand.vmem [shape: bf16[160,32], index: 1, kind: input, shape index: {}]   ;;  %s389_s0 = inlined_call_operand.vmem [shape: bf16[32,160], index: 0, kind: input, shape index: {}]   ;;  %s390_s2 = inlined_call_operand.vmem [shape: f32[1,32], index: 2, kind: input, shape index: {}]   ;;  %s391_s3 = inlined_call_operand.vmem [shape: f32[1,32], index: 3, kind: input, shape index: {}]   ;;  %s392_s4 = inlined_call_operand.vmem [shape: bf16[32,32], index: 4, kind: output, shape index: {}]  }
   0x1   :  { %127 = vmatprep.subr.bf16.mxu0 %v298_v0  ;;  %261 = vmatprep.subr.bf16.mxu1 %v298_v0  ;;  %v282_v1 = vld [vmem:[%s388_s1 + $0x38] sm:$0xff]   ;;  %v283_v2 = vld [vmem:[%s388_s1 + $0x30] sm:$0xff]   ;;  %v284_v3 = vld [vmem:[%s388_s1 + $0x28] sm:$0xff]  }
   0x2   :  { %128 = vmatpush1.bf16.msra.mxu0 %v282_v1  ;;  %271 = vmatpush1.bf16.msra.mxu1 %v282_v1  ;;  %v285_v4 = vld [vmem:[%s388_s1 + $0x20] sm:$0xff]   ;;  %v297_v6 = vld [vmem:[%s389_s0 + $0x14] ss:$8 sps:$4 sm:$0xff]   ;;  %v288_v9 = vld [vmem:[%s388_s1 + $0x8] sm:$0xff]  }
   0x3   :  { %129 = vmatprep.subr.bf16.mxu0 %v298_v0  ;;  %262 = vmatprep.subr.bf16.mxu1 %v298_v0  ;;  %v294_v5 = vld [vmem:[%s389_s0 + $0x4] ss:$8 sps:$4 sm:$0xff]   ;;  %v286_v7 = vld [vmem:[%s388_s1 + $0x18] sm:$0xff]   ;;  %v287_v8 = vld [vmem:[%s388_s1 + $0x10] sm:$0xff]  }
   0x4   :  { %249 = vmatprep.mubr.msk.bf16.mxu0 %vm120_vm0, %v294_v5  ;;  %250 = vmatprep.mubr.msk.bf16.mxu1 %vm120_vm0, %v297_v6  ;;  %v289_v10 = vld [vmem:[%s388_s1] sm:$0xff]   ;;  %v290_v11 = vld [vmem:[%s388_s1 + $0x48] sm:$0xff]   ;;  %v295_v14 = vld [vmem:[%s389_s0 + $0x10] ss:$8 sps:$4 sm:$0xff]  }
   0x5   :  { %v291_v12 = vld [vmem:[%s388_s1 + $0x40] sm:$0xff]  }
   0x6   :  { %130 = vmatpush1.bf16.msra.mxu0 %v283_v2  ;;  %272 = vmatpush1.bf16.msra.mxu1 %v283_v2  ;;  %v292_v13 = vld [vmem:[%s389_s0] ss:$8 sps:$4 sm:$0xff]  }
   0x7   :  { %131 = vmatprep.subr.bf16.mxu0 %v298_v0  ;;  %263 = vmatprep.subr.bf16.mxu1 %v298_v0  ;;  %v251_v15 = vld [vmem:[%s390_s2] ss:$0 sm:$0xff] }
   0x8   :  { %v252_v17 = vld [vmem:[%s391_s3] ss:$0 sm:$0xff] }
   0xa   :  { %132 = vmatpush1.bf16.msra.mxu0 %v284_v3  ;;  %273 = vmatpush1.bf16.msra.mxu1 %v284_v3 }
   0xb   :  { %133 = vmatprep.subr.bf16.mxu0 %v298_v0  ;;  %264 = vmatprep.subr.bf16.mxu1 %v298_v0 }
   0xe   :  { %134 = vmatpush1.bf16.msra.mxu0 %v285_v4  ;;  %274 = vmatpush1.bf16.msra.mxu1 %v285_v4 }
   0xf   :  { %135 = vmatprep.subr.bf16.mxu0 %v298_v0  ;;  %265 = vmatprep.subr.bf16.mxu1 %v298_v0 }
  0x12   :  { %136 = vmatpush1.bf16.msra.mxu0 %v286_v7  ;;  %275 = vmatpush1.bf16.msra.mxu1 %v286_v7 }
  0x13   :  { %137 = vmatprep.subr.bf16.mxu0 %v298_v0  ;;  %266 = vmatprep.subr.bf16.mxu1 %v298_v0 }
  0x16   :  { %138 = vmatpush1.bf16.msra.mxu0 %v287_v8  ;;  %276 = vmatpush1.bf16.msra.mxu1 %v287_v8 }
  0x17   :  { %139 = vmatprep.subr.bf16.mxu0 %v298_v0  ;;  %267 = vmatprep.subr.bf16.mxu1 %v298_v0 }
  0x1a   :  { %140 = vmatpush1.bf16.msra.mxu0 %v288_v9  ;;  %277 = vmatpush1.bf16.msra.mxu1 %v288_v9 }
  0x1b   :  { %141 = vmatprep.subr.bf16.mxu0 %v298_v0  ;;  %268 = vmatprep.subr.bf16.mxu1 %v298_v0 }
  0x1e   :  { %142 = vmatpush1.bf16.msra.mxu0 %v289_v10  ;;  %278 = vmatpush1.bf16.msra.mxu1 %v289_v10 }
  0x1f   :  { %155 = vmatprep.subr.bf16.mxu0 %v298_v0  ;;  %269 = vmatprep.subr.bf16.mxu1 %v298_v0 }
  0x22   :  { %156 = vmatpush2.bf16.msra.mxu0 %v290_v11  ;;  %279 = vmatpush2.bf16.msra.mxu1 %v290_v11 }
  0x23   :  { %157 = vmatprep.subr.bf16.mxu0 %v298_v0  ;;  %270 = vmatprep.subr.bf16.mxu1 %v298_v0 }
  0x26   :  { %158 = vmatpush2.bf16.msra.mxu0 %v291_v12  ;;  %280 = vmatpush2.bf16.msra.mxu1 %v291_v12 }
  0x29   :  { %160 = vmatmul.mubr.bf16.vlgmr.msra.gmra.mxu0 %v292_v13  ;;  %168 = vmatmul.mubr.bf16.vlgmr.msra.gmra.mxu1 %v295_v14 }
  0xe9   :  { %v161_v16 = vpop.f32.mrf.mxu0  ;;  %v169_v18 = vpop.f32.mrf.mxu1 }
  0xea   :  { %v183_v19 = vmul.f32 %v251_v15, %v161_v16  ;;  %v185_v20 = vmul.f32 %v251_v15, %v169_v18 }
  0xeb   :  { %v163_v21 = vpop.f32.mrf.mxu0  ;;  %v171_v22 = vpop.f32.mrf.mxu1 }
  0xec   :  { %v194_v23 = vadd.f32 %v252_v17, %v183_v19  ;;  %v196_v24 = vadd.f32 %v252_v17, %v185_v20 }
  0xed   :  { %v164_v25 = vpop.f32.mrf.mxu0  ;;  %v172_v26 = vpop.f32.mrf.mxu1 }
  0xee   :  { %vm198_vm1 = vcmp.gt.f32.partialorder %v194_v23, 0.0  ;;  %v202_v27 = vmul.f32 0.25, %v194_v23  ;;  %vm200_vm2 = vcmp.gt.f32.partialorder %v196_v24, 0.0  ;;  %v204_v28 = vmul.f32 0.25, %v196_v24 }
  0xef   :  { %v184_v29 = vmul.f32 %v251_v15, %v164_v25  ;;  %v186_v30 = vmul.f32 %v251_v15, %v172_v26  ;;  %v166_v31 = vpop.f32.mrf.mxu0  ;;  %v174_v32 = vpop.f32.mrf.mxu1 }
  0xf0   :  { %v206_v33 = vsel %vm198_vm1, %v194_v23, %v202_v27  ;;  %v208_v34 = vsel %vm200_vm2, %v196_v24, %v204_v28 }
  0xf1   :  { %v257_v35 = vpack.c.bf16 %v206_v33, %v206_v33  ;;  %v259_v36 = vpack.c.bf16 %v208_v34, %v208_v34  ;;  %v195_v37 = vadd.f32 %v252_v17, %v184_v29  ;;  %v197_v38 = vadd.f32 %v252_v17, %v186_v30 }
  0xf3   :  { %227 = vst.msk [vmem:[%s392_s4] sm:$0xf] %vm226_vm3, %v257_v35  ;;  %229 = vst.msk [vmem:[%s392_s4 + $0x8] sm:$0xf] %vm226_vm3, %v259_v36  ;;  %vm199_vm4 = vcmp.gt.f32.partialorder %v195_v37, 0.0  ;;  %v203_v39 = vmul.f32 0.25, %v195_v37 }
  0xf4   :  { %vm201_vm5 = vcmp.gt.f32.partialorder %v197_v38, 0.0  ;;  %v205_v40 = vmul.f32 0.25, %v197_v38 }
  0xf5   :  { %v207_v41 = vsel %vm199_vm4, %v195_v37, %v203_v39 }
  0xf6   :  { %v209_v42 = vsel %vm201_vm5, %v197_v38, %v205_v40  ;;  %v258_v43 = vpack.c.bf16 %v207_v41, %v207_v41 }
  0xf7   :  { %v260_v44 = vpack.c.bf16 %v209_v42, %v209_v42 }
  0xf8   :  { %228 = vst.msk [vmem:[%s392_s4 + $0x4] sm:$0xf] %vm226_vm3, %v258_v43 }
  0xf9   :  { %230 = vst.msk [vmem:[%s392_s4 + $0xc] sm:$0xf] %vm226_vm3, %v260_v44 }

// kernel: _lambda_.160
= control target key start
LH: loop header
LB: loop body
LE: loop exit
PB: predicated region body
PF: predicated region fallthrough
CT: control target
= control target key end

     0   :  { %vm185_vm0 = vcmask 519168   ;;  %s327_s1 = inlined_call_operand.vmem [shape: bf16[128,64], index: 1, kind: input, shape index: {}]   ;;  %s328_s0 = inlined_call_operand.vmem [shape: bf16[32,128], index: 0, kind: input, shape index: {}]   ;;  %s329_s2 = inlined_call_operand.vmem [shape: f32[1,64], index: 2, kind: input, shape index: {}]   ;;  %s330_s3 = inlined_call_operand.vmem [shape: f32[1,64], index: 3, kind: input, shape index: {}]   ;;  %s331_s4 = inlined_call_operand.vmem [shape: bf16[32,64], index: 4, kind: output, shape index: {}]  }
   0x1   :  { %v244_v0 = vld [vmem:[%s327_s1 + $0x38] sm:$0xff]   ;;  %v245_v1 = vld [vmem:[%s327_s1 + $0x30] sm:$0xff]   ;;  %v246_v2 = vld [vmem:[%s327_s1 + $0x28] sm:$0xff]  }
   0x2   :  { %224 = vmatprep.subr.bf16.mxu0 %v244_v0  ;;  %v247_v3 = vld [vmem:[%s327_s1 + $0x20] sm:$0xff]   ;;  %v248_v5 = vld [vmem:[%s327_s1 + $0x18] sm:$0xff]   ;;  %v249_v6 = vld [vmem:[%s327_s1 + $0x10] sm:$0xff]  }
   0x3   :  { %225 = vmatpush3.bf16.msra.mxu0 %v244_v0  ;;  %v252_v4 = vld [vmem:[%s328_s0] sm:$0xff]   ;;  %v250_v7 = vld [vmem:[%s327_s1 + $0x8] sm:$0xff]  }
   0x4   :  { %226 = vmatprep.subr.bf16.mxu0 %v245_v1  ;;  %240 = vmatprep.mubr.bf16.mxu0 %v252_v4  ;;  %v251_v8 = vld [vmem:[%s327_s1] sm:$0xff]   ;;  %v253_v9 = vld [vmem:[%s328_s0 + $0x8] sm:$0xff]  }
   0x5   :  { %v204_v10 = vld [vmem:[%s329_s2] ss:$0 sm:$0xff] }
   0x6   :  { %v205_v12 = vld [vmem:[%s330_s3] ss:$0 sm:$0xff] }
   0x7   :  { %227 = vmatpush3.bf16.msra.mxu0 %v245_v1 }
   0x8   :  { %228 = vmatprep.subr.bf16.mxu0 %v246_v2 }
   0xb   :  { %229 = vmatpush3.bf16.msra.mxu0 %v246_v2 }
   0xc   :  { %230 = vmatprep.subr.bf16.mxu0 %v247_v3 }
   0xf   :  { %231 = vmatpush3.bf16.msra.mxu0 %v247_v3 }
  0x10   :  { %232 = vmatprep.subr.bf16.mxu0 %v248_v5 }
  0x13   :  { %233 = vmatpush3.bf16.msra.mxu0 %v248_v5 }
  0x14   :  { %234 = vmatprep.subr.bf16.mxu0 %v249_v6 }
  0x17   :  { %235 = vmatpush3.bf16.msra.mxu0 %v249_v6 }
  0x18   :  { %236 = vmatprep.subr.bf16.mxu0 %v250_v7 }
  0x1b   :  { %237 = vmatpush3.bf16.msra.mxu0 %v250_v7 }
  0x1c   :  { %238 = vmatprep.subr.bf16.mxu0 %v251_v8 }
  0x1f   :  { %239 = vmatpush3.bf16.msra.mxu0 %v251_v8 }
  0x22   :  { %241 = vmatmul.mubr.bf16.vlgmr.msra.gmra.mxu0 %v253_v9 }
  0xe2   :  { %v242_v11 = vpop.f32.mrf.mxu0 }
  0xe3   :  { %v156_v13 = vmul.f32 %v242_v11, %v204_v10 }
  0xe4   :  { %v132_v14 = vpop.f32.mrf.mxu0 }
  0xe5   :  { %v167_v15 = vadd.f32 %v205_v12, %v156_v13  ;;  %v154_v16 = vmul.f32 %v204_v10, %v132_v14 }
  0xe6   :  { %v243_v17 = vpop.f32.mrf.mxu0 }
  0xe7   :  { %v212_v18 = vpack.c.bf16 %v167_v15, %v167_v15  ;;  %v165_v19 = vadd.f32 %v205_v12, %v154_v16  ;;  %v157_v20 = vmul.f32 %v243_v17, %v204_v10 }
  0xe8   :  { %v135_v21 = vpop.f32.mrf.mxu0 }
  0xe9   :  { %188 = vst.msk [vmem:[%s331_s4 + $0x8] sm:$0xf] %vm185_vm0, %v212_v18  ;;  %v210_v22 = vpack.c.bf16 %v165_v19, %v165_v19  ;;  %v168_v23 = vadd.f32 %v205_v12, %v157_v20  ;;  %v155_v24 = vmul.f32 %v204_v10, %v135_v21 }
  0xeb   :  { %186 = vst.msk [vmem:[%s331_s4] sm:$0xf] %vm185_vm0, %v210_v22  ;;  %v213_v25 = vpack.c.bf16 %v168_v23, %v168_v23  ;;  %v166_v26 = vadd.f32 %v205_v12, %v155_v24 }
  0xed   :  { %189 = vst.msk [vmem:[%s331_s4 + $0xc] sm:$0xf] %vm185_vm0, %v213_v25  ;;  %v211_v27 = vpack.c.bf16 %v166_v26, %v166_v26 }
  0xef   :  { %187 = vst.msk [vmem:[%s331_s4 + $0x4] sm:$0xf] %vm185_vm0, %v211_v27 }

// kernel: _lambda_.161
= control target key start
LH: loop header
LB: loop body
LE: loop exit
PB: predicated region body
PF: predicated region fallthrough
CT: control target
= control target key end

     0   :  { %vm189_vm0 = vcmask 257024   ;;  %s331_s1 = inlined_call_operand.vmem [shape: bf16[128,32], index: 1, kind: input, shape index: {}]   ;;  %s332_s0 = inlined_call_operand.vmem [shape: bf16[32,128], index: 0, kind: input, shape index: {}]   ;;  %s333_s2 = inlined_call_operand.vmem [shape: f32[1,32], index: 2, kind: input, shape index: {}]   ;;  %s334_s3 = inlined_call_operand.vmem [shape: f32[1,32], index: 3, kind: input, shape index: {}]   ;;  %s335_s4 = inlined_call_operand.vmem [shape: bf16[32,32], index: 4, kind: output, shape index: {}]  }
   0x1   :  { %v248_v0 = vld [vmem:[%s331_s1 + $0x38] sm:$0xff]   ;;  %v249_v1 = vld [vmem:[%s331_s1 + $0x30] sm:$0xff]   ;;  %v250_v2 = vld [vmem:[%s331_s1 + $0x28] sm:$0xff]  }
   0x2   :  { %228 = vmatprep.subr.bf16.mxu0 %v248_v0  ;;  %v251_v3 = vld [vmem:[%s331_s1 + $0x20] sm:$0xff]   ;;  %v252_v5 = vld [vmem:[%s331_s1 + $0x18] sm:$0xff]   ;;  %v253_v6 = vld [vmem:[%s331_s1 + $0x10] sm:$0xff]  }
   0x3   :  { %229 = vmatpush3.bf16.msra.mxu0 %v248_v0  ;;  %v256_v4 = vld [vmem:[%s332_s0] sm:$0xff]   ;;  %v254_v7 = vld [vmem:[%s331_s1 + $0x8] sm:$0xff]  }
   0x4   :  { %230 = vmatprep.subr.bf16.mxu0 %v249_v1  ;;  %244 = vmatprep.mubr.bf16.mxu0 %v256_v4  ;;  %v255_v8 = vld [vmem:[%s331_s1] sm:$0xff]   ;;  %v257_v9 = vld [vmem:[%s332_s0 + $0x8] sm:$0xff]  }
   0x5   :  { %v208_v10 = vld [vmem:[%s333_s2] ss:$0 sm:$0xff] }
   0x6   :  { %v209_v12 = vld [vmem:[%s334_s3] ss:$0 sm:$0xff] }
   0x7   :  { %231 = vmatpush3.bf16.msra.mxu0 %v249_v1 }
   0x8   :  { %232 = vmatprep.subr.bf16.mxu0 %v250_v2 }
   0xb   :  { %233 = vmatpush3.bf16.msra.mxu0 %v250_v2 }
   0xc   :  { %234 = vmatprep.subr.bf16.mxu0 %v251_v3 }
   0xf   :  { %235 = vmatpush3.bf16.msra.mxu0 %v251_v3 }
  0x10   :  { %236 = vmatprep.subr.bf16.mxu0 %v252_v5 }
  0x13   :  { %237 = vmatpush3.bf16.msra.mxu0 %v252_v5 }
  0x14   :  { %238 = vmatprep.subr.bf16.mxu0 %v253_v6 }
  0x17   :  { %239 = vmatpush3.bf16.msra.mxu0 %v253_v6 }
  0x18   :  { %240 = vmatprep.subr.bf16.mxu0 %v254_v7 }
  0x1b   :  { %241 = vmatpush3.bf16.msra.mxu0 %v254_v7 }
  0x1c   :  { %242 = vmatprep.subr.bf16.mxu0 %v255_v8 }
  0x1f   :  { %243 = vmatpush3.bf16.msra.mxu0 %v255_v8 }
  0x22   :  { %245 = vmatmul.mubr.bf16.vlgmr.msra.gmra.mxu0 %v257_v9 }
  0xe2   :  { %v246_v11 = vpop.f32.mrf.mxu0 }
  0xe3   :  { %v156_v13 = vmul.f32 %v246_v11, %v208_v10 }
  0xe4   :  { %v132_v14 = vpop.f32.mrf.mxu0 }
  0xe5   :  { %v167_v15 = vadd.f32 %v209_v12, %v156_v13  ;;  %v154_v16 = vmul.f32 %v208_v10, %v132_v14 }
  0xe6   :  { %v247_v17 = vpop.f32.mrf.mxu0 }
  0xe7   :  { %v171_v18 = vmax.f32 %v167_v15, 0.0  ;;  %v165_v19 = vadd.f32 %v209_v12, %v154_v16  ;;  %v157_v20 = vmul.f32 %v247_v17, %v208_v10 }
  0xe8   :  { %v135_v21 = vpop.f32.mrf.mxu0 }
  0xe9   :  { %v216_v22 = vpack.c.bf16 %v171_v18, %v171_v18  ;;  %v169_v23 = vmax.f32 %v165_v19, 0.0  ;;  %v168_v24 = vadd.f32 %v209_v12, %v157_v20  ;;  %v155_v25 = vmul.f32 %v208_v10, %v135_v21 }
  0xeb   :  { %192 = vst.msk [vmem:[%s335_s4 + $0x8] sm:$0xf] %vm189_vm0, %v216_v22  ;;  %v214_v26 = vpack.c.bf16 %v169_v23, %v169_v23  ;;  %v172_v27 = vmax.f32 %v168_v24, 0.0  ;;  %v166_v28 = vadd.f32 %v209_v12, %v155_v25 }
  0xed   :  { %190 = vst.msk [vmem:[%s335_s4] sm:$0xf] %vm189_vm0, %v214_v26  ;;  %v217_v29 = vpack.c.bf16 %v172_v27, %v172_v27  ;;  %v170_v30 = vmax.f32 %v166_v28, 0.0 }
  0xef   :  { %193 = vst.msk [vmem:[%s335_s4 + $0xc] sm:$0xf] %vm189_vm0, %v217_v29  ;;  %v215_v31 = vpack.c.bf16 %v170_v30, %v170_v30 }
  0xf1   :  { %191 = vst.msk [vmem:[%s335_s4 + $0x4] sm:$0xf] %vm189_vm0, %v215_v31 }

// kernel: _lambda_.163
= control target key start
LH: loop header
LB: loop body
LE: loop exit
PB: predicated region body
PF: predicated region fallthrough
CT: control target
= control target key end

     0   :  { %vm93_vm0 = vcmask 261120   ;;  %vm405_vm1 = vcmask 519168   ;;  %s811_s1 = inlined_call_operand.vmem [shape: bf16[32,64], index: 1, kind: input, shape index: {}]   ;;  %s812_s0 = inlined_call_operand.vmem [shape: bf16[128,32], index: 0, kind: input, shape index: {}]   ;;  %s813_s4 = inlined_call_operand.vmem [shape: bf16[128,64], index: 4, kind: input, shape index: {}]   ;;  %s814_s2 = inlined_call_operand.vmem [shape: f32[1,64], index: 2, kind: input, shape index: {}]   ;;  %s815_s3 = inlined_call_operand.vmem [shape: f32[1,64], index: 3, kind: input, shape index: {}]   ;;  %s816_s5 = inlined_call_operand.vmem [shape: bf16[128,64], index: 5, kind: output, shape index: {}]  }
   0x1   :  { %v551_v0 = vld [vmem:[%s811_s1 + $0x8] sm:$0xff]   ;;  %v552_v1 = vld [vmem:[%s811_s1] sm:$0xff]   ;;  %v557_v6 = vld [vmem:[%s812_s0 + $0x10] sm:$0xff]  }
   0x2   :  { %527 = vmatprep.subr.bf16.mxu0 %v551_v0  ;;  %547 = vmatprep.subr.bf16.mxu1 %v551_v0  ;;  %v553_v2 = vld [vmem:[%s812_s0] sm:$0xff]   ;;  %v555_v4 = vld [vmem:[%s812_s0 + $0x8] sm:$0xff]   ;;  %v558_v7 = vld [vmem:[%s812_s0 + $0x30] sm:$0xff]  }
   0x3   :  { %528 = vmatpush3.bf16.msra.mxu0 %v551_v0  ;;  %549 = vmatpush3.bf16.msra.mxu1 %v551_v0  ;;  %v554_v3 = vld [vmem:[%s812_s0 + $0x20] sm:$0xff]   ;;  %v556_v5 = vld [vmem:[%s812_s0 + $0x28] sm:$0xff]   ;;  %v559_v8 = vld [vmem:[%s812_s0 + $0x18] sm:$0xff]  }
   0x4   :  { %529 = vmatprep.subr.bf16.mxu0 %v552_v1  ;;  %548 = vmatprep.subr.bf16.mxu1 %v552_v1  ;;  %v560_v9 = vld [vmem:[%s812_s0 + $0x38] sm:$0xff]   ;;  %v632_v10 = vld [vmem:[%s813_s4 + $0x8] sm:$0xff]   ;;  %v642_v12 = vld [vmem:[%s813_s4] sm:$0xff]  }
   0x5   :  { %531 = vmatprep.mubr.msk.bf16.mxu0 %vm93_vm0, %v553_v2  ;;  %539 = vmatprep.mubr.msk.bf16.mxu1 %vm93_vm0, %v554_v3  ;;  %v637_v11 = vld [vmem:[%s813_s4 + $0x28] sm:$0xff]   ;;  %v647_v13 = vld [vmem:[%s813_s4 + $0x20] sm:$0xff]   ;;  %v657_v15 = vld [vmem:[%s813_s4 + $0x18] sm:$0xff]   ;;  %v484_v19 = vunpack.c.l.bf16 %v632_v10  ;;  %v480_v22 = vunpack.c.l.bf16 %v642_v12  ;;  %v485_v26 = vunpack.c.h.bf16 %v632_v10  ;;  %v481_v32 = vunpack.c.h.bf16 %v642_v12 }
   0x6   :  { %v652_v14 = vld [vmem:[%s814_s2] ss:$0 sm:$0xff]  ;;  %v662_v16 = vld [vmem:[%s813_s4 + $0x38] sm:$0xff]   ;;  %v500_v21 = vunpack.c.l.bf16 %v637_v11  ;;  %v496_v23 = vunpack.c.l.bf16 %v647_v13  ;;  %v501_v27 = vunpack.c.h.bf16 %v637_v11  ;;  %v680_v28 = vld [vmem:[%s813_s4 + $0x10] sm:$0xff]   ;;  %v497_v33 = vunpack.c.h.bf16 %v647_v13 }
   0x7   :  { %530 = vmatpush3.bf16.msra.mxu0 %v552_v1  ;;  %550 = vmatpush3.bf16.msra.mxu1 %v552_v1  ;;  %v667_v18 = vld [vmem:[%s815_s3] ss:$0 sm:$0xff]  ;;  %v685_v29 = vld [vmem:[%s813_s4 + $0x30] sm:$0xff]   ;;  %v492_v34 = vunpack.c.l.bf16 %v657_v15  ;;  %v508_v35 = vunpack.c.l.bf16 %v662_v16  ;;  %v488_v42 = vunpack.c.l.bf16 %v680_v28  ;;  %v493_v44 = vunpack.c.h.bf16 %v657_v15 }
   0x8   :  { %v504_v43 = vunpack.c.l.bf16 %v685_v29  ;;  %v509_v45 = vunpack.c.h.bf16 %v662_v16  ;;  %v489_v54 = vunpack.c.h.bf16 %v680_v28  ;;  %v505_v55 = vunpack.c.h.bf16 %v685_v29 }
   0xa   :  { %532 = vmatmul.mubr.msk.bf16.vlgmr.msra.gmra.mxu0 %vm93_vm0, %v555_v4  ;;  %540 = vmatmul.mubr.msk.bf16.vlgmr.msra.gmra.mxu1 %vm93_vm0, %v556_v5 }
   0xb   :  { %535 = vmatprep.mubr.msk.bf16.mxu0 %vm93_vm0, %v557_v6  ;;  %543 = vmatprep.mubr.msk.bf16.mxu1 %vm93_vm0, %v558_v7 }
  0x12   :  { %536 = vmatmul.mubr.msk.bf16.gmra.mxu0 %vm93_vm0, %v559_v8  ;;  %544 = vmatmul.mubr.msk.bf16.gmra.mxu1 %vm93_vm0, %v560_v9 }
  0xca   :  { %v533_v17 = vpop.f32.mrf.mxu0  ;;  %v541_v20 = vpop.f32.mrf.mxu1 }
  0xcb   :  { %v224_v24 = vmul.f32 %v533_v17, %v652_v14  ;;  %v232_v25 = vmul.f32 %v541_v20, %v652_v14 }
  0xcc   :  { %v152_v30 = vpop.f32.mrf.mxu0  ;;  %v184_v31 = vpop.f32.mrf.mxu1 }
  0xcd   :  { %v247_v36 = vadd.f32 %v667_v18, %v224_v24  ;;  %v255_v37 = vadd.f32 %v667_v18, %v232_v25  ;;  %v222_v38 = vmul.f32 %v652_v14, %v152_v30  ;;  %v230_v39 = vmul.f32 %v652_v14, %v184_v31 }
  0xce   :  { %v534_v40 = vpop.f32.mrf.mxu0  ;;  %v542_v41 = vpop.f32.mrf.mxu1 }
  0xcf   :  { %v263_v46 = vmax.f32 %v247_v36, 0.0  ;;  %v271_v47 = vmax.f32 %v255_v37, 0.0  ;;  %v245_v48 = vadd.f32 %v667_v18, %v222_v38  ;;  %v253_v49 = vadd.f32 %v667_v18, %v230_v39 }
  0xd0   :  { %v225_v50 = vmul.f32 %v534_v40, %v652_v14  ;;  %v233_v51 = vmul.f32 %v542_v41, %v652_v14  ;;  %v155_v52 = vpop.f32.mrf.mxu0  ;;  %v187_v53 = vpop.f32.mrf.mxu1 }
  0xd1   :  { %v311_v56 = vadd.f32 %v484_v19, %v263_v46  ;;  %v319_v57 = vadd.f32 %v500_v21, %v271_v47  ;;  %v261_v58 = vmax.f32 %v245_v48, 0.0  ;;  %v269_v59 = vmax.f32 %v253_v49, 0.0 }
  0xd2   :  { %v248_v60 = vadd.f32 %v667_v18, %v225_v50  ;;  %v256_v61 = vadd.f32 %v667_v18, %v233_v51  ;;  %v223_v62 = vmul.f32 %v652_v14, %v155_v52  ;;  %v231_v63 = vmul.f32 %v652_v14, %v187_v53  ;;  %v537_v0 = vpop.f32.mrf.mxu0  ;;  %v545_v1 = vpop.f32.mrf.mxu1 }
  0xd3   :  { %v327_v2 = vmax.f32 %v311_v56, 0.0  ;;  %v335_v3 = vmax.f32 %v319_v57, 0.0  ;;  %v309_v4 = vadd.f32 %v480_v22, %v261_v58  ;;  %v317_v5 = vadd.f32 %v496_v23, %v269_v59 }
  0xd4   :  { %v264_v6 = vmax.f32 %v248_v60, 0.0  ;;  %v272_v7 = vmax.f32 %v256_v61, 0.0  ;;  %v246_v8 = vadd.f32 %v667_v18, %v223_v62  ;;  %v254_v9 = vadd.f32 %v667_v18, %v231_v63  ;;  %v168_v10 = vpop.f32.mrf.mxu0  ;;  %v200_v11 = vpop.f32.mrf.mxu1 }
  0xd5   :  { %v464_v17 = vpack.c.bf16 %v327_v2, %v327_v2  ;;  %v472_v19 = vpack.c.bf16 %v335_v3, %v335_v3  ;;  %v325_v20 = vmax.f32 %v309_v4, 0.0  ;;  %v333_v21 = vmax.f32 %v317_v5, 0.0 }
  0xd6   :  { %v312_v24 = vadd.f32 %v485_v26, %v264_v6  ;;  %v320_v25 = vadd.f32 %v501_v27, %v272_v7  ;;  %v262_v30 = vmax.f32 %v246_v8, 0.0  ;;  %v270_v31 = vmax.f32 %v254_v9, 0.0  ;;  %v538_v26 = vpop.f32.mrf.mxu0  ;;  %v546_v27 = vpop.f32.mrf.mxu1 }
  0xd7   :  { %408 = vst.msk [vmem:[%s816_s5 + $0x8] sm:$0xf] %vm405_vm1, %v464_v17  ;;  %416 = vst.msk [vmem:[%s816_s5 + $0x28] sm:$0xf] %vm405_vm1, %v472_v19  ;;  %v462_v22 = vpack.c.bf16 %v325_v20, %v325_v20  ;;  %v470_v23 = vpack.c.bf16 %v333_v21, %v333_v21  ;;  %v228_v36 = vmul.f32 %v537_v0, %v652_v14 }
  0xd8   :  { %v236_v37 = vmul.f32 %v545_v1, %v652_v14  ;;  %v328_v38 = vmax.f32 %v312_v24, 0.0  ;;  %v336_v39 = vmax.f32 %v320_v25, 0.0  ;;  %v310_v40 = vadd.f32 %v481_v32, %v262_v30  ;;  %v171_v56 = vpop.f32.mrf.mxu0  ;;  %v203_v57 = vpop.f32.mrf.mxu1 }
  0xd9   :  { %v318_v41 = vadd.f32 %v497_v33, %v270_v31  ;;  %406 = vst.msk [vmem:[%s816_s5] sm:$0xf] %vm405_vm1, %v462_v22  ;;  %414 = vst.msk [vmem:[%s816_s5 + $0x20] sm:$0xf] %vm405_vm1, %v470_v23  ;;  %v251_v46 = vadd.f32 %v667_v18, %v228_v36  ;;  %v226_v12 = vmul.f32 %v652_v14, %v168_v10 }
  0xda   :  { %v259_v47 = vadd.f32 %v667_v18, %v236_v37  ;;  %v234_v32 = vmul.f32 %v652_v14, %v200_v11  ;;  %v465_v13 = vpack.c.bf16 %v328_v38, %v328_v38  ;;  %v473_v33 = vpack.c.bf16 %v336_v39, %v336_v39 }
  0xdb   :  { %v326_v48 = vmax.f32 %v310_v40, 0.0  ;;  %v334_v49 = vmax.f32 %v318_v41, 0.0  ;;  %v267_v50 = vmax.f32 %v251_v46, 0.0  ;;  %v249_v52 = vadd.f32 %v667_v18, %v226_v12 }
  0xdc   :  { %v275_v51 = vmax.f32 %v259_v47, 0.0  ;;  %v257_v53 = vadd.f32 %v667_v18, %v234_v32  ;;  %409 = vst.msk [vmem:[%s816_s5 + $0xc] sm:$0xf] %vm405_vm1, %v465_v13  ;;  %417 = vst.msk [vmem:[%s816_s5 + $0x2c] sm:$0xf] %vm405_vm1, %v473_v33  ;;  %v229_v60 = vmul.f32 %v538_v26, %v652_v14  ;;  %v237_v61 = vmul.f32 %v546_v27, %v652_v14 }
  0xdd   :  { %v463_v58 = vpack.c.bf16 %v326_v48, %v326_v48  ;;  %v471_v59 = vpack.c.bf16 %v334_v49, %v334_v49  ;;  %v315_v62 = vadd.f32 %v492_v34, %v267_v50  ;;  %v265_v0 = vmax.f32 %v249_v52, 0.0 }
  0xde   :  { %v323_v63 = vadd.f32 %v508_v35, %v275_v51  ;;  %v273_v1 = vmax.f32 %v257_v53, 0.0  ;;  %v252_v2 = vadd.f32 %v667_v18, %v229_v60  ;;  %v260_v3 = vadd.f32 %v667_v18, %v237_v61 }
  0xdf   :  { %407 = vst.msk [vmem:[%s816_s5 + $0x4] sm:$0xf] %vm405_vm1, %v463_v58  ;;  %415 = vst.msk [vmem:[%s816_s5 + $0x24] sm:$0xf] %vm405_vm1, %v471_v59  ;;  %v227_v34 = vmul.f32 %v652_v14, %v171_v56  ;;  %v235_v35 = vmul.f32 %v652_v14, %v203_v57  ;;  %v331_v4 = vmax.f32 %v315_v62, 0.0  ;;  %v313_v6 = vadd.f32 %v488_v42, %v265_v0 }
  0xe0   :  { %v339_v5 = vmax.f32 %v323_v63, 0.0  ;;  %v321_v7 = vadd.f32 %v504_v43, %v273_v1  ;;  %v268_v8 = vmax.f32 %v252_v2, 0.0  ;;  %v276_v9 = vmax.f32 %v260_v3, 0.0 }
  0xe1   :  { %v250_v10 = vadd.f32 %v667_v18, %v227_v34  ;;  %v258_v11 = vadd.f32 %v667_v18, %v235_v35  ;;  %v468_v17 = vpack.c.bf16 %v331_v4, %v331_v4  ;;  %v329_v20 = vmax.f32 %v313_v6, 0.0 }
  0xe2   :  { %v476_v19 = vpack.c.bf16 %v339_v5, %v339_v5  ;;  %v337_v21 = vmax.f32 %v321_v7, 0.0  ;;  %v316_v14 = vadd.f32 %v493_v44, %v268_v8  ;;  %v324_v24 = vadd.f32 %v509_v45, %v276_v9 }
  0xe3   :  { %v266_v42 = vmax.f32 %v250_v10, 0.0  ;;  %v274_v25 = vmax.f32 %v258_v11, 0.0  ;;  %412 = vst.msk [vmem:[%s816_s5 + $0x18] sm:$0xf] %vm405_vm1, %v468_v17  ;;  %v466_v18 = vpack.c.bf16 %v329_v20, %v329_v20 }
  0xe4   :  { %420 = vst.msk [vmem:[%s816_s5 + $0x38] sm:$0xf] %vm405_vm1, %v476_v19  ;;  %v474_v43 = vpack.c.bf16 %v337_v21, %v337_v21  ;;  %v332_v30 = vmax.f32 %v316_v14, 0.0  ;;  %v340_v15 = vmax.f32 %v324_v24, 0.0 }
  0xe5   :  { %v314_v16 = vadd.f32 %v489_v54, %v266_v42  ;;  %v322_v44 = vadd.f32 %v505_v55, %v274_v25  ;;  %410 = vst.msk [vmem:[%s816_s5 + $0x10] sm:$0xf] %vm405_vm1, %v466_v18 }
  0xe6   :  { %418 = vst.msk [vmem:[%s816_s5 + $0x30] sm:$0xf] %vm405_vm1, %v474_v43  ;;  %v469_v45 = vpack.c.bf16 %v332_v30, %v332_v30  ;;  %v477_v31 = vpack.c.bf16 %v340_v15, %v340_v15 }
  0xe7   :  { %v330_v22 = vmax.f32 %v314_v16, 0.0  ;;  %v338_v23 = vmax.f32 %v322_v44, 0.0 }
  0xe8   :  { %413 = vst.msk [vmem:[%s816_s5 + $0x1c] sm:$0xf] %vm405_vm1, %v469_v45  ;;  %421 = vst.msk [vmem:[%s816_s5 + $0x3c] sm:$0xf] %vm405_vm1, %v477_v31 }
  0xe9   :  { %v467_v28 = vpack.c.bf16 %v330_v22, %v330_v22  ;;  %v475_v29 = vpack.c.bf16 %v338_v23, %v338_v23 }
  0xeb   :  { %411 = vst.msk [vmem:[%s816_s5 + $0x14] sm:$0xf] %vm405_vm1, %v467_v28  ;;  %419 = vst.msk [vmem:[%s816_s5 + $0x34] sm:$0xf] %vm405_vm1, %v475_v29 }

// kernel: _lambda_.162
= control target key start
LH: loop header
LB: loop body
LE: loop exit
PB: predicated region body
PF: predicated region fallthrough
CT: control target
= control target key end

     0   :  { %vm314_vm0 = vcmask 261120   ;;  %vm659_vm1 = vcmask 257024   ;;  %s1213_s1 = inlined_call_operand.vmem [shape: bf16[288,32], index: 1, kind: input, shape index: {}]   ;;  %s1214_s0 = inlined_call_operand.vmem [shape: bf16[128,288], index: 0, kind: input, shape index: {}]   ;;  %s1215_s2 = inlined_call_operand.vmem [shape: f32[1,32], index: 2, kind: input, shape index: {}]   ;;  %s1216_s3 = inlined_call_operand.vmem [shape: f32[1,32], index: 3, kind: input, shape index: {}]   ;;  %s1217_s4 = inlined_call_operand.vmem [shape: bf16[128,32], index: 4, kind: output, shape index: {}]  }
   0x1   :  { %v874_v0 = vld [vmem:[%s1213_s1 + $0x78] sm:$0xff]   ;;  %v876_v2 = vld [vmem:[%s1213_s1 + $0x70] sm:$0xff]   ;;  %v878_v4 = vld [vmem:[%s1213_s1 + $0x68] sm:$0xff]  }
   0x2   :  { %v875_v1 = vld [vmem:[%s1213_s1 + $0x38] sm:$0xff]   ;;  %764 = vmatprep.subr.bf16.mxu0 %v874_v0  ;;  %858 = vmatprep.subr.bf16.mxu1 %v874_v0  ;;  %v877_v3 = vld [vmem:[%s1213_s1 + $0x30] sm:$0xff]   ;;  %v879_v5 = vld [vmem:[%s1213_s1 + $0x28] sm:$0xff]  }
   0x3   :  { %765 = vmatpush3.bf16.msra.mxu0 %v875_v1  ;;  %866 = vmatpush3.bf16.msra.mxu1 %v875_v1  ;;  %v880_v6 = vld [vmem:[%s1213_s1 + $0x60] sm:$0xff]   ;;  %v882_v8 = vld [vmem:[%s1213_s1 + $0x58] sm:$0xff]   ;;  %v884_v10 = vld [vmem:[%s1213_s1 + $0x50] sm:$0xff]  }
   0x4   :  { %766 = vmatprep.subr.bf16.mxu0 %v876_v2  ;;  %859 = vmatprep.subr.bf16.mxu1 %v876_v2  ;;  %v881_v7 = vld [vmem:[%s1213_s1 + $0x20] sm:$0xff]   ;;  %v883_v9 = vld [vmem:[%s1213_s1 + $0x18] sm:$0xff]   ;;  %v885_v13 = vld [vmem:[%s1213_s1 + $0x10] sm:$0xff]  }
   0x5   :  { %v892_v11 = vld [vmem:[%s1214_s0 + $0x4] ss:$12 sps:$4 sm:$0xff]   ;;  %v895_v12 = vld [vmem:[%s1214_s0 + $0x94] ss:$12 sps:$4 sm:$0xff]   ;;  %v886_v14 = vld [vmem:[%s1213_s1 + $0x48] sm:$0xff]  }
   0x6   :  { %371 = vmatprep.mubr.bf16.mxu0 %v892_v11  ;;  %419 = vmatprep.mubr.bf16.mxu1 %v895_v12  ;;  %v887_v15 = vld [vmem:[%s1213_s1 + $0x8] sm:$0xff]   ;;  %v888_v16 = vld [vmem:[%s1213_s1 + $0x40] sm:$0xff]   ;;  %v893_v20 = vld [vmem:[%s1214_s0 + $0x90] ss:$12 sps:$4 sm:$0xff]  }
   0x7   :  { %767 = vmatpush3.bf16.msra.mxu0 %v877_v3  ;;  %867 = vmatpush3.bf16.msra.mxu1 %v877_v3  ;;  %v889_v17 = vld [vmem:[%s1213_s1] sm:$0xff]   ;;  %v896_v19 = vld [vmem:[%s1213_s1 + $0x88] sm:$0xff]   ;;  %v907_v28 = vld [vmem:[%s1214_s0 + $0x30] ss:$12 sps:$4 sm:$0xff]  }
   0x8   :  { %768 = vmatprep.subr.bf16.mxu0 %v878_v4  ;;  %860 = vmatprep.subr.bf16.mxu1 %v878_v4  ;;  %v890_v18 = vld [vmem:[%s1214_s0] ss:$12 sps:$4 sm:$0xff]   ;;  %v897_v21 = vld [vmem:[%s1214_s0 + $0x1c] ss:$12 sps:$4 sm:$0xff]   ;;  %v901_v24 = vld [vmem:[%s1214_s0 + $0x18] ss:$12 sps:$4 sm:$0xff]  }
   0x9   :  { %v899_v22 = vld [vmem:[%s1214_s0 + $0xac] ss:$12 sps:$4 sm:$0xff]   ;;  %v903_v23 = vld [vmem:[%s1213_s1 + $0x80] sm:$0xff]   ;;  %v902_v25 = vld [vmem:[%s1214_s0 + $0xa8] ss:$12 sps:$4 sm:$0xff]  }
   0xa   :  { %v904_v26 = vld [vmem:[%s1214_s0 + $0x34] ss:$12 sps:$4 sm:$0xff]   ;;  %v909_v30 = vld [vmem:[%s1214_s0 + $0x4c] ss:$12 sps:$4 sm:$0xff]   ;;  %v913_v33 = vld [vmem:[%s1214_s0 + $0x50] ss:$12 sps:$4 sm:$0xff]  }
   0xb   :  { %769 = vmatpush3.bf16.msra.mxu0 %v879_v5  ;;  %868 = vmatpush3.bf16.msra.mxu1 %v879_v5  ;;  %v906_v27 = vld [vmem:[%s1214_s0 + $0x8] ss:$12 sps:$4 sm:$0xff]   ;;  %v908_v29 = vld [vmem:[%s1214_s0 + $0x20] ss:$12 sps:$4 sm:$0xff]   ;;  %v911_v31 = vld [vmem:[%s1214_s0 + $0x38] ss:$12 sps:$4 sm:$0xff]  }
   0xc   :  { %770 = vmatprep.subr.bf16.mxu0 %v880_v6  ;;  %861 = vmatprep.subr.bf16.mxu1 %v880_v6  ;;  %v912_v32 = vld [vmem:[%s1214_s0 + $0x48] ss:$12 sps:$4 sm:$0xff]   ;;  %v914_v34 = vld [vmem:[%s1214_s0 + $0x64] ss:$12 sps:$4 sm:$0xff]   ;;  %v917_v36 = vld [vmem:[%s1214_s0 + $0x60] ss:$12 sps:$4 sm:$0xff]  }
   0xd   :  { %v916_v35 = vld [vmem:[%s1214_s0 + $0x68] ss:$12 sps:$4 sm:$0xff]   ;;  %v918_v37 = vld [vmem:[%s1214_s0 + $0x80] ss:$12 sps:$4 sm:$0xff]   ;;  %v921_v39 = vld [vmem:[%s1214_s0 + $0x98] ss:$12 sps:$4 sm:$0xff]  }
   0xe   :  { %v919_v38 = vld [vmem:[%s1214_s0 + $0x7c] ss:$12 sps:$4 sm:$0xff]   ;;  %v922_v40 = vld [vmem:[%s1214_s0 + $0x78] ss:$12 sps:$4 sm:$0xff]   ;;  %v1102_v61 = vld [vmem:[%s1215_s2] ss:$0 sm:$0xff] }
   0xf   :  { %771 = vmatpush3.bf16.msra.mxu0 %v881_v7  ;;  %869 = vmatpush3.bf16.msra.mxu1 %v881_v7  ;;  %v923_v41 = vld [vmem:[%s1214_s0 + $0xb0] ss:$12 sps:$4 sm:$0xff]   ;;  %v1107_v0 = vld [vmem:[%s1216_s3] ss:$0 sm:$0xff] }
  0x10   :  { %772 = vmatprep.subr.bf16.mxu0 %v882_v8  ;;  %862 = vmatprep.subr.bf16.mxu1 %v882_v8 }
  0x13   :  { %773 = vmatpush3.bf16.msra.mxu0 %v883_v9  ;;  %870 = vmatpush3.bf16.msra.mxu1 %v883_v9 }
  0x14   :  { %774 = vmatprep.subr.bf16.mxu0 %v884_v10  ;;  %863 = vmatprep.subr.bf16.mxu1 %v884_v10 }
  0x17   :  { %775 = vmatpush3.bf16.msra.mxu0 %v885_v13  ;;  %871 = vmatpush3.bf16.msra.mxu1 %v885_v13 }
  0x18   :  { %776 = vmatprep.subr.bf16.mxu0 %v886_v14  ;;  %864 = vmatprep.subr.bf16.mxu1 %v886_v14 }
  0x1b   :  { %777 = vmatpush3.bf16.msra.mxu0 %v887_v15  ;;  %872 = vmatpush3.bf16.msra.mxu1 %v887_v15 }
  0x1c   :  { %778 = vmatprep.subr.bf16.mxu0 %v888_v16  ;;  %865 = vmatprep.subr.bf16.mxu1 %v888_v16 }
  0x1f   :  { %779 = vmatpush3.bf16.msra.mxu0 %v889_v17  ;;  %873 = vmatpush3.bf16.msra.mxu1 %v889_v17 }
  0x20   :  { %838 = vmatprep.subr.bf16.mxu1 %v896_v19 }
  0x22   :  { %372 = vmatmul.mubr.bf16.vlgmr.msra.gmra.mxu0 %v890_v18  ;;  %420 = vmatmul.mubr.bf16.vlgmr.msra.gmra.mxu1 %v893_v20 }
  0x23   :  { %839 = vmatpush3.bf16.msra.mxu1 %v896_v19  ;;  %379 = vmatprep.mubr.bf16.mxu0 %v897_v21 }
  0x24   :  { %427 = vmatprep.mubr.bf16.mxu1 %v899_v22  ;;  %840 = vmatprep.subr.bf16.mxu1 %v903_v23 }
  0x27   :  { %841 = vmatpush3.bf16.msra.mxu1 %v903_v23 }
  0x2a   :  { %380 = vmatmul.mubr.bf16.gmra.mxu0 %v901_v24  ;;  %428 = vmatmul.mubr.bf16.gmra.mxu1 %v902_v25 }
  0x2b   :  { %387 = vmatprep.mubr.bf16.mxu0 %v904_v26  ;;  %842 = vmatprep.mubr.msk.bf16.mxu1 %vm314_vm0, %v906_v27 }
  0x32   :  { %388 = vmatmul.mubr.bf16.gmra.mxu0 %v907_v28  ;;  %843 = vmatmul.mubr.msk.bf16.vlgmr.msra.gmra.mxu1 %vm314_vm0, %v908_v29 }
  0x33   :  { %395 = vmatprep.mubr.bf16.mxu0 %v909_v30  ;;  %846 = vmatprep.mubr.msk.bf16.mxu1 %vm314_vm0, %v911_v31 }
  0x3a   :  { %396 = vmatmul.mubr.bf16.gmra.mxu0 %v912_v32  ;;  %847 = vmatmul.mubr.msk.bf16.gmra.mxu1 %vm314_vm0, %v913_v33 }
  0x3b   :  { %403 = vmatprep.mubr.bf16.mxu0 %v914_v34  ;;  %850 = vmatprep.mubr.msk.bf16.mxu1 %vm314_vm0, %v916_v35 }
  0x42   :  { %404 = vmatmul.mubr.bf16.gmra.mxu0 %v917_v36  ;;  %851 = vmatmul.mubr.msk.bf16.gmra.mxu1 %vm314_vm0, %v918_v37 }
  0x43   :  { %411 = vmatprep.mubr.bf16.mxu0 %v919_v38  ;;  %854 = vmatprep.mubr.msk.bf16.mxu1 %vm314_vm0, %v921_v39 }
  0x4a   :  { %412 = vmatmul.mubr.bf16.gmra.mxu0 %v922_v40  ;;  %855 = vmatmul.mubr.msk.bf16.gmra.mxu1 %vm314_vm0, %v923_v41 }
  0xe2   :  { %v780_v42 = vpop.f32.mrf.mxu0  ;;  %v1083_v43 = vpop.f32.mrf.mxu1 }
  0xe4   :  { %v781_v44 = vpop.f32.mrf.mxu0  ;;  %v1085_v45 = vpop.f32.mrf.mxu1 }
  0xe5   :  { %v782_v62 = vadd.f32 %v781_v44, %v780_v42 }
  0xe6   :  { %v783_v46 = vpop.f32.mrf.mxu0  ;;  %v1087_v47 = vpop.f32.mrf.mxu1 }
  0xe8   :  { %v784_v48 = vpop.f32.mrf.mxu0  ;;  %v1089_v49 = vpop.f32.mrf.mxu1 }
  0xe9   :  { %v785_v11 = vadd.f32 %v784_v48, %v783_v46 }
  0xea   :  { %v786_v50 = vpop.f32.mrf.mxu0  ;;  %v1091_v51 = vpop.f32.mrf.mxu1 }
  0xec   :  { %v787_v52 = vpop.f32.mrf.mxu0  ;;  %v1093_v53 = vpop.f32.mrf.mxu1 }
  0xed   :  { %v788_v58 = vadd.f32 %v787_v52, %v786_v50 }
  0xee   :  { %v789_v54 = vpop.f32.mrf.mxu0  ;;  %v1095_v55 = vpop.f32.mrf.mxu1 }
  0xf0   :  { %v790_v56 = vpop.f32.mrf.mxu0  ;;  %v1097_v57 = vpop.f32.mrf.mxu1 }
  0xf1   :  { %v791_v3 = vadd.f32 %v790_v56, %v789_v54 }
  0xf2   :  { %v792_v59 = vpop.f32.mrf.mxu0  ;;  %v844_v60 = vpop.f32.mrf.mxu1 }
  0xf3   :  { %v479_v63 = vadd.f32 %v844_v60, %v788_v58 }
  0xf4   :  { %v793_v1 = vpop.f32.mrf.mxu0  ;;  %v470_v2 = vpop.f32.mrf.mxu1 }
  0xf5   :  { %v542_v4 = vmul.f32 %v1102_v61, %v479_v63  ;;  %v471_v5 = vadd.f32 %v782_v62, %v470_v2  ;;  %v794_v21 = vadd.f32 %v793_v1, %v792_v59 }
  0xf6   :  { %v795_v6 = vpop.f32.mrf.mxu0  ;;  %v845_v7 = vpop.f32.mrf.mxu1 }
  0xf7   :  { %v565_v8 = vadd.f32 %v1107_v0, %v542_v4  ;;  %v540_v9 = vmul.f32 %v1102_v61, %v471_v5  ;;  %v482_v10 = vadd.f32 %v845_v7, %v791_v3 }
  0xf8   :  { %v796_v12 = vpop.f32.mrf.mxu0  ;;  %v473_v13 = vpop.f32.mrf.mxu1 }
  0xf9   :  { %v581_v14 = vmax.f32 %v565_v8, 0.0  ;;  %v563_v15 = vadd.f32 %v1107_v0, %v540_v9  ;;  %v543_v16 = vmul.f32 %v1102_v61, %v482_v10  ;;  %v474_v17 = vadd.f32 %v785_v11, %v473_v13 }
  0xfa   :  { %v798_v18 = vpop.f32.mrf.mxu0  ;;  %v848_v19 = vpop.f32.mrf.mxu1  ;;  %v797_v35 = vadd.f32 %v796_v12, %v795_v6  ;;  %v824_v13 = vadd.f32 %v1093_v53, %v1091_v51 }
  0xfb   :  { %v750_v20 = vpack.c.bf16 %v581_v14, %v581_v14  ;;  %v579_v22 = vmax.f32 %v563_v15, 0.0  ;;  %v566_v23 = vadd.f32 %v1107_v0, %v543_v16  ;;  %v541_v24 = vmul.f32 %v1102_v61, %v474_v17 }
  0xfc   :  { %v799_v25 = vpop.f32.mrf.mxu0  ;;  %v486_v26 = vpop.f32.mrf.mxu1 }
  0xfd   :  { %662 = vst.msk [vmem:[%s1217_s4 + $0x8] sm:$0xf] %vm659_vm1, %v750_v20  ;;  %v748_v27 = vpack.c.bf16 %v579_v22, %v579_v22  ;;  %v582_v28 = vmax.f32 %v566_v23, 0.0  ;;  %v800_v29 = vadd.f32 %v799_v25, %v798_v18  ;;  %v487_v30 = vadd.f32 %v794_v21, %v486_v26 }
  0xfe   :  { %v564_v31 = vadd.f32 %v1107_v0, %v541_v24  ;;  %v801_v32 = vpop.f32.mrf.mxu0  ;;  %v849_v33 = vpop.f32.mrf.mxu1  ;;  %v818_v20 = vadd.f32 %v1085_v45, %v1083_v43 }
  0xff   :  { %660 = vst.msk [vmem:[%s1217_s4] sm:$0xf] %vm659_vm1, %v748_v27  ;;  %v751_v34 = vpack.c.bf16 %v582_v28, %v582_v28  ;;  %v495_v36 = vadd.f32 %v848_v19, %v800_v29  ;;  %v544_v37 = vmul.f32 %v1102_v61, %v487_v30  ;;  %v827_v27 = vadd.f32 %v1097_v57, %v1095_v55 }
 0x100   :  { %v580_v38 = vmax.f32 %v564_v31, 0.0  ;;  %v802_v39 = vpop.f32.mrf.mxu0  ;;  %v489_v40 = vpop.f32.mrf.mxu1 }
 0x101   :  { %663 = vst.msk [vmem:[%s1217_s4 + $0xc] sm:$0xf] %vm659_vm1, %v751_v34  ;;  %v546_v41 = vmul.f32 %v1102_v61, %v495_v36  ;;  %v567_v42 = vadd.f32 %v1107_v0, %v544_v37  ;;  %v803_v44 = vadd.f32 %v802_v39, %v801_v32  ;;  %v490_v46 = vadd.f32 %v797_v35, %v489_v40 }
 0x102   :  { %v749_v48 = vpack.c.bf16 %v580_v38, %v580_v38  ;;  %v804_v50 = vpop.f32.mrf.mxu0  ;;  %v852_v52 = vpop.f32.mrf.mxu1  ;;  %v821_v35 = vadd.f32 %v1089_v49, %v1087_v47 }
 0x103   :  { %v569_v54 = vadd.f32 %v1107_v0, %v546_v41  ;;  %v583_v56 = vmax.f32 %v567_v42, 0.0  ;;  %v498_v58 = vadd.f32 %v849_v33, %v803_v44  ;;  %v545_v59 = vmul.f32 %v1102_v61, %v490_v46 }
 0x104   :  { %661 = vst.msk [vmem:[%s1217_s4 + $0x4] sm:$0xf] %vm659_vm1, %v749_v48  ;;  %v805_v60 = vpop.f32.mrf.mxu0  ;;  %v502_v62 = vpop.f32.mrf.mxu1 }
 0x105   :  { %v585_v63 = vmax.f32 %v569_v54, 0.0  ;;  %v752_v1 = vpack.c.bf16 %v583_v56, %v583_v56  ;;  %v547_v2 = vmul.f32 %v1102_v61, %v498_v58  ;;  %v568_v3 = vadd.f32 %v1107_v0, %v545_v59 }
 0x106   :  { %v806_v4 = vadd.f32 %v805_v60, %v804_v50  ;;  %v807_v5 = vpop.f32.mrf.mxu0  ;;  %v853_v6 = vpop.f32.mrf.mxu1 }
 0x107   :  { %v754_v7 = vpack.c.bf16 %v585_v63, %v585_v63  ;;  %664 = vst.msk [vmem:[%s1217_s4 + $0x10] sm:$0xf] %vm659_vm1, %v752_v1  ;;  %v570_v8 = vadd.f32 %v1107_v0, %v547_v2  ;;  %v584_v9 = vmax.f32 %v568_v3, 0.0 }
 0x108   :  { %v503_v10 = vadd.f32 %v806_v4, %v502_v62  ;;  %v808_v11 = vpop.f32.mrf.mxu0  ;;  %v505_v12 = vpop.f32.mrf.mxu1 }
 0x109   :  { %666 = vst.msk [vmem:[%s1217_s4 + $0x18] sm:$0xf] %vm659_vm1, %v754_v7  ;;  %v586_v14 = vmax.f32 %v570_v8, 0.0  ;;  %v753_v15 = vpack.c.bf16 %v584_v9, %v584_v9  ;;  %v809_v16 = vadd.f32 %v808_v11, %v807_v5 }
 0x10a   :  { %v548_v17 = vmul.f32 %v1102_v61, %v503_v10  ;;  %v810_v18 = vpop.f32.mrf.mxu0  ;;  %v856_v19 = vpop.f32.mrf.mxu1 }
 0x10b   :  { %v755_v21 = vpack.c.bf16 %v586_v14, %v586_v14  ;;  %665 = vst.msk [vmem:[%s1217_s4 + $0x14] sm:$0xf] %vm659_vm1, %v753_v15  ;;  %v506_v51 = vadd.f32 %v809_v16, %v505_v12  ;;  %v527_v53 = vadd.f32 %v856_v19, %v824_v13 }
 0x10c   :  { %v571_v22 = vadd.f32 %v1107_v0, %v548_v17  ;;  %v811_v23 = vpop.f32.mrf.mxu0  ;;  %v518_v24 = vpop.f32.mrf.mxu1 }
 0x10d   :  { %667 = vst.msk [vmem:[%s1217_s4 + $0x1c] sm:$0xf] %vm659_vm1, %v755_v21  ;;  %v549_v25 = vmul.f32 %v1102_v61, %v506_v51  ;;  %v554_v43 = vmul.f32 %v1102_v61, %v527_v53  ;;  %v812_v45 = vadd.f32 %v811_v23, %v810_v18  ;;  %v519_v26 = vadd.f32 %v818_v20, %v518_v24 }
 0x10e   :  { %v587_v28 = vmax.f32 %v571_v22, 0.0  ;;  %v813_v29 = vpop.f32.mrf.mxu0  ;;  %v857_v30 = vpop.f32.mrf.mxu1 }
 0x10f   :  { %v572_v31 = vadd.f32 %v1107_v0, %v549_v25  ;;  %v577_v32 = vadd.f32 %v1107_v0, %v554_v43  ;;  %v511_v33 = vadd.f32 %v852_v52, %v812_v45  ;;  %v552_v34 = vmul.f32 %v1102_v61, %v519_v26 }
 0x110   :  { %v756_v36 = vpack.c.bf16 %v587_v28, %v587_v28  ;;  %v530_v37 = vadd.f32 %v857_v30, %v827_v27  ;;  %v814_v38 = vpop.f32.mrf.mxu0  ;;  %v521_v39 = vpop.f32.mrf.mxu1 }
 0x111   :  { %v588_v40 = vmax.f32 %v572_v31, 0.0  ;;  %v593_v41 = vmax.f32 %v577_v32, 0.0  ;;  %v550_v55 = vmul.f32 %v1102_v61, %v511_v33  ;;  %v575_v57 = vadd.f32 %v1107_v0, %v552_v34 }
 0x112   :  { %668 = vst.msk [vmem:[%s1217_s4 + $0x20] sm:$0xf] %vm659_vm1, %v756_v36  ;;  %v555_v42 = vmul.f32 %v1102_v61, %v530_v37  ;;  %v815_v44 = vadd.f32 %v814_v38, %v813_v29  ;;  %v522_v46 = vadd.f32 %v821_v35, %v521_v39 }
 0x113   :  { %v757_v47 = vpack.c.bf16 %v588_v40, %v588_v40  ;;  %v762_v49 = vpack.c.bf16 %v593_v41, %v593_v41  ;;  %v573_v48 = vadd.f32 %v1107_v0, %v550_v55  ;;  %v591_v50 = vmax.f32 %v575_v57, 0.0 }
 0x114   :  { %v578_v52 = vadd.f32 %v1107_v0, %v555_v42  ;;  %v514_v54 = vadd.f32 %v853_v6, %v815_v44  ;;  %v553_v56 = vmul.f32 %v1102_v61, %v522_v46 }
 0x115   :  { %669 = vst.msk [vmem:[%s1217_s4 + $0x24] sm:$0xf] %vm659_vm1, %v757_v47  ;;  %674 = vst.msk [vmem:[%s1217_s4 + $0x38] sm:$0xf] %vm659_vm1, %v762_v49  ;;  %v589_v58 = vmax.f32 %v573_v48, 0.0  ;;  %v760_v59 = vpack.c.bf16 %v591_v50, %v591_v50 }
 0x116   :  { %v594_v60 = vmax.f32 %v578_v52, 0.0  ;;  %v551_v62 = vmul.f32 %v1102_v61, %v514_v54  ;;  %v576_v63 = vadd.f32 %v1107_v0, %v553_v56 }
 0x117   :  { %v758_v1 = vpack.c.bf16 %v589_v58, %v589_v58  ;;  %672 = vst.msk [vmem:[%s1217_s4 + $0x30] sm:$0xf] %vm659_vm1, %v760_v59 }
 0x118   :  { %v763_v2 = vpack.c.bf16 %v594_v60, %v594_v60  ;;  %v574_v3 = vadd.f32 %v1107_v0, %v551_v62  ;;  %v592_v4 = vmax.f32 %v576_v63, 0.0 }
 0x119   :  { %670 = vst.msk [vmem:[%s1217_s4 + $0x28] sm:$0xf] %vm659_vm1, %v758_v1 }
 0x11a   :  { %675 = vst.msk [vmem:[%s1217_s4 + $0x3c] sm:$0xf] %vm659_vm1, %v763_v2  ;;  %v590_v61 = vmax.f32 %v574_v3, 0.0  ;;  %v761_v5 = vpack.c.bf16 %v592_v4, %v592_v4 }
 0x11c   :  { %v759_v6 = vpack.c.bf16 %v590_v61, %v590_v61  ;;  %673 = vst.msk [vmem:[%s1217_s4 + $0x34] sm:$0xf] %vm659_vm1, %v761_v5 }
 0x11e   :  { %671 = vst.msk [vmem:[%s1217_s4 + $0x2c] sm:$0xf] %vm659_vm1, %v759_v6 }

// kernel: _lambda_.164
= control target key start
LH: loop header
LB: loop body
LE: loop exit
PB: predicated region body
PF: predicated region fallthrough
CT: control target
= control target key end

     0   :  { %vm106_vm0 = vcmask 523264   ;;  %vm354_vm1 = vcmask 125952   ;;  %s660_s1 = inlined_call_operand.vmem [shape: bf16[64,16], index: 1, kind: input, shape index: {}]   ;;  %s661_s0 = inlined_call_operand.vmem [shape: bf16[128,64], index: 0, kind: input, shape index: {}]   ;;  %s662_s2 = inlined_call_operand.vmem [shape: f32[1,16], index: 2, kind: input, shape index: {}]   ;;  %s663_s3 = inlined_call_operand.vmem [shape: f32[1,16], index: 3, kind: input, shape index: {}]   ;;  %s664_s4 = inlined_call_operand.vmem [shape: bf16[128,16], index: 4, kind: output, shape index: {}]  }
   0x1   :  { %v473_v0 = vld [vmem:[%s660_s1 + $0x18] sm:$0xff]   ;;  %v474_v1 = vld [vmem:[%s660_s1 + $0x10] sm:$0xff]   ;;  %v475_v2 = vld [vmem:[%s660_s1 + $0x8] sm:$0xff]  }
   0x2   :  { %441 = vmatprep.subr.bf16.mxu0 %v473_v0  ;;  %465 = vmatprep.subr.bf16.mxu1 %v473_v0  ;;  %v477_v3 = vld [vmem:[%s661_s0] sm:$0xff]   ;;  %v479_v6 = vld [vmem:[%s661_s0 + $0x8] sm:$0xff]   ;;  %v481_v8 = vld [vmem:[%s661_s0 + $0x10] sm:$0xff]  }
   0x3   :  { %442 = vmatpush3.bf16.msra.mxu0 %v473_v0  ;;  %469 = vmatpush3.bf16.msra.mxu1 %v473_v0  ;;  %v478_v4 = vld [vmem:[%s661_s0 + $0x20] sm:$0xff]   ;;  %v480_v7 = vld [vmem:[%s661_s0 + $0x28] sm:$0xff]   ;;  %v482_v9 = vld [vmem:[%s661_s0 + $0x30] sm:$0xff]  }
   0x4   :  { %443 = vmatprep.subr.bf16.mxu0 %v474_v1  ;;  %466 = vmatprep.subr.bf16.mxu1 %v474_v1  ;;  %v476_v5 = vld [vmem:[%s660_s1] sm:$0xff]   ;;  %v483_v10 = vld [vmem:[%s661_s0 + $0x18] sm:$0xff]  }
   0x5   :  { %449 = vmatprep.mubr.msk.bf16.mxu0 %vm106_vm0, %v477_v3  ;;  %457 = vmatprep.mubr.msk.bf16.mxu1 %vm106_vm0, %v478_v4  ;;  %v484_v11 = vld [vmem:[%s661_s0 + $0x38] sm:$0xff]   ;;  %v557_v12 = vld [vmem:[%s662_s2] ss:$0 sm:$0xff] }
   0x6   :  { %v562_v14 = vld [vmem:[%s663_s3] ss:$0 sm:$0xff] }
   0x7   :  { %444 = vmatpush3.bf16.msra.mxu0 %v474_v1  ;;  %470 = vmatpush3.bf16.msra.mxu1 %v474_v1 }
   0x8   :  { %445 = vmatprep.subr.bf16.mxu0 %v475_v2  ;;  %467 = vmatprep.subr.bf16.mxu1 %v475_v2 }
   0xb   :  { %446 = vmatpush3.bf16.msra.mxu0 %v475_v2  ;;  %471 = vmatpush3.bf16.msra.mxu1 %v475_v2 }
   0xc   :  { %447 = vmatprep.subr.bf16.mxu0 %v476_v5  ;;  %468 = vmatprep.subr.bf16.mxu1 %v476_v5 }
   0xf   :  { %448 = vmatpush3.bf16.msra.mxu0 %v476_v5  ;;  %472 = vmatpush3.bf16.msra.mxu1 %v476_v5 }
  0x12   :  { %450 = vmatmul.mubr.msk.bf16.vlgmr.msra.gmra.mxu0 %vm106_vm0, %v479_v6  ;;  %458 = vmatmul.mubr.msk.bf16.vlgmr.msra.gmra.mxu1 %vm106_vm0, %v480_v7 }
  0x13   :  { %453 = vmatprep.mubr.msk.bf16.mxu0 %vm106_vm0, %v481_v8  ;;  %461 = vmatprep.mubr.msk.bf16.mxu1 %vm106_vm0, %v482_v9 }
  0x1a   :  { %454 = vmatmul.mubr.msk.bf16.gmra.mxu0 %vm106_vm0, %v483_v10  ;;  %462 = vmatmul.mubr.msk.bf16.gmra.mxu1 %vm106_vm0, %v484_v11 }
  0xd2   :  { %v451_v13 = vpop.f32.mrf.mxu0  ;;  %v459_v15 = vpop.f32.mrf.mxu1 }
  0xd3   :  { %v237_v16 = vmul.f32 %v451_v13, %v557_v12  ;;  %v245_v17 = vmul.f32 %v459_v15, %v557_v12 }
  0xd4   :  { %v165_v18 = vpop.f32.mrf.mxu0  ;;  %v197_v19 = vpop.f32.mrf.mxu1 }
  0xd5   :  { %v260_v20 = vadd.f32 %v562_v14, %v237_v16  ;;  %v268_v21 = vadd.f32 %v562_v14, %v245_v17  ;;  %v235_v22 = vmul.f32 %v557_v12, %v165_v18  ;;  %v243_v23 = vmul.f32 %v557_v12, %v197_v19 }
  0xd6   :  { %v452_v24 = vpop.f32.mrf.mxu0  ;;  %v460_v25 = vpop.f32.mrf.mxu1 }
  0xd7   :  { %v276_v26 = vmax.f32 %v260_v20, 0.0  ;;  %v284_v27 = vmax.f32 %v268_v21, 0.0  ;;  %v258_v28 = vadd.f32 %v562_v14, %v235_v22  ;;  %v266_v29 = vadd.f32 %v562_v14, %v243_v23 }
  0xd8   :  { %v238_v30 = vmul.f32 %v452_v24, %v557_v12  ;;  %v246_v31 = vmul.f32 %v460_v25, %v557_v12  ;;  %v168_v32 = vpop.f32.mrf.mxu0  ;;  %v200_v33 = vpop.f32.mrf.mxu1 }
  0xd9   :  { %v415_v34 = vpack.c.bf16 %v276_v26, %v276_v26  ;;  %v423_v35 = vpack.c.bf16 %v284_v27, %v284_v27  ;;  %v274_v36 = vmax.f32 %v258_v28, 0.0  ;;  %v282_v37 = vmax.f32 %v266_v29, 0.0 }
  0xda   :  { %v261_v38 = vadd.f32 %v562_v14, %v238_v30  ;;  %v269_v39 = vadd.f32 %v562_v14, %v246_v31  ;;  %v236_v40 = vmul.f32 %v557_v12, %v168_v32  ;;  %v244_v41 = vmul.f32 %v557_v12, %v200_v33  ;;  %v455_v42 = vpop.f32.mrf.mxu0  ;;  %v463_v43 = vpop.f32.mrf.mxu1 }
  0xdb   :  { %357 = vst.msk [vmem:[%s664_s4 + $0x8] sm:$0xf] %vm354_vm1, %v415_v34  ;;  %365 = vst.msk [vmem:[%s664_s4 + $0x28] sm:$0xf] %vm354_vm1, %v423_v35  ;;  %v413_v44 = vpack.c.bf16 %v274_v36, %v274_v36  ;;  %v421_v45 = vpack.c.bf16 %v282_v37, %v282_v37  ;;  %v241_v46 = vmul.f32 %v455_v42, %v557_v12 }
  0xdc   :  { %v249_v47 = vmul.f32 %v463_v43, %v557_v12  ;;  %v277_v48 = vmax.f32 %v261_v38, 0.0  ;;  %v285_v49 = vmax.f32 %v269_v39, 0.0  ;;  %v259_v50 = vadd.f32 %v562_v14, %v236_v40  ;;  %v181_v52 = vpop.f32.mrf.mxu0  ;;  %v213_v53 = vpop.f32.mrf.mxu1 }
  0xdd   :  { %v267_v51 = vadd.f32 %v562_v14, %v244_v41  ;;  %355 = vst.msk [vmem:[%s664_s4] sm:$0xf] %vm354_vm1, %v413_v44  ;;  %363 = vst.msk [vmem:[%s664_s4 + $0x20] sm:$0xf] %vm354_vm1, %v421_v45  ;;  %v264_v54 = vadd.f32 %v562_v14, %v241_v46  ;;  %v239_v56 = vmul.f32 %v557_v12, %v181_v52 }
  0xde   :  { %v272_v55 = vadd.f32 %v562_v14, %v249_v47  ;;  %v247_v57 = vmul.f32 %v557_v12, %v213_v53  ;;  %v416_v58 = vpack.c.bf16 %v277_v48, %v277_v48  ;;  %v424_v59 = vpack.c.bf16 %v285_v49, %v285_v49  ;;  %v456_v62 = vpop.f32.mrf.mxu0  ;;  %v464_v63 = vpop.f32.mrf.mxu1 }
  0xdf   :  { %v275_v60 = vmax.f32 %v259_v50, 0.0  ;;  %v283_v61 = vmax.f32 %v267_v51, 0.0  ;;  %v280_v0 = vmax.f32 %v264_v54, 0.0  ;;  %v262_v2 = vadd.f32 %v562_v14, %v239_v56 }
  0xe0   :  { %v288_v1 = vmax.f32 %v272_v55, 0.0  ;;  %v270_v3 = vadd.f32 %v562_v14, %v247_v57  ;;  %358 = vst.msk [vmem:[%s664_s4 + $0xc] sm:$0xf] %vm354_vm1, %v416_v58  ;;  %366 = vst.msk [vmem:[%s664_s4 + $0x2c] sm:$0xf] %vm354_vm1, %v424_v59  ;;  %v242_v6 = vmul.f32 %v456_v62, %v557_v12  ;;  %v250_v7 = vmul.f32 %v464_v63, %v557_v12  ;;  %v184_v8 = vpop.f32.mrf.mxu0  ;;  %v216_v9 = vpop.f32.mrf.mxu1 }
  0xe1   :  { %v414_v4 = vpack.c.bf16 %v275_v60, %v275_v60  ;;  %v422_v5 = vpack.c.bf16 %v283_v61, %v283_v61  ;;  %v419_v10 = vpack.c.bf16 %v280_v0, %v280_v0  ;;  %v278_v13 = vmax.f32 %v262_v2, 0.0 }
  0xe2   :  { %v427_v11 = vpack.c.bf16 %v288_v1, %v288_v1  ;;  %v286_v15 = vmax.f32 %v270_v3, 0.0  ;;  %v265_v16 = vadd.f32 %v562_v14, %v242_v6  ;;  %v273_v17 = vadd.f32 %v562_v14, %v250_v7 }
  0xe3   :  { %356 = vst.msk [vmem:[%s664_s4 + $0x4] sm:$0xf] %vm354_vm1, %v414_v4  ;;  %364 = vst.msk [vmem:[%s664_s4 + $0x24] sm:$0xf] %vm354_vm1, %v422_v5  ;;  %v240_v18 = vmul.f32 %v557_v12, %v184_v8  ;;  %v248_v19 = vmul.f32 %v557_v12, %v216_v9  ;;  %v417_v20 = vpack.c.bf16 %v278_v13, %v278_v13 }
  0xe4   :  { %361 = vst.msk [vmem:[%s664_s4 + $0x18] sm:$0xf] %vm354_vm1, %v419_v10  ;;  %369 = vst.msk [vmem:[%s664_s4 + $0x38] sm:$0xf] %vm354_vm1, %v427_v11  ;;  %v425_v21 = vpack.c.bf16 %v286_v15, %v286_v15  ;;  %v281_v22 = vmax.f32 %v265_v16, 0.0  ;;  %v289_v23 = vmax.f32 %v273_v17, 0.0 }
  0xe5   :  { %v263_v24 = vadd.f32 %v562_v14, %v240_v18  ;;  %v271_v25 = vadd.f32 %v562_v14, %v248_v19  ;;  %359 = vst.msk [vmem:[%s664_s4 + $0x10] sm:$0xf] %vm354_vm1, %v417_v20 }
  0xe6   :  { %367 = vst.msk [vmem:[%s664_s4 + $0x30] sm:$0xf] %vm354_vm1, %v425_v21  ;;  %v420_v12 = vpack.c.bf16 %v281_v22, %v281_v22  ;;  %v428_v26 = vpack.c.bf16 %v289_v23, %v289_v23 }
  0xe7   :  { %v279_v27 = vmax.f32 %v263_v24, 0.0  ;;  %v287_v28 = vmax.f32 %v271_v25, 0.0 }
  0xe8   :  { %362 = vst.msk [vmem:[%s664_s4 + $0x1c] sm:$0xf] %vm354_vm1, %v420_v12  ;;  %370 = vst.msk [vmem:[%s664_s4 + $0x3c] sm:$0xf] %vm354_vm1, %v428_v26 }
  0xe9   :  { %v418_v14 = vpack.c.bf16 %v279_v27, %v279_v27  ;;  %v426_v29 = vpack.c.bf16 %v287_v28, %v287_v28 }
  0xeb   :  { %360 = vst.msk [vmem:[%s664_s4 + $0x14] sm:$0xf] %vm354_vm1, %v418_v14  ;;  %368 = vst.msk [vmem:[%s664_s4 + $0x34] sm:$0xf] %vm354_vm1, %v426_v29 }

// kernel: _lambda_.165
= control target key start
LH: loop header
LB: loop body
LE: loop exit
PB: predicated region body
PF: predicated region fallthrough
CT: control target
= control target key end

     0   :  { %v566_v0 = vmov 0   ;;  %vm178_vm0 = vcmask 130048   ;;  %vm426_vm1 = vcmask 125952   ;;  %s781_s1 = inlined_call_operand.vmem [shape: bf16[144,16], index: 1, kind: input, shape index: {}]   ;;  %s782_s0 = inlined_call_operand.vmem [shape: bf16[128,144], index: 0, kind: input, shape index: {}]   ;;  %s783_s2 = inlined_call_operand.vmem [shape: f32[1,16], index: 2, kind: input, shape index: {}]   ;;  %s784_s3 = inlined_call_operand.vmem [shape: f32[1,16], index: 3, kind: input, shape index: {}]   ;;  %s785_s4 = inlined_call_operand.vmem [shape: bf16[128,16], index: 4, kind: output, shape index: {}]  }
   0x1   :  { %203 = vmatprep.subr.bf16.mxu0 %v566_v0  ;;  %514 = vmatprep.subr.bf16.mxu1 %v566_v0  ;;  %v533_v1 = vld [vmem:[%s781_s1 + $0x38] sm:$0xff]   ;;  %v534_v2 = vld [vmem:[%s781_s1 + $0x30] sm:$0xff]   ;;  %v535_v3 = vld [vmem:[%s781_s1 + $0x28] sm:$0xff]  }
   0x2   :  { %204 = vmatpush1.bf16.msra.mxu0 %v533_v1  ;;  %523 = vmatpush1.bf16.msra.mxu1 %v533_v1  ;;  %v536_v4 = vld [vmem:[%s781_s1 + $0x20] sm:$0xff]   ;;  %v537_v7 = vld [vmem:[%s781_s1 + $0x18] sm:$0xff]   ;;  %v538_v8 = vld [vmem:[%s781_s1 + $0x10] sm:$0xff]  }
   0x3   :  { %205 = vmatprep.subr.bf16.mxu0 %v566_v0  ;;  %515 = vmatprep.subr.bf16.mxu1 %v566_v0  ;;  %v544_v5 = vld [vmem:[%s782_s0 + $0x4] ss:$8 sps:$4 sm:$0xff]   ;;  %v542_v12 = vld [vmem:[%s782_s0] ss:$8 sps:$4 sm:$0xff]   ;;  %v548_v14 = vld [vmem:[%s782_s0 + $0x14] ss:$8 sps:$4 sm:$0xff]  }
   0x4   :  { %v547_v6 = vld [vmem:[%s782_s0 + $0x44] ss:$8 sps:$4 sm:$0xff]   ;;  %472 = vmatprep.mubr.msk.bf16.mxu0 %vm178_vm0, %v544_v5  ;;  %v545_v13 = vld [vmem:[%s782_s0 + $0x40] ss:$8 sps:$4 sm:$0xff]   ;;  %v550_v15 = vld [vmem:[%s782_s0 + $0x54] ss:$8 sps:$4 sm:$0xff]  }
   0x5   :  { %476 = vmatprep.mubr.msk.bf16.mxu1 %vm178_vm0, %v547_v6  ;;  %v539_v9 = vld [vmem:[%s781_s1 + $0x8] sm:$0xff]   ;;  %v540_v10 = vld [vmem:[%s781_s1] sm:$0xff]   ;;  %v552_v16 = vld [vmem:[%s782_s0 + $0x10] ss:$8 sps:$4 sm:$0xff]  }
   0x6   :  { %206 = vmatpush1.bf16.msra.mxu0 %v534_v2  ;;  %524 = vmatpush1.bf16.msra.mxu1 %v534_v2  ;;  %v541_v11 = vld [vmem:[%s781_s1 + $0x40] sm:$0xff]   ;;  %v553_v17 = vld [vmem:[%s782_s0 + $0x50] ss:$8 sps:$4 sm:$0xff]   ;;  %v560_v22 = vld [vmem:[%s782_s0 + $0x34] ss:$8 sps:$4 sm:$0xff]  }
   0x7   :  { %207 = vmatprep.subr.bf16.mxu0 %v566_v0  ;;  %516 = vmatprep.subr.bf16.mxu1 %v566_v0  ;;  %v554_v18 = vld [vmem:[%s782_s0 + $0x24] ss:$8 sps:$4 sm:$0xff]   ;;  %v558_v20 = vld [vmem:[%s782_s0 + $0x20] ss:$8 sps:$4 sm:$0xff]   ;;  %v562_v23 = vld [vmem:[%s782_s0 + $0x74] ss:$8 sps:$4 sm:$0xff]  }
   0x8   :  { %v556_v19 = vld [vmem:[%s782_s0 + $0x64] ss:$8 sps:$4 sm:$0xff]   ;;  %v559_v21 = vld [vmem:[%s782_s0 + $0x60] ss:$8 sps:$4 sm:$0xff]   ;;  %v564_v24 = vld [vmem:[%s782_s0 + $0x30] ss:$8 sps:$4 sm:$0xff]  }
   0x9   :  { %v565_v25 = vld [vmem:[%s782_s0 + $0x70] ss:$8 sps:$4 sm:$0xff]   ;;  %v678_v26 = vld [vmem:[%s783_s2] ss:$0 sm:$0xff] }
   0xa   :  { %208 = vmatpush1.bf16.msra.mxu0 %v535_v3  ;;  %525 = vmatpush1.bf16.msra.mxu1 %v535_v3  ;;  %v683_v28 = vld [vmem:[%s784_s3] ss:$0 sm:$0xff] }
   0xb   :  { %209 = vmatprep.subr.bf16.mxu0 %v566_v0  ;;  %517 = vmatprep.subr.bf16.mxu1 %v566_v0 }
   0xe   :  { %210 = vmatpush1.bf16.msra.mxu0 %v536_v4  ;;  %526 = vmatpush1.bf16.msra.mxu1 %v536_v4 }
   0xf   :  { %211 = vmatprep.subr.bf16.mxu0 %v566_v0  ;;  %518 = vmatprep.subr.bf16.mxu1 %v566_v0 }
  0x12   :  { %212 = vmatpush1.bf16.msra.mxu0 %v537_v7  ;;  %527 = vmatpush1.bf16.msra.mxu1 %v537_v7 }
  0x13   :  { %213 = vmatprep.subr.bf16.mxu0 %v566_v0  ;;  %519 = vmatprep.subr.bf16.mxu1 %v566_v0 }
  0x16   :  { %214 = vmatpush1.bf16.msra.mxu0 %v538_v8  ;;  %528 = vmatpush1.bf16.msra.mxu1 %v538_v8 }
  0x17   :  { %215 = vmatprep.subr.bf16.mxu0 %v566_v0  ;;  %520 = vmatprep.subr.bf16.mxu1 %v566_v0 }
  0x1a   :  { %216 = vmatpush1.bf16.msra.mxu0 %v539_v9  ;;  %529 = vmatpush1.bf16.msra.mxu1 %v539_v9 }
  0x1b   :  { %217 = vmatprep.subr.bf16.mxu0 %v566_v0  ;;  %521 = vmatprep.subr.bf16.mxu1 %v566_v0 }
  0x1e   :  { %218 = vmatpush1.bf16.msra.mxu0 %v540_v10  ;;  %530 = vmatpush1.bf16.msra.mxu1 %v540_v10 }
  0x1f   :  { %233 = vmatprep.subr.bf16.mxu0 %v566_v0  ;;  %522 = vmatprep.subr.bf16.mxu1 %v566_v0 }
  0x22   :  { %234 = vmatpush2.bf16.msra.mxu0 %v541_v11  ;;  %531 = vmatpush2.bf16.msra.mxu1 %v541_v11 }
  0x25   :  { %236 = vmatmul.mubr.bf16.vlgmr.msra.gmra.mxu0 %v542_v12  ;;  %268 = vmatmul.mubr.bf16.vlgmr.msra.gmra.mxu1 %v545_v13 }
  0x26   :  { %473 = vmatprep.mubr.msk.bf16.mxu0 %vm178_vm0, %v548_v14  ;;  %477 = vmatprep.mubr.msk.bf16.mxu1 %vm178_vm0, %v550_v15 }
  0x2d   :  { %244 = vmatmul.mubr.bf16.gmra.mxu0 %v552_v16  ;;  %276 = vmatmul.mubr.bf16.gmra.mxu1 %v553_v17 }
  0x2e   :  { %474 = vmatprep.mubr.msk.bf16.mxu0 %vm178_vm0, %v554_v18  ;;  %478 = vmatprep.mubr.msk.bf16.mxu1 %vm178_vm0, %v556_v19 }
  0x35   :  { %252 = vmatmul.mubr.bf16.gmra.mxu0 %v558_v20  ;;  %284 = vmatmul.mubr.bf16.gmra.mxu1 %v559_v21 }
  0x36   :  { %475 = vmatprep.mubr.msk.bf16.mxu0 %vm178_vm0, %v560_v22  ;;  %479 = vmatprep.mubr.msk.bf16.mxu1 %vm178_vm0, %v562_v23 }
  0x3d   :  { %260 = vmatmul.mubr.bf16.gmra.mxu0 %v564_v24  ;;  %292 = vmatmul.mubr.bf16.gmra.mxu1 %v565_v25 }
  0xe5   :  { %v237_v27 = vpop.f32.mrf.mxu0  ;;  %v269_v29 = vpop.f32.mrf.mxu1 }
  0xe6   :  { %v307_v30 = vmul.f32 %v678_v26, %v237_v27  ;;  %v315_v31 = vmul.f32 %v678_v26, %v269_v29 }
  0xe7   :  { %v239_v32 = vpop.f32.mrf.mxu0  ;;  %v271_v33 = vpop.f32.mrf.mxu1 }
  0xe8   :  { %v330_v34 = vadd.f32 %v683_v28, %v307_v30  ;;  %v338_v35 = vadd.f32 %v683_v28, %v315_v31 }
  0xe9   :  { %v240_v36 = vpop.f32.mrf.mxu0  ;;  %v272_v37 = vpop.f32.mrf.mxu1 }
  0xea   :  { %v346_v38 = vmax.f32 %v330_v34, 0.0  ;;  %v354_v39 = vmax.f32 %v338_v35, 0.0  ;;  %v308_v40 = vmul.f32 %v678_v26, %v240_v36  ;;  %v316_v41 = vmul.f32 %v678_v26, %v272_v37 }
  0xeb   :  { %v242_v42 = vpop.f32.mrf.mxu0  ;;  %v274_v43 = vpop.f32.mrf.mxu1 }
  0xec   :  { %v498_v44 = vpack.c.bf16 %v346_v38, %v346_v38  ;;  %v506_v45 = vpack.c.bf16 %v354_v39, %v354_v39  ;;  %v331_v46 = vadd.f32 %v683_v28, %v308_v40  ;;  %v339_v47 = vadd.f32 %v683_v28, %v316_v41 }
  0xed   :  { %v245_v48 = vpop.f32.mrf.mxu0  ;;  %v277_v49 = vpop.f32.mrf.mxu1 }
  0xee   :  { %427 = vst.msk [vmem:[%s785_s4] sm:$0xf] %vm426_vm1, %v498_v44  ;;  %435 = vst.msk [vmem:[%s785_s4 + $0x20] sm:$0xf] %vm426_vm1, %v506_v45  ;;  %v347_v50 = vmax.f32 %v331_v46, 0.0  ;;  %v355_v51 = vmax.f32 %v339_v47, 0.0  ;;  %v309_v52 = vmul.f32 %v678_v26, %v245_v48  ;;  %v317_v53 = vmul.f32 %v678_v26, %v277_v49 }
  0xef   :  { %v247_v54 = vpop.f32.mrf.mxu0  ;;  %v279_v55 = vpop.f32.mrf.mxu1 }
  0xf0   :  { %v499_v56 = vpack.c.bf16 %v347_v50, %v347_v50  ;;  %v507_v57 = vpack.c.bf16 %v355_v51, %v355_v51  ;;  %v332_v58 = vadd.f32 %v683_v28, %v309_v52  ;;  %v340_v59 = vadd.f32 %v683_v28, %v317_v53 }
  0xf1   :  { %v248_v60 = vpop.f32.mrf.mxu0  ;;  %v280_v61 = vpop.f32.mrf.mxu1 }
  0xf2   :  { %428 = vst.msk [vmem:[%s785_s4 + $0x4] sm:$0xf] %vm426_vm1, %v499_v56  ;;  %436 = vst.msk [vmem:[%s785_s4 + $0x24] sm:$0xf] %vm426_vm1, %v507_v57  ;;  %v348_v62 = vmax.f32 %v332_v58, 0.0  ;;  %v356_v63 = vmax.f32 %v340_v59, 0.0  ;;  %v310_v0 = vmul.f32 %v678_v26, %v248_v60  ;;  %v318_v1 = vmul.f32 %v678_v26, %v280_v61 }
  0xf3   :  { %v250_v2 = vpop.f32.mrf.mxu0  ;;  %v282_v3 = vpop.f32.mrf.mxu1 }
  0xf4   :  { %v500_v4 = vpack.c.bf16 %v348_v62, %v348_v62  ;;  %v508_v5 = vpack.c.bf16 %v356_v63, %v356_v63  ;;  %v333_v6 = vadd.f32 %v683_v28, %v310_v0  ;;  %v341_v7 = vadd.f32 %v683_v28, %v318_v1 }
  0xf5   :  { %v253_v8 = vpop.f32.mrf.mxu0  ;;  %v285_v9 = vpop.f32.mrf.mxu1 }
  0xf6   :  { %429 = vst.msk [vmem:[%s785_s4 + $0x8] sm:$0xf] %vm426_vm1, %v500_v4  ;;  %437 = vst.msk [vmem:[%s785_s4 + $0x28] sm:$0xf] %vm426_vm1, %v508_v5  ;;  %v349_v10 = vmax.f32 %v333_v6, 0.0  ;;  %v357_v11 = vmax.f32 %v341_v7, 0.0  ;;  %v311_v12 = vmul.f32 %v678_v26, %v253_v8  ;;  %v319_v13 = vmul.f32 %v678_v26, %v285_v9 }
  0xf7   :  { %v255_v14 = vpop.f32.mrf.mxu0  ;;  %v287_v15 = vpop.f32.mrf.mxu1 }
  0xf8   :  { %v501_v16 = vpack.c.bf16 %v349_v10, %v349_v10  ;;  %v509_v17 = vpack.c.bf16 %v357_v11, %v357_v11  ;;  %v334_v18 = vadd.f32 %v683_v28, %v311_v12  ;;  %v342_v19 = vadd.f32 %v683_v28, %v319_v13 }
  0xf9   :  { %v256_v20 = vpop.f32.mrf.mxu0  ;;  %v288_v21 = vpop.f32.mrf.mxu1 }
  0xfa   :  { %430 = vst.msk [vmem:[%s785_s4 + $0xc] sm:$0xf] %vm426_vm1, %v501_v16  ;;  %438 = vst.msk [vmem:[%s785_s4 + $0x2c] sm:$0xf] %vm426_vm1, %v509_v17  ;;  %v350_v22 = vmax.f32 %v334_v18, 0.0  ;;  %v358_v23 = vmax.f32 %v342_v19, 0.0  ;;  %v312_v24 = vmul.f32 %v678_v26, %v256_v20  ;;  %v320_v25 = vmul.f32 %v678_v26, %v288_v21 }
  0xfb   :  { %v258_v27 = vpop.f32.mrf.mxu0  ;;  %v290_v29 = vpop.f32.mrf.mxu1 }
  0xfc   :  { %v502_v30 = vpack.c.bf16 %v350_v22, %v350_v22  ;;  %v510_v31 = vpack.c.bf16 %v358_v23, %v358_v23  ;;  %v335_v32 = vadd.f32 %v683_v28, %v312_v24  ;;  %v343_v33 = vadd.f32 %v683_v28, %v320_v25 }
  0xfd   :  { %v261_v34 = vpop.f32.mrf.mxu0  ;;  %v293_v35 = vpop.f32.mrf.mxu1 }
  0xfe   :  { %431 = vst.msk [vmem:[%s785_s4 + $0x10] sm:$0xf] %vm426_vm1, %v502_v30  ;;  %439 = vst.msk [vmem:[%s785_s4 + $0x30] sm:$0xf] %vm426_vm1, %v510_v31  ;;  %v351_v36 = vmax.f32 %v335_v32, 0.0  ;;  %v359_v37 = vmax.f32 %v343_v33, 0.0  ;;  %v313_v38 = vmul.f32 %v678_v26, %v261_v34  ;;  %v321_v39 = vmul.f32 %v678_v26, %v293_v35 }
  0xff   :  { %v263_v40 = vpop.f32.mrf.mxu0  ;;  %v295_v41 = vpop.f32.mrf.mxu1 }
 0x100   :  { %v503_v42 = vpack.c.bf16 %v351_v36, %v351_v36  ;;  %v511_v43 = vpack.c.bf16 %v359_v37, %v359_v37  ;;  %v336_v44 = vadd.f32 %v683_v28, %v313_v38  ;;  %v344_v45 = vadd.f32 %v683_v28, %v321_v39 }
 0x101   :  { %v264_v46 = vpop.f32.mrf.mxu0  ;;  %v296_v47 = vpop.f32.mrf.mxu1 }
 0x102   :  { %432 = vst.msk [vmem:[%s785_s4 + $0x14] sm:$0xf] %vm426_vm1, %v503_v42  ;;  %440 = vst.msk [vmem:[%s785_s4 + $0x34] sm:$0xf] %vm426_vm1, %v511_v43  ;;  %v352_v48 = vmax.f32 %v336_v44, 0.0  ;;  %v360_v49 = vmax.f32 %v344_v45, 0.0  ;;  %v314_v50 = vmul.f32 %v678_v26, %v264_v46  ;;  %v322_v51 = vmul.f32 %v678_v26, %v296_v47 }
 0x103   :  { %v266_v52 = vpop.f32.mrf.mxu0  ;;  %v298_v53 = vpop.f32.mrf.mxu1 }
 0x104   :  { %v504_v54 = vpack.c.bf16 %v352_v48, %v352_v48  ;;  %v512_v55 = vpack.c.bf16 %v360_v49, %v360_v49  ;;  %v337_v56 = vadd.f32 %v683_v28, %v314_v50  ;;  %v345_v57 = vadd.f32 %v683_v28, %v322_v51 }
 0x106   :  { %433 = vst.msk [vmem:[%s785_s4 + $0x18] sm:$0xf] %vm426_vm1, %v504_v54  ;;  %441 = vst.msk [vmem:[%s785_s4 + $0x38] sm:$0xf] %vm426_vm1, %v512_v55  ;;  %v353_v58 = vmax.f32 %v337_v56, 0.0  ;;  %v361_v26 = vmax.f32 %v345_v57, 0.0 }
 0x108   :  { %v505_v59 = vpack.c.bf16 %v353_v58, %v353_v58  ;;  %v513_v60 = vpack.c.bf16 %v361_v26, %v361_v26 }
 0x10a   :  { %434 = vst.msk [vmem:[%s785_s4 + $0x1c] sm:$0xf] %vm426_vm1, %v505_v59  ;;  %442 = vst.msk [vmem:[%s785_s4 + $0x3c] sm:$0xf] %vm426_vm1, %v513_v60 }

// kernel: _lambda_.166
= control target key start
LH: loop header
LB: loop body
LE: loop exit
PB: predicated region body
PF: predicated region fallthrough
CT: control target
= control target key end

     0   :  { %vm85_vm0 = vcmask 130048   ;;  %vm397_vm1 = vcmask 519168   ;;  %s793_s1 = inlined_call_operand.vmem [shape: bf16[16,64], index: 1, kind: input, shape index: {}]   ;;  %s794_s0 = inlined_call_operand.vmem [shape: bf16[128,16], index: 0, kind: input, shape index: {}]   ;;  %s795_s4 = inlined_call_operand.vmem [shape: bf16[128,64], index: 4, kind: input, shape index: {}]   ;;  %s796_s2 = inlined_call_operand.vmem [shape: f32[1,64], index: 2, kind: input, shape index: {}]   ;;  %s797_s3 = inlined_call_operand.vmem [shape: f32[1,64], index: 3, kind: input, shape index: {}]   ;;  %s798_s5 = inlined_call_operand.vmem [shape: bf16[128,64], index: 5, kind: output, shape index: {}]  }
   0x1   :  { %v537_v0 = vld [vmem:[%s793_s1] sm:$0xff]   ;;  %v540_v3 = vld [vmem:[%s794_s0 + $0x8] sm:$0xff]   ;;  %v542_v5 = vld [vmem:[%s794_s0 + $0x10] sm:$0xff]  }
   0x2   :  { %v538_v1 = vld [vmem:[%s794_s0] sm:$0xff]   ;;  %517 = vmatprep.subr.bf16.mxu0 %v537_v0  ;;  %535 = vmatprep.subr.bf16.mxu1 %v537_v0  ;;  %v541_v4 = vld [vmem:[%s794_s0 + $0x28] sm:$0xff]   ;;  %v543_v6 = vld [vmem:[%s794_s0 + $0x30] sm:$0xff]  }
   0x3   :  { %v539_v2 = vld [vmem:[%s794_s0 + $0x20] sm:$0xff]   ;;  %518 = vmatpush3.bf16.msra.mxu0 %v537_v0  ;;  %536 = vmatpush3.bf16.msra.mxu1 %v537_v0  ;;  %v544_v7 = vld [vmem:[%s794_s0 + $0x18] sm:$0xff]   ;;  %v614_v9 = vld [vmem:[%s795_s4 + $0x8] sm:$0xff]  }
   0x4   :  { %519 = vmatprep.mubr.msk.bf16.mxu0 %vm85_vm0, %v538_v1  ;;  %527 = vmatprep.mubr.msk.bf16.mxu1 %vm85_vm0, %v539_v2  ;;  %v545_v8 = vld [vmem:[%s794_s0 + $0x38] sm:$0xff]   ;;  %v619_v10 = vld [vmem:[%s795_s4 + $0x28] sm:$0xff]   ;;  %v624_v11 = vld [vmem:[%s795_s4] sm:$0xff]   ;;  %v475_v18 = vunpack.c.l.bf16 %v614_v9  ;;  %v476_v25 = vunpack.c.h.bf16 %v614_v9 }
   0x5   :  { %v629_v12 = vld [vmem:[%s795_s4 + $0x20] sm:$0xff]   ;;  %v639_v14 = vld [vmem:[%s795_s4 + $0x18] sm:$0xff]   ;;  %v491_v20 = vunpack.c.l.bf16 %v619_v10  ;;  %v471_v21 = vunpack.c.l.bf16 %v624_v11  ;;  %v492_v26 = vunpack.c.h.bf16 %v619_v10  ;;  %v662_v27 = vld [vmem:[%s795_s4 + $0x10] sm:$0xff]   ;;  %v472_v31 = vunpack.c.h.bf16 %v624_v11 }
   0x6   :  { %520 = vmatmul.mubr.msk.bf16.vlgmr.msra.gmra.mxu0 %vm85_vm0, %v540_v3  ;;  %528 = vmatmul.mubr.msk.bf16.vlgmr.msra.gmra.mxu1 %vm85_vm0, %v541_v4  ;;  %v634_v13 = vld [vmem:[%s796_s2] ss:$0 sm:$0xff]  ;;  %v644_v15 = vld [vmem:[%s795_s4 + $0x38] sm:$0xff]   ;;  %v487_v22 = vunpack.c.l.bf16 %v629_v12  ;;  %v667_v28 = vld [vmem:[%s795_s4 + $0x30] sm:$0xff]   ;;  %v488_v32 = vunpack.c.h.bf16 %v629_v12  ;;  %v483_v33 = vunpack.c.l.bf16 %v639_v14  ;;  %v479_v41 = vunpack.c.l.bf16 %v662_v27 }
   0x7   :  { %523 = vmatprep.mubr.msk.bf16.mxu0 %vm85_vm0, %v542_v5  ;;  %531 = vmatprep.mubr.msk.bf16.mxu1 %vm85_vm0, %v543_v6  ;;  %v649_v17 = vld [vmem:[%s797_s3] ss:$0 sm:$0xff]  ;;  %v499_v34 = vunpack.c.l.bf16 %v644_v15  ;;  %v495_v42 = vunpack.c.l.bf16 %v667_v28  ;;  %v484_v43 = vunpack.c.h.bf16 %v639_v14  ;;  %v500_v44 = vunpack.c.h.bf16 %v644_v15 }
   0x8   :  { %v480_v53 = vunpack.c.h.bf16 %v662_v27  ;;  %v496_v54 = vunpack.c.h.bf16 %v667_v28 }
   0xe   :  { %524 = vmatmul.mubr.msk.bf16.gmra.mxu0 %vm85_vm0, %v544_v7  ;;  %532 = vmatmul.mubr.msk.bf16.gmra.mxu1 %vm85_vm0, %v545_v8 }
  0xc6   :  { %v521_v16 = vpop.f32.mrf.mxu0  ;;  %v529_v19 = vpop.f32.mrf.mxu1 }
  0xc7   :  { %v216_v23 = vmul.f32 %v521_v16, %v634_v13  ;;  %v224_v24 = vmul.f32 %v529_v19, %v634_v13 }
  0xc8   :  { %v144_v29 = vpop.f32.mrf.mxu0  ;;  %v176_v30 = vpop.f32.mrf.mxu1 }
  0xc9   :  { %v239_v35 = vadd.f32 %v649_v17, %v216_v23  ;;  %v247_v36 = vadd.f32 %v649_v17, %v224_v24  ;;  %v214_v37 = vmul.f32 %v634_v13, %v144_v29  ;;  %v222_v38 = vmul.f32 %v634_v13, %v176_v30 }
  0xca   :  { %v522_v39 = vpop.f32.mrf.mxu0  ;;  %v530_v40 = vpop.f32.mrf.mxu1 }
  0xcb   :  { %v255_v45 = vmax.f32 %v239_v35, 0.0  ;;  %v263_v46 = vmax.f32 %v247_v36, 0.0  ;;  %v237_v47 = vadd.f32 %v649_v17, %v214_v37  ;;  %v245_v48 = vadd.f32 %v649_v17, %v222_v38 }
  0xcc   :  { %v217_v49 = vmul.f32 %v522_v39, %v634_v13  ;;  %v225_v50 = vmul.f32 %v530_v40, %v634_v13  ;;  %v147_v51 = vpop.f32.mrf.mxu0  ;;  %v179_v52 = vpop.f32.mrf.mxu1 }
  0xcd   :  { %v303_v55 = vadd.f32 %v475_v18, %v255_v45  ;;  %v311_v56 = vadd.f32 %v491_v20, %v263_v46  ;;  %v253_v57 = vmax.f32 %v237_v47, 0.0  ;;  %v261_v58 = vmax.f32 %v245_v48, 0.0 }
  0xce   :  { %v240_v59 = vadd.f32 %v649_v17, %v217_v49  ;;  %v248_v60 = vadd.f32 %v649_v17, %v225_v50  ;;  %v215_v61 = vmul.f32 %v634_v13, %v147_v51  ;;  %v223_v62 = vmul.f32 %v634_v13, %v179_v52  ;;  %v525_v63 = vpop.f32.mrf.mxu0  ;;  %v533_v0 = vpop.f32.mrf.mxu1 }
  0xcf   :  { %v319_v1 = vmax.f32 %v303_v55, 0.0  ;;  %v327_v2 = vmax.f32 %v311_v56, 0.0  ;;  %v301_v3 = vadd.f32 %v471_v21, %v253_v57  ;;  %v309_v4 = vadd.f32 %v487_v22, %v261_v58 }
  0xd0   :  { %v256_v5 = vmax.f32 %v240_v59, 0.0  ;;  %v264_v6 = vmax.f32 %v248_v60, 0.0  ;;  %v238_v7 = vadd.f32 %v649_v17, %v215_v61  ;;  %v246_v8 = vadd.f32 %v649_v17, %v223_v62  ;;  %v160_v9 = vpop.f32.mrf.mxu0  ;;  %v192_v10 = vpop.f32.mrf.mxu1 }
  0xd1   :  { %v455_v16 = vpack.c.bf16 %v319_v1, %v319_v1  ;;  %v463_v18 = vpack.c.bf16 %v327_v2, %v327_v2  ;;  %v317_v19 = vmax.f32 %v301_v3, 0.0  ;;  %v325_v20 = vmax.f32 %v309_v4, 0.0 }
  0xd2   :  { %v304_v23 = vadd.f32 %v476_v25, %v256_v5  ;;  %v312_v24 = vadd.f32 %v492_v26, %v264_v6  ;;  %v254_v29 = vmax.f32 %v238_v7, 0.0  ;;  %v262_v30 = vmax.f32 %v246_v8, 0.0  ;;  %v526_v25 = vpop.f32.mrf.mxu0  ;;  %v534_v26 = vpop.f32.mrf.mxu1 }
  0xd3   :  { %400 = vst.msk [vmem:[%s798_s5 + $0x8] sm:$0xf] %vm397_vm1, %v455_v16  ;;  %408 = vst.msk [vmem:[%s798_s5 + $0x28] sm:$0xf] %vm397_vm1, %v463_v18  ;;  %v453_v21 = vpack.c.bf16 %v317_v19, %v317_v19  ;;  %v461_v22 = vpack.c.bf16 %v325_v20, %v325_v20  ;;  %v220_v35 = vmul.f32 %v525_v63, %v634_v13 }
  0xd4   :  { %v228_v36 = vmul.f32 %v533_v0, %v634_v13  ;;  %v320_v37 = vmax.f32 %v304_v23, 0.0  ;;  %v328_v38 = vmax.f32 %v312_v24, 0.0  ;;  %v302_v39 = vadd.f32 %v472_v31, %v254_v29  ;;  %v163_v55 = vpop.f32.mrf.mxu0  ;;  %v195_v56 = vpop.f32.mrf.mxu1 }
  0xd5   :  { %v310_v40 = vadd.f32 %v488_v32, %v262_v30  ;;  %398 = vst.msk [vmem:[%s798_s5] sm:$0xf] %vm397_vm1, %v453_v21  ;;  %406 = vst.msk [vmem:[%s798_s5 + $0x20] sm:$0xf] %vm397_vm1, %v461_v22  ;;  %v243_v45 = vadd.f32 %v649_v17, %v220_v35  ;;  %v218_v11 = vmul.f32 %v634_v13, %v160_v9 }
  0xd6   :  { %v251_v46 = vadd.f32 %v649_v17, %v228_v36  ;;  %v226_v31 = vmul.f32 %v634_v13, %v192_v10  ;;  %v456_v12 = vpack.c.bf16 %v320_v37, %v320_v37  ;;  %v464_v32 = vpack.c.bf16 %v328_v38, %v328_v38 }
  0xd7   :  { %v318_v47 = vmax.f32 %v302_v39, 0.0  ;;  %v326_v48 = vmax.f32 %v310_v40, 0.0  ;;  %v259_v49 = vmax.f32 %v243_v45, 0.0  ;;  %v241_v51 = vadd.f32 %v649_v17, %v218_v11 }
  0xd8   :  { %v267_v50 = vmax.f32 %v251_v46, 0.0  ;;  %v249_v52 = vadd.f32 %v649_v17, %v226_v31  ;;  %401 = vst.msk [vmem:[%s798_s5 + $0xc] sm:$0xf] %vm397_vm1, %v456_v12  ;;  %409 = vst.msk [vmem:[%s798_s5 + $0x2c] sm:$0xf] %vm397_vm1, %v464_v32  ;;  %v221_v59 = vmul.f32 %v526_v25, %v634_v13  ;;  %v229_v60 = vmul.f32 %v534_v26, %v634_v13 }
  0xd9   :  { %v454_v57 = vpack.c.bf16 %v318_v47, %v318_v47  ;;  %v462_v58 = vpack.c.bf16 %v326_v48, %v326_v48  ;;  %v307_v61 = vadd.f32 %v483_v33, %v259_v49  ;;  %v257_v63 = vmax.f32 %v241_v51, 0.0 }
  0xda   :  { %v315_v62 = vadd.f32 %v499_v34, %v267_v50  ;;  %v265_v0 = vmax.f32 %v249_v52, 0.0  ;;  %v244_v1 = vadd.f32 %v649_v17, %v221_v59  ;;  %v252_v2 = vadd.f32 %v649_v17, %v229_v60 }
  0xdb   :  { %399 = vst.msk [vmem:[%s798_s5 + $0x4] sm:$0xf] %vm397_vm1, %v454_v57  ;;  %407 = vst.msk [vmem:[%s798_s5 + $0x24] sm:$0xf] %vm397_vm1, %v462_v58  ;;  %v219_v33 = vmul.f32 %v634_v13, %v163_v55  ;;  %v227_v34 = vmul.f32 %v634_v13, %v195_v56  ;;  %v323_v3 = vmax.f32 %v307_v61, 0.0  ;;  %v305_v5 = vadd.f32 %v479_v41, %v257_v63 }
  0xdc   :  { %v331_v4 = vmax.f32 %v315_v62, 0.0  ;;  %v313_v6 = vadd.f32 %v495_v42, %v265_v0  ;;  %v260_v7 = vmax.f32 %v244_v1, 0.0  ;;  %v268_v8 = vmax.f32 %v252_v2, 0.0 }
  0xdd   :  { %v242_v9 = vadd.f32 %v649_v17, %v219_v33  ;;  %v250_v10 = vadd.f32 %v649_v17, %v227_v34  ;;  %v459_v16 = vpack.c.bf16 %v323_v3, %v323_v3  ;;  %v321_v19 = vmax.f32 %v305_v5, 0.0 }
  0xde   :  { %v467_v18 = vpack.c.bf16 %v331_v4, %v331_v4  ;;  %v329_v20 = vmax.f32 %v313_v6, 0.0  ;;  %v308_v13 = vadd.f32 %v484_v43, %v260_v7  ;;  %v316_v23 = vadd.f32 %v500_v44, %v268_v8 }
  0xdf   :  { %v258_v41 = vmax.f32 %v242_v9, 0.0  ;;  %v266_v24 = vmax.f32 %v250_v10, 0.0  ;;  %404 = vst.msk [vmem:[%s798_s5 + $0x18] sm:$0xf] %vm397_vm1, %v459_v16  ;;  %v457_v17 = vpack.c.bf16 %v321_v19, %v321_v19 }
  0xe0   :  { %412 = vst.msk [vmem:[%s798_s5 + $0x38] sm:$0xf] %vm397_vm1, %v467_v18  ;;  %v465_v42 = vpack.c.bf16 %v329_v20, %v329_v20  ;;  %v324_v29 = vmax.f32 %v308_v13, 0.0  ;;  %v332_v14 = vmax.f32 %v316_v23, 0.0 }
  0xe1   :  { %v306_v15 = vadd.f32 %v480_v53, %v258_v41  ;;  %v314_v43 = vadd.f32 %v496_v54, %v266_v24  ;;  %402 = vst.msk [vmem:[%s798_s5 + $0x10] sm:$0xf] %vm397_vm1, %v457_v17 }
  0xe2   :  { %410 = vst.msk [vmem:[%s798_s5 + $0x30] sm:$0xf] %vm397_vm1, %v465_v42  ;;  %v460_v44 = vpack.c.bf16 %v324_v29, %v324_v29  ;;  %v468_v30 = vpack.c.bf16 %v332_v14, %v332_v14 }
  0xe3   :  { %v322_v21 = vmax.f32 %v306_v15, 0.0  ;;  %v330_v22 = vmax.f32 %v314_v43, 0.0 }
  0xe4   :  { %405 = vst.msk [vmem:[%s798_s5 + $0x1c] sm:$0xf] %vm397_vm1, %v460_v44  ;;  %413 = vst.msk [vmem:[%s798_s5 + $0x3c] sm:$0xf] %vm397_vm1, %v468_v30 }
  0xe5   :  { %v458_v27 = vpack.c.bf16 %v322_v21, %v322_v21  ;;  %v466_v28 = vpack.c.bf16 %v330_v22, %v330_v22 }
  0xe7   :  { %403 = vst.msk [vmem:[%s798_s5 + $0x14] sm:$0xf] %vm397_vm1, %v458_v27  ;;  %411 = vst.msk [vmem:[%s798_s5 + $0x34] sm:$0xf] %vm397_vm1, %v466_v28 }

// kernel: _lambda_.170
= control target key start
LH: loop header
LB: loop body
LE: loop exit
PB: predicated region body
PF: predicated region fallthrough
CT: control target
= control target key end

     0   :  { %vm106_vm0 = vcmask 523264   ;;  %vm338_vm1 = vcmask 125952   ;;  %s644_s1 = inlined_call_operand.vmem [shape: bf16[64,16], index: 1, kind: input, shape index: {}]   ;;  %s645_s0 = inlined_call_operand.vmem [shape: bf16[128,64], index: 0, kind: input, shape index: {}]   ;;  %s646_s2 = inlined_call_operand.vmem [shape: f32[1,16], index: 2, kind: input, shape index: {}]   ;;  %s647_s3 = inlined_call_operand.vmem [shape: f32[1,16], index: 3, kind: input, shape index: {}]   ;;  %s648_s4 = inlined_call_operand.vmem [shape: bf16[128,16], index: 4, kind: output, shape index: {}]  }
   0x1   :  { %v457_v0 = vld [vmem:[%s644_s1 + $0x18] sm:$0xff]   ;;  %v458_v1 = vld [vmem:[%s644_s1 + $0x10] sm:$0xff]   ;;  %v459_v2 = vld [vmem:[%s644_s1 + $0x8] sm:$0xff]  }
   0x2   :  { %425 = vmatprep.subr.bf16.mxu0 %v457_v0  ;;  %449 = vmatprep.subr.bf16.mxu1 %v457_v0  ;;  %v461_v3 = vld [vmem:[%s645_s0] sm:$0xff]   ;;  %v463_v6 = vld [vmem:[%s645_s0 + $0x8] sm:$0xff]   ;;  %v465_v8 = vld [vmem:[%s645_s0 + $0x10] sm:$0xff]  }
   0x3   :  { %426 = vmatpush3.bf16.msra.mxu0 %v457_v0  ;;  %453 = vmatpush3.bf16.msra.mxu1 %v457_v0  ;;  %v462_v4 = vld [vmem:[%s645_s0 + $0x20] sm:$0xff]   ;;  %v464_v7 = vld [vmem:[%s645_s0 + $0x28] sm:$0xff]   ;;  %v466_v9 = vld [vmem:[%s645_s0 + $0x30] sm:$0xff]  }
   0x4   :  { %427 = vmatprep.subr.bf16.mxu0 %v458_v1  ;;  %450 = vmatprep.subr.bf16.mxu1 %v458_v1  ;;  %v460_v5 = vld [vmem:[%s644_s1] sm:$0xff]   ;;  %v467_v10 = vld [vmem:[%s645_s0 + $0x18] sm:$0xff]  }
   0x5   :  { %433 = vmatprep.mubr.msk.bf16.mxu0 %vm106_vm0, %v461_v3  ;;  %441 = vmatprep.mubr.msk.bf16.mxu1 %vm106_vm0, %v462_v4  ;;  %v468_v11 = vld [vmem:[%s645_s0 + $0x38] sm:$0xff]   ;;  %v541_v12 = vld [vmem:[%s646_s2] ss:$0 sm:$0xff] }
   0x6   :  { %v546_v14 = vld [vmem:[%s647_s3] ss:$0 sm:$0xff] }
   0x7   :  { %428 = vmatpush3.bf16.msra.mxu0 %v458_v1  ;;  %454 = vmatpush3.bf16.msra.mxu1 %v458_v1 }
   0x8   :  { %429 = vmatprep.subr.bf16.mxu0 %v459_v2  ;;  %451 = vmatprep.subr.bf16.mxu1 %v459_v2 }
   0xb   :  { %430 = vmatpush3.bf16.msra.mxu0 %v459_v2  ;;  %455 = vmatpush3.bf16.msra.mxu1 %v459_v2 }
   0xc   :  { %431 = vmatprep.subr.bf16.mxu0 %v460_v5  ;;  %452 = vmatprep.subr.bf16.mxu1 %v460_v5 }
   0xf   :  { %432 = vmatpush3.bf16.msra.mxu0 %v460_v5  ;;  %456 = vmatpush3.bf16.msra.mxu1 %v460_v5 }
  0x12   :  { %434 = vmatmul.mubr.msk.bf16.vlgmr.msra.gmra.mxu0 %vm106_vm0, %v463_v6  ;;  %442 = vmatmul.mubr.msk.bf16.vlgmr.msra.gmra.mxu1 %vm106_vm0, %v464_v7 }
  0x13   :  { %437 = vmatprep.mubr.msk.bf16.mxu0 %vm106_vm0, %v465_v8  ;;  %445 = vmatprep.mubr.msk.bf16.mxu1 %vm106_vm0, %v466_v9 }
  0x1a   :  { %438 = vmatmul.mubr.msk.bf16.gmra.mxu0 %vm106_vm0, %v467_v10  ;;  %446 = vmatmul.mubr.msk.bf16.gmra.mxu1 %vm106_vm0, %v468_v11 }
  0xd2   :  { %v435_v13 = vpop.f32.mrf.mxu0  ;;  %v443_v15 = vpop.f32.mrf.mxu1 }
  0xd3   :  { %v237_v16 = vmul.f32 %v435_v13, %v541_v12  ;;  %v245_v17 = vmul.f32 %v443_v15, %v541_v12 }
  0xd4   :  { %v165_v18 = vpop.f32.mrf.mxu0  ;;  %v197_v19 = vpop.f32.mrf.mxu1 }
  0xd5   :  { %v260_v20 = vadd.f32 %v546_v14, %v237_v16  ;;  %v268_v21 = vadd.f32 %v546_v14, %v245_v17  ;;  %v235_v22 = vmul.f32 %v541_v12, %v165_v18  ;;  %v243_v23 = vmul.f32 %v541_v12, %v197_v19 }
  0xd6   :  { %v436_v24 = vpop.f32.mrf.mxu0  ;;  %v444_v25 = vpop.f32.mrf.mxu1 }
  0xd7   :  { %v399_v26 = vpack.c.bf16 %v260_v20, %v260_v20  ;;  %v407_v27 = vpack.c.bf16 %v268_v21, %v268_v21  ;;  %v258_v28 = vadd.f32 %v546_v14, %v235_v22  ;;  %v266_v29 = vadd.f32 %v546_v14, %v243_v23 }
  0xd8   :  { %v238_v30 = vmul.f32 %v436_v24, %v541_v12  ;;  %v246_v31 = vmul.f32 %v444_v25, %v541_v12  ;;  %v168_v32 = vpop.f32.mrf.mxu0  ;;  %v200_v33 = vpop.f32.mrf.mxu1 }
  0xd9   :  { %341 = vst.msk [vmem:[%s648_s4 + $0x8] sm:$0xf] %vm338_vm1, %v399_v26  ;;  %349 = vst.msk [vmem:[%s648_s4 + $0x28] sm:$0xf] %vm338_vm1, %v407_v27  ;;  %v397_v34 = vpack.c.bf16 %v258_v28, %v258_v28  ;;  %v405_v35 = vpack.c.bf16 %v266_v29, %v266_v29  ;;  %v236_v36 = vmul.f32 %v541_v12, %v168_v32 }
  0xda   :  { %v244_v37 = vmul.f32 %v541_v12, %v200_v33  ;;  %v261_v38 = vadd.f32 %v546_v14, %v238_v30  ;;  %v269_v39 = vadd.f32 %v546_v14, %v246_v31  ;;  %v439_v40 = vpop.f32.mrf.mxu0  ;;  %v447_v41 = vpop.f32.mrf.mxu1 }
  0xdb   :  { %339 = vst.msk [vmem:[%s648_s4] sm:$0xf] %vm338_vm1, %v397_v34  ;;  %347 = vst.msk [vmem:[%s648_s4 + $0x20] sm:$0xf] %vm338_vm1, %v405_v35  ;;  %v259_v42 = vadd.f32 %v546_v14, %v236_v36  ;;  %v241_v44 = vmul.f32 %v439_v40, %v541_v12  ;;  %v249_v45 = vmul.f32 %v447_v41, %v541_v12 }
  0xdc   :  { %v267_v43 = vadd.f32 %v546_v14, %v244_v37  ;;  %v400_v46 = vpack.c.bf16 %v261_v38, %v261_v38  ;;  %v408_v47 = vpack.c.bf16 %v269_v39, %v269_v39  ;;  %v181_v48 = vpop.f32.mrf.mxu0  ;;  %v213_v49 = vpop.f32.mrf.mxu1 }
  0xdd   :  { %v398_v50 = vpack.c.bf16 %v259_v42, %v259_v42  ;;  %v264_v52 = vadd.f32 %v546_v14, %v241_v44  ;;  %v272_v53 = vadd.f32 %v546_v14, %v249_v45  ;;  %v239_v54 = vmul.f32 %v541_v12, %v181_v48 }
  0xde   :  { %v406_v51 = vpack.c.bf16 %v267_v43, %v267_v43  ;;  %342 = vst.msk [vmem:[%s648_s4 + $0xc] sm:$0xf] %vm338_vm1, %v400_v46  ;;  %350 = vst.msk [vmem:[%s648_s4 + $0x2c] sm:$0xf] %vm338_vm1, %v408_v47  ;;  %v247_v55 = vmul.f32 %v541_v12, %v213_v49  ;;  %v440_v56 = vpop.f32.mrf.mxu0  ;;  %v448_v57 = vpop.f32.mrf.mxu1 }
  0xdf   :  { %340 = vst.msk [vmem:[%s648_s4 + $0x4] sm:$0xf] %vm338_vm1, %v398_v50  ;;  %v403_v58 = vpack.c.bf16 %v264_v52, %v264_v52  ;;  %v411_v59 = vpack.c.bf16 %v272_v53, %v272_v53  ;;  %v242_v60 = vmul.f32 %v440_v56, %v541_v12  ;;  %v250_v61 = vmul.f32 %v448_v57, %v541_v12 }
  0xe0   :  { %348 = vst.msk [vmem:[%s648_s4 + $0x24] sm:$0xf] %vm338_vm1, %v406_v51  ;;  %v262_v62 = vadd.f32 %v546_v14, %v239_v54  ;;  %v270_v63 = vadd.f32 %v546_v14, %v247_v55  ;;  %v184_v0 = vpop.f32.mrf.mxu0  ;;  %v216_v1 = vpop.f32.mrf.mxu1 }
  0xe1   :  { %345 = vst.msk [vmem:[%s648_s4 + $0x18] sm:$0xf] %vm338_vm1, %v403_v58  ;;  %353 = vst.msk [vmem:[%s648_s4 + $0x38] sm:$0xf] %vm338_vm1, %v411_v59  ;;  %v265_v2 = vadd.f32 %v546_v14, %v242_v60  ;;  %v273_v3 = vadd.f32 %v546_v14, %v250_v61  ;;  %v240_v4 = vmul.f32 %v541_v12, %v184_v0 }
  0xe2   :  { %v248_v5 = vmul.f32 %v541_v12, %v216_v1  ;;  %v401_v6 = vpack.c.bf16 %v262_v62, %v262_v62  ;;  %v409_v7 = vpack.c.bf16 %v270_v63, %v270_v63 }
  0xe3   :  { %v404_v8 = vpack.c.bf16 %v265_v2, %v265_v2  ;;  %v412_v9 = vpack.c.bf16 %v273_v3, %v273_v3  ;;  %v263_v10 = vadd.f32 %v546_v14, %v240_v4 }
  0xe4   :  { %v271_v11 = vadd.f32 %v546_v14, %v248_v5  ;;  %343 = vst.msk [vmem:[%s648_s4 + $0x10] sm:$0xf] %vm338_vm1, %v401_v6  ;;  %351 = vst.msk [vmem:[%s648_s4 + $0x30] sm:$0xf] %vm338_vm1, %v409_v7 }
  0xe5   :  { %346 = vst.msk [vmem:[%s648_s4 + $0x1c] sm:$0xf] %vm338_vm1, %v404_v8  ;;  %354 = vst.msk [vmem:[%s648_s4 + $0x3c] sm:$0xf] %vm338_vm1, %v412_v9  ;;  %v402_v12 = vpack.c.bf16 %v263_v10, %v263_v10 }
  0xe6   :  { %v410_v13 = vpack.c.bf16 %v271_v11, %v271_v11 }
  0xe7   :  { %344 = vst.msk [vmem:[%s648_s4 + $0x14] sm:$0xf] %vm338_vm1, %v402_v12 }
  0xe8   :  { %352 = vst.msk [vmem:[%s648_s4 + $0x34] sm:$0xf] %vm338_vm1, %v410_v13 }

// kernel: _lambda_.172
= control target key start
LH: loop header
LB: loop body
LE: loop exit
PB: predicated region body
PF: predicated region fallthrough
CT: control target
= control target key end

     0   :  { %s1244_s15 = smov 0   ;;  %s1482_s0 = inlined_call_operand.vmem [shape: bf16[512,144], index: 0, kind: input, shape index: {}]   ;;  %s1483_s1 = inlined_call_operand.vmem [shape: bf16[144,16], index: 1, kind: input, shape index: {}]   ;;  %s1484_s2 = inlined_call_operand.vmem [shape: f32[1,16], index: 2, kind: input, shape index: {}]   ;;  %s1485_s3 = inlined_call_operand.vmem [shape: f32[1,16], index: 3, kind: input, shape index: {}]   ;;  %s1486_s4 = inlined_call_operand.vmem [shape: bf16[512,16], index: 4, kind: output, shape index: {}]  }
   0x1 LB: > { %s990_s16 = sadd.s32 4294967295, %s1216_s15   ;;  %p994_p0 = scmp.ge.s32.totalorder %s1216_s15, 1  ;;  %s1216_s15 = sphi %s1244_s15, %s14_s15  }
   0x2   : > { %p164_p1 = scmp.lt.s32.totalorder %s1216_s15, 3 }
   0x4   : > { %p165_p2 = pnand %p994_p0, %p164_p1 }
   0x5   : > { %s995_s19 = sshll.u32 (!%p165_p2), %s990_s16, 5 }
   0x6   : > { %168 = sbr.rel (%p165_p2) target bundleno = 310 (0x136), region = 36  ;;  %p192_p3 = scmp.lt.s32.totalorder (!%p165_p2), %s995_s19, 63 }
   0xb   : > { %v1153_v0 = vld [vmem:[%s1483_s1 + $0x38] sm:$0xff]   ;;  %v1218_v1 = vmov 0   ;;  %v1154_v2 = vld [vmem:[%s1483_s1 + $0x30] sm:$0xff]   ;;  %s1488_s19 = smov (!%p192_p3, %s995_s19), 63  ;;  %v1155_v3 = vld [vmem:[%s1483_s1 + $0x28] sm:$0xff]   ;;  %vm453_vm0 = vcmask 130048  }
   0xc   : > { %502 = vmatprep.subr.bf16.mxu0 %v1218_v1  ;;  %1126 = vmatprep.subr.bf16.mxu1 %v1218_v1  ;;  %s1093_s24 = sshll.u32 %s1488_s19, 3  ;;  %v1156_v4 = vld [vmem:[%s1483_s1 + $0x20] sm:$0xff]   ;;  %v1157_v7 = vld [vmem:[%s1483_s1 + $0x18] sm:$0xff]   ;;  %v1158_v8 = vld [vmem:[%s1483_s1 + $0x10] sm:$0xff]   ;;  %s999_s20 = sshll.u32 %s1488_s19, 2  ;;  %vm901_vm1 = vcmask 125952  }
   0xd   : > { %503 = vmatpush1.bf16.msra.mxu0 %v1153_v0  ;;  %1135 = vmatpush1.bf16.msra.mxu1 %v1153_v0  ;;  %s1267_s27 = scalar_lea.vmem %s1482_s0, %s1093_s24  ;;  %v1159_v9 = vld [vmem:[%s1483_s1 + $0x8] sm:$0xff]   ;;  %v1160_v10 = vld [vmem:[%s1483_s1] sm:$0xff]   ;;  %s1355_s23 = scalar_lea.vmem %s1486_s4, %s999_s20 }
   0xe   : > { %504 = vmatprep.subr.bf16.mxu0 %v1218_v1  ;;  %1127 = vmatprep.subr.bf16.mxu1 %v1218_v1  ;;  %v1164_v5 = vld [vmem:[%s1267_s27 + $0x4] ss:$8 sps:$4 sm:$0xff]   ;;  %v1162_v12 = vld [vmem:[%s1267_s27] ss:$8 sps:$4 sm:$0xff]   ;;  %v1168_v14 = vld [vmem:[%s1267_s27 + $0x14] ss:$8 sps:$4 sm:$0xff]  }
   0xf   : > { %v1167_v6 = vld [vmem:[%s1267_s27 + $0x84] ss:$8 sps:$4 sm:$0xff]   ;;  %1041 = vmatprep.mubr.msk.bf16.mxu0 %vm453_vm0, %v1164_v5  ;;  %v1165_v13 = vld [vmem:[%s1267_s27 + $0x80] ss:$8 sps:$4 sm:$0xff]   ;;  %v1170_v15 = vld [vmem:[%s1267_s27 + $0x94] ss:$8 sps:$4 sm:$0xff]  }
  0x10   : > { %1049 = vmatprep.mubr.msk.bf16.mxu1 %vm453_vm0, %v1167_v6  ;;  %v1161_v11 = vld [vmem:[%s1483_s1 + $0x40] sm:$0xff]   ;;  %v1172_v16 = vld [vmem:[%s1267_s27 + $0x10] ss:$8 sps:$4 sm:$0xff]   ;;  %v1180_v22 = vld [vmem:[%s1267_s27 + $0x34] ss:$8 sps:$4 sm:$0xff]  }
  0x11   : > { %505 = vmatpush1.bf16.msra.mxu0 %v1154_v2  ;;  %1136 = vmatpush1.bf16.msra.mxu1 %v1154_v2  ;;  %v1173_v17 = vld [vmem:[%s1267_s27 + $0x90] ss:$8 sps:$4 sm:$0xff]   ;;  %v1174_v18 = vld [vmem:[%s1267_s27 + $0x24] ss:$8 sps:$4 sm:$0xff]   ;;  %v1178_v20 = vld [vmem:[%s1267_s27 + $0x20] ss:$8 sps:$4 sm:$0xff]  }
  0x12   : > { %506 = vmatprep.subr.bf16.mxu0 %v1218_v1  ;;  %1128 = vmatprep.subr.bf16.mxu1 %v1218_v1  ;;  %v1176_v19 = vld [vmem:[%s1267_s27 + $0xa4] ss:$8 sps:$4 sm:$0xff]   ;;  %v1179_v21 = vld [vmem:[%s1267_s27 + $0xa0] ss:$8 sps:$4 sm:$0xff]   ;;  %v1182_v23 = vld [vmem:[%s1267_s27 + $0xb4] ss:$8 sps:$4 sm:$0xff]  }
  0x13   : > { %v1184_v24 = vld [vmem:[%s1267_s27 + $0x30] ss:$8 sps:$4 sm:$0xff]   ;;  %v1186_v26 = vld [vmem:[%s1267_s27 + $0x44] ss:$8 sps:$4 sm:$0xff]   ;;  %v1190_v28 = vld [vmem:[%s1267_s27 + $0x40] ss:$8 sps:$4 sm:$0xff]  }
  0x14   : > { %v1185_v25 = vld [vmem:[%s1267_s27 + $0xb0] ss:$8 sps:$4 sm:$0xff]   ;;  %v1188_v27 = vld [vmem:[%s1267_s27 + $0xc4] ss:$8 sps:$4 sm:$0xff]   ;;  %v1191_v29 = vld [vmem:[%s1267_s27 + $0xc0] ss:$8 sps:$4 sm:$0xff]  }
  0x15   : > { %507 = vmatpush1.bf16.msra.mxu0 %v1155_v3  ;;  %1137 = vmatpush1.bf16.msra.mxu1 %v1155_v3  ;;  %v1192_v30 = vld [vmem:[%s1267_s27 + $0x54] ss:$8 sps:$4 sm:$0xff]   ;;  %v1196_v32 = vld [vmem:[%s1267_s27 + $0x50] ss:$8 sps:$4 sm:$0xff]   ;;  %v1198_v34 = vld [vmem:[%s1267_s27 + $0x64] ss:$8 sps:$4 sm:$0xff]  }
  0x16   : > { %508 = vmatprep.subr.bf16.mxu0 %v1218_v1  ;;  %1129 = vmatprep.subr.bf16.mxu1 %v1218_v1  ;;  %v1194_v31 = vld [vmem:[%s1267_s27 + $0xd4] ss:$8 sps:$4 sm:$0xff]   ;;  %v1197_v33 = vld [vmem:[%s1267_s27 + $0xd0] ss:$8 sps:$4 sm:$0xff]   ;;  %v1200_v35 = vld [vmem:[%s1267_s27 + $0xe4] ss:$8 sps:$4 sm:$0xff]  }
  0x17   : > { %v1202_v36 = vld [vmem:[%s1267_s27 + $0x60] ss:$8 sps:$4 sm:$0xff]   ;;  %v1204_v38 = vld [vmem:[%s1267_s27 + $0x74] ss:$8 sps:$4 sm:$0xff]   ;;  %v1208_v40 = vld [vmem:[%s1267_s27 + $0x70] ss:$8 sps:$4 sm:$0xff]  }
  0x18   : > { %v1203_v37 = vld [vmem:[%s1267_s27 + $0xe0] ss:$8 sps:$4 sm:$0xff]   ;;  %v1206_v39 = vld [vmem:[%s1267_s27 + $0xf4] ss:$8 sps:$4 sm:$0xff]   ;;  %v1209_v41 = vld [vmem:[%s1267_s27 + $0xf0] ss:$8 sps:$4 sm:$0xff]  }
  0x19   : > { %509 = vmatpush1.bf16.msra.mxu0 %v1156_v4  ;;  %1138 = vmatpush1.bf16.msra.mxu1 %v1156_v4  ;;  %v1338_v42 = vld [vmem:[%s1484_s2] ss:$0 sm:$0xff] }
  0x1a   : > { %510 = vmatprep.subr.bf16.mxu0 %v1218_v1  ;;  %1130 = vmatprep.subr.bf16.mxu1 %v1218_v1  ;;  %v1343_v44 = vld [vmem:[%s1485_s3] ss:$0 sm:$0xff] }
  0x1d   : > { %511 = vmatpush1.bf16.msra.mxu0 %v1157_v7  ;;  %1139 = vmatpush1.bf16.msra.mxu1 %v1157_v7 }
  0x1e   : > { %512 = vmatprep.subr.bf16.mxu0 %v1218_v1  ;;  %1131 = vmatprep.subr.bf16.mxu1 %v1218_v1 }
  0x21   : > { %513 = vmatpush1.bf16.msra.mxu0 %v1158_v8  ;;  %1140 = vmatpush1.bf16.msra.mxu1 %v1158_v8 }
  0x22   : > { %514 = vmatprep.subr.bf16.mxu0 %v1218_v1  ;;  %1132 = vmatprep.subr.bf16.mxu1 %v1218_v1 }
  0x25   : > { %515 = vmatpush1.bf16.msra.mxu0 %v1159_v9  ;;  %1141 = vmatpush1.bf16.msra.mxu1 %v1159_v9 }
  0x26   : > { %516 = vmatprep.subr.bf16.mxu0 %v1218_v1  ;;  %1133 = vmatprep.subr.bf16.mxu1 %v1218_v1 }
  0x29   : > { %517 = vmatpush1.bf16.msra.mxu0 %v1160_v10  ;;  %1142 = vmatpush1.bf16.msra.mxu1 %v1160_v10 }
  0x2a   : > { %532 = vmatprep.subr.bf16.mxu0 %v1218_v1  ;;  %1134 = vmatprep.subr.bf16.mxu1 %v1218_v1 }
  0x2d   : > { %533 = vmatpush2.bf16.msra.mxu0 %v1161_v11  ;;  %1143 = vmatpush2.bf16.msra.mxu1 %v1161_v11 }
  0x30   : > { %535 = vmatmul.mubr.bf16.vlgmr.msra.gmra.mxu0 %v1162_v12  ;;  %599 = vmatmul.mubr.bf16.vlgmr.msra.gmra.mxu1 %v1165_v13 }
  0x31   : > { %1042 = vmatprep.mubr.msk.bf16.mxu0 %vm453_vm0, %v1168_v14  ;;  %1050 = vmatprep.mubr.msk.bf16.mxu1 %vm453_vm0, %v1170_v15 }
  0x38   : > { %543 = vmatmul.mubr.bf16.gmra.mxu0 %v1172_v16  ;;  %607 = vmatmul.mubr.bf16.gmra.mxu1 %v1173_v17 }
  0x39   : > { %1043 = vmatprep.mubr.msk.bf16.mxu0 %vm453_vm0, %v1174_v18  ;;  %1051 = vmatprep.mubr.msk.bf16.mxu1 %vm453_vm0, %v1176_v19 }
  0x40   : > { %551 = vmatmul.mubr.bf16.gmra.mxu0 %v1178_v20  ;;  %615 = vmatmul.mubr.bf16.gmra.mxu1 %v1179_v21 }
  0x41   : > { %1044 = vmatprep.mubr.msk.bf16.mxu0 %vm453_vm0, %v1180_v22  ;;  %1052 = vmatprep.mubr.msk.bf16.mxu1 %vm453_vm0, %v1182_v23 }
  0x48   : > { %559 = vmatmul.mubr.bf16.gmra.mxu0 %v1184_v24  ;;  %623 = vmatmul.mubr.bf16.gmra.mxu1 %v1185_v25 }
  0x49   : > { %1045 = vmatprep.mubr.msk.bf16.mxu0 %vm453_vm0, %v1186_v26  ;;  %1053 = vmatprep.mubr.msk.bf16.mxu1 %vm453_vm0, %v1188_v27 }
  0x50   : > { %567 = vmatmul.mubr.bf16.gmra.mxu0 %v1190_v28  ;;  %631 = vmatmul.mubr.bf16.gmra.mxu1 %v1191_v29 }
  0x51   : > { %1046 = vmatprep.mubr.msk.bf16.mxu0 %vm453_vm0, %v1192_v30  ;;  %1054 = vmatprep.mubr.msk.bf16.mxu1 %vm453_vm0, %v1194_v31 }
  0x58   : > { %575 = vmatmul.mubr.bf16.gmra.mxu0 %v1196_v32  ;;  %639 = vmatmul.mubr.bf16.gmra.mxu1 %v1197_v33 }
  0x59   : > { %1047 = vmatprep.mubr.msk.bf16.mxu0 %vm453_vm0, %v1198_v34  ;;  %1055 = vmatprep.mubr.msk.bf16.mxu1 %vm453_vm0, %v1200_v35 }
  0x60   : > { %583 = vmatmul.mubr.bf16.gmra.mxu0 %v1202_v36  ;;  %647 = vmatmul.mubr.bf16.gmra.mxu1 %v1203_v37 }
  0x61   : > { %1048 = vmatprep.mubr.msk.bf16.mxu0 %vm453_vm0, %v1204_v38  ;;  %1056 = vmatprep.mubr.msk.bf16.mxu1 %vm453_vm0, %v1206_v39 }
  0x68   : > { %591 = vmatmul.mubr.bf16.gmra.mxu0 %v1208_v40  ;;  %655 = vmatmul.mubr.bf16.gmra.mxu1 %v1209_v41 }
  0xf0   : > { %v536_v43 = vpop.f32.mrf.mxu0  ;;  %v600_v45 = vpop.f32.mrf.mxu1 }
  0xf1   : > { %v670_v46 = vmul.f32 %v1338_v42, %v536_v43  ;;  %v686_v47 = vmul.f32 %v1338_v42, %v600_v45 }
  0xf2   : > { %v538_v48 = vpop.f32.mrf.mxu0  ;;  %v602_v49 = vpop.f32.mrf.mxu1 }
  0xf3   : > { %v709_v50 = vadd.f32 %v1343_v44, %v670_v46  ;;  %v725_v51 = vadd.f32 %v1343_v44, %v686_v47 }
  0xf4   : > { %v539_v52 = vpop.f32.mrf.mxu0  ;;  %v603_v53 = vpop.f32.mrf.mxu1 }
  0xf5   : > { %v741_v54 = vmax.f32 %v709_v50, 0.0  ;;  %v757_v55 = vmax.f32 %v725_v51, 0.0  ;;  %v671_v56 = vmul.f32 %v1338_v42, %v539_v52  ;;  %v687_v57 = vmul.f32 %v1338_v42, %v603_v53 }
  0xf6   : > { %v541_v58 = vpop.f32.mrf.mxu0  ;;  %v605_v59 = vpop.f32.mrf.mxu1 }
  0xf7   : > { %v1094_v60 = vpack.c.bf16 %v741_v54, %v741_v54  ;;  %v1110_v61 = vpack.c.bf16 %v757_v55, %v757_v55  ;;  %v710_v62 = vadd.f32 %v1343_v44, %v671_v56  ;;  %v726_v63 = vadd.f32 %v1343_v44, %v687_v57 }
  0xf8   : > { %v544_v0 = vpop.f32.mrf.mxu0  ;;  %v608_v1 = vpop.f32.mrf.mxu1 }
  0xf9   : > { %902 = vst.msk [vmem:[%s1355_s23] sm:$0xf] %vm901_vm1, %v1094_v60  ;;  %918 = vst.msk [vmem:[%s1355_s23 + $0x40] sm:$0xf] %vm901_vm1, %v1110_v61  ;;  %v742_v2 = vmax.f32 %v710_v62, 0.0  ;;  %v758_v3 = vmax.f32 %v726_v63, 0.0  ;;  %v672_v4 = vmul.f32 %v1338_v42, %v544_v0  ;;  %v688_v5 = vmul.f32 %v1338_v42, %v608_v1 }
  0xfa   : > { %v546_v6 = vpop.f32.mrf.mxu0  ;;  %v610_v7 = vpop.f32.mrf.mxu1 }
  0xfb   : > { %v1095_v8 = vpack.c.bf16 %v742_v2, %v742_v2  ;;  %v1111_v9 = vpack.c.bf16 %v758_v3, %v758_v3  ;;  %v711_v10 = vadd.f32 %v1343_v44, %v672_v4  ;;  %v727_v11 = vadd.f32 %v1343_v44, %v688_v5 }
  0xfc   : > { %v547_v12 = vpop.f32.mrf.mxu0  ;;  %v611_v13 = vpop.f32.mrf.mxu1 }
  0xfd   : > { %903 = vst.msk [vmem:[%s1355_s23 + $0x4] sm:$0xf] %vm901_vm1, %v1095_v8  ;;  %919 = vst.msk [vmem:[%s1355_s23 + $0x44] sm:$0xf] %vm901_vm1, %v1111_v9  ;;  %v743_v14 = vmax.f32 %v711_v10, 0.0  ;;  %v759_v15 = vmax.f32 %v727_v11, 0.0  ;;  %v673_v16 = vmul.f32 %v1338_v42, %v547_v12  ;;  %v689_v17 = vmul.f32 %v1338_v42, %v611_v13 }
  0xfe   : > { %v549_v18 = vpop.f32.mrf.mxu0  ;;  %v613_v19 = vpop.f32.mrf.mxu1 }
  0xff   : > { %v1096_v20 = vpack.c.bf16 %v743_v14, %v743_v14  ;;  %v1112_v21 = vpack.c.bf16 %v759_v15, %v759_v15  ;;  %v712_v22 = vadd.f32 %v1343_v44, %v673_v16  ;;  %v728_v23 = vadd.f32 %v1343_v44, %v689_v17 }
 0x100   : > { %v552_v24 = vpop.f32.mrf.mxu0  ;;  %v616_v25 = vpop.f32.mrf.mxu1 }
 0x101   : > { %904 = vst.msk [vmem:[%s1355_s23 + $0x8] sm:$0xf] %vm901_vm1, %v1096_v20  ;;  %920 = vst.msk [vmem:[%s1355_s23 + $0x48] sm:$0xf] %vm901_vm1, %v1112_v21  ;;  %v744_v26 = vmax.f32 %v712_v22, 0.0  ;;  %v760_v27 = vmax.f32 %v728_v23, 0.0  ;;  %v674_v28 = vmul.f32 %v1338_v42, %v552_v24  ;;  %v690_v29 = vmul.f32 %v1338_v42, %v616_v25 }
 0x102   : > { %v554_v30 = vpop.f32.mrf.mxu0  ;;  %v618_v31 = vpop.f32.mrf.mxu1 }
 0x103   : > { %v1097_v32 = vpack.c.bf16 %v744_v26, %v744_v26  ;;  %v1113_v33 = vpack.c.bf16 %v760_v27, %v760_v27  ;;  %v713_v34 = vadd.f32 %v1343_v44, %v674_v28  ;;  %v729_v35 = vadd.f32 %v1343_v44, %v690_v29 }
 0x104   : > { %v555_v36 = vpop.f32.mrf.mxu0  ;;  %v619_v37 = vpop.f32.mrf.mxu1 }
 0x105   : > { %905 = vst.msk [vmem:[%s1355_s23 + $0xc] sm:$0xf] %vm901_vm1, %v1097_v32  ;;  %921 = vst.msk [vmem:[%s1355_s23 + $0x4c] sm:$0xf] %vm901_vm1, %v1113_v33  ;;  %v745_v38 = vmax.f32 %v713_v34, 0.0  ;;  %v761_v39 = vmax.f32 %v729_v35, 0.0  ;;  %v675_v40 = vmul.f32 %v1338_v42, %v555_v36  ;;  %v691_v41 = vmul.f32 %v1338_v42, %v619_v37 }
 0x106   : > { %v557_v43 = vpop.f32.mrf.mxu0  ;;  %v621_v45 = vpop.f32.mrf.mxu1 }
 0x107   : > { %v1098_v46 = vpack.c.bf16 %v745_v38, %v745_v38  ;;  %v1114_v47 = vpack.c.bf16 %v761_v39, %v761_v39  ;;  %v714_v48 = vadd.f32 %v1343_v44, %v675_v40  ;;  %v730_v49 = vadd.f32 %v1343_v44, %v691_v41 }
 0x108   : > { %v560_v50 = vpop.f32.mrf.mxu0  ;;  %v624_v51 = vpop.f32.mrf.mxu1 }
 0x109   : > { %906 = vst.msk [vmem:[%s1355_s23 + $0x10] sm:$0xf] %vm901_vm1, %v1098_v46  ;;  %922 = vst.msk [vmem:[%s1355_s23 + $0x50] sm:$0xf] %vm901_vm1, %v1114_v47  ;;  %v746_v52 = vmax.f32 %v714_v48, 0.0  ;;  %v762_v53 = vmax.f32 %v730_v49, 0.0  ;;  %v676_v54 = vmul.f32 %v1338_v42, %v560_v50  ;;  %v692_v55 = vmul.f32 %v1338_v42, %v624_v51 }
 0x10a   : > { %v562_v56 = vpop.f32.mrf.mxu0  ;;  %v626_v57 = vpop.f32.mrf.mxu1 }
 0x10b   : > { %v1099_v58 = vpack.c.bf16 %v746_v52, %v746_v52  ;;  %v1115_v59 = vpack.c.bf16 %v762_v53, %v762_v53  ;;  %v715_v60 = vadd.f32 %v1343_v44, %v676_v54  ;;  %v731_v61 = vadd.f32 %v1343_v44, %v692_v55 }
 0x10c   : > { %v563_v62 = vpop.f32.mrf.mxu0  ;;  %v627_v63 = vpop.f32.mrf.mxu1 }
 0x10d   : > { %907 = vst.msk [vmem:[%s1355_s23 + $0x14] sm:$0xf] %vm901_vm1, %v1099_v58  ;;  %923 = vst.msk [vmem:[%s1355_s23 + $0x54] sm:$0xf] %vm901_vm1, %v1115_v59  ;;  %v747_v0 = vmax.f32 %v715_v60, 0.0  ;;  %v763_v1 = vmax.f32 %v731_v61, 0.0  ;;  %v677_v2 = vmul.f32 %v1338_v42, %v563_v62  ;;  %v693_v3 = vmul.f32 %v1338_v42, %v627_v63 }
 0x10e   : > { %v565_v4 = vpop.f32.mrf.mxu0  ;;  %v629_v5 = vpop.f32.mrf.mxu1 }
 0x10f   : > { %v1100_v6 = vpack.c.bf16 %v747_v0, %v747_v0  ;;  %v1116_v7 = vpack.c.bf16 %v763_v1, %v763_v1  ;;  %v716_v8 = vadd.f32 %v1343_v44, %v677_v2  ;;  %v732_v9 = vadd.f32 %v1343_v44, %v693_v3 }
 0x110   : > { %v568_v10 = vpop.f32.mrf.mxu0  ;;  %v632_v11 = vpop.f32.mrf.mxu1 }
 0x111   : > { %908 = vst.msk [vmem:[%s1355_s23 + $0x18] sm:$0xf] %vm901_vm1, %v1100_v6  ;;  %924 = vst.msk [vmem:[%s1355_s23 + $0x58] sm:$0xf] %vm901_vm1, %v1116_v7  ;;  %v748_v12 = vmax.f32 %v716_v8, 0.0  ;;  %v764_v13 = vmax.f32 %v732_v9, 0.0  ;;  %v678_v14 = vmul.f32 %v1338_v42, %v568_v10  ;;  %v694_v15 = vmul.f32 %v1338_v42, %v632_v11 }
 0x112   : > { %v570_v16 = vpop.f32.mrf.mxu0  ;;  %v634_v17 = vpop.f32.mrf.mxu1 }
 0x113   : > { %v1101_v18 = vpack.c.bf16 %v748_v12, %v748_v12  ;;  %v1117_v19 = vpack.c.bf16 %v764_v13, %v764_v13  ;;  %v717_v20 = vadd.f32 %v1343_v44, %v678_v14  ;;  %v733_v21 = vadd.f32 %v1343_v44, %v694_v15 }
 0x114   : > { %v571_v22 = vpop.f32.mrf.mxu0  ;;  %v635_v23 = vpop.f32.mrf.mxu1 }
 0x115   : > { %909 = vst.msk [vmem:[%s1355_s23 + $0x1c] sm:$0xf] %vm901_vm1, %v1101_v18  ;;  %925 = vst.msk [vmem:[%s1355_s23 + $0x5c] sm:$0xf] %vm901_vm1, %v1117_v19  ;;  %v749_v24 = vmax.f32 %v717_v20, 0.0  ;;  %v765_v25 = vmax.f32 %v733_v21, 0.0  ;;  %v679_v26 = vmul.f32 %v1338_v42, %v571_v22  ;;  %v695_v27 = vmul.f32 %v1338_v42, %v635_v23 }
 0x116   : > { %v573_v28 = vpop.f32.mrf.mxu0  ;;  %v637_v29 = vpop.f32.mrf.mxu1 }
 0x117   : > { %v1102_v30 = vpack.c.bf16 %v749_v24, %v749_v24  ;;  %v1118_v31 = vpack.c.bf16 %v765_v25, %v765_v25  ;;  %v718_v32 = vadd.f32 %v1343_v44, %v679_v26  ;;  %v734_v33 = vadd.f32 %v1343_v44, %v695_v27 }
 0x118   : > { %v576_v34 = vpop.f32.mrf.mxu0  ;;  %v640_v35 = vpop.f32.mrf.mxu1 }
 0x119   : > { %910 = vst.msk [vmem:[%s1355_s23 + $0x20] sm:$0xf] %vm901_vm1, %v1102_v30  ;;  %926 = vst.msk [vmem:[%s1355_s23 + $0x60] sm:$0xf] %vm901_vm1, %v1118_v31  ;;  %v750_v36 = vmax.f32 %v718_v32, 0.0  ;;  %v766_v37 = vmax.f32 %v734_v33, 0.0  ;;  %v680_v38 = vmul.f32 %v1338_v42, %v576_v34  ;;  %v696_v39 = vmul.f32 %v1338_v42, %v640_v35 }
 0x11a   : > { %v578_v40 = vpop.f32.mrf.mxu0  ;;  %v642_v41 = vpop.f32.mrf.mxu1 }
 0x11b   : > { %v1103_v43 = vpack.c.bf16 %v750_v36, %v750_v36  ;;  %v1119_v45 = vpack.c.bf16 %v766_v37, %v766_v37  ;;  %v719_v46 = vadd.f32 %v1343_v44, %v680_v38  ;;  %v735_v47 = vadd.f32 %v1343_v44, %v696_v39 }
 0x11c   : > { %v579_v48 = vpop.f32.mrf.mxu0  ;;  %v643_v49 = vpop.f32.mrf.mxu1 }
 0x11d   : > { %911 = vst.msk [vmem:[%s1355_s23 + $0x24] sm:$0xf] %vm901_vm1, %v1103_v43  ;;  %927 = vst.msk [vmem:[%s1355_s23 + $0x64] sm:$0xf] %vm901_vm1, %v1119_v45  ;;  %v751_v50 = vmax.f32 %v719_v46, 0.0  ;;  %v767_v51 = vmax.f32 %v735_v47, 0.0  ;;  %v681_v52 = vmul.f32 %v1338_v42, %v579_v48  ;;  %v697_v53 = vmul.f32 %v1338_v42, %v643_v49 }
 0x11e   : > { %v581_v54 = vpop.f32.mrf.mxu0  ;;  %v645_v55 = vpop.f32.mrf.mxu1 }
 0x11f   : > { %v1104_v56 = vpack.c.bf16 %v751_v50, %v751_v50  ;;  %v1120_v57 = vpack.c.bf16 %v767_v51, %v767_v51  ;;  %v720_v58 = vadd.f32 %v1343_v44, %v681_v52  ;;  %v736_v59 = vadd.f32 %v1343_v44, %v697_v53 }
 0x120   : > { %v584_v60 = vpop.f32.mrf.mxu0  ;;  %v648_v61 = vpop.f32.mrf.mxu1 }
 0x121   : > { %912 = vst.msk [vmem:[%s1355_s23 + $0x28] sm:$0xf] %vm901_vm1, %v1104_v56  ;;  %928 = vst.msk [vmem:[%s1355_s23 + $0x68] sm:$0xf] %vm901_vm1, %v1120_v57  ;;  %v752_v62 = vmax.f32 %v720_v58, 0.0  ;;  %v768_v63 = vmax.f32 %v736_v59, 0.0  ;;  %v682_v0 = vmul.f32 %v1338_v42, %v584_v60  ;;  %v698_v1 = vmul.f32 %v1338_v42, %v648_v61 }
 0x122   : > { %v586_v2 = vpop.f32.mrf.mxu0  ;;  %v650_v3 = vpop.f32.mrf.mxu1 }
 0x123   : > { %v1105_v4 = vpack.c.bf16 %v752_v62, %v752_v62  ;;  %v1121_v5 = vpack.c.bf16 %v768_v63, %v768_v63  ;;  %v721_v6 = vadd.f32 %v1343_v44, %v682_v0  ;;  %v737_v7 = vadd.f32 %v1343_v44, %v698_v1 }
 0x124   : > { %v587_v8 = vpop.f32.mrf.mxu0  ;;  %v651_v9 = vpop.f32.mrf.mxu1 }
 0x125   : > { %913 = vst.msk [vmem:[%s1355_s23 + $0x2c] sm:$0xf] %vm901_vm1, %v1105_v4  ;;  %929 = vst.msk [vmem:[%s1355_s23 + $0x6c] sm:$0xf] %vm901_vm1, %v1121_v5  ;;  %v753_v10 = vmax.f32 %v721_v6, 0.0  ;;  %v769_v11 = vmax.f32 %v737_v7, 0.0  ;;  %v683_v12 = vmul.f32 %v1338_v42, %v587_v8  ;;  %v699_v13 = vmul.f32 %v1338_v42, %v651_v9 }
 0x126   : > { %v589_v14 = vpop.f32.mrf.mxu0  ;;  %v653_v15 = vpop.f32.mrf.mxu1 }
 0x127   : > { %v1106_v16 = vpack.c.bf16 %v753_v10, %v753_v10  ;;  %v1122_v17 = vpack.c.bf16 %v769_v11, %v769_v11  ;;  %v722_v18 = vadd.f32 %v1343_v44, %v683_v12  ;;  %v738_v19 = vadd.f32 %v1343_v44, %v699_v13 }
 0x128   : > { %v592_v20 = vpop.f32.mrf.mxu0  ;;  %v656_v21 = vpop.f32.mrf.mxu1 }
 0x129   : > { %914 = vst.msk [vmem:[%s1355_s23 + $0x30] sm:$0xf] %vm901_vm1, %v1106_v16  ;;  %930 = vst.msk [vmem:[%s1355_s23 + $0x70] sm:$0xf] %vm901_vm1, %v1122_v17  ;;  %v754_v22 = vmax.f32 %v722_v18, 0.0  ;;  %v770_v23 = vmax.f32 %v738_v19, 0.0  ;;  %v684_v24 = vmul.f32 %v1338_v42, %v592_v20  ;;  %v700_v25 = vmul.f32 %v1338_v42, %v656_v21 }
 0x12a   : > { %v594_v26 = vpop.f32.mrf.mxu0  ;;  %v658_v27 = vpop.f32.mrf.mxu1 }
 0x12b   : > { %v1107_v28 = vpack.c.bf16 %v754_v22, %v754_v22  ;;  %v1123_v29 = vpack.c.bf16 %v770_v23, %v770_v23  ;;  %v723_v30 = vadd.f32 %v1343_v44, %v684_v24  ;;  %v739_v31 = vadd.f32 %v1343_v44, %v700_v25 }
 0x12c   : > { %v595_v32 = vpop.f32.mrf.mxu0  ;;  %v659_v33 = vpop.f32.mrf.mxu1 }
 0x12d   : > { %915 = vst.msk [vmem:[%s1355_s23 + $0x34] sm:$0xf] %vm901_vm1, %v1107_v28  ;;  %931 = vst.msk [vmem:[%s1355_s23 + $0x74] sm:$0xf] %vm901_vm1, %v1123_v29  ;;  %v755_v34 = vmax.f32 %v723_v30, 0.0  ;;  %v771_v35 = vmax.f32 %v739_v31, 0.0  ;;  %v685_v36 = vmul.f32 %v1338_v42, %v595_v32  ;;  %v701_v37 = vmul.f32 %v1338_v42, %v659_v33 }
 0x12e   : > { %v597_v38 = vpop.f32.mrf.mxu0  ;;  %v661_v39 = vpop.f32.mrf.mxu1 }
 0x12f   : > { %v1108_v40 = vpack.c.bf16 %v755_v34, %v755_v34  ;;  %v1124_v41 = vpack.c.bf16 %v771_v35, %v771_v35  ;;  %v724_v43 = vadd.f32 %v1343_v44, %v685_v36  ;;  %v740_v45 = vadd.f32 %v1343_v44, %v701_v37 }
 0x131   : > { %916 = vst.msk [vmem:[%s1355_s23 + $0x38] sm:$0xf] %vm901_vm1, %v1108_v40  ;;  %932 = vst.msk [vmem:[%s1355_s23 + $0x78] sm:$0xf] %vm901_vm1, %v1124_v41  ;;  %v756_v46 = vmax.f32 %v724_v43, 0.0  ;;  %v772_v47 = vmax.f32 %v740_v45, 0.0 }
 0x133   : > { %v1109_v48 = vpack.c.bf16 %v756_v46, %v756_v46  ;;  %v1125_v49 = vpack.c.bf16 %v772_v47, %v772_v47 }
 0x135   : > { %917 = vst.msk [vmem:[%s1355_s23 + $0x3c] sm:$0xf] %vm901_vm1, %v1109_v48  ;;  %933 = vst.msk [vmem:[%s1355_s23 + $0x7c] sm:$0xf] %vm901_vm1, %v1125_v49 }
 0x136 PF: > { %s14_s15 = sadd.s32 1, %s1216_s15  }
 0x137   : > { %p11_p4 = scmp.ge.s32.totalorder %s14_s15, 4  }
 0x139   :  { %13 = sbr.rel (!%p11_p4) target bundleno = 1 (0x1), region = 66 }

// kernel: _lambda_.173
= control target key start
LH: loop header
LB: loop body
LE: loop exit
PB: predicated region body
PF: predicated region fallthrough
CT: control target
= control target key end

     0   :  { %s1355_s18 = smov 0   ;;  %s1701_s0 = inlined_call_operand.vmem [shape: bf16[512,16], index: 0, kind: input, shape index: {}]   ;;  %s1702_s1 = inlined_call_operand.vmem [shape: bf16[16,16], index: 1, kind: input, shape index: {}]   ;;  %s1703_s2 = inlined_call_operand.vmem [shape: f32[1,16], index: 2, kind: input, shape index: {}]   ;;  %s1704_s3 = inlined_call_operand.vmem [shape: f32[1,16], index: 3, kind: input, shape index: {}]   ;;  %s1705_s4 = inlined_call_operand.vmem [shape: bf16[512,16], index: 4, kind: input, shape index: {}]   ;;  %s1706_s5 = inlined_call_operand.vmem [shape: bf16[512,16], index: 5, kind: output, shape index: {}]  }
   0x1 LB: > { %s1048_s19 = sadd.s32 4294967295, %s1323_s18   ;;  %p1052_p0 = scmp.ge.s32.totalorder %s1323_s18, 1  ;;  %s1323_s18 = sphi %s1355_s18, %s15_s18  }
   0x2   : > { %p199_p1 = scmp.lt.s32.totalorder %s1323_s18, 3 }
   0x4   : > { %p200_p2 = pnand %p1052_p0, %p199_p1 }
   0x5   : > { %s1053_s22 = sshll.u32 (!%p200_p2), %s1048_s19, 5 }
   0x6   : > { %203 = sbr.rel (%p200_p2) target bundleno = 266 (0x10a), region = 40  ;;  %p233_p3 = scmp.lt.s32.totalorder (!%p200_p2), %s1053_s22, 63 }
   0xb   : > { %v1300_v0 = vld [vmem:[%s1702_s1] sm:$0xff]   ;;  %s1714_s22 = smov (!%p233_p3, %s1053_s22), 63  ;;  %vm371_vm0 = vcmask 130048   ;;  %vm947_vm1 = vcmask 125952  }
   0xc   : > { %1256 = vmatprep.subr.bf16.mxu0 %v1300_v0  ;;  %1290 = vmatprep.subr.bf16.mxu1 %v1300_v0  ;;  %s1366_s23 = sshll.u32 %s1714_s22, 2  ;;  %v1459_v37 = vld [vmem:[%s1703_s2] ss:$0 sm:$0xff] }
   0xd   : > { %1257 = vmatpush3.bf16.msra.mxu0 %v1300_v0  ;;  %1291 = vmatpush3.bf16.msra.mxu1 %v1300_v0  ;;  %s1372_s26 = scalar_lea.vmem %s1701_s0, %s1366_s23  ;;  %s1410_s29 = scalar_lea.vmem %s1705_s4, %s1366_s23  ;;  %v1478_v49 = vld [vmem:[%s1704_s3] ss:$0 sm:$0xff] }
   0xe   : > { %v1301_v1 = vld [vmem:[%s1372_s26] sm:$0xff]   ;;  %v1303_v3 = vld [vmem:[%s1372_s26 + $0x8] sm:$0xff]   ;;  %v1305_v5 = vld [vmem:[%s1372_s26 + $0x10] sm:$0xff]   ;;  %s1525_s11 = scalar_lea.vmem %s1706_s5, %s1366_s23 }
   0xf   : > { %v1302_v2 = vld [vmem:[%s1372_s26 + $0x40] sm:$0xff]   ;;  %1258 = vmatprep.mubr.msk.bf16.mxu0 %vm371_vm0, %v1301_v1  ;;  %v1304_v4 = vld [vmem:[%s1372_s26 + $0x48] sm:$0xff]   ;;  %v1306_v6 = vld [vmem:[%s1372_s26 + $0x50] sm:$0xff]  }
  0x10   : > { %1274 = vmatprep.mubr.msk.bf16.mxu1 %vm371_vm0, %v1302_v2  ;;  %1259 = vmatmul.mubr.msk.bf16.vlgmr.msra.gmra.mxu0 %vm371_vm0, %v1303_v3  ;;  %v1307_v7 = vld [vmem:[%s1372_s26 + $0x18] sm:$0xff]   ;;  %v1309_v9 = vld [vmem:[%s1372_s26 + $0x20] sm:$0xff]   ;;  %v1311_v11 = vld [vmem:[%s1372_s26 + $0x28] sm:$0xff]  }
  0x11   : > { %1275 = vmatmul.mubr.msk.bf16.vlgmr.msra.gmra.mxu1 %vm371_vm0, %v1304_v4  ;;  %1262 = vmatprep.mubr.msk.bf16.mxu0 %vm371_vm0, %v1305_v5  ;;  %v1308_v8 = vld [vmem:[%s1372_s26 + $0x58] sm:$0xff]   ;;  %v1310_v10 = vld [vmem:[%s1372_s26 + $0x60] sm:$0xff]   ;;  %v1312_v12 = vld [vmem:[%s1372_s26 + $0x68] sm:$0xff]  }
  0x12   : > { %1278 = vmatprep.mubr.msk.bf16.mxu1 %vm371_vm0, %v1306_v6  ;;  %v1313_v13 = vld [vmem:[%s1372_s26 + $0x30] sm:$0xff]   ;;  %v1315_v15 = vld [vmem:[%s1372_s26 + $0x38] sm:$0xff]   ;;  %v1413_v17 = vld [vmem:[%s1410_s29 + $0x8] sm:$0xff]  }
  0x13   : > { %v1314_v14 = vld [vmem:[%s1372_s26 + $0x70] sm:$0xff]   ;;  %v1316_v16 = vld [vmem:[%s1372_s26 + $0x78] sm:$0xff]   ;;  %v1416_v18 = vld [vmem:[%s1410_s29 + $0x48] sm:$0xff]   ;;  %v1166_v25 = vunpack.c.l.bf16 %v1413_v17  ;;  %v1167_v30 = vunpack.c.h.bf16 %v1413_v17 }
  0x14   : > { %v1419_v19 = vld [vmem:[%s1410_s29] sm:$0xff]   ;;  %v1425_v21 = vld [vmem:[%s1410_s29 + $0x18] sm:$0xff]   ;;  %v1431_v23 = vld [vmem:[%s1410_s29 + $0x10] sm:$0xff]   ;;  %v1198_v26 = vunpack.c.l.bf16 %v1416_v18  ;;  %v1199_v31 = vunpack.c.h.bf16 %v1416_v18 }
  0x15   : > { %v1422_v20 = vld [vmem:[%s1410_s29 + $0x40] sm:$0xff]   ;;  %v1428_v22 = vld [vmem:[%s1410_s29 + $0x58] sm:$0xff]   ;;  %v1434_v24 = vld [vmem:[%s1410_s29 + $0x50] sm:$0xff]   ;;  %v1162_v27 = vunpack.c.l.bf16 %v1419_v19  ;;  %v1163_v32 = vunpack.c.h.bf16 %v1419_v19  ;;  %v1174_v38 = vunpack.c.l.bf16 %v1425_v21  ;;  %v1170_v40 = vunpack.c.l.bf16 %v1431_v23 }
  0x16   : > { %v1194_v28 = vunpack.c.l.bf16 %v1422_v20  ;;  %v1441_v29 = vld [vmem:[%s1410_s29 + $0x28] sm:$0xff]   ;;  %v1195_v33 = vunpack.c.h.bf16 %v1422_v20  ;;  %v1451_v35 = vld [vmem:[%s1410_s29 + $0x20] sm:$0xff]   ;;  %v1206_v39 = vunpack.c.l.bf16 %v1428_v22  ;;  %v1202_v41 = vunpack.c.l.bf16 %v1434_v24  ;;  %v1470_v46 = vld [vmem:[%s1410_s29 + $0x38] sm:$0xff]  }
  0x17   : > { %v1448_v34 = vld [vmem:[%s1410_s29 + $0x68] sm:$0xff]   ;;  %v1454_v36 = vld [vmem:[%s1410_s29 + $0x60] sm:$0xff]   ;;  %v1175_v42 = vunpack.c.h.bf16 %v1425_v21  ;;  %v1207_v43 = vunpack.c.h.bf16 %v1428_v22  ;;  %v1171_v44 = vunpack.c.h.bf16 %v1431_v23  ;;  %v1203_v45 = vunpack.c.h.bf16 %v1434_v24  ;;  %v1473_v47 = vld [vmem:[%s1410_s29 + $0x78] sm:$0xff]  }
  0x18   : > { %1263 = vmatmul.mubr.msk.bf16.gmra.mxu0 %vm371_vm0, %v1307_v7  ;;  %v1182_v50 = vunpack.c.l.bf16 %v1441_v29  ;;  %v1214_v51 = vunpack.c.l.bf16 %v1448_v34  ;;  %v1178_v52 = vunpack.c.l.bf16 %v1451_v35  ;;  %v1210_v53 = vunpack.c.l.bf16 %v1454_v36  ;;  %v1485_v54 = vld [vmem:[%s1410_s29 + $0x30] sm:$0xff]  }
  0x19   : > { %1279 = vmatmul.mubr.msk.bf16.gmra.mxu1 %vm371_vm0, %v1308_v8  ;;  %1266 = vmatprep.mubr.msk.bf16.mxu0 %vm371_vm0, %v1309_v9  ;;  %v1488_v55 = vld [vmem:[%s1410_s29 + $0x70] sm:$0xff]   ;;  %v1183_v58 = vunpack.c.h.bf16 %v1441_v29  ;;  %v1215_v59 = vunpack.c.h.bf16 %v1448_v34  ;;  %v1179_v60 = vunpack.c.h.bf16 %v1451_v35  ;;  %v1211_v63 = vunpack.c.h.bf16 %v1454_v36 }
  0x1a   : > { %1282 = vmatprep.mubr.msk.bf16.mxu1 %vm371_vm0, %v1310_v10  ;;  %v1190_v0 = vunpack.c.l.bf16 %v1470_v46  ;;  %v1222_v1 = vunpack.c.l.bf16 %v1473_v47 }
  0x20   : > { %1267 = vmatmul.mubr.msk.bf16.gmra.mxu0 %vm371_vm0, %v1311_v11 }
  0x21   : > { %1283 = vmatmul.mubr.msk.bf16.gmra.mxu1 %vm371_vm0, %v1312_v12  ;;  %1270 = vmatprep.mubr.msk.bf16.mxu0 %vm371_vm0, %v1313_v13 }
  0x22   : > { %1286 = vmatprep.mubr.msk.bf16.mxu1 %vm371_vm0, %v1314_v14 }
  0x28   : > { %1271 = vmatmul.mubr.msk.bf16.gmra.mxu0 %vm371_vm0, %v1315_v15 }
  0x29   : > { %1287 = vmatmul.mubr.msk.bf16.gmra.mxu1 %vm371_vm0, %v1316_v16 }
  0xd0   : > { %v1260_v48 = vpop.f32.mrf.mxu0 }
  0xd1   : > { %v590_v56 = vmul.f32 %v1260_v48, %v1459_v37  ;;  %v1276_v57 = vpop.f32.mrf.mxu1 }
  0xd2   : > { %v606_v61 = vmul.f32 %v1276_v57, %v1459_v37  ;;  %v454_v62 = vpop.f32.mrf.mxu0 }
  0xd3   : > { %v629_v2 = vadd.f32 %v1478_v49, %v590_v56  ;;  %v588_v3 = vmul.f32 %v1459_v37, %v454_v62  ;;  %v518_v4 = vpop.f32.mrf.mxu1 }
  0xd4   : > { %v645_v7 = vadd.f32 %v1478_v49, %v606_v61  ;;  %v604_v8 = vmul.f32 %v1459_v37, %v518_v4  ;;  %v1261_v9 = vpop.f32.mrf.mxu0 }
  0xd5   : > { %v661_v12 = vmax.f32 %v629_v2, 0.0  ;;  %v627_v13 = vadd.f32 %v1478_v49, %v588_v3  ;;  %v591_v14 = vmul.f32 %v1261_v9, %v1459_v37  ;;  %v1277_v15 = vpop.f32.mrf.mxu1 }
  0xd6   : > { %v677_v48 = vmax.f32 %v645_v7, 0.0  ;;  %v643_v56 = vadd.f32 %v1478_v49, %v604_v8  ;;  %v607_v57 = vmul.f32 %v1277_v15, %v1459_v37  ;;  %v457_v61 = vpop.f32.mrf.mxu0 }
  0xd7   : > { %v757_v4 = vadd.f32 %v1166_v25, %v661_v12  ;;  %v659_v10 = vmax.f32 %v627_v13, 0.0  ;;  %v630_v2 = vadd.f32 %v1478_v49, %v591_v14  ;;  %v589_v3 = vmul.f32 %v1459_v37, %v457_v61  ;;  %v521_v11 = vpop.f32.mrf.mxu1 }
  0xd8   : > { %v773_v9 = vadd.f32 %v1198_v26, %v677_v48  ;;  %v675_v16 = vmax.f32 %v643_v56, 0.0  ;;  %v646_v7 = vadd.f32 %v1478_v49, %v607_v57  ;;  %v605_v8 = vmul.f32 %v1459_v37, %v521_v11  ;;  %v1264_v15 = vpop.f32.mrf.mxu0 }
  0xd9   : > { %v789_v6 = vmax.f32 %v757_v4, 0.0  ;;  %v755_v62 = vadd.f32 %v1162_v27, %v659_v10  ;;  %v662_v25 = vmax.f32 %v630_v2, 0.0  ;;  %v628_v12 = vadd.f32 %v1478_v49, %v589_v3  ;;  %v1280_v13 = vpop.f32.mrf.mxu1 }
  0xda   : > { %v805_v26 = vmax.f32 %v773_v9, 0.0  ;;  %v771_v14 = vadd.f32 %v1194_v28, %v675_v16  ;;  %v678_v11 = vmax.f32 %v646_v7, 0.0  ;;  %v644_v48 = vadd.f32 %v1478_v49, %v605_v8  ;;  %v470_v56 = vpop.f32.mrf.mxu0 }
  0xdb   : > { %v1130_v57 = vpack.c.bf16 %v789_v6, %v789_v6  ;;  %v787_v27 = vmax.f32 %v755_v62, 0.0  ;;  %v758_v10 = vadd.f32 %v1167_v30, %v662_v25  ;;  %v660_v61 = vmax.f32 %v628_v12, 0.0  ;;  %v534_v4 = vpop.f32.mrf.mxu1 }
  0xdc   : > { %v1146_v2 = vpack.c.bf16 %v805_v26, %v805_v26  ;;  %v803_v3 = vmax.f32 %v771_v14, 0.0  ;;  %v774_v9 = vadd.f32 %v1199_v31, %v678_v11  ;;  %v676_v5 = vmax.f32 %v644_v48, 0.0  ;;  %v1265_v28 = vpop.f32.mrf.mxu0 }
  0xdd   : > { %950 = vst.msk [vmem:[%s1525_s11 + $0x8] sm:$0xf] %vm947_vm1, %v1130_v57  ;;  %v1128_v16 = vpack.c.bf16 %v787_v27, %v787_v27  ;;  %v790_v7 = vmax.f32 %v758_v10, 0.0  ;;  %v756_v6 = vadd.f32 %v1163_v32, %v660_v61  ;;  %v594_v17 = vmul.f32 %v1264_v15, %v1459_v37  ;;  %v1281_v30 = vpop.f32.mrf.mxu1 }
  0xde   : > { %966 = vst.msk [vmem:[%s1525_s11 + $0x48] sm:$0xf] %vm947_vm1, %v1146_v2  ;;  %v1144_v62 = vpack.c.bf16 %v803_v3, %v803_v3  ;;  %v806_v8 = vmax.f32 %v774_v9, 0.0  ;;  %v772_v18 = vadd.f32 %v1195_v33, %v676_v5  ;;  %v610_v31 = vmul.f32 %v1280_v13, %v1459_v37  ;;  %v473_v25 = vpop.f32.mrf.mxu0 }
  0xdf   : > { %948 = vst.msk [vmem:[%s1525_s11] sm:$0xf] %vm947_vm1, %v1128_v16  ;;  %v1131_v12 = vpack.c.bf16 %v790_v7, %v790_v7  ;;  %v788_v19 = vmax.f32 %v756_v6, 0.0  ;;  %v633_v32 = vadd.f32 %v1478_v49, %v594_v17  ;;  %v592_v15 = vmul.f32 %v1459_v37, %v470_v56  ;;  %v537_v26 = vpop.f32.mrf.mxu1 }
  0xe0   : > { %964 = vst.msk [vmem:[%s1525_s11 + $0x40] sm:$0xf] %vm947_vm1, %v1144_v62  ;;  %v1147_v14 = vpack.c.bf16 %v806_v8, %v806_v8  ;;  %v804_v11 = vmax.f32 %v772_v18, 0.0  ;;  %v649_v20 = vadd.f32 %v1478_v49, %v610_v31  ;;  %v608_v33 = vmul.f32 %v1459_v37, %v534_v4  ;;  %v1268_v5 = vpop.f32.mrf.mxu0 }
  0xe1   : > { %951 = vst.msk [vmem:[%s1525_s11 + $0xc] sm:$0xf] %vm947_vm1, %v1131_v12  ;;  %v1129_v13 = vpack.c.bf16 %v788_v19, %v788_v19  ;;  %v665_v48 = vmax.f32 %v633_v32, 0.0  ;;  %v631_v57 = vadd.f32 %v1478_v49, %v592_v15  ;;  %v595_v56 = vmul.f32 %v1265_v28, %v1459_v37  ;;  %v1284_v27 = vpop.f32.mrf.mxu1 }
  0xe2   : > { %967 = vst.msk [vmem:[%s1525_s11 + $0x4c] sm:$0xf] %vm947_vm1, %v1147_v14  ;;  %v1145_v10 = vpack.c.bf16 %v804_v11, %v804_v11  ;;  %v681_v61 = vmax.f32 %v649_v20, 0.0  ;;  %v647_v2 = vadd.f32 %v1478_v49, %v608_v33  ;;  %v611_v3 = vmul.f32 %v1281_v30, %v1459_v37  ;;  %v486_v4 = vpop.f32.mrf.mxu0 }
  0xe3   : > { %949 = vst.msk [vmem:[%s1525_s11 + $0x4] sm:$0xf] %vm947_vm1, %v1129_v13  ;;  %v761_v9 = vadd.f32 %v1174_v38, %v665_v48  ;;  %v663_v16 = vmax.f32 %v631_v57, 0.0  ;;  %v634_v7 = vadd.f32 %v1478_v49, %v595_v56  ;;  %v593_v28 = vmul.f32 %v1459_v37, %v473_v25  ;;  %v550_v6 = vpop.f32.mrf.mxu1 }
  0xe4   : > { %965 = vst.msk [vmem:[%s1525_s11 + $0x44] sm:$0xf] %vm947_vm1, %v1145_v10  ;;  %v777_v17 = vadd.f32 %v1206_v39, %v681_v61  ;;  %v679_v62 = vmax.f32 %v647_v2, 0.0  ;;  %v650_v30 = vadd.f32 %v1478_v49, %v611_v3  ;;  %v609_v8 = vmul.f32 %v1459_v37, %v537_v26  ;;  %v1269_v18 = vpop.f32.mrf.mxu0 }
  0xe5   : > { %v793_v31 = vmax.f32 %v761_v9, 0.0  ;;  %v759_v38 = vadd.f32 %v1170_v40, %v663_v16  ;;  %v666_v12 = vmax.f32 %v634_v7, 0.0  ;;  %v632_v25 = vadd.f32 %v1478_v49, %v593_v28  ;;  %v1285_v19 = vpop.f32.mrf.mxu1 }
  0xe6   : > { %v809_v32 = vmax.f32 %v777_v17, 0.0  ;;  %v775_v15 = vadd.f32 %v1202_v41, %v679_v62  ;;  %v682_v39 = vmax.f32 %v650_v30, 0.0  ;;  %v648_v14 = vadd.f32 %v1478_v49, %v609_v8  ;;  %v489_v56 = vpop.f32.mrf.mxu0 }
  0xe7   : > { %v1134_v11 = vpack.c.bf16 %v793_v31, %v793_v31  ;;  %v791_v26 = vmax.f32 %v759_v38, 0.0  ;;  %v762_v20 = vadd.f32 %v1175_v42, %v666_v12  ;;  %v664_v33 = vmax.f32 %v632_v25, 0.0  ;;  %v553_v42 = vpop.f32.mrf.mxu1 }
  0xe8   : > { %v1150_v40 = vpack.c.bf16 %v809_v32, %v809_v32  ;;  %v807_v13 = vmax.f32 %v775_v15, 0.0  ;;  %v778_v48 = vadd.f32 %v1207_v43, %v682_v39  ;;  %v680_v57 = vmax.f32 %v648_v14, 0.0 }
  0xe9   : > { %954 = vst.msk [vmem:[%s1525_s11 + $0x18] sm:$0xf] %vm947_vm1, %v1134_v11  ;;  %v1132_v41 = vpack.c.bf16 %v791_v26, %v791_v26  ;;  %v794_v10 = vmax.f32 %v762_v20, 0.0  ;;  %v760_v61 = vadd.f32 %v1171_v44, %v664_v33  ;;  %v598_v21 = vmul.f32 %v1268_v5, %v1459_v37 }
  0xea   : > { %970 = vst.msk [vmem:[%s1525_s11 + $0x58] sm:$0xf] %vm947_vm1, %v1150_v40  ;;  %v1148_v2 = vpack.c.bf16 %v807_v13, %v807_v13  ;;  %v810_v3 = vmax.f32 %v778_v48, 0.0  ;;  %v776_v22 = vadd.f32 %v1203_v45, %v680_v57  ;;  %v614_v43 = vmul.f32 %v1284_v27, %v1459_v37  ;;  %v1272_v45 = vpop.f32.mrf.mxu0 }
  0xeb   : > { %952 = vst.msk [vmem:[%s1525_s11 + $0x10] sm:$0xf] %vm947_vm1, %v1132_v41  ;;  %v1135_v9 = vpack.c.bf16 %v794_v10, %v794_v10  ;;  %v792_v16 = vmax.f32 %v760_v61, 0.0  ;;  %v637_v23 = vadd.f32 %v1478_v49, %v598_v21  ;;  %v596_v44 = vmul.f32 %v1459_v37, %v486_v4  ;;  %v1288_v4 = vpop.f32.mrf.mxu1 }
  0xec   : > { %968 = vst.msk [vmem:[%s1525_s11 + $0x50] sm:$0xf] %vm947_vm1, %v1148_v2  ;;  %v1151_v5 = vpack.c.bf16 %v810_v3, %v810_v3  ;;  %v808_v7 = vmax.f32 %v776_v22, 0.0  ;;  %v653_v28 = vadd.f32 %v1478_v49, %v614_v43  ;;  %v612_v24 = vmul.f32 %v1459_v37, %v550_v6  ;;  %v502_v11 = vpop.f32.mrf.mxu0 }
  0xed   : > { %955 = vst.msk [vmem:[%s1525_s11 + $0x1c] sm:$0xf] %vm947_vm1, %v1135_v9  ;;  %v1133_v27 = vpack.c.bf16 %v792_v16, %v792_v16  ;;  %v669_v17 = vmax.f32 %v637_v23, 0.0  ;;  %v635_v62 = vadd.f32 %v1478_v49, %v596_v44  ;;  %v599_v30 = vmul.f32 %v1269_v18, %v1459_v37  ;;  %v566_v40 = vpop.f32.mrf.mxu1 }
  0xee   : > { %971 = vst.msk [vmem:[%s1525_s11 + $0x5c] sm:$0xf] %vm947_vm1, %v1151_v5  ;;  %v1149_v8 = vpack.c.bf16 %v808_v7, %v808_v7  ;;  %v685_v31 = vmax.f32 %v653_v28, 0.0  ;;  %v651_v38 = vadd.f32 %v1478_v49, %v612_v24  ;;  %v615_v12 = vmul.f32 %v1285_v19, %v1459_v37  ;;  %v1273_v3 = vpop.f32.mrf.mxu0 }
  0xef   : > { %953 = vst.msk [vmem:[%s1525_s11 + $0x14] sm:$0xf] %vm947_vm1, %v1133_v27  ;;  %v765_v6 = vadd.f32 %v1182_v50, %v669_v17  ;;  %v667_v25 = vmax.f32 %v635_v62, 0.0  ;;  %v638_v32 = vadd.f32 %v1478_v49, %v599_v30  ;;  %v597_v15 = vmul.f32 %v1459_v37, %v489_v56 }
  0xf0   : > { %969 = vst.msk [vmem:[%s1525_s11 + $0x54] sm:$0xf] %vm947_vm1, %v1149_v8  ;;  %v781_v18 = vadd.f32 %v1214_v51, %v685_v31  ;;  %v683_v39 = vmax.f32 %v651_v38, 0.0  ;;  %v654_v14 = vadd.f32 %v1478_v49, %v615_v12  ;;  %v613_v19 = vmul.f32 %v1459_v37, %v553_v42 }
  0xf1   : > { %v797_v26 = vmax.f32 %v765_v6, 0.0  ;;  %v763_v50 = vadd.f32 %v1178_v52, %v667_v25  ;;  %v670_v20 = vmax.f32 %v638_v32, 0.0  ;;  %v636_v33 = vadd.f32 %v1478_v49, %v597_v15 }
  0xf2   : > { %v813_v13 = vmax.f32 %v781_v18, 0.0  ;;  %v779_v48 = vadd.f32 %v1210_v53, %v683_v39  ;;  %v686_v51 = vmax.f32 %v654_v14, 0.0  ;;  %v652_v57 = vadd.f32 %v1478_v49, %v613_v19 }
  0xf3   : > { %v1138_v56 = vpack.c.bf16 %v797_v26, %v797_v26  ;;  %v795_v41 = vmax.f32 %v763_v50, 0.0  ;;  %v766_v10 = vadd.f32 %v1183_v58, %v670_v20  ;;  %v668_v61 = vmax.f32 %v636_v33, 0.0  ;;  %v1289_v58 = vpop.f32.mrf.mxu1 }
  0xf4   : > { %v1154_v52 = vpack.c.bf16 %v813_v13, %v813_v13  ;;  %v811_v21 = vmax.f32 %v779_v48, 0.0  ;;  %v782_v42 = vadd.f32 %v1215_v59, %v686_v51  ;;  %v684_v2 = vmax.f32 %v652_v57, 0.0 }
  0xf5   : > { %958 = vst.msk [vmem:[%s1525_s11 + $0x28] sm:$0xf] %vm947_vm1, %v1138_v56  ;;  %v1136_v53 = vpack.c.bf16 %v795_v41, %v795_v41  ;;  %v798_v22 = vmax.f32 %v766_v10, 0.0  ;;  %v764_v43 = vadd.f32 %v1179_v60, %v668_v61  ;;  %v602_v29 = vmul.f32 %v1272_v45, %v1459_v37  ;;  %v569_v62 = vpop.f32.mrf.mxu1 }
  0xf6   : > { %974 = vst.msk [vmem:[%s1525_s11 + $0x68] sm:$0xf] %vm947_vm1, %v1154_v52  ;;  %v1152_v9 = vpack.c.bf16 %v811_v21, %v811_v21  ;;  %v814_v16 = vmax.f32 %v782_v42, 0.0  ;;  %v780_v34 = vadd.f32 %v1211_v63, %v684_v2  ;;  %v618_v59 = vmul.f32 %v1288_v4, %v1459_v37  ;;  %v505_v63 = vpop.f32.mrf.mxu0 }
  0xf7   : > { %956 = vst.msk [vmem:[%s1525_s11 + $0x20] sm:$0xf] %vm947_vm1, %v1136_v53  ;;  %v1139_v23 = vpack.c.bf16 %v798_v22, %v798_v22  ;;  %v796_v44 = vmax.f32 %v764_v43, 0.0  ;;  %v641_v35 = vadd.f32 %v1478_v49, %v602_v29  ;;  %v600_v60 = vmul.f32 %v1459_v37, %v502_v11 }
  0xf8   : > { %972 = vst.msk [vmem:[%s1525_s11 + $0x60] sm:$0xf] %vm947_vm1, %v1152_v9  ;;  %v1155_v5 = vpack.c.bf16 %v814_v16, %v814_v16  ;;  %v812_v7 = vmax.f32 %v780_v34, 0.0  ;;  %v657_v28 = vadd.f32 %v1478_v49, %v618_v59  ;;  %v616_v36 = vmul.f32 %v1459_v37, %v566_v40 }
  0xf9   : > { %959 = vst.msk [vmem:[%s1525_s11 + $0x2c] sm:$0xf] %vm947_vm1, %v1139_v23  ;;  %v1137_v24 = vpack.c.bf16 %v796_v44, %v796_v44  ;;  %v673_v45 = vmax.f32 %v641_v35, 0.0  ;;  %v639_v27 = vadd.f32 %v1478_v49, %v600_v60  ;;  %v603_v17 = vmul.f32 %v1273_v3, %v1459_v37 }
  0xfa   : > { %975 = vst.msk [vmem:[%s1525_s11 + $0x6c] sm:$0xf] %vm947_vm1, %v1155_v5  ;;  %v1153_v30 = vpack.c.bf16 %v812_v7, %v812_v7  ;;  %v689_v4 = vmax.f32 %v657_v28, 0.0  ;;  %v655_v8 = vadd.f32 %v1478_v49, %v616_v36  ;;  %v619_v31 = vmul.f32 %v1289_v58, %v1459_v37 }
  0xfb   : > { %957 = vst.msk [vmem:[%s1525_s11 + $0x24] sm:$0xf] %vm947_vm1, %v1137_v24  ;;  %v769_v38 = vadd.f32 %v1190_v0, %v673_v45  ;;  %v671_v12 = vmax.f32 %v639_v27, 0.0  ;;  %v642_v6 = vadd.f32 %v1478_v49, %v603_v17  ;;  %v601_v25 = vmul.f32 %v1459_v37, %v505_v63 }
  0xfc   : > { %973 = vst.msk [vmem:[%s1525_s11 + $0x64] sm:$0xf] %vm947_vm1, %v1153_v30  ;;  %v785_v32 = vadd.f32 %v1222_v1, %v689_v4  ;;  %v687_v15 = vmax.f32 %v655_v8, 0.0  ;;  %v658_v18 = vadd.f32 %v1478_v49, %v619_v31  ;;  %v617_v39 = vmul.f32 %v1459_v37, %v569_v62 }
  0xfd   : > { %v801_v14 = vmax.f32 %v769_v38, 0.0  ;;  %v1707_v19 = vunpack.c.l.bf16 %v1485_v54  ;;  %v674_v11 = vmax.f32 %v642_v6, 0.0  ;;  %v640_v26 = vadd.f32 %v1478_v49, %v601_v25 }
  0xfe   : > { %v817_v50 = vmax.f32 %v785_v32, 0.0  ;;  %v1708_v20 = vunpack.c.l.bf16 %v1488_v55  ;;  %v690_v40 = vmax.f32 %v658_v18, 0.0  ;;  %v656_v1 = vadd.f32 %v1478_v49, %v617_v39 }
  0xff   : > { %v767_v0 = vadd.f32 %v1707_v19, %v671_v12  ;;  %v1142_v13 = vpack.c.bf16 %v801_v14, %v801_v14  ;;  %v1709_v37 = vunpack.c.h.bf16 %v1470_v46  ;;  %v672_v57 = vmax.f32 %v640_v26, 0.0 }
 0x100   : > { %v783_v33 = vadd.f32 %v1708_v20, %v687_v15  ;;  %v1158_v56 = vpack.c.bf16 %v817_v50, %v817_v50  ;;  %v1710_v10 = vunpack.c.h.bf16 %v1473_v47  ;;  %v688_v52 = vmax.f32 %v656_v1, 0.0 }
 0x101   : > { %v799_v48 = vmax.f32 %v767_v0, 0.0  ;;  %v770_v51 = vadd.f32 %v1709_v37, %v674_v11  ;;  %962 = vst.msk [vmem:[%s1525_s11 + $0x38] sm:$0xf] %vm947_vm1, %v1142_v13  ;;  %v1711_v42 = vunpack.c.h.bf16 %v1485_v54  ;;  %v1712_v53 = vunpack.c.h.bf16 %v1488_v55 }
 0x102   : > { %v815_v41 = vmax.f32 %v783_v33, 0.0  ;;  %v786_v61 = vadd.f32 %v1710_v10, %v690_v40  ;;  %978 = vst.msk [vmem:[%s1525_s11 + $0x78] sm:$0xf] %vm947_vm1, %v1158_v56 }
 0x103   : > { %v1140_v21 = vpack.c.bf16 %v799_v48, %v799_v48  ;;  %v802_v49 = vmax.f32 %v770_v51, 0.0  ;;  %v768_v2 = vadd.f32 %v1711_v42, %v672_v57  ;;  %v784_v47 = vadd.f32 %v1712_v53, %v688_v52 }
 0x104   : > { %v1156_v46 = vpack.c.bf16 %v815_v41, %v815_v41  ;;  %v818_v3 = vmax.f32 %v786_v61, 0.0 }
 0x105   : > { %960 = vst.msk [vmem:[%s1525_s11 + $0x30] sm:$0xf] %vm947_vm1, %v1140_v21  ;;  %v1143_v22 = vpack.c.bf16 %v802_v49, %v802_v49  ;;  %v800_v43 = vmax.f32 %v768_v2, 0.0  ;;  %v816_v58 = vmax.f32 %v784_v47, 0.0 }
 0x106   : > { %976 = vst.msk [vmem:[%s1525_s11 + $0x70] sm:$0xf] %vm947_vm1, %v1156_v46  ;;  %v1159_v29 = vpack.c.bf16 %v818_v3, %v818_v3 }
 0x107   : > { %963 = vst.msk [vmem:[%s1525_s11 + $0x3c] sm:$0xf] %vm947_vm1, %v1143_v22  ;;  %v1141_v54 = vpack.c.bf16 %v800_v43, %v800_v43  ;;  %v1157_v9 = vpack.c.bf16 %v816_v58, %v816_v58 }
 0x108   : > { %979 = vst.msk [vmem:[%s1525_s11 + $0x7c] sm:$0xf] %vm947_vm1, %v1159_v29 }
 0x109   : > { %961 = vst.msk [vmem:[%s1525_s11 + $0x34] sm:$0xf] %vm947_vm1, %v1141_v54  ;;  %977 = vst.msk [vmem:[%s1525_s11 + $0x74] sm:$0xf] %vm947_vm1, %v1157_v9 }
 0x10a PF: > { %s15_s18 = sadd.s32 1, %s1323_s18  }
 0x10b   : > { %p12_p4 = scmp.ge.s32.totalorder %s15_s18, 4  }
 0x10d   :  { %14 = sbr.rel (!%p12_p4) target bundleno = 1 (0x1), region = 73 }

// kernel: _lambda_.174
= control target key start
LH: loop header
LB: loop body
LE: loop exit
PB: predicated region body
PF: predicated region fallthrough
CT: control target
= control target key end

     0   :  { %s1080_s15 = smov 0   ;;  %s1281_s0 = inlined_call_operand.vmem [shape: bf16[512,16], index: 0, kind: input, shape index: {}]   ;;  %s1282_s1 = inlined_call_operand.vmem [shape: bf16[16,4], index: 1, kind: input, shape index: {}]   ;;  %s1283_s2 = inlined_call_operand.vmem [shape: f32[1,4], index: 2, kind: input, shape index: {}]   ;;  %s1284_s3 = inlined_call_operand.vmem [shape: f32[1,4], index: 3, kind: input, shape index: {}]   ;;  %s1285_s4 = inlined_call_operand.vmem [shape: bf16[512,4], index: 4, kind: output, shape index: {}]  }
   0x1 LB: > { %s859_s16 = sadd.s32 4294967295, %s1053_s15   ;;  %p863_p0 = scmp.ge.s32.totalorder %s1053_s15, 1  ;;  %s1053_s15 = sphi %s1080_s15, %s14_s15  }
   0x2   : > { %p163_p1 = scmp.lt.s32.totalorder %s1053_s15, 3 }
   0x4   : > { %p164_p2 = pnand %p863_p0, %p163_p1 }
   0x5   : > { %s864_s19 = sshll.u32 (!%p164_p2), %s859_s16, 5 }
   0x6   : > { %167 = sbr.rel (%p164_p2) target bundleno = 249 (0xf9), region = 36  ;;  %p190_p3 = scmp.lt.s32.totalorder (!%p164_p2), %s864_s19, 63 }
   0xb   : > { %v1030_v0 = vld [vmem:[%s1282_s1] sm:$0xff]   ;;  %s1287_s19 = smov (!%p190_p3, %s864_s19), 63  ;;  %vm322_vm0 = vcmask 130048   ;;  %vm770_vm1 = vcmask 27648  }
   0xc   : > { %986 = vmatprep.subr.bf16.mxu0 %v1030_v0  ;;  %1020 = vmatprep.subr.bf16.mxu1 %v1030_v0  ;;  %s865_s20 = sshll.u32 %s1287_s19, 2  ;;  %v1136_v17 = vld [vmem:[%s1283_s2] ss:$0 sm:$0xff] }
   0xd   : > { %987 = vmatpush3.bf16.msra.mxu0 %v1030_v0  ;;  %1021 = vmatpush3.bf16.msra.mxu1 %v1030_v0  ;;  %s1099_s23 = scalar_lea.vmem %s1281_s0, %s865_s20  ;;  %v1141_v19 = vld [vmem:[%s1284_s3] ss:$0 sm:$0xff]  ;;  %s1156_s30 = scalar_lea.vmem %s1285_s4, %s865_s20 }
   0xe   : > { %v1031_v1 = vld [vmem:[%s1099_s23] sm:$0xff]   ;;  %v1033_v3 = vld [vmem:[%s1099_s23 + $0x8] sm:$0xff]   ;;  %v1035_v5 = vld [vmem:[%s1099_s23 + $0x10] sm:$0xff]  }
   0xf   : > { %v1032_v2 = vld [vmem:[%s1099_s23 + $0x40] sm:$0xff]   ;;  %988 = vmatprep.mubr.msk.bf16.mxu0 %vm322_vm0, %v1031_v1  ;;  %v1034_v4 = vld [vmem:[%s1099_s23 + $0x48] sm:$0xff]   ;;  %v1036_v6 = vld [vmem:[%s1099_s23 + $0x50] sm:$0xff]  }
  0x10   : > { %1004 = vmatprep.mubr.msk.bf16.mxu1 %vm322_vm0, %v1032_v2  ;;  %989 = vmatmul.mubr.msk.bf16.vlgmr.msra.gmra.mxu0 %vm322_vm0, %v1033_v3  ;;  %v1037_v7 = vld [vmem:[%s1099_s23 + $0x18] sm:$0xff]   ;;  %v1039_v9 = vld [vmem:[%s1099_s23 + $0x20] sm:$0xff]   ;;  %v1041_v11 = vld [vmem:[%s1099_s23 + $0x28] sm:$0xff]  }
  0x11   : > { %1005 = vmatmul.mubr.msk.bf16.vlgmr.msra.gmra.mxu1 %vm322_vm0, %v1034_v4  ;;  %992 = vmatprep.mubr.msk.bf16.mxu0 %vm322_vm0, %v1035_v5  ;;  %v1038_v8 = vld [vmem:[%s1099_s23 + $0x58] sm:$0xff]   ;;  %v1040_v10 = vld [vmem:[%s1099_s23 + $0x60] sm:$0xff]   ;;  %v1042_v12 = vld [vmem:[%s1099_s23 + $0x68] sm:$0xff]  }
  0x12   : > { %1008 = vmatprep.mubr.msk.bf16.mxu1 %vm322_vm0, %v1036_v6  ;;  %v1043_v13 = vld [vmem:[%s1099_s23 + $0x30] sm:$0xff]   ;;  %v1045_v15 = vld [vmem:[%s1099_s23 + $0x38] sm:$0xff]  }
  0x13   : > { %v1044_v14 = vld [vmem:[%s1099_s23 + $0x70] sm:$0xff]   ;;  %v1046_v16 = vld [vmem:[%s1099_s23 + $0x78] sm:$0xff]  }
  0x18   : > { %993 = vmatmul.mubr.msk.bf16.gmra.mxu0 %vm322_vm0, %v1037_v7 }
  0x19   : > { %1009 = vmatmul.mubr.msk.bf16.gmra.mxu1 %vm322_vm0, %v1038_v8  ;;  %996 = vmatprep.mubr.msk.bf16.mxu0 %vm322_vm0, %v1039_v9 }
  0x1a   : > { %1012 = vmatprep.mubr.msk.bf16.mxu1 %vm322_vm0, %v1040_v10 }
  0x20   : > { %997 = vmatmul.mubr.msk.bf16.gmra.mxu0 %vm322_vm0, %v1041_v11 }
  0x21   : > { %1013 = vmatmul.mubr.msk.bf16.gmra.mxu1 %vm322_vm0, %v1042_v12  ;;  %1000 = vmatprep.mubr.msk.bf16.mxu0 %vm322_vm0, %v1043_v13 }
  0x22   : > { %1016 = vmatprep.mubr.msk.bf16.mxu1 %vm322_vm0, %v1044_v14 }
  0x28   : > { %1001 = vmatmul.mubr.msk.bf16.gmra.mxu0 %vm322_vm0, %v1045_v15 }
  0x29   : > { %1017 = vmatmul.mubr.msk.bf16.gmra.mxu1 %vm322_vm0, %v1046_v16 }
  0xd0   : > { %v990_v18 = vpop.f32.mrf.mxu0 }
  0xd1   : > { %v541_v20 = vmul.f32 %v990_v18, %v1136_v17  ;;  %v1006_v21 = vpop.f32.mrf.mxu1 }
  0xd2   : > { %v557_v22 = vmul.f32 %v1006_v21, %v1136_v17  ;;  %v405_v23 = vpop.f32.mrf.mxu0 }
  0xd3   : > { %v580_v24 = vadd.f32 %v1141_v19, %v541_v20  ;;  %v539_v25 = vmul.f32 %v1136_v17, %v405_v23  ;;  %v469_v26 = vpop.f32.mrf.mxu1 }
  0xd4   : > { %v596_v27 = vadd.f32 %v1141_v19, %v557_v22  ;;  %v555_v28 = vmul.f32 %v1136_v17, %v469_v26  ;;  %v991_v29 = vpop.f32.mrf.mxu0 }
  0xd5   : > { %v612_v30 = vmax.f32 %v580_v24, 0.0  ;;  %v578_v31 = vadd.f32 %v1141_v19, %v539_v25  ;;  %v542_v32 = vmul.f32 %v991_v29, %v1136_v17  ;;  %v1007_v33 = vpop.f32.mrf.mxu1 }
  0xd6   : > { %v628_v34 = vmax.f32 %v596_v27, 0.0  ;;  %v594_v35 = vadd.f32 %v1141_v19, %v555_v28  ;;  %v558_v36 = vmul.f32 %v1007_v33, %v1136_v17  ;;  %v408_v37 = vpop.f32.mrf.mxu0 }
  0xd7   : > { %v939_v38 = vpack.c.bf16 %v612_v30, %v612_v30  ;;  %v610_v39 = vmax.f32 %v578_v31, 0.0  ;;  %v581_v40 = vadd.f32 %v1141_v19, %v542_v32  ;;  %v540_v41 = vmul.f32 %v1136_v17, %v408_v37  ;;  %v472_v42 = vpop.f32.mrf.mxu1 }
  0xd8   : > { %v955_v43 = vpack.c.bf16 %v628_v34, %v628_v34  ;;  %v626_v44 = vmax.f32 %v594_v35, 0.0  ;;  %v597_v45 = vadd.f32 %v1141_v19, %v558_v36  ;;  %v556_v46 = vmul.f32 %v1136_v17, %v472_v42  ;;  %v994_v47 = vpop.f32.mrf.mxu0 }
  0xd9   : > { %773 = vst.msk [vmem:[%s1156_s30 + $0x8] sm:$0xf] %vm770_vm1, %v939_v38  ;;  %v937_v48 = vpack.c.bf16 %v610_v39, %v610_v39  ;;  %v613_v49 = vmax.f32 %v581_v40, 0.0  ;;  %v579_v50 = vadd.f32 %v1141_v19, %v540_v41  ;;  %v545_v51 = vmul.f32 %v994_v47, %v1136_v17  ;;  %v1010_v52 = vpop.f32.mrf.mxu1 }
  0xda   : > { %789 = vst.msk [vmem:[%s1156_s30 + $0x48] sm:$0xf] %vm770_vm1, %v955_v43  ;;  %v953_v53 = vpack.c.bf16 %v626_v44, %v626_v44  ;;  %v629_v54 = vmax.f32 %v597_v45, 0.0  ;;  %v595_v55 = vadd.f32 %v1141_v19, %v556_v46  ;;  %v561_v56 = vmul.f32 %v1010_v52, %v1136_v17  ;;  %v421_v57 = vpop.f32.mrf.mxu0 }
  0xdb   : > { %771 = vst.msk [vmem:[%s1156_s30] sm:$0xf] %vm770_vm1, %v937_v48  ;;  %v940_v58 = vpack.c.bf16 %v613_v49, %v613_v49  ;;  %v611_v59 = vmax.f32 %v579_v50, 0.0  ;;  %v584_v60 = vadd.f32 %v1141_v19, %v545_v51  ;;  %v543_v61 = vmul.f32 %v1136_v17, %v421_v57  ;;  %v485_v62 = vpop.f32.mrf.mxu1 }
  0xdc   : > { %787 = vst.msk [vmem:[%s1156_s30 + $0x40] sm:$0xf] %vm770_vm1, %v953_v53  ;;  %v956_v63 = vpack.c.bf16 %v629_v54, %v629_v54  ;;  %v627_v0 = vmax.f32 %v595_v55, 0.0  ;;  %v600_v1 = vadd.f32 %v1141_v19, %v561_v56  ;;  %v559_v2 = vmul.f32 %v1136_v17, %v485_v62  ;;  %v995_v3 = vpop.f32.mrf.mxu0 }
  0xdd   : > { %774 = vst.msk [vmem:[%s1156_s30 + $0xc] sm:$0xf] %vm770_vm1, %v940_v58  ;;  %v938_v4 = vpack.c.bf16 %v611_v59, %v611_v59  ;;  %v616_v5 = vmax.f32 %v584_v60, 0.0  ;;  %v582_v6 = vadd.f32 %v1141_v19, %v543_v61  ;;  %v546_v7 = vmul.f32 %v995_v3, %v1136_v17  ;;  %v1011_v8 = vpop.f32.mrf.mxu1 }
  0xde   : > { %790 = vst.msk [vmem:[%s1156_s30 + $0x4c] sm:$0xf] %vm770_vm1, %v956_v63  ;;  %v954_v9 = vpack.c.bf16 %v627_v0, %v627_v0  ;;  %v632_v10 = vmax.f32 %v600_v1, 0.0  ;;  %v598_v11 = vadd.f32 %v1141_v19, %v559_v2  ;;  %v562_v12 = vmul.f32 %v1011_v8, %v1136_v17  ;;  %v424_v13 = vpop.f32.mrf.mxu0 }
  0xdf   : > { %772 = vst.msk [vmem:[%s1156_s30 + $0x4] sm:$0xf] %vm770_vm1, %v938_v4  ;;  %v943_v14 = vpack.c.bf16 %v616_v5, %v616_v5  ;;  %v614_v15 = vmax.f32 %v582_v6, 0.0  ;;  %v585_v16 = vadd.f32 %v1141_v19, %v546_v7  ;;  %v544_v18 = vmul.f32 %v1136_v17, %v424_v13  ;;  %v488_v20 = vpop.f32.mrf.mxu1 }
  0xe0   : > { %788 = vst.msk [vmem:[%s1156_s30 + $0x44] sm:$0xf] %vm770_vm1, %v954_v9  ;;  %v959_v21 = vpack.c.bf16 %v632_v10, %v632_v10  ;;  %v630_v22 = vmax.f32 %v598_v11, 0.0  ;;  %v601_v23 = vadd.f32 %v1141_v19, %v562_v12  ;;  %v560_v24 = vmul.f32 %v1136_v17, %v488_v20  ;;  %v998_v25 = vpop.f32.mrf.mxu0 }
  0xe1   : > { %777 = vst.msk [vmem:[%s1156_s30 + $0x18] sm:$0xf] %vm770_vm1, %v943_v14  ;;  %v941_v26 = vpack.c.bf16 %v614_v15, %v614_v15  ;;  %v617_v27 = vmax.f32 %v585_v16, 0.0  ;;  %v583_v28 = vadd.f32 %v1141_v19, %v544_v18  ;;  %v549_v29 = vmul.f32 %v998_v25, %v1136_v17  ;;  %v1014_v30 = vpop.f32.mrf.mxu1 }
  0xe2   : > { %793 = vst.msk [vmem:[%s1156_s30 + $0x58] sm:$0xf] %vm770_vm1, %v959_v21  ;;  %v957_v31 = vpack.c.bf16 %v630_v22, %v630_v22  ;;  %v633_v32 = vmax.f32 %v601_v23, 0.0  ;;  %v599_v33 = vadd.f32 %v1141_v19, %v560_v24  ;;  %v565_v34 = vmul.f32 %v1014_v30, %v1136_v17  ;;  %v437_v35 = vpop.f32.mrf.mxu0 }
  0xe3   : > { %775 = vst.msk [vmem:[%s1156_s30 + $0x10] sm:$0xf] %vm770_vm1, %v941_v26  ;;  %v944_v36 = vpack.c.bf16 %v617_v27, %v617_v27  ;;  %v615_v37 = vmax.f32 %v583_v28, 0.0  ;;  %v588_v38 = vadd.f32 %v1141_v19, %v549_v29  ;;  %v547_v39 = vmul.f32 %v1136_v17, %v437_v35  ;;  %v501_v40 = vpop.f32.mrf.mxu1 }
  0xe4   : > { %791 = vst.msk [vmem:[%s1156_s30 + $0x50] sm:$0xf] %vm770_vm1, %v957_v31  ;;  %v960_v41 = vpack.c.bf16 %v633_v32, %v633_v32  ;;  %v631_v42 = vmax.f32 %v599_v33, 0.0  ;;  %v604_v43 = vadd.f32 %v1141_v19, %v565_v34  ;;  %v563_v44 = vmul.f32 %v1136_v17, %v501_v40  ;;  %v999_v45 = vpop.f32.mrf.mxu0 }
  0xe5   : > { %778 = vst.msk [vmem:[%s1156_s30 + $0x1c] sm:$0xf] %vm770_vm1, %v944_v36  ;;  %v942_v46 = vpack.c.bf16 %v615_v37, %v615_v37  ;;  %v620_v47 = vmax.f32 %v588_v38, 0.0  ;;  %v586_v48 = vadd.f32 %v1141_v19, %v547_v39  ;;  %v550_v49 = vmul.f32 %v999_v45, %v1136_v17  ;;  %v1015_v50 = vpop.f32.mrf.mxu1 }
  0xe6   : > { %794 = vst.msk [vmem:[%s1156_s30 + $0x5c] sm:$0xf] %vm770_vm1, %v960_v41  ;;  %v958_v51 = vpack.c.bf16 %v631_v42, %v631_v42  ;;  %v636_v52 = vmax.f32 %v604_v43, 0.0  ;;  %v602_v53 = vadd.f32 %v1141_v19, %v563_v44  ;;  %v566_v54 = vmul.f32 %v1015_v50, %v1136_v17  ;;  %v440_v55 = vpop.f32.mrf.mxu0 }
  0xe7   : > { %776 = vst.msk [vmem:[%s1156_s30 + $0x14] sm:$0xf] %vm770_vm1, %v942_v46  ;;  %v947_v56 = vpack.c.bf16 %v620_v47, %v620_v47  ;;  %v618_v57 = vmax.f32 %v586_v48, 0.0  ;;  %v589_v58 = vadd.f32 %v1141_v19, %v550_v49  ;;  %v548_v59 = vmul.f32 %v1136_v17, %v440_v55  ;;  %v504_v60 = vpop.f32.mrf.mxu1 }
  0xe8   : > { %792 = vst.msk [vmem:[%s1156_s30 + $0x54] sm:$0xf] %vm770_vm1, %v958_v51  ;;  %v963_v61 = vpack.c.bf16 %v636_v52, %v636_v52  ;;  %v634_v62 = vmax.f32 %v602_v53, 0.0  ;;  %v605_v63 = vadd.f32 %v1141_v19, %v566_v54  ;;  %v564_v0 = vmul.f32 %v1136_v17, %v504_v60  ;;  %v1002_v1 = vpop.f32.mrf.mxu0 }
  0xe9   : > { %781 = vst.msk [vmem:[%s1156_s30 + $0x28] sm:$0xf] %vm770_vm1, %v947_v56  ;;  %v945_v2 = vpack.c.bf16 %v618_v57, %v618_v57  ;;  %v621_v3 = vmax.f32 %v589_v58, 0.0  ;;  %v587_v4 = vadd.f32 %v1141_v19, %v548_v59  ;;  %v553_v5 = vmul.f32 %v1002_v1, %v1136_v17  ;;  %v1018_v6 = vpop.f32.mrf.mxu1 }
  0xea   : > { %797 = vst.msk [vmem:[%s1156_s30 + $0x68] sm:$0xf] %vm770_vm1, %v963_v61  ;;  %v961_v7 = vpack.c.bf16 %v634_v62, %v634_v62  ;;  %v637_v8 = vmax.f32 %v605_v63, 0.0  ;;  %v603_v9 = vadd.f32 %v1141_v19, %v564_v0  ;;  %v569_v10 = vmul.f32 %v1018_v6, %v1136_v17  ;;  %v453_v11 = vpop.f32.mrf.mxu0 }
  0xeb   : > { %779 = vst.msk [vmem:[%s1156_s30 + $0x20] sm:$0xf] %vm770_vm1, %v945_v2  ;;  %v948_v12 = vpack.c.bf16 %v621_v3, %v621_v3  ;;  %v619_v13 = vmax.f32 %v587_v4, 0.0  ;;  %v592_v14 = vadd.f32 %v1141_v19, %v553_v5  ;;  %v551_v15 = vmul.f32 %v1136_v17, %v453_v11  ;;  %v517_v16 = vpop.f32.mrf.mxu1 }
  0xec   : > { %795 = vst.msk [vmem:[%s1156_s30 + $0x60] sm:$0xf] %vm770_vm1, %v961_v7  ;;  %v964_v18 = vpack.c.bf16 %v637_v8, %v637_v8  ;;  %v635_v20 = vmax.f32 %v603_v9, 0.0  ;;  %v608_v21 = vadd.f32 %v1141_v19, %v569_v10  ;;  %v567_v22 = vmul.f32 %v1136_v17, %v517_v16  ;;  %v1003_v23 = vpop.f32.mrf.mxu0 }
  0xed   : > { %782 = vst.msk [vmem:[%s1156_s30 + $0x2c] sm:$0xf] %vm770_vm1, %v948_v12  ;;  %v946_v24 = vpack.c.bf16 %v619_v13, %v619_v13  ;;  %v624_v25 = vmax.f32 %v592_v14, 0.0  ;;  %v590_v26 = vadd.f32 %v1141_v19, %v551_v15  ;;  %v554_v27 = vmul.f32 %v1003_v23, %v1136_v17  ;;  %v1019_v28 = vpop.f32.mrf.mxu1 }
  0xee   : > { %798 = vst.msk [vmem:[%s1156_s30 + $0x6c] sm:$0xf] %vm770_vm1, %v964_v18  ;;  %v962_v29 = vpack.c.bf16 %v635_v20, %v635_v20  ;;  %v640_v30 = vmax.f32 %v608_v21, 0.0  ;;  %v606_v31 = vadd.f32 %v1141_v19, %v567_v22  ;;  %v570_v32 = vmul.f32 %v1019_v28, %v1136_v17  ;;  %v456_v33 = vpop.f32.mrf.mxu0 }
  0xef   : > { %780 = vst.msk [vmem:[%s1156_s30 + $0x24] sm:$0xf] %vm770_vm1, %v946_v24  ;;  %v951_v34 = vpack.c.bf16 %v624_v25, %v624_v25  ;;  %v622_v35 = vmax.f32 %v590_v26, 0.0  ;;  %v593_v36 = vadd.f32 %v1141_v19, %v554_v27  ;;  %v552_v37 = vmul.f32 %v1136_v17, %v456_v33  ;;  %v520_v38 = vpop.f32.mrf.mxu1 }
  0xf0   : > { %796 = vst.msk [vmem:[%s1156_s30 + $0x64] sm:$0xf] %vm770_vm1, %v962_v29  ;;  %v967_v39 = vpack.c.bf16 %v640_v30, %v640_v30  ;;  %v638_v40 = vmax.f32 %v606_v31, 0.0  ;;  %v609_v41 = vadd.f32 %v1141_v19, %v570_v32  ;;  %v568_v42 = vmul.f32 %v1136_v17, %v520_v38 }
  0xf1   : > { %785 = vst.msk [vmem:[%s1156_s30 + $0x38] sm:$0xf] %vm770_vm1, %v951_v34  ;;  %v949_v43 = vpack.c.bf16 %v622_v35, %v622_v35  ;;  %v625_v44 = vmax.f32 %v593_v36, 0.0  ;;  %v591_v45 = vadd.f32 %v1141_v19, %v552_v37 }
  0xf2   : > { %801 = vst.msk [vmem:[%s1156_s30 + $0x78] sm:$0xf] %vm770_vm1, %v967_v39  ;;  %v965_v46 = vpack.c.bf16 %v638_v40, %v638_v40  ;;  %v641_v47 = vmax.f32 %v609_v41, 0.0  ;;  %v607_v48 = vadd.f32 %v1141_v19, %v568_v42 }
  0xf3   : > { %783 = vst.msk [vmem:[%s1156_s30 + $0x30] sm:$0xf] %vm770_vm1, %v949_v43  ;;  %v952_v49 = vpack.c.bf16 %v625_v44, %v625_v44  ;;  %v623_v50 = vmax.f32 %v591_v45, 0.0 }
  0xf4   : > { %799 = vst.msk [vmem:[%s1156_s30 + $0x70] sm:$0xf] %vm770_vm1, %v965_v46  ;;  %v968_v17 = vpack.c.bf16 %v641_v47, %v641_v47  ;;  %v639_v51 = vmax.f32 %v607_v48, 0.0 }
  0xf5   : > { %786 = vst.msk [vmem:[%s1156_s30 + $0x3c] sm:$0xf] %vm770_vm1, %v952_v49  ;;  %v950_v52 = vpack.c.bf16 %v623_v50, %v623_v50 }
  0xf6   : > { %802 = vst.msk [vmem:[%s1156_s30 + $0x7c] sm:$0xf] %vm770_vm1, %v968_v17  ;;  %v966_v53 = vpack.c.bf16 %v639_v51, %v639_v51 }
  0xf7   : > { %784 = vst.msk [vmem:[%s1156_s30 + $0x34] sm:$0xf] %vm770_vm1, %v950_v52 }
  0xf8   : > { %800 = vst.msk [vmem:[%s1156_s30 + $0x74] sm:$0xf] %vm770_vm1, %v966_v53 }
  0xf9 PF: > { %s14_s15 = sadd.s32 1, %s1053_s15  }
  0xfa   : > { %p11_p4 = scmp.ge.s32.totalorder %s14_s15, 4  }
  0xfc   :  { %13 = sbr.rel (!%p11_p4) target bundleno = 1 (0x1), region = 66 }

// kernel: _lambda_.175
= control target key start
LH: loop header
LB: loop body
LE: loop exit
PB: predicated region body
PF: predicated region fallthrough
CT: control target
= control target key end

     0   :  { %s1110_s15 = smov 0   ;;  %s1317_s0 = inlined_call_operand.vmem [shape: bf16[512,48], index: 0, kind: input, shape index: {}]   ;;  %s1318_s1 = inlined_call_operand.vmem [shape: bf16[48,4], index: 1, kind: input, shape index: {}]   ;;  %s1319_s2 = inlined_call_operand.vmem [shape: f32[1,4], index: 2, kind: input, shape index: {}]   ;;  %s1320_s3 = inlined_call_operand.vmem [shape: f32[1,4], index: 3, kind: input, shape index: {}]   ;;  %s1321_s4 = inlined_call_operand.vmem [shape: bf16[512,4], index: 4, kind: output, shape index: {}]  }
   0x1 LB: > { %s875_s16 = sadd.s32 4294967295, %s1083_s15   ;;  %p879_p0 = scmp.ge.s32.totalorder %s1083_s15, 1  ;;  %s1083_s15 = sphi %s1110_s15, %s14_s15  }
   0x2   : > { %p163_p1 = scmp.lt.s32.totalorder %s1083_s15, 3 }
   0x4   : > { %p164_p2 = pnand %p879_p0, %p163_p1 }
   0x5   : > { %s880_s19 = sshll.u32 (!%p164_p2), %s875_s16, 5 }
   0x6   : > { %167 = sbr.rel (%p164_p2) target bundleno = 259 (0x103), region = 36  ;;  %p190_p3 = scmp.lt.s32.totalorder (!%p164_p2), %s880_s19, 63 }
   0xb   : > { %v1058_v0 = vld [vmem:[%s1318_s1 + $0x10] sm:$0xff]   ;;  %v1059_v1 = vld [vmem:[%s1318_s1 + $0x8] sm:$0xff]   ;;  %s1323_s19 = smov (!%p190_p3, %s880_s19), 63  ;;  %v1060_v2 = vld [vmem:[%s1318_s1] sm:$0xff]   ;;  %vm338_vm0 = vcmask 392192   ;;  %vm786_vm1 = vcmask 27648  }
   0xc   : > { %1006 = vmatprep.subr.bf16.mxu0 %v1058_v0  ;;  %1044 = vmatprep.subr.bf16.mxu1 %v1058_v0  ;;  %s881_s24 = sshll.u32 %s1323_s19, 2  ;;  %v1172_v19 = vld [vmem:[%s1319_s2] ss:$0 sm:$0xff] }
   0xd   : > { %1007 = vmatpush3.bf16.msra.mxu0 %v1058_v0  ;;  %1047 = vmatpush3.bf16.msra.mxu1 %v1058_v0  ;;  %s1135_s27 = scalar_lea.vmem %s1317_s0, %s881_s24  ;;  %v1177_v21 = vld [vmem:[%s1320_s3] ss:$0 sm:$0xff]  ;;  %s1192_s8 = scalar_lea.vmem %s1321_s4, %s881_s24 }
   0xe   : > { %1008 = vmatprep.subr.bf16.mxu0 %v1059_v1  ;;  %1045 = vmatprep.subr.bf16.mxu1 %v1059_v1  ;;  %v1061_v3 = vld [vmem:[%s1135_s27] sm:$0xff]   ;;  %v1063_v5 = vld [vmem:[%s1135_s27 + $0x8] sm:$0xff]   ;;  %v1065_v7 = vld [vmem:[%s1135_s27 + $0x10] sm:$0xff]  }
   0xf   : > { %v1062_v4 = vld [vmem:[%s1135_s27 + $0x40] sm:$0xff]   ;;  %1012 = vmatprep.mubr.msk.bf16.mxu0 %vm338_vm0, %v1061_v3  ;;  %v1064_v6 = vld [vmem:[%s1135_s27 + $0x48] sm:$0xff]   ;;  %v1066_v8 = vld [vmem:[%s1135_s27 + $0x50] sm:$0xff]  }
  0x10   : > { %1028 = vmatprep.mubr.msk.bf16.mxu1 %vm338_vm0, %v1062_v4  ;;  %v1067_v9 = vld [vmem:[%s1135_s27 + $0x18] sm:$0xff]   ;;  %v1069_v11 = vld [vmem:[%s1135_s27 + $0x20] sm:$0xff]   ;;  %v1071_v13 = vld [vmem:[%s1135_s27 + $0x28] sm:$0xff]  }
  0x11   : > { %1009 = vmatpush3.bf16.msra.mxu0 %v1059_v1  ;;  %1048 = vmatpush3.bf16.msra.mxu1 %v1059_v1  ;;  %v1068_v10 = vld [vmem:[%s1135_s27 + $0x58] sm:$0xff]   ;;  %v1070_v12 = vld [vmem:[%s1135_s27 + $0x60] sm:$0xff]   ;;  %v1072_v14 = vld [vmem:[%s1135_s27 + $0x68] sm:$0xff]  }
  0x12   : > { %1010 = vmatprep.subr.bf16.mxu0 %v1060_v2  ;;  %1046 = vmatprep.subr.bf16.mxu1 %v1060_v2  ;;  %v1073_v15 = vld [vmem:[%s1135_s27 + $0x30] sm:$0xff]   ;;  %v1075_v17 = vld [vmem:[%s1135_s27 + $0x38] sm:$0xff]  }
  0x13   : > { %v1074_v16 = vld [vmem:[%s1135_s27 + $0x70] sm:$0xff]   ;;  %v1076_v18 = vld [vmem:[%s1135_s27 + $0x78] sm:$0xff]  }
  0x15   : > { %1011 = vmatpush3.bf16.msra.mxu0 %v1060_v2  ;;  %1049 = vmatpush3.bf16.msra.mxu1 %v1060_v2 }
  0x18   : > { %1013 = vmatmul.mubr.msk.bf16.vlgmr.msra.gmra.mxu0 %vm338_vm0, %v1063_v5  ;;  %1029 = vmatmul.mubr.msk.bf16.vlgmr.msra.gmra.mxu1 %vm338_vm0, %v1064_v6 }
  0x19   : > { %1016 = vmatprep.mubr.msk.bf16.mxu0 %vm338_vm0, %v1065_v7  ;;  %1032 = vmatprep.mubr.msk.bf16.mxu1 %vm338_vm0, %v1066_v8 }
  0x20   : > { %1017 = vmatmul.mubr.msk.bf16.gmra.mxu0 %vm338_vm0, %v1067_v9  ;;  %1033 = vmatmul.mubr.msk.bf16.gmra.mxu1 %vm338_vm0, %v1068_v10 }
  0x21   : > { %1020 = vmatprep.mubr.msk.bf16.mxu0 %vm338_vm0, %v1069_v11  ;;  %1036 = vmatprep.mubr.msk.bf16.mxu1 %vm338_vm0, %v1070_v12 }
  0x28   : > { %1021 = vmatmul.mubr.msk.bf16.gmra.mxu0 %vm338_vm0, %v1071_v13  ;;  %1037 = vmatmul.mubr.msk.bf16.gmra.mxu1 %vm338_vm0, %v1072_v14 }
  0x29   : > { %1024 = vmatprep.mubr.msk.bf16.mxu0 %vm338_vm0, %v1073_v15  ;;  %1040 = vmatprep.mubr.msk.bf16.mxu1 %vm338_vm0, %v1074_v16 }
  0x30   : > { %1025 = vmatmul.mubr.msk.bf16.gmra.mxu0 %vm338_vm0, %v1075_v17  ;;  %1041 = vmatmul.mubr.msk.bf16.gmra.mxu1 %vm338_vm0, %v1076_v18 }
  0xd8   : > { %v1014_v20 = vpop.f32.mrf.mxu0  ;;  %v1030_v22 = vpop.f32.mrf.mxu1 }
  0xd9   : > { %v557_v23 = vmul.f32 %v1014_v20, %v1172_v19  ;;  %v573_v24 = vmul.f32 %v1030_v22, %v1172_v19 }
  0xda   : > { %v421_v25 = vpop.f32.mrf.mxu0  ;;  %v485_v26 = vpop.f32.mrf.mxu1 }
  0xdb   : > { %v596_v27 = vadd.f32 %v1177_v21, %v557_v23  ;;  %v612_v28 = vadd.f32 %v1177_v21, %v573_v24  ;;  %v555_v29 = vmul.f32 %v1172_v19, %v421_v25  ;;  %v571_v30 = vmul.f32 %v1172_v19, %v485_v26 }
  0xdc   : > { %v1015_v31 = vpop.f32.mrf.mxu0  ;;  %v1031_v32 = vpop.f32.mrf.mxu1 }
  0xdd   : > { %v628_v33 = vmax.f32 %v596_v27, 0.0  ;;  %v644_v34 = vmax.f32 %v612_v28, 0.0  ;;  %v594_v35 = vadd.f32 %v1177_v21, %v555_v29  ;;  %v610_v36 = vadd.f32 %v1177_v21, %v571_v30 }
  0xde   : > { %v558_v37 = vmul.f32 %v1015_v31, %v1172_v19  ;;  %v574_v38 = vmul.f32 %v1031_v32, %v1172_v19  ;;  %v424_v39 = vpop.f32.mrf.mxu0  ;;  %v488_v40 = vpop.f32.mrf.mxu1 }
  0xdf   : > { %v957_v41 = vpack.c.bf16 %v628_v33, %v628_v33  ;;  %v973_v42 = vpack.c.bf16 %v644_v34, %v644_v34  ;;  %v626_v43 = vmax.f32 %v594_v35, 0.0  ;;  %v642_v44 = vmax.f32 %v610_v36, 0.0 }
  0xe0   : > { %v597_v45 = vadd.f32 %v1177_v21, %v558_v37  ;;  %v613_v46 = vadd.f32 %v1177_v21, %v574_v38  ;;  %v556_v47 = vmul.f32 %v1172_v19, %v424_v39  ;;  %v572_v48 = vmul.f32 %v1172_v19, %v488_v40  ;;  %v1018_v49 = vpop.f32.mrf.mxu0  ;;  %v1034_v50 = vpop.f32.mrf.mxu1 }
  0xe1   : > { %789 = vst.msk [vmem:[%s1192_s8 + $0x8] sm:$0xf] %vm786_vm1, %v957_v41  ;;  %805 = vst.msk [vmem:[%s1192_s8 + $0x48] sm:$0xf] %vm786_vm1, %v973_v42  ;;  %v955_v51 = vpack.c.bf16 %v626_v43, %v626_v43  ;;  %v971_v52 = vpack.c.bf16 %v642_v44, %v642_v44  ;;  %v561_v53 = vmul.f32 %v1018_v49, %v1172_v19 }
  0xe2   : > { %v577_v54 = vmul.f32 %v1034_v50, %v1172_v19  ;;  %v629_v55 = vmax.f32 %v597_v45, 0.0  ;;  %v645_v56 = vmax.f32 %v613_v46, 0.0  ;;  %v595_v57 = vadd.f32 %v1177_v21, %v556_v47  ;;  %v437_v59 = vpop.f32.mrf.mxu0  ;;  %v501_v60 = vpop.f32.mrf.mxu1 }
  0xe3   : > { %v611_v58 = vadd.f32 %v1177_v21, %v572_v48  ;;  %787 = vst.msk [vmem:[%s1192_s8] sm:$0xf] %vm786_vm1, %v955_v51  ;;  %803 = vst.msk [vmem:[%s1192_s8 + $0x40] sm:$0xf] %vm786_vm1, %v971_v52  ;;  %v600_v61 = vadd.f32 %v1177_v21, %v561_v53  ;;  %v559_v63 = vmul.f32 %v1172_v19, %v437_v59 }
  0xe4   : > { %v616_v62 = vadd.f32 %v1177_v21, %v577_v54  ;;  %v575_v0 = vmul.f32 %v1172_v19, %v501_v60  ;;  %v958_v1 = vpack.c.bf16 %v629_v55, %v629_v55  ;;  %v974_v2 = vpack.c.bf16 %v645_v56, %v645_v56  ;;  %v1019_v5 = vpop.f32.mrf.mxu0  ;;  %v1035_v6 = vpop.f32.mrf.mxu1 }
  0xe5   : > { %v627_v3 = vmax.f32 %v595_v57, 0.0  ;;  %v643_v4 = vmax.f32 %v611_v58, 0.0  ;;  %v632_v7 = vmax.f32 %v600_v61, 0.0  ;;  %v598_v9 = vadd.f32 %v1177_v21, %v559_v63 }
  0xe6   : > { %v648_v8 = vmax.f32 %v616_v62, 0.0  ;;  %v614_v10 = vadd.f32 %v1177_v21, %v575_v0  ;;  %790 = vst.msk [vmem:[%s1192_s8 + $0xc] sm:$0xf] %vm786_vm1, %v958_v1  ;;  %806 = vst.msk [vmem:[%s1192_s8 + $0x4c] sm:$0xf] %vm786_vm1, %v974_v2  ;;  %v562_v13 = vmul.f32 %v1019_v5, %v1172_v19  ;;  %v578_v14 = vmul.f32 %v1035_v6, %v1172_v19  ;;  %v440_v15 = vpop.f32.mrf.mxu0  ;;  %v504_v16 = vpop.f32.mrf.mxu1 }
  0xe7   : > { %v956_v11 = vpack.c.bf16 %v627_v3, %v627_v3  ;;  %v972_v12 = vpack.c.bf16 %v643_v4, %v643_v4  ;;  %v961_v17 = vpack.c.bf16 %v632_v7, %v632_v7  ;;  %v630_v20 = vmax.f32 %v598_v9, 0.0 }
  0xe8   : > { %v977_v18 = vpack.c.bf16 %v648_v8, %v648_v8  ;;  %v646_v22 = vmax.f32 %v614_v10, 0.0  ;;  %v601_v23 = vadd.f32 %v1177_v21, %v562_v13  ;;  %v617_v24 = vadd.f32 %v1177_v21, %v578_v14  ;;  %v1022_v27 = vpop.f32.mrf.mxu0  ;;  %v1038_v28 = vpop.f32.mrf.mxu1 }
  0xe9   : > { %788 = vst.msk [vmem:[%s1192_s8 + $0x4] sm:$0xf] %vm786_vm1, %v956_v11  ;;  %804 = vst.msk [vmem:[%s1192_s8 + $0x44] sm:$0xf] %vm786_vm1, %v972_v12  ;;  %v560_v25 = vmul.f32 %v1172_v19, %v440_v15  ;;  %v576_v26 = vmul.f32 %v1172_v19, %v504_v16  ;;  %v959_v29 = vpack.c.bf16 %v630_v20, %v630_v20 }
  0xea   : > { %793 = vst.msk [vmem:[%s1192_s8 + $0x18] sm:$0xf] %vm786_vm1, %v961_v17  ;;  %809 = vst.msk [vmem:[%s1192_s8 + $0x58] sm:$0xf] %vm786_vm1, %v977_v18  ;;  %v975_v30 = vpack.c.bf16 %v646_v22, %v646_v22  ;;  %v565_v31 = vmul.f32 %v1022_v27, %v1172_v19  ;;  %v581_v32 = vmul.f32 %v1038_v28, %v1172_v19  ;;  %v633_v33 = vmax.f32 %v601_v23, 0.0  ;;  %v453_v37 = vpop.f32.mrf.mxu0  ;;  %v517_v38 = vpop.f32.mrf.mxu1 }
  0xeb   : > { %v649_v34 = vmax.f32 %v617_v24, 0.0  ;;  %v599_v35 = vadd.f32 %v1177_v21, %v560_v25  ;;  %v615_v36 = vadd.f32 %v1177_v21, %v576_v26  ;;  %791 = vst.msk [vmem:[%s1192_s8 + $0x10] sm:$0xf] %vm786_vm1, %v959_v29  ;;  %v563_v41 = vmul.f32 %v1172_v19, %v453_v37 }
  0xec   : > { %807 = vst.msk [vmem:[%s1192_s8 + $0x50] sm:$0xf] %vm786_vm1, %v975_v30  ;;  %v604_v39 = vadd.f32 %v1177_v21, %v565_v31  ;;  %v620_v40 = vadd.f32 %v1177_v21, %v581_v32  ;;  %v579_v42 = vmul.f32 %v1172_v19, %v517_v38  ;;  %v962_v43 = vpack.c.bf16 %v633_v33, %v633_v33  ;;  %v1023_v47 = vpop.f32.mrf.mxu0  ;;  %v1039_v48 = vpop.f32.mrf.mxu1 }
  0xed   : > { %v978_v44 = vpack.c.bf16 %v649_v34, %v649_v34  ;;  %v631_v45 = vmax.f32 %v599_v35, 0.0  ;;  %v647_v46 = vmax.f32 %v615_v36, 0.0  ;;  %v602_v51 = vadd.f32 %v1177_v21, %v563_v41 }
  0xee   : > { %v636_v49 = vmax.f32 %v604_v39, 0.0  ;;  %v652_v50 = vmax.f32 %v620_v40, 0.0  ;;  %v618_v52 = vadd.f32 %v1177_v21, %v579_v42  ;;  %794 = vst.msk [vmem:[%s1192_s8 + $0x1c] sm:$0xf] %vm786_vm1, %v962_v43  ;;  %v566_v55 = vmul.f32 %v1023_v47, %v1172_v19  ;;  %v456_v57 = vpop.f32.mrf.mxu0  ;;  %v520_v58 = vpop.f32.mrf.mxu1 }
  0xef   : > { %810 = vst.msk [vmem:[%s1192_s8 + $0x5c] sm:$0xf] %vm786_vm1, %v978_v44  ;;  %v960_v53 = vpack.c.bf16 %v631_v45, %v631_v45  ;;  %v976_v54 = vpack.c.bf16 %v647_v46, %v647_v46  ;;  %v582_v56 = vmul.f32 %v1039_v48, %v1172_v19  ;;  %v634_v61 = vmax.f32 %v602_v51, 0.0 }
  0xf0   : > { %v965_v59 = vpack.c.bf16 %v636_v49, %v636_v49  ;;  %v981_v60 = vpack.c.bf16 %v652_v50, %v652_v50  ;;  %v650_v62 = vmax.f32 %v618_v52, 0.0  ;;  %v605_v63 = vadd.f32 %v1177_v21, %v566_v55  ;;  %v1026_v3 = vpop.f32.mrf.mxu0  ;;  %v1042_v4 = vpop.f32.mrf.mxu1 }
  0xf1   : > { %792 = vst.msk [vmem:[%s1192_s8 + $0x14] sm:$0xf] %vm786_vm1, %v960_v53  ;;  %808 = vst.msk [vmem:[%s1192_s8 + $0x54] sm:$0xf] %vm786_vm1, %v976_v54  ;;  %v621_v0 = vadd.f32 %v1177_v21, %v582_v56  ;;  %v564_v1 = vmul.f32 %v1172_v19, %v456_v57  ;;  %v580_v2 = vmul.f32 %v1172_v19, %v520_v58 }
  0xf2   : > { %797 = vst.msk [vmem:[%s1192_s8 + $0x28] sm:$0xf] %vm786_vm1, %v965_v59  ;;  %813 = vst.msk [vmem:[%s1192_s8 + $0x68] sm:$0xf] %vm786_vm1, %v981_v60  ;;  %v963_v5 = vpack.c.bf16 %v634_v61, %v634_v61  ;;  %v979_v6 = vpack.c.bf16 %v650_v62, %v650_v62  ;;  %v569_v7 = vmul.f32 %v1026_v3, %v1172_v19  ;;  %v637_v9 = vmax.f32 %v605_v63, 0.0  ;;  %v469_v13 = vpop.f32.mrf.mxu0  ;;  %v533_v14 = vpop.f32.mrf.mxu1 }
  0xf3   : > { %v585_v8 = vmul.f32 %v1042_v4, %v1172_v19  ;;  %v653_v10 = vmax.f32 %v621_v0, 0.0  ;;  %v603_v11 = vadd.f32 %v1177_v21, %v564_v1  ;;  %v619_v12 = vadd.f32 %v1177_v21, %v580_v2 }
  0xf4   : > { %795 = vst.msk [vmem:[%s1192_s8 + $0x20] sm:$0xf] %vm786_vm1, %v963_v5  ;;  %811 = vst.msk [vmem:[%s1192_s8 + $0x60] sm:$0xf] %vm786_vm1, %v979_v6  ;;  %v608_v15 = vadd.f32 %v1177_v21, %v569_v7  ;;  %v567_v17 = vmul.f32 %v1172_v19, %v469_v13  ;;  %v583_v18 = vmul.f32 %v1172_v19, %v533_v14  ;;  %v1027_v25 = vpop.f32.mrf.mxu0  ;;  %v1043_v26 = vpop.f32.mrf.mxu1 }
  0xf5   : > { %v624_v16 = vadd.f32 %v1177_v21, %v585_v8  ;;  %v966_v20 = vpack.c.bf16 %v637_v9, %v637_v9  ;;  %v982_v22 = vpack.c.bf16 %v653_v10, %v653_v10  ;;  %v635_v23 = vmax.f32 %v603_v11, 0.0 }
  0xf6   : > { %v651_v24 = vmax.f32 %v619_v12, 0.0  ;;  %v640_v27 = vmax.f32 %v608_v15, 0.0  ;;  %v606_v29 = vadd.f32 %v1177_v21, %v567_v17  ;;  %v622_v30 = vadd.f32 %v1177_v21, %v583_v18  ;;  %v472_v35 = vpop.f32.mrf.mxu0  ;;  %v536_v36 = vpop.f32.mrf.mxu1 }
  0xf7   : > { %v656_v28 = vmax.f32 %v624_v16, 0.0  ;;  %798 = vst.msk [vmem:[%s1192_s8 + $0x2c] sm:$0xf] %vm786_vm1, %v966_v20  ;;  %814 = vst.msk [vmem:[%s1192_s8 + $0x6c] sm:$0xf] %vm786_vm1, %v982_v22  ;;  %v964_v31 = vpack.c.bf16 %v635_v23, %v635_v23  ;;  %v570_v33 = vmul.f32 %v1027_v25, %v1172_v19  ;;  %v586_v34 = vmul.f32 %v1043_v26, %v1172_v19 }
  0xf8   : > { %v980_v32 = vpack.c.bf16 %v651_v24, %v651_v24  ;;  %v969_v37 = vpack.c.bf16 %v640_v27, %v640_v27  ;;  %v638_v39 = vmax.f32 %v606_v29, 0.0  ;;  %v654_v40 = vmax.f32 %v622_v30, 0.0 }
  0xf9   : > { %v985_v38 = vpack.c.bf16 %v656_v28, %v656_v28  ;;  %796 = vst.msk [vmem:[%s1192_s8 + $0x24] sm:$0xf] %vm786_vm1, %v964_v31  ;;  %v609_v41 = vadd.f32 %v1177_v21, %v570_v33  ;;  %v625_v42 = vadd.f32 %v1177_v21, %v586_v34  ;;  %v568_v43 = vmul.f32 %v1172_v19, %v472_v35 }
  0xfa   : > { %812 = vst.msk [vmem:[%s1192_s8 + $0x64] sm:$0xf] %vm786_vm1, %v980_v32  ;;  %v584_v44 = vmul.f32 %v1172_v19, %v536_v36  ;;  %801 = vst.msk [vmem:[%s1192_s8 + $0x38] sm:$0xf] %vm786_vm1, %v969_v37  ;;  %v967_v45 = vpack.c.bf16 %v638_v39, %v638_v39  ;;  %v983_v46 = vpack.c.bf16 %v654_v40, %v654_v40 }
  0xfb   : > { %817 = vst.msk [vmem:[%s1192_s8 + $0x78] sm:$0xf] %vm786_vm1, %v985_v38  ;;  %v641_v47 = vmax.f32 %v609_v41, 0.0  ;;  %v657_v48 = vmax.f32 %v625_v42, 0.0  ;;  %v607_v49 = vadd.f32 %v1177_v21, %v568_v43 }
  0xfc   : > { %v623_v50 = vadd.f32 %v1177_v21, %v584_v44  ;;  %799 = vst.msk [vmem:[%s1192_s8 + $0x30] sm:$0xf] %vm786_vm1, %v967_v45  ;;  %815 = vst.msk [vmem:[%s1192_s8 + $0x70] sm:$0xf] %vm786_vm1, %v983_v46 }
  0xfd   : > { %v970_v19 = vpack.c.bf16 %v641_v47, %v641_v47  ;;  %v986_v51 = vpack.c.bf16 %v657_v48, %v657_v48  ;;  %v639_v52 = vmax.f32 %v607_v49, 0.0 }
  0xfe   : > { %v655_v53 = vmax.f32 %v623_v50, 0.0 }
  0xff   : > { %802 = vst.msk [vmem:[%s1192_s8 + $0x3c] sm:$0xf] %vm786_vm1, %v970_v19  ;;  %818 = vst.msk [vmem:[%s1192_s8 + $0x7c] sm:$0xf] %vm786_vm1, %v986_v51  ;;  %v968_v54 = vpack.c.bf16 %v639_v52, %v639_v52 }
 0x100   : > { %v984_v55 = vpack.c.bf16 %v655_v53, %v655_v53 }
 0x101   : > { %800 = vst.msk [vmem:[%s1192_s8 + $0x34] sm:$0xf] %vm786_vm1, %v968_v54 }
 0x102   : > { %816 = vst.msk [vmem:[%s1192_s8 + $0x74] sm:$0xf] %vm786_vm1, %v984_v55 }
 0x103 PF: > { %s14_s15 = sadd.s32 1, %s1083_s15  }
 0x104   : > { %p11_p4 = scmp.ge.s32.totalorder %s14_s15, 4  }
 0x106   :  { %13 = sbr.rel (!%p11_p4) target bundleno = 1 (0x1), region = 66 }

// kernel: _lambda_.177
= control target key start
LH: loop header
LB: loop body
LE: loop exit
PB: predicated region body
PF: predicated region fallthrough
CT: control target
= control target key end

     0   :  { %s1948_s15 = smov 0   ;;  %s2362_s0 = inlined_call_operand.vmem [shape: bf16[2048,144], index: 0, kind: input, shape index: {}]   ;;  %s2363_s1 = inlined_call_operand.vmem [shape: bf16[144,4], index: 1, kind: input, shape index: {}]   ;;  %s2364_s2 = inlined_call_operand.vmem [shape: f32[1,4], index: 2, kind: input, shape index: {}]   ;;  %s2365_s3 = inlined_call_operand.vmem [shape: f32[1,4], index: 3, kind: input, shape index: {}]   ;;  %s2366_s4 = inlined_call_operand.vmem [shape: bf16[2048,4], index: 4, kind: output, shape index: {}]  }
   0x1 LB: > { %s1534_s16 = sadd.s32 4294967295, %s1920_s15   ;;  %p1538_p0 = scmp.ge.s32.totalorder %s1920_s15, 1  ;;  %s1920_s15 = sphi %s1948_s15, %s14_s15  }
   0x2   : > { %p164_p1 = scmp.lt.s32.totalorder %s1920_s15, 5 }
   0x4   : > { %p165_p2 = pnand %p1538_p0, %p164_p1 }
   0x5   : > { %s1539_s19 = sshll.u32 (!%p165_p2), %s1534_s16, 6 }
   0x6   : > { %168 = sbr.rel (%p165_p2) target bundleno = 372 (0x174), region = 36  ;;  %p192_p3 = scmp.lt.s32.totalorder (!%p165_p2), %s1539_s19, 255 }
   0xb   : > { %v1809_v0 = vld [vmem:[%s2363_s1 + $0x38] sm:$0xff]   ;;  %v1922_v1 = vmov 0   ;;  %v1810_v2 = vld [vmem:[%s2363_s1 + $0x30] sm:$0xff]   ;;  %s2368_s19 = smov (!%p192_p3, %s1539_s19), 255  ;;  %v1811_v3 = vld [vmem:[%s2363_s1 + $0x28] sm:$0xff]   ;;  %vm629_vm0 = vcmask 130048  }
   0xc   : > { %726 = vmatprep.subr.bf16.mxu0 %v1922_v1  ;;  %1782 = vmatprep.subr.bf16.mxu1 %v1922_v1  ;;  %s1717_s24 = sshll.u32 %s2368_s19, 3  ;;  %v1812_v4 = vld [vmem:[%s2363_s1 + $0x20] sm:$0xff]   ;;  %v1813_v7 = vld [vmem:[%s2363_s1 + $0x18] sm:$0xff]   ;;  %v1814_v8 = vld [vmem:[%s2363_s1 + $0x10] sm:$0xff]   ;;  %s1543_s20 = sshll.u32 %s2368_s19, 2  ;;  %vm1413_vm1 = vcmask 27648  }
   0xd   : > { %727 = vmatpush1.bf16.msra.mxu0 %v1809_v0  ;;  %1791 = vmatpush1.bf16.msra.mxu1 %v1809_v0  ;;  %s1971_s27 = scalar_lea.vmem %s2362_s0, %s1717_s24  ;;  %v1815_v9 = vld [vmem:[%s2363_s1 + $0x8] sm:$0xff]   ;;  %v1816_v10 = vld [vmem:[%s2363_s1] sm:$0xff]   ;;  %s2105_s23 = scalar_lea.vmem %s2366_s4, %s1543_s20 }
   0xe   : > { %728 = vmatprep.subr.bf16.mxu0 %v1922_v1  ;;  %1783 = vmatprep.subr.bf16.mxu1 %v1922_v1  ;;  %v1820_v5 = vld [vmem:[%s1971_s27 + $0x4] ss:$8 sps:$4 sm:$0xff]   ;;  %v1818_v12 = vld [vmem:[%s1971_s27] ss:$8 sps:$4 sm:$0xff]   ;;  %v1824_v14 = vld [vmem:[%s1971_s27 + $0x14] ss:$8 sps:$4 sm:$0xff]  }
   0xf   : > { %v1823_v6 = vld [vmem:[%s1971_s27 + $0x104] ss:$8 sps:$4 sm:$0xff]   ;;  %1617 = vmatprep.mubr.msk.bf16.mxu0 %vm629_vm0, %v1820_v5  ;;  %v1821_v13 = vld [vmem:[%s1971_s27 + $0x100] ss:$8 sps:$4 sm:$0xff]   ;;  %v1826_v15 = vld [vmem:[%s1971_s27 + $0x114] ss:$8 sps:$4 sm:$0xff]  }
  0x10   : > { %1633 = vmatprep.mubr.msk.bf16.mxu1 %vm629_vm0, %v1823_v6  ;;  %v1817_v11 = vld [vmem:[%s2363_s1 + $0x40] sm:$0xff]   ;;  %v1828_v16 = vld [vmem:[%s1971_s27 + $0x10] ss:$8 sps:$4 sm:$0xff]   ;;  %v1836_v22 = vld [vmem:[%s1971_s27 + $0x34] ss:$8 sps:$4 sm:$0xff]  }
  0x11   : > { %729 = vmatpush1.bf16.msra.mxu0 %v1810_v2  ;;  %1792 = vmatpush1.bf16.msra.mxu1 %v1810_v2  ;;  %v1829_v17 = vld [vmem:[%s1971_s27 + $0x110] ss:$8 sps:$4 sm:$0xff]   ;;  %v1830_v18 = vld [vmem:[%s1971_s27 + $0x24] ss:$8 sps:$4 sm:$0xff]   ;;  %v1834_v20 = vld [vmem:[%s1971_s27 + $0x20] ss:$8 sps:$4 sm:$0xff]  }
  0x12   : > { %730 = vmatprep.subr.bf16.mxu0 %v1922_v1  ;;  %1784 = vmatprep.subr.bf16.mxu1 %v1922_v1  ;;  %v1832_v19 = vld [vmem:[%s1971_s27 + $0x124] ss:$8 sps:$4 sm:$0xff]   ;;  %v1835_v21 = vld [vmem:[%s1971_s27 + $0x120] ss:$8 sps:$4 sm:$0xff]   ;;  %v1838_v23 = vld [vmem:[%s1971_s27 + $0x134] ss:$8 sps:$4 sm:$0xff]  }
  0x13   : > { %v1840_v24 = vld [vmem:[%s1971_s27 + $0x30] ss:$8 sps:$4 sm:$0xff]   ;;  %v1842_v26 = vld [vmem:[%s1971_s27 + $0x44] ss:$8 sps:$4 sm:$0xff]   ;;  %v1846_v28 = vld [vmem:[%s1971_s27 + $0x40] ss:$8 sps:$4 sm:$0xff]  }
  0x14   : > { %v1841_v25 = vld [vmem:[%s1971_s27 + $0x130] ss:$8 sps:$4 sm:$0xff]   ;;  %v1844_v27 = vld [vmem:[%s1971_s27 + $0x144] ss:$8 sps:$4 sm:$0xff]   ;;  %v1847_v29 = vld [vmem:[%s1971_s27 + $0x140] ss:$8 sps:$4 sm:$0xff]  }
  0x15   : > { %731 = vmatpush1.bf16.msra.mxu0 %v1811_v3  ;;  %1793 = vmatpush1.bf16.msra.mxu1 %v1811_v3  ;;  %v1848_v30 = vld [vmem:[%s1971_s27 + $0x54] ss:$8 sps:$4 sm:$0xff]   ;;  %v1852_v32 = vld [vmem:[%s1971_s27 + $0x50] ss:$8 sps:$4 sm:$0xff]   ;;  %v1854_v34 = vld [vmem:[%s1971_s27 + $0x64] ss:$8 sps:$4 sm:$0xff]  }
  0x16   : > { %732 = vmatprep.subr.bf16.mxu0 %v1922_v1  ;;  %1785 = vmatprep.subr.bf16.mxu1 %v1922_v1  ;;  %v1850_v31 = vld [vmem:[%s1971_s27 + $0x154] ss:$8 sps:$4 sm:$0xff]   ;;  %v1853_v33 = vld [vmem:[%s1971_s27 + $0x150] ss:$8 sps:$4 sm:$0xff]   ;;  %v1856_v35 = vld [vmem:[%s1971_s27 + $0x164] ss:$8 sps:$4 sm:$0xff]  }
  0x17   : > { %v1858_v36 = vld [vmem:[%s1971_s27 + $0x60] ss:$8 sps:$4 sm:$0xff]   ;;  %v1860_v38 = vld [vmem:[%s1971_s27 + $0x74] ss:$8 sps:$4 sm:$0xff]   ;;  %v1864_v40 = vld [vmem:[%s1971_s27 + $0x70] ss:$8 sps:$4 sm:$0xff]  }
  0x18   : > { %v1859_v37 = vld [vmem:[%s1971_s27 + $0x160] ss:$8 sps:$4 sm:$0xff]   ;;  %v1862_v39 = vld [vmem:[%s1971_s27 + $0x174] ss:$8 sps:$4 sm:$0xff]   ;;  %v1865_v41 = vld [vmem:[%s1971_s27 + $0x170] ss:$8 sps:$4 sm:$0xff]  }
  0x19   : > { %733 = vmatpush1.bf16.msra.mxu0 %v1812_v4  ;;  %1794 = vmatpush1.bf16.msra.mxu1 %v1812_v4  ;;  %v1866_v42 = vld [vmem:[%s1971_s27 + $0x84] ss:$8 sps:$4 sm:$0xff]   ;;  %v1870_v44 = vld [vmem:[%s1971_s27 + $0x80] ss:$8 sps:$4 sm:$0xff]   ;;  %v1872_v46 = vld [vmem:[%s1971_s27 + $0x94] ss:$8 sps:$4 sm:$0xff]  }
  0x1a   : > { %734 = vmatprep.subr.bf16.mxu0 %v1922_v1  ;;  %1786 = vmatprep.subr.bf16.mxu1 %v1922_v1  ;;  %v1868_v43 = vld [vmem:[%s1971_s27 + $0x184] ss:$8 sps:$4 sm:$0xff]   ;;  %v1871_v45 = vld [vmem:[%s1971_s27 + $0x180] ss:$8 sps:$4 sm:$0xff]   ;;  %v1874_v47 = vld [vmem:[%s1971_s27 + $0x194] ss:$8 sps:$4 sm:$0xff]  }
  0x1b   : > { %v1876_v48 = vld [vmem:[%s1971_s27 + $0x90] ss:$8 sps:$4 sm:$0xff]   ;;  %v1878_v50 = vld [vmem:[%s1971_s27 + $0xa4] ss:$8 sps:$4 sm:$0xff]   ;;  %v1882_v52 = vld [vmem:[%s1971_s27 + $0xa0] ss:$8 sps:$4 sm:$0xff]  }
  0x1c   : > { %v1877_v49 = vld [vmem:[%s1971_s27 + $0x190] ss:$8 sps:$4 sm:$0xff]   ;;  %v1880_v51 = vld [vmem:[%s1971_s27 + $0x1a4] ss:$8 sps:$4 sm:$0xff]   ;;  %v1883_v53 = vld [vmem:[%s1971_s27 + $0x1a0] ss:$8 sps:$4 sm:$0xff]  }
  0x1d   : > { %735 = vmatpush1.bf16.msra.mxu0 %v1813_v7  ;;  %1795 = vmatpush1.bf16.msra.mxu1 %v1813_v7  ;;  %v1884_v54 = vld [vmem:[%s1971_s27 + $0xb4] ss:$8 sps:$4 sm:$0xff]   ;;  %v1888_v56 = vld [vmem:[%s1971_s27 + $0xb0] ss:$8 sps:$4 sm:$0xff]   ;;  %v1890_v58 = vld [vmem:[%s1971_s27 + $0xc4] ss:$8 sps:$4 sm:$0xff]  }
  0x1e   : > { %736 = vmatprep.subr.bf16.mxu0 %v1922_v1  ;;  %1787 = vmatprep.subr.bf16.mxu1 %v1922_v1  ;;  %v1886_v55 = vld [vmem:[%s1971_s27 + $0x1b4] ss:$8 sps:$4 sm:$0xff]   ;;  %v1889_v57 = vld [vmem:[%s1971_s27 + $0x1b0] ss:$8 sps:$4 sm:$0xff]   ;;  %v1892_v59 = vld [vmem:[%s1971_s27 + $0x1c4] ss:$8 sps:$4 sm:$0xff]  }
  0x1f   : > { %v1894_v60 = vld [vmem:[%s1971_s27 + $0xc0] ss:$8 sps:$4 sm:$0xff]   ;;  %v1896_v62 = vld [vmem:[%s1971_s27 + $0xd4] ss:$8 sps:$4 sm:$0xff]   ;;  %v1900_v0 = vld [vmem:[%s1971_s27 + $0xd0] ss:$8 sps:$4 sm:$0xff]  }
  0x20   : > { %v1895_v61 = vld [vmem:[%s1971_s27 + $0x1c0] ss:$8 sps:$4 sm:$0xff]   ;;  %v1898_v63 = vld [vmem:[%s1971_s27 + $0x1d4] ss:$8 sps:$4 sm:$0xff]   ;;  %v1902_v2 = vld [vmem:[%s1971_s27 + $0xe4] ss:$8 sps:$4 sm:$0xff]  }
  0x21   : > { %737 = vmatpush1.bf16.msra.mxu0 %v1814_v8  ;;  %1796 = vmatpush1.bf16.msra.mxu1 %v1814_v8  ;;  %v1904_v3 = vld [vmem:[%s1971_s27 + $0x1e4] ss:$8 sps:$4 sm:$0xff]   ;;  %v1906_v4 = vld [vmem:[%s1971_s27 + $0xe0] ss:$8 sps:$4 sm:$0xff]   ;;  %v1908_v6 = vld [vmem:[%s1971_s27 + $0xf4] ss:$8 sps:$4 sm:$0xff]  }
  0x22   : > { %738 = vmatprep.subr.bf16.mxu0 %v1922_v1  ;;  %1788 = vmatprep.subr.bf16.mxu1 %v1922_v1  ;;  %v1907_v5 = vld [vmem:[%s1971_s27 + $0x1e0] ss:$8 sps:$4 sm:$0xff]   ;;  %v1910_v7 = vld [vmem:[%s1971_s27 + $0x1f4] ss:$8 sps:$4 sm:$0xff]   ;;  %v1912_v8 = vld [vmem:[%s1971_s27 + $0xf0] ss:$8 sps:$4 sm:$0xff]  }
  0x25   : > { %739 = vmatpush1.bf16.msra.mxu0 %v1815_v9  ;;  %1797 = vmatpush1.bf16.msra.mxu1 %v1815_v9  ;;  %v1913_v9 = vld [vmem:[%s1971_s27 + $0x1f0] ss:$8 sps:$4 sm:$0xff]  }
  0x26   : > { %740 = vmatprep.subr.bf16.mxu0 %v1922_v1  ;;  %1789 = vmatprep.subr.bf16.mxu1 %v1922_v1 }
  0x29   : > { %741 = vmatpush1.bf16.msra.mxu0 %v1816_v10  ;;  %1798 = vmatpush1.bf16.msra.mxu1 %v1816_v10  ;;  %v2090_v10 = vld [vmem:[%s2364_s2] ss:$0 sm:$0xff] }
  0x2a   : > { %756 = vmatprep.subr.bf16.mxu0 %v1922_v1  ;;  %1790 = vmatprep.subr.bf16.mxu1 %v1922_v1  ;;  %v1901_v1 = vld [vmem:[%s1971_s27 + $0x1d0] ss:$8 sps:$4 sm:$0xff]  }
  0x2d   : > { %757 = vmatpush2.bf16.msra.mxu0 %v1817_v11  ;;  %1799 = vmatpush2.bf16.msra.mxu1 %v1817_v11 }
  0x30   : > { %759 = vmatmul.mubr.bf16.vlgmr.msra.gmra.mxu0 %v1818_v12  ;;  %887 = vmatmul.mubr.bf16.vlgmr.msra.gmra.mxu1 %v1821_v13  ;;  %v2095_v12 = vld [vmem:[%s2365_s3] ss:$0 sm:$0xff] }
  0x31   : > { %1618 = vmatprep.mubr.msk.bf16.mxu0 %vm629_vm0, %v1824_v14  ;;  %1634 = vmatprep.mubr.msk.bf16.mxu1 %vm629_vm0, %v1826_v15 }
  0x38   : > { %767 = vmatmul.mubr.bf16.gmra.mxu0 %v1828_v16  ;;  %895 = vmatmul.mubr.bf16.gmra.mxu1 %v1829_v17 }
  0x39   : > { %1619 = vmatprep.mubr.msk.bf16.mxu0 %vm629_vm0, %v1830_v18  ;;  %1635 = vmatprep.mubr.msk.bf16.mxu1 %vm629_vm0, %v1832_v19 }
  0x40   : > { %775 = vmatmul.mubr.bf16.gmra.mxu0 %v1834_v20  ;;  %903 = vmatmul.mubr.bf16.gmra.mxu1 %v1835_v21 }
  0x41   : > { %1620 = vmatprep.mubr.msk.bf16.mxu0 %vm629_vm0, %v1836_v22  ;;  %1636 = vmatprep.mubr.msk.bf16.mxu1 %vm629_vm0, %v1838_v23 }
  0x48   : > { %783 = vmatmul.mubr.bf16.gmra.mxu0 %v1840_v24  ;;  %911 = vmatmul.mubr.bf16.gmra.mxu1 %v1841_v25 }
  0x49   : > { %1621 = vmatprep.mubr.msk.bf16.mxu0 %vm629_vm0, %v1842_v26  ;;  %1637 = vmatprep.mubr.msk.bf16.mxu1 %vm629_vm0, %v1844_v27 }
  0x50   : > { %791 = vmatmul.mubr.bf16.gmra.mxu0 %v1846_v28  ;;  %919 = vmatmul.mubr.bf16.gmra.mxu1 %v1847_v29 }
  0x51   : > { %1622 = vmatprep.mubr.msk.bf16.mxu0 %vm629_vm0, %v1848_v30  ;;  %1638 = vmatprep.mubr.msk.bf16.mxu1 %vm629_vm0, %v1850_v31 }
  0x58   : > { %799 = vmatmul.mubr.bf16.gmra.mxu0 %v1852_v32  ;;  %927 = vmatmul.mubr.bf16.gmra.mxu1 %v1853_v33 }
  0x59   : > { %1623 = vmatprep.mubr.msk.bf16.mxu0 %vm629_vm0, %v1854_v34  ;;  %1639 = vmatprep.mubr.msk.bf16.mxu1 %vm629_vm0, %v1856_v35 }
  0x60   : > { %807 = vmatmul.mubr.bf16.gmra.mxu0 %v1858_v36  ;;  %935 = vmatmul.mubr.bf16.gmra.mxu1 %v1859_v37 }
  0x61   : > { %1624 = vmatprep.mubr.msk.bf16.mxu0 %vm629_vm0, %v1860_v38  ;;  %1640 = vmatprep.mubr.msk.bf16.mxu1 %vm629_vm0, %v1862_v39 }
  0x68   : > { %815 = vmatmul.mubr.bf16.gmra.mxu0 %v1864_v40  ;;  %943 = vmatmul.mubr.bf16.gmra.mxu1 %v1865_v41 }
  0x69   : > { %1625 = vmatprep.mubr.msk.bf16.mxu0 %vm629_vm0, %v1866_v42  ;;  %1641 = vmatprep.mubr.msk.bf16.mxu1 %vm629_vm0, %v1868_v43 }
  0x70   : > { %823 = vmatmul.mubr.bf16.gmra.mxu0 %v1870_v44  ;;  %951 = vmatmul.mubr.bf16.gmra.mxu1 %v1871_v45 }
  0x71   : > { %1626 = vmatprep.mubr.msk.bf16.mxu0 %vm629_vm0, %v1872_v46  ;;  %1642 = vmatprep.mubr.msk.bf16.mxu1 %vm629_vm0, %v1874_v47 }
  0x78   : > { %831 = vmatmul.mubr.bf16.gmra.mxu0 %v1876_v48  ;;  %959 = vmatmul.mubr.bf16.gmra.mxu1 %v1877_v49 }
  0x79   : > { %1627 = vmatprep.mubr.msk.bf16.mxu0 %vm629_vm0, %v1878_v50  ;;  %1643 = vmatprep.mubr.msk.bf16.mxu1 %vm629_vm0, %v1880_v51 }
  0x80   : > { %839 = vmatmul.mubr.bf16.gmra.mxu0 %v1882_v52  ;;  %967 = vmatmul.mubr.bf16.gmra.mxu1 %v1883_v53 }
  0x81   : > { %1628 = vmatprep.mubr.msk.bf16.mxu0 %vm629_vm0, %v1884_v54  ;;  %1644 = vmatprep.mubr.msk.bf16.mxu1 %vm629_vm0, %v1886_v55 }
  0x88   : > { %847 = vmatmul.mubr.bf16.gmra.mxu0 %v1888_v56  ;;  %975 = vmatmul.mubr.bf16.gmra.mxu1 %v1889_v57 }
  0x89   : > { %1629 = vmatprep.mubr.msk.bf16.mxu0 %vm629_vm0, %v1890_v58  ;;  %1645 = vmatprep.mubr.msk.bf16.mxu1 %vm629_vm0, %v1892_v59 }
  0x90   : > { %855 = vmatmul.mubr.bf16.gmra.mxu0 %v1894_v60  ;;  %983 = vmatmul.mubr.bf16.gmra.mxu1 %v1895_v61 }
  0x91   : > { %1630 = vmatprep.mubr.msk.bf16.mxu0 %vm629_vm0, %v1896_v62  ;;  %1646 = vmatprep.mubr.msk.bf16.mxu1 %vm629_vm0, %v1898_v63 }
  0x98   : > { %863 = vmatmul.mubr.bf16.gmra.mxu0 %v1900_v0  ;;  %991 = vmatmul.mubr.bf16.gmra.mxu1 %v1901_v1 }
  0x99   : > { %1631 = vmatprep.mubr.msk.bf16.mxu0 %vm629_vm0, %v1902_v2  ;;  %1647 = vmatprep.mubr.msk.bf16.mxu1 %vm629_vm0, %v1904_v3 }
  0xa0   : > { %871 = vmatmul.mubr.bf16.gmra.mxu0 %v1906_v4  ;;  %999 = vmatmul.mubr.bf16.gmra.mxu1 %v1907_v5 }
  0xa1   : > { %1632 = vmatprep.mubr.msk.bf16.mxu0 %vm629_vm0, %v1908_v6  ;;  %1648 = vmatprep.mubr.msk.bf16.mxu1 %vm629_vm0, %v1910_v7 }
  0xa8   : > { %879 = vmatmul.mubr.bf16.gmra.mxu0 %v1912_v8  ;;  %1007 = vmatmul.mubr.bf16.gmra.mxu1 %v1913_v9 }
  0xf0   : > { %v760_v11 = vpop.f32.mrf.mxu0  ;;  %v888_v13 = vpop.f32.mrf.mxu1 }
  0xf1   : > { %v1022_v14 = vmul.f32 %v2090_v10, %v760_v11  ;;  %v1054_v15 = vmul.f32 %v2090_v10, %v888_v13 }
  0xf2   : > { %v762_v16 = vpop.f32.mrf.mxu0  ;;  %v890_v17 = vpop.f32.mrf.mxu1 }
  0xf3   : > { %v1093_v18 = vadd.f32 %v2095_v12, %v1022_v14  ;;  %v1125_v19 = vadd.f32 %v2095_v12, %v1054_v15 }
  0xf4   : > { %v763_v20 = vpop.f32.mrf.mxu0  ;;  %v891_v21 = vpop.f32.mrf.mxu1 }
  0xf5   : > { %v1718_v22 = vpack.c.bf16 %v1093_v18, %v1093_v18  ;;  %v1750_v23 = vpack.c.bf16 %v1125_v19, %v1125_v19  ;;  %v1023_v24 = vmul.f32 %v2090_v10, %v763_v20  ;;  %v1055_v25 = vmul.f32 %v2090_v10, %v891_v21 }
  0xf6   : > { %v765_v26 = vpop.f32.mrf.mxu0  ;;  %v893_v27 = vpop.f32.mrf.mxu1 }
  0xf7   : > { %1414 = vst.msk [vmem:[%s2105_s23] sm:$0xf] %vm1413_vm1, %v1718_v22  ;;  %1446 = vst.msk [vmem:[%s2105_s23 + $0x80] sm:$0xf] %vm1413_vm1, %v1750_v23  ;;  %v1094_v28 = vadd.f32 %v2095_v12, %v1023_v24  ;;  %v1126_v29 = vadd.f32 %v2095_v12, %v1055_v25 }
  0xf8   : > { %v768_v30 = vpop.f32.mrf.mxu0  ;;  %v896_v31 = vpop.f32.mrf.mxu1 }
  0xf9   : > { %v1719_v32 = vpack.c.bf16 %v1094_v28, %v1094_v28  ;;  %v1751_v33 = vpack.c.bf16 %v1126_v29, %v1126_v29  ;;  %v1024_v34 = vmul.f32 %v2090_v10, %v768_v30  ;;  %v1056_v35 = vmul.f32 %v2090_v10, %v896_v31 }
  0xfa   : > { %v770_v36 = vpop.f32.mrf.mxu0  ;;  %v898_v37 = vpop.f32.mrf.mxu1 }
  0xfb   : > { %1415 = vst.msk [vmem:[%s2105_s23 + $0x4] sm:$0xf] %vm1413_vm1, %v1719_v32  ;;  %1447 = vst.msk [vmem:[%s2105_s23 + $0x84] sm:$0xf] %vm1413_vm1, %v1751_v33  ;;  %v1095_v38 = vadd.f32 %v2095_v12, %v1024_v34  ;;  %v1127_v39 = vadd.f32 %v2095_v12, %v1056_v35 }
  0xfc   : > { %v771_v40 = vpop.f32.mrf.mxu0  ;;  %v899_v41 = vpop.f32.mrf.mxu1 }
  0xfd   : > { %v1720_v42 = vpack.c.bf16 %v1095_v38, %v1095_v38  ;;  %v1752_v43 = vpack.c.bf16 %v1127_v39, %v1127_v39  ;;  %v1025_v44 = vmul.f32 %v2090_v10, %v771_v40  ;;  %v1057_v45 = vmul.f32 %v2090_v10, %v899_v41 }
  0xfe   : > { %v773_v46 = vpop.f32.mrf.mxu0  ;;  %v901_v47 = vpop.f32.mrf.mxu1 }
  0xff   : > { %1416 = vst.msk [vmem:[%s2105_s23 + $0x8] sm:$0xf] %vm1413_vm1, %v1720_v42  ;;  %1448 = vst.msk [vmem:[%s2105_s23 + $0x88] sm:$0xf] %vm1413_vm1, %v1752_v43  ;;  %v1096_v48 = vadd.f32 %v2095_v12, %v1025_v44  ;;  %v1128_v49 = vadd.f32 %v2095_v12, %v1057_v45 }
 0x100   : > { %v776_v50 = vpop.f32.mrf.mxu0  ;;  %v904_v51 = vpop.f32.mrf.mxu1 }
 0x101   : > { %v1721_v52 = vpack.c.bf16 %v1096_v48, %v1096_v48  ;;  %v1753_v53 = vpack.c.bf16 %v1128_v49, %v1128_v49  ;;  %v1026_v54 = vmul.f32 %v2090_v10, %v776_v50  ;;  %v1058_v55 = vmul.f32 %v2090_v10, %v904_v51 }
 0x102   : > { %v778_v56 = vpop.f32.mrf.mxu0  ;;  %v906_v57 = vpop.f32.mrf.mxu1 }
 0x103   : > { %1417 = vst.msk [vmem:[%s2105_s23 + $0xc] sm:$0xf] %vm1413_vm1, %v1721_v52  ;;  %1449 = vst.msk [vmem:[%s2105_s23 + $0x8c] sm:$0xf] %vm1413_vm1, %v1753_v53  ;;  %v1097_v58 = vadd.f32 %v2095_v12, %v1026_v54  ;;  %v1129_v59 = vadd.f32 %v2095_v12, %v1058_v55 }
 0x104   : > { %v779_v60 = vpop.f32.mrf.mxu0  ;;  %v907_v61 = vpop.f32.mrf.mxu1 }
 0x105   : > { %v1722_v62 = vpack.c.bf16 %v1097_v58, %v1097_v58  ;;  %v1754_v63 = vpack.c.bf16 %v1129_v59, %v1129_v59  ;;  %v1027_v0 = vmul.f32 %v2090_v10, %v779_v60  ;;  %v1059_v1 = vmul.f32 %v2090_v10, %v907_v61 }
 0x106   : > { %v781_v2 = vpop.f32.mrf.mxu0  ;;  %v909_v3 = vpop.f32.mrf.mxu1 }
 0x107   : > { %1418 = vst.msk [vmem:[%s2105_s23 + $0x10] sm:$0xf] %vm1413_vm1, %v1722_v62  ;;  %1450 = vst.msk [vmem:[%s2105_s23 + $0x90] sm:$0xf] %vm1413_vm1, %v1754_v63  ;;  %v1098_v4 = vadd.f32 %v2095_v12, %v1027_v0  ;;  %v1130_v5 = vadd.f32 %v2095_v12, %v1059_v1 }
 0x108   : > { %v784_v6 = vpop.f32.mrf.mxu0  ;;  %v912_v7 = vpop.f32.mrf.mxu1 }
 0x109   : > { %v1723_v8 = vpack.c.bf16 %v1098_v4, %v1098_v4  ;;  %v1755_v9 = vpack.c.bf16 %v1130_v5, %v1130_v5  ;;  %v1028_v11 = vmul.f32 %v2090_v10, %v784_v6  ;;  %v1060_v13 = vmul.f32 %v2090_v10, %v912_v7 }
 0x10a   : > { %v786_v14 = vpop.f32.mrf.mxu0  ;;  %v914_v15 = vpop.f32.mrf.mxu1 }
 0x10b   : > { %1419 = vst.msk [vmem:[%s2105_s23 + $0x14] sm:$0xf] %vm1413_vm1, %v1723_v8  ;;  %1451 = vst.msk [vmem:[%s2105_s23 + $0x94] sm:$0xf] %vm1413_vm1, %v1755_v9  ;;  %v1099_v16 = vadd.f32 %v2095_v12, %v1028_v11  ;;  %v1131_v17 = vadd.f32 %v2095_v12, %v1060_v13 }
 0x10c   : > { %v787_v18 = vpop.f32.mrf.mxu0  ;;  %v915_v19 = vpop.f32.mrf.mxu1 }
 0x10d   : > { %v1724_v20 = vpack.c.bf16 %v1099_v16, %v1099_v16  ;;  %v1756_v21 = vpack.c.bf16 %v1131_v17, %v1131_v17  ;;  %v1029_v22 = vmul.f32 %v2090_v10, %v787_v18  ;;  %v1061_v23 = vmul.f32 %v2090_v10, %v915_v19 }
 0x10e   : > { %v789_v24 = vpop.f32.mrf.mxu0  ;;  %v917_v25 = vpop.f32.mrf.mxu1 }
 0x10f   : > { %1420 = vst.msk [vmem:[%s2105_s23 + $0x18] sm:$0xf] %vm1413_vm1, %v1724_v20  ;;  %1452 = vst.msk [vmem:[%s2105_s23 + $0x98] sm:$0xf] %vm1413_vm1, %v1756_v21  ;;  %v1100_v26 = vadd.f32 %v2095_v12, %v1029_v22  ;;  %v1132_v27 = vadd.f32 %v2095_v12, %v1061_v23 }
 0x110   : > { %v792_v28 = vpop.f32.mrf.mxu0  ;;  %v920_v29 = vpop.f32.mrf.mxu1 }
 0x111   : > { %v1725_v30 = vpack.c.bf16 %v1100_v26, %v1100_v26  ;;  %v1757_v31 = vpack.c.bf16 %v1132_v27, %v1132_v27  ;;  %v1030_v32 = vmul.f32 %v2090_v10, %v792_v28  ;;  %v1062_v33 = vmul.f32 %v2090_v10, %v920_v29 }
 0x112   : > { %v794_v34 = vpop.f32.mrf.mxu0  ;;  %v922_v35 = vpop.f32.mrf.mxu1 }
 0x113   : > { %1421 = vst.msk [vmem:[%s2105_s23 + $0x1c] sm:$0xf] %vm1413_vm1, %v1725_v30  ;;  %1453 = vst.msk [vmem:[%s2105_s23 + $0x9c] sm:$0xf] %vm1413_vm1, %v1757_v31  ;;  %v1101_v36 = vadd.f32 %v2095_v12, %v1030_v32  ;;  %v1133_v37 = vadd.f32 %v2095_v12, %v1062_v33 }
 0x114   : > { %v795_v38 = vpop.f32.mrf.mxu0  ;;  %v923_v39 = vpop.f32.mrf.mxu1 }
 0x115   : > { %v1726_v40 = vpack.c.bf16 %v1101_v36, %v1101_v36  ;;  %v1758_v41 = vpack.c.bf16 %v1133_v37, %v1133_v37  ;;  %v1031_v42 = vmul.f32 %v2090_v10, %v795_v38  ;;  %v1063_v43 = vmul.f32 %v2090_v10, %v923_v39 }
 0x116   : > { %v797_v44 = vpop.f32.mrf.mxu0  ;;  %v925_v45 = vpop.f32.mrf.mxu1 }
 0x117   : > { %1422 = vst.msk [vmem:[%s2105_s23 + $0x20] sm:$0xf] %vm1413_vm1, %v1726_v40  ;;  %1454 = vst.msk [vmem:[%s2105_s23 + $0xa0] sm:$0xf] %vm1413_vm1, %v1758_v41  ;;  %v1102_v46 = vadd.f32 %v2095_v12, %v1031_v42  ;;  %v1134_v47 = vadd.f32 %v2095_v12, %v1063_v43 }
 0x118   : > { %v800_v48 = vpop.f32.mrf.mxu0  ;;  %v928_v49 = vpop.f32.mrf.mxu1 }
 0x119   : > { %v1727_v50 = vpack.c.bf16 %v1102_v46, %v1102_v46  ;;  %v1759_v51 = vpack.c.bf16 %v1134_v47, %v1134_v47  ;;  %v1032_v52 = vmul.f32 %v2090_v10, %v800_v48  ;;  %v1064_v53 = vmul.f32 %v2090_v10, %v928_v49 }
 0x11a   : > { %v802_v54 = vpop.f32.mrf.mxu0  ;;  %v930_v55 = vpop.f32.mrf.mxu1 }
 0x11b   : > { %1423 = vst.msk [vmem:[%s2105_s23 + $0x24] sm:$0xf] %vm1413_vm1, %v1727_v50  ;;  %1455 = vst.msk [vmem:[%s2105_s23 + $0xa4] sm:$0xf] %vm1413_vm1, %v1759_v51  ;;  %v1103_v56 = vadd.f32 %v2095_v12, %v1032_v52  ;;  %v1135_v57 = vadd.f32 %v2095_v12, %v1064_v53 }
 0x11c   : > { %v803_v58 = vpop.f32.mrf.mxu0  ;;  %v931_v59 = vpop.f32.mrf.mxu1 }
 0x11d   : > { %v1728_v60 = vpack.c.bf16 %v1103_v56, %v1103_v56  ;;  %v1760_v61 = vpack.c.bf16 %v1135_v57, %v1135_v57  ;;  %v1033_v62 = vmul.f32 %v2090_v10, %v803_v58  ;;  %v1065_v63 = vmul.f32 %v2090_v10, %v931_v59 }
 0x11e   : > { %v805_v0 = vpop.f32.mrf.mxu0  ;;  %v933_v1 = vpop.f32.mrf.mxu1 }
 0x11f   : > { %1424 = vst.msk [vmem:[%s2105_s23 + $0x28] sm:$0xf] %vm1413_vm1, %v1728_v60  ;;  %1456 = vst.msk [vmem:[%s2105_s23 + $0xa8] sm:$0xf] %vm1413_vm1, %v1760_v61  ;;  %v1104_v2 = vadd.f32 %v2095_v12, %v1033_v62  ;;  %v1136_v3 = vadd.f32 %v2095_v12, %v1065_v63 }
 0x120   : > { %v808_v4 = vpop.f32.mrf.mxu0  ;;  %v936_v5 = vpop.f32.mrf.mxu1 }
 0x121   : > { %v1729_v6 = vpack.c.bf16 %v1104_v2, %v1104_v2  ;;  %v1761_v7 = vpack.c.bf16 %v1136_v3, %v1136_v3  ;;  %v1034_v8 = vmul.f32 %v2090_v10, %v808_v4  ;;  %v1066_v9 = vmul.f32 %v2090_v10, %v936_v5 }
 0x122   : > { %v810_v11 = vpop.f32.mrf.mxu0  ;;  %v938_v13 = vpop.f32.mrf.mxu1 }
 0x123   : > { %1425 = vst.msk [vmem:[%s2105_s23 + $0x2c] sm:$0xf] %vm1413_vm1, %v1729_v6  ;;  %1457 = vst.msk [vmem:[%s2105_s23 + $0xac] sm:$0xf] %vm1413_vm1, %v1761_v7  ;;  %v1105_v14 = vadd.f32 %v2095_v12, %v1034_v8  ;;  %v1137_v15 = vadd.f32 %v2095_v12, %v1066_v9 }
 0x124   : > { %v811_v16 = vpop.f32.mrf.mxu0  ;;  %v939_v17 = vpop.f32.mrf.mxu1 }
 0x125   : > { %v1730_v18 = vpack.c.bf16 %v1105_v14, %v1105_v14  ;;  %v1762_v19 = vpack.c.bf16 %v1137_v15, %v1137_v15  ;;  %v1035_v20 = vmul.f32 %v2090_v10, %v811_v16  ;;  %v1067_v21 = vmul.f32 %v2090_v10, %v939_v17 }
 0x126   : > { %v813_v22 = vpop.f32.mrf.mxu0  ;;  %v941_v23 = vpop.f32.mrf.mxu1 }
 0x127   : > { %1426 = vst.msk [vmem:[%s2105_s23 + $0x30] sm:$0xf] %vm1413_vm1, %v1730_v18  ;;  %1458 = vst.msk [vmem:[%s2105_s23 + $0xb0] sm:$0xf] %vm1413_vm1, %v1762_v19  ;;  %v1106_v24 = vadd.f32 %v2095_v12, %v1035_v20  ;;  %v1138_v25 = vadd.f32 %v2095_v12, %v1067_v21 }
 0x128   : > { %v816_v26 = vpop.f32.mrf.mxu0  ;;  %v944_v27 = vpop.f32.mrf.mxu1 }
 0x129   : > { %v1731_v28 = vpack.c.bf16 %v1106_v24, %v1106_v24  ;;  %v1763_v29 = vpack.c.bf16 %v1138_v25, %v1138_v25  ;;  %v1036_v30 = vmul.f32 %v2090_v10, %v816_v26  ;;  %v1068_v31 = vmul.f32 %v2090_v10, %v944_v27 }
 0x12a   : > { %v818_v32 = vpop.f32.mrf.mxu0  ;;  %v946_v33 = vpop.f32.mrf.mxu1 }
 0x12b   : > { %1427 = vst.msk [vmem:[%s2105_s23 + $0x34] sm:$0xf] %vm1413_vm1, %v1731_v28  ;;  %1459 = vst.msk [vmem:[%s2105_s23 + $0xb4] sm:$0xf] %vm1413_vm1, %v1763_v29  ;;  %v1107_v34 = vadd.f32 %v2095_v12, %v1036_v30  ;;  %v1139_v35 = vadd.f32 %v2095_v12, %v1068_v31 }
 0x12c   : > { %v819_v36 = vpop.f32.mrf.mxu0  ;;  %v947_v37 = vpop.f32.mrf.mxu1 }
 0x12d   : > { %v1732_v38 = vpack.c.bf16 %v1107_v34, %v1107_v34  ;;  %v1764_v39 = vpack.c.bf16 %v1139_v35, %v1139_v35  ;;  %v1037_v40 = vmul.f32 %v2090_v10, %v819_v36  ;;  %v1069_v41 = vmul.f32 %v2090_v10, %v947_v37 }
 0x12e   : > { %v821_v42 = vpop.f32.mrf.mxu0  ;;  %v949_v43 = vpop.f32.mrf.mxu1 }
 0x12f   : > { %1428 = vst.msk [vmem:[%s2105_s23 + $0x38] sm:$0xf] %vm1413_vm1, %v1732_v38  ;;  %1460 = vst.msk [vmem:[%s2105_s23 + $0xb8] sm:$0xf] %vm1413_vm1, %v1764_v39  ;;  %v1108_v44 = vadd.f32 %v2095_v12, %v1037_v40  ;;  %v1140_v45 = vadd.f32 %v2095_v12, %v1069_v41 }
 0x130   : > { %v824_v46 = vpop.f32.mrf.mxu0  ;;  %v952_v47 = vpop.f32.mrf.mxu1 }
 0x131   : > { %v1733_v48 = vpack.c.bf16 %v1108_v44, %v1108_v44  ;;  %v1765_v49 = vpack.c.bf16 %v1140_v45, %v1140_v45  ;;  %v1038_v50 = vmul.f32 %v2090_v10, %v824_v46  ;;  %v1070_v51 = vmul.f32 %v2090_v10, %v952_v47 }
 0x132   : > { %v826_v52 = vpop.f32.mrf.mxu0  ;;  %v954_v53 = vpop.f32.mrf.mxu1 }
 0x133   : > { %1429 = vst.msk [vmem:[%s2105_s23 + $0x3c] sm:$0xf] %vm1413_vm1, %v1733_v48  ;;  %1461 = vst.msk [vmem:[%s2105_s23 + $0xbc] sm:$0xf] %vm1413_vm1, %v1765_v49  ;;  %v1109_v54 = vadd.f32 %v2095_v12, %v1038_v50  ;;  %v1141_v55 = vadd.f32 %v2095_v12, %v1070_v51 }
 0x134   : > { %v827_v56 = vpop.f32.mrf.mxu0  ;;  %v955_v57 = vpop.f32.mrf.mxu1 }
 0x135   : > { %v1734_v58 = vpack.c.bf16 %v1109_v54, %v1109_v54  ;;  %v1766_v59 = vpack.c.bf16 %v1141_v55, %v1141_v55  ;;  %v1039_v60 = vmul.f32 %v2090_v10, %v827_v56  ;;  %v1071_v61 = vmul.f32 %v2090_v10, %v955_v57 }
 0x136   : > { %v829_v62 = vpop.f32.mrf.mxu0  ;;  %v957_v63 = vpop.f32.mrf.mxu1 }
 0x137   : > { %1430 = vst.msk [vmem:[%s2105_s23 + $0x40] sm:$0xf] %vm1413_vm1, %v1734_v58  ;;  %1462 = vst.msk [vmem:[%s2105_s23 + $0xc0] sm:$0xf] %vm1413_vm1, %v1766_v59  ;;  %v1110_v0 = vadd.f32 %v2095_v12, %v1039_v60  ;;  %v1142_v1 = vadd.f32 %v2095_v12, %v1071_v61 }
 0x138   : > { %v832_v2 = vpop.f32.mrf.mxu0  ;;  %v960_v3 = vpop.f32.mrf.mxu1 }
 0x139   : > { %v1735_v4 = vpack.c.bf16 %v1110_v0, %v1110_v0  ;;  %v1767_v5 = vpack.c.bf16 %v1142_v1, %v1142_v1  ;;  %v1040_v6 = vmul.f32 %v2090_v10, %v832_v2  ;;  %v1072_v7 = vmul.f32 %v2090_v10, %v960_v3 }
 0x13a   : > { %v834_v8 = vpop.f32.mrf.mxu0  ;;  %v962_v9 = vpop.f32.mrf.mxu1 }
 0x13b   : > { %1431 = vst.msk [vmem:[%s2105_s23 + $0x44] sm:$0xf] %vm1413_vm1, %v1735_v4  ;;  %1463 = vst.msk [vmem:[%s2105_s23 + $0xc4] sm:$0xf] %vm1413_vm1, %v1767_v5  ;;  %v1111_v11 = vadd.f32 %v2095_v12, %v1040_v6  ;;  %v1143_v13 = vadd.f32 %v2095_v12, %v1072_v7 }
 0x13c   : > { %v835_v14 = vpop.f32.mrf.mxu0  ;;  %v963_v15 = vpop.f32.mrf.mxu1 }
 0x13d   : > { %v1736_v16 = vpack.c.bf16 %v1111_v11, %v1111_v11  ;;  %v1768_v17 = vpack.c.bf16 %v1143_v13, %v1143_v13  ;;  %v1041_v18 = vmul.f32 %v2090_v10, %v835_v14  ;;  %v1073_v19 = vmul.f32 %v2090_v10, %v963_v15 }
 0x13e   : > { %v837_v20 = vpop.f32.mrf.mxu0  ;;  %v965_v21 = vpop.f32.mrf.mxu1 }
 0x13f   : > { %1432 = vst.msk [vmem:[%s2105_s23 + $0x48] sm:$0xf] %vm1413_vm1, %v1736_v16  ;;  %1464 = vst.msk [vmem:[%s2105_s23 + $0xc8] sm:$0xf] %vm1413_vm1, %v1768_v17  ;;  %v1112_v22 = vadd.f32 %v2095_v12, %v1041_v18  ;;  %v1144_v23 = vadd.f32 %v2095_v12, %v1073_v19 }
 0x140   : > { %v840_v24 = vpop.f32.mrf.mxu0  ;;  %v968_v25 = vpop.f32.mrf.mxu1 }
 0x141   : > { %v1737_v26 = vpack.c.bf16 %v1112_v22, %v1112_v22  ;;  %v1769_v27 = vpack.c.bf16 %v1144_v23, %v1144_v23  ;;  %v1042_v28 = vmul.f32 %v2090_v10, %v840_v24  ;;  %v1074_v29 = vmul.f32 %v2090_v10, %v968_v25 }
 0x142   : > { %v842_v30 = vpop.f32.mrf.mxu0  ;;  %v970_v31 = vpop.f32.mrf.mxu1 }
 0x143   : > { %1433 = vst.msk [vmem:[%s2105_s23 + $0x4c] sm:$0xf] %vm1413_vm1, %v1737_v26  ;;  %1465 = vst.msk [vmem:[%s2105_s23 + $0xcc] sm:$0xf] %vm1413_vm1, %v1769_v27  ;;  %v1113_v32 = vadd.f32 %v2095_v12, %v1042_v28  ;;  %v1145_v33 = vadd.f32 %v2095_v12, %v1074_v29 }
 0x144   : > { %v843_v34 = vpop.f32.mrf.mxu0  ;;  %v971_v35 = vpop.f32.mrf.mxu1 }
 0x145   : > { %v1738_v36 = vpack.c.bf16 %v1113_v32, %v1113_v32  ;;  %v1770_v37 = vpack.c.bf16 %v1145_v33, %v1145_v33  ;;  %v1043_v38 = vmul.f32 %v2090_v10, %v843_v34  ;;  %v1075_v39 = vmul.f32 %v2090_v10, %v971_v35 }
 0x146   : > { %v845_v40 = vpop.f32.mrf.mxu0  ;;  %v973_v41 = vpop.f32.mrf.mxu1 }
 0x147   : > { %1434 = vst.msk [vmem:[%s2105_s23 + $0x50] sm:$0xf] %vm1413_vm1, %v1738_v36  ;;  %1466 = vst.msk [vmem:[%s2105_s23 + $0xd0] sm:$0xf] %vm1413_vm1, %v1770_v37  ;;  %v1114_v42 = vadd.f32 %v2095_v12, %v1043_v38  ;;  %v1146_v43 = vadd.f32 %v2095_v12, %v1075_v39 }
 0x148   : > { %v848_v44 = vpop.f32.mrf.mxu0  ;;  %v976_v45 = vpop.f32.mrf.mxu1 }
 0x149   : > { %v1739_v46 = vpack.c.bf16 %v1114_v42, %v1114_v42  ;;  %v1771_v47 = vpack.c.bf16 %v1146_v43, %v1146_v43  ;;  %v1044_v48 = vmul.f32 %v2090_v10, %v848_v44  ;;  %v1076_v49 = vmul.f32 %v2090_v10, %v976_v45 }
 0x14a   : > { %v850_v50 = vpop.f32.mrf.mxu0  ;;  %v978_v51 = vpop.f32.mrf.mxu1 }
 0x14b   : > { %1435 = vst.msk [vmem:[%s2105_s23 + $0x54] sm:$0xf] %vm1413_vm1, %v1739_v46  ;;  %1467 = vst.msk [vmem:[%s2105_s23 + $0xd4] sm:$0xf] %vm1413_vm1, %v1771_v47  ;;  %v1115_v52 = vadd.f32 %v2095_v12, %v1044_v48  ;;  %v1147_v53 = vadd.f32 %v2095_v12, %v1076_v49 }
 0x14c   : > { %v851_v54 = vpop.f32.mrf.mxu0  ;;  %v979_v55 = vpop.f32.mrf.mxu1 }
 0x14d   : > { %v1740_v56 = vpack.c.bf16 %v1115_v52, %v1115_v52  ;;  %v1772_v57 = vpack.c.bf16 %v1147_v53, %v1147_v53  ;;  %v1045_v58 = vmul.f32 %v2090_v10, %v851_v54  ;;  %v1077_v59 = vmul.f32 %v2090_v10, %v979_v55 }
 0x14e   : > { %v853_v60 = vpop.f32.mrf.mxu0  ;;  %v981_v61 = vpop.f32.mrf.mxu1 }
 0x14f   : > { %1436 = vst.msk [vmem:[%s2105_s23 + $0x58] sm:$0xf] %vm1413_vm1, %v1740_v56  ;;  %1468 = vst.msk [vmem:[%s2105_s23 + $0xd8] sm:$0xf] %vm1413_vm1, %v1772_v57  ;;  %v1116_v62 = vadd.f32 %v2095_v12, %v1045_v58  ;;  %v1148_v63 = vadd.f32 %v2095_v12, %v1077_v59 }
 0x150   : > { %v856_v0 = vpop.f32.mrf.mxu0  ;;  %v984_v1 = vpop.f32.mrf.mxu1 }
 0x151   : > { %v1741_v2 = vpack.c.bf16 %v1116_v62, %v1116_v62  ;;  %v1773_v3 = vpack.c.bf16 %v1148_v63, %v1148_v63  ;;  %v1046_v4 = vmul.f32 %v2090_v10, %v856_v0  ;;  %v1078_v5 = vmul.f32 %v2090_v10, %v984_v1 }
 0x152   : > { %v858_v6 = vpop.f32.mrf.mxu0  ;;  %v986_v7 = vpop.f32.mrf.mxu1 }
 0x153   : > { %1437 = vst.msk [vmem:[%s2105_s23 + $0x5c] sm:$0xf] %vm1413_vm1, %v1741_v2  ;;  %1469 = vst.msk [vmem:[%s2105_s23 + $0xdc] sm:$0xf] %vm1413_vm1, %v1773_v3  ;;  %v1117_v8 = vadd.f32 %v2095_v12, %v1046_v4  ;;  %v1149_v9 = vadd.f32 %v2095_v12, %v1078_v5 }
 0x154   : > { %v859_v11 = vpop.f32.mrf.mxu0  ;;  %v987_v13 = vpop.f32.mrf.mxu1 }
 0x155   : > { %v1742_v14 = vpack.c.bf16 %v1117_v8, %v1117_v8  ;;  %v1774_v15 = vpack.c.bf16 %v1149_v9, %v1149_v9  ;;  %v1047_v16 = vmul.f32 %v2090_v10, %v859_v11  ;;  %v1079_v17 = vmul.f32 %v2090_v10, %v987_v13 }
 0x156   : > { %v861_v18 = vpop.f32.mrf.mxu0  ;;  %v989_v19 = vpop.f32.mrf.mxu1 }
 0x157   : > { %1438 = vst.msk [vmem:[%s2105_s23 + $0x60] sm:$0xf] %vm1413_vm1, %v1742_v14  ;;  %1470 = vst.msk [vmem:[%s2105_s23 + $0xe0] sm:$0xf] %vm1413_vm1, %v1774_v15  ;;  %v1118_v20 = vadd.f32 %v2095_v12, %v1047_v16  ;;  %v1150_v21 = vadd.f32 %v2095_v12, %v1079_v17 }
 0x158   : > { %v864_v22 = vpop.f32.mrf.mxu0  ;;  %v992_v23 = vpop.f32.mrf.mxu1 }
 0x159   : > { %v1743_v24 = vpack.c.bf16 %v1118_v20, %v1118_v20  ;;  %v1775_v25 = vpack.c.bf16 %v1150_v21, %v1150_v21  ;;  %v1048_v26 = vmul.f32 %v2090_v10, %v864_v22  ;;  %v1080_v27 = vmul.f32 %v2090_v10, %v992_v23 }
 0x15a   : > { %v866_v28 = vpop.f32.mrf.mxu0  ;;  %v994_v29 = vpop.f32.mrf.mxu1 }
 0x15b   : > { %1439 = vst.msk [vmem:[%s2105_s23 + $0x64] sm:$0xf] %vm1413_vm1, %v1743_v24  ;;  %1471 = vst.msk [vmem:[%s2105_s23 + $0xe4] sm:$0xf] %vm1413_vm1, %v1775_v25  ;;  %v1119_v30 = vadd.f32 %v2095_v12, %v1048_v26  ;;  %v1151_v31 = vadd.f32 %v2095_v12, %v1080_v27 }
 0x15c   : > { %v867_v32 = vpop.f32.mrf.mxu0  ;;  %v995_v33 = vpop.f32.mrf.mxu1 }
 0x15d   : > { %v1744_v34 = vpack.c.bf16 %v1119_v30, %v1119_v30  ;;  %v1776_v35 = vpack.c.bf16 %v1151_v31, %v1151_v31  ;;  %v1049_v36 = vmul.f32 %v2090_v10, %v867_v32  ;;  %v1081_v37 = vmul.f32 %v2090_v10, %v995_v33 }
 0x15e   : > { %v869_v38 = vpop.f32.mrf.mxu0  ;;  %v997_v39 = vpop.f32.mrf.mxu1 }
 0x15f   : > { %1440 = vst.msk [vmem:[%s2105_s23 + $0x68] sm:$0xf] %vm1413_vm1, %v1744_v34  ;;  %1472 = vst.msk [vmem:[%s2105_s23 + $0xe8] sm:$0xf] %vm1413_vm1, %v1776_v35  ;;  %v1120_v40 = vadd.f32 %v2095_v12, %v1049_v36  ;;  %v1152_v41 = vadd.f32 %v2095_v12, %v1081_v37 }
 0x160   : > { %v872_v42 = vpop.f32.mrf.mxu0  ;;  %v1000_v43 = vpop.f32.mrf.mxu1 }
 0x161   : > { %v1745_v44 = vpack.c.bf16 %v1120_v40, %v1120_v40  ;;  %v1777_v45 = vpack.c.bf16 %v1152_v41, %v1152_v41  ;;  %v1050_v46 = vmul.f32 %v2090_v10, %v872_v42  ;;  %v1082_v47 = vmul.f32 %v2090_v10, %v1000_v43 }
 0x162   : > { %v874_v48 = vpop.f32.mrf.mxu0  ;;  %v1002_v49 = vpop.f32.mrf.mxu1 }
 0x163   : > { %1441 = vst.msk [vmem:[%s2105_s23 + $0x6c] sm:$0xf] %vm1413_vm1, %v1745_v44  ;;  %1473 = vst.msk [vmem:[%s2105_s23 + $0xec] sm:$0xf] %vm1413_vm1, %v1777_v45  ;;  %v1121_v50 = vadd.f32 %v2095_v12, %v1050_v46  ;;  %v1153_v51 = vadd.f32 %v2095_v12, %v1082_v47 }
 0x164   : > { %v875_v52 = vpop.f32.mrf.mxu0  ;;  %v1003_v53 = vpop.f32.mrf.mxu1 }
 0x165   : > { %v1746_v54 = vpack.c.bf16 %v1121_v50, %v1121_v50  ;;  %v1778_v55 = vpack.c.bf16 %v1153_v51, %v1153_v51  ;;  %v1051_v56 = vmul.f32 %v2090_v10, %v875_v52  ;;  %v1083_v57 = vmul.f32 %v2090_v10, %v1003_v53 }
 0x166   : > { %v877_v58 = vpop.f32.mrf.mxu0  ;;  %v1005_v59 = vpop.f32.mrf.mxu1 }
 0x167   : > { %1442 = vst.msk [vmem:[%s2105_s23 + $0x70] sm:$0xf] %vm1413_vm1, %v1746_v54  ;;  %1474 = vst.msk [vmem:[%s2105_s23 + $0xf0] sm:$0xf] %vm1413_vm1, %v1778_v55  ;;  %v1122_v60 = vadd.f32 %v2095_v12, %v1051_v56  ;;  %v1154_v61 = vadd.f32 %v2095_v12, %v1083_v57 }
 0x168   : > { %v880_v62 = vpop.f32.mrf.mxu0  ;;  %v1008_v63 = vpop.f32.mrf.mxu1 }
 0x169   : > { %v1747_v0 = vpack.c.bf16 %v1122_v60, %v1122_v60  ;;  %v1779_v1 = vpack.c.bf16 %v1154_v61, %v1154_v61  ;;  %v1052_v2 = vmul.f32 %v2090_v10, %v880_v62  ;;  %v1084_v3 = vmul.f32 %v2090_v10, %v1008_v63 }
 0x16a   : > { %v882_v4 = vpop.f32.mrf.mxu0  ;;  %v1010_v5 = vpop.f32.mrf.mxu1 }
 0x16b   : > { %1443 = vst.msk [vmem:[%s2105_s23 + $0x74] sm:$0xf] %vm1413_vm1, %v1747_v0  ;;  %1475 = vst.msk [vmem:[%s2105_s23 + $0xf4] sm:$0xf] %vm1413_vm1, %v1779_v1  ;;  %v1123_v6 = vadd.f32 %v2095_v12, %v1052_v2  ;;  %v1155_v7 = vadd.f32 %v2095_v12, %v1084_v3 }
 0x16c   : > { %v883_v8 = vpop.f32.mrf.mxu0  ;;  %v1011_v9 = vpop.f32.mrf.mxu1 }
 0x16d   : > { %v1748_v11 = vpack.c.bf16 %v1123_v6, %v1123_v6  ;;  %v1780_v13 = vpack.c.bf16 %v1155_v7, %v1155_v7  ;;  %v1053_v14 = vmul.f32 %v2090_v10, %v883_v8  ;;  %v1085_v15 = vmul.f32 %v2090_v10, %v1011_v9 }
 0x16e   : > { %v885_v16 = vpop.f32.mrf.mxu0  ;;  %v1013_v17 = vpop.f32.mrf.mxu1 }
 0x16f   : > { %1444 = vst.msk [vmem:[%s2105_s23 + $0x78] sm:$0xf] %vm1413_vm1, %v1748_v11  ;;  %1476 = vst.msk [vmem:[%s2105_s23 + $0xf8] sm:$0xf] %vm1413_vm1, %v1780_v13  ;;  %v1124_v18 = vadd.f32 %v2095_v12, %v1053_v14  ;;  %v1156_v19 = vadd.f32 %v2095_v12, %v1085_v15 }
 0x171   : > { %v1749_v20 = vpack.c.bf16 %v1124_v18, %v1124_v18  ;;  %v1781_v21 = vpack.c.bf16 %v1156_v19, %v1156_v19 }
 0x173   : > { %1445 = vst.msk [vmem:[%s2105_s23 + $0x7c] sm:$0xf] %vm1413_vm1, %v1749_v20  ;;  %1477 = vst.msk [vmem:[%s2105_s23 + $0xfc] sm:$0xf] %vm1413_vm1, %v1781_v21 }
 0x174 PF: > { %s14_s15 = sadd.s32 1, %s1920_s15  }
 0x175   : > { %p11_p4 = scmp.ge.s32.totalorder %s14_s15, 6  }
 0x177   :  { %13 = sbr.rel (!%p11_p4) target bundleno = 1 (0x1), region = 66 }

</bundles_post_ra>
